<compile_context>
chip_gen: v7x
topology: tpu7x:2x2x1
jax: 0.10.0
libtpu: 0.0.40
codegen_flags: <defaults>
</compile_context>

<pallas_src>
import numpy as np

import jax
import jax.numpy as jnp
from jax.experimental import pallas as pl
from jax.experimental.pallas import tpu as pltpu


Z_DIM = 16
H_DIM = 128  # fixed by the architecture (8 filters * 4 * 4) -> 28x28 inputs


# ------------------------------------------------------------- param init ---

def init_params(key):
    ks = jax.random.split(key, 10)

    def conv(k, cout, cin):
        return (0.1 * jax.random.normal(k, (cout, cin, 3, 3), jnp.float32),
                jnp.zeros((cout,), jnp.float32))

    def lin(k, out, inp):
        return (0.1 * jax.random.normal(k, (out, inp), jnp.float32),
                jnp.zeros((out,), jnp.float32))

    p = {}
    p["ec1_w"], p["ec1_b"] = conv(ks[0], 16, 1)
    p["ec2_w"], p["ec2_b"] = conv(ks[1], 8, 16)
    p["ec3_w"], p["ec3_b"] = conv(ks[2], 8, 8)
    p["fc1_w"], p["fc1_b"] = lin(ks[3], Z_DIM, H_DIM)
    p["fc2_w"], p["fc2_b"] = lin(ks[4], Z_DIM, H_DIM)
    p["fc3_w"], p["fc3_b"] = lin(ks[5], H_DIM, Z_DIM)
    p["dc1_w"], p["dc1_b"] = conv(ks[6], 8, 8)
    p["dc2_w"], p["dc2_b"] = conv(ks[7], 8, 8)
    p["dc3_w"], p["dc3_b"] = conv(ks[8], 16, 8)
    p["dc4_w"], p["dc4_b"] = conv(ks[9], 1, 16)
    return p


# ------------------------------------------------- one-time weight packing ---

def pack_params(params, batch):
    """Pre-pack all weights into MXU-ready constants. Runs ONCE, off the hot path.

    conv  -> S   (3, B*Ho, B*H)   row-shift selection per kernel row ki
             WK  (3, W*Cin, Wo*Cout)  banded weight (column taps + zero pad folded in)
             bias(1, Wo*Cout)
    pool  -> R   (2, B*Ho, B*H), Csel (2, W*C, Wo*C)  (ZeroPad2d folded into pool 3)
    up2   -> UR  (B*2H, B*H),   UC (W*C, 2W*C)
    flatten/unflatten -> 0/1 permutation slabs matching torch NCHW flatten order.
    """
    p = {k: np.asarray(v, np.float32) for k, v in params.items()}

    def conv_pack(w, b, H, W, pad):
        Cout, Cin, KH, KW = w.shape
        Ho, Wo = H + 2 * pad - KH + 1, W + 2 * pad - KW + 1
        S = np.zeros((KH, batch * Ho, batch * H), np.float32)
        WK = np.zeros((KH, W * Cin, Wo * Cout), np.float32)
        for ki in range(KH):
            for i in range(Ho):
                src = i + ki - pad
                if 0 <= src < H:
                    for bb in range(batch):
                        S[ki, bb * Ho + i, bb * H + src] = 1.0
            for kj in range(KW):
                for j in range(Wo):
                    src = j + kj - pad
                    if 0 <= src < W:
                        WK[ki, src * Cin:(src + 1) * Cin,
                           j * Cout:(j + 1) * Cout] += w[:, :, ki, kj].T
        bias = np.tile(b, Wo).reshape(1, Wo * Cout)
        return [S, WK, bias]

    def pool_pack(H, W, C, pad_tl=False):
        off = 1 if pad_tl else 0          # ZeroPad2d((1,0,1,0)): pad top/left by 1
        Ho, Wo = (H + off) // 2, (W + off) // 2
        R = np.zeros((2, batch * Ho, batch * H), np.float32)
        Csel = np.zeros((2, W * C, Wo * C), np.float32)
        for d in range(2):
            for i in range(Ho):
                src = 2 * i + d - off
                if 0 <= src < H:
                    for bb in range(batch):
                        R[d, bb * Ho + i, bb * H + src] = 1.0
            for j in range(Wo):
                src = 2 * j + d - off
                if 0 <= src < W:
                    for c in range(C):
                        Csel[d, src * C + c, j * C + c] = 1.0
        return [R, Csel]

    def up_pack(H, W, C):
        UR = np.zeros((batch * 2 * H, batch * H), np.float32)
        UC = np.zeros((W * C, 2 * W * C), np.float32)
        for bb in range(batch):
            for i in range(H):
                UR[bb * 2 * H + 2 * i, bb * H + i] = 1.0
                UR[bb * 2 * H + 2 * i + 1, bb * H + i] = 1.0
        for j in range(W):
            for c in range(C):
                UC[j * C + c, 2 * j * C + c] = 1.0
                UC[j * C + c, (2 * j + 1) * C + c] = 1.0
        return [UR, UC]

    # Flatten / UnFlatten between kernel slab layout (col = j*8 + c) and torch's
    # NCHW flatten index (c*16 + i*4 + j), for the (8, 4, 4) bottleneck tensor.
    FSEL = np.zeros((4, batch, batch * 4), np.float32)
    FPERM = np.zeros((4, 32, 128), np.float32)
    ESEL = np.zeros((4, batch * 4, batch), np.float32)
    QPERM = np.zeros((4, 128, 32), np.float32)
    for i in range(4):
        for bb in range(batch):
            FSEL[i, bb, bb * 4 + i] = 1.0
            ESEL[i, bb * 4 + i, bb] = 1.0
        for j in range(4):
            for c in range(8):
                FPERM[i, j * 8 + c, c * 16 + i * 4 + j] = 1.0
                QPERM[i, c * 16 + i * 4 + j, j * 8 + c] = 1.0

    ops = []
    ops += conv_pack(p["ec1_w"], p["ec1_b"], 28, 28, 1)   # -> (B*28, 28*16)
    ops += pool_pack(28, 28, 16)                          # -> (B*14, 14*16)
    ops += conv_pack(p["ec2_w"], p["ec2_b"], 14, 14, 1)   # -> (B*14, 14*8)
    ops += pool_pack(14, 14, 8)                           # -> (B*7, 7*8)
    ops += conv_pack(p["ec3_w"], p["ec3_b"], 7, 7, 1)     # -> (B*7, 7*8)
    ops += pool_pack(7, 7, 8, pad_tl=True)                # ZeroPad2d + pool -> (B*4, 4*8)
    ops += [FSEL, FPERM]
    ops += [p["fc1_w"].T, p["fc1_b"].reshape(1, -1),      # (128,16), (1,16)
            p["fc2_w"].T, p["fc2_b"].reshape(1, -1),
            p["fc3_w"].T, p["fc3_b"].reshape(1, -1)]      # (16,128), (1,128)
    ops += [ESEL, QPERM]
    ops += conv_pack(p["dc1_w"], p["dc1_b"], 4, 4, 1)     # -> (B*4, 4*8)
    ops += up_pack(4, 4, 8)                               # -> (B*8, 8*8)
    ops += conv_pack(p["dc2_w"], p["dc2_b"], 8, 8, 1)     # -> (B*8, 8*8)
    ops += up_pack(8, 8, 8)                               # -> (B*16, 16*8)
    ops += conv_pack(p["dc3_w"], p["dc3_b"], 16, 16, 0)   # valid conv -> (B*14, 14*16)
    ops += up_pack(14, 14, 16)                            # -> (B*28, 28*16)
    ops += conv_pack(p["dc4_w"], p["dc4_b"], 28, 28, 1)   # -> (B*28, 28*1)
    return [jnp.asarray(a) for a in ops]


# -------------------------------------------------------- the fused kernel ---

def _vae_kernel(*refs):
    (x_ref, eps_ref,
     e1_s, e1_w, e1_b, p1_r, p1_c,
     e2_s, e2_w, e2_b, p2_r, p2_c,
     e3_s, e3_w, e3_b, p3_r, p3_c,
     fsel, fperm,
     w1t, b1, w2t, b2, w3t, b3,
     esel, qperm,
     d1_s, d1_w, d1_b, u1_r, u1_c,
     d2_s, d2_w, d2_b, u2_r, u2_c,
     d3_s, d3_w, d3_b, u3_r, u3_c,
     d4_s, d4_w, d4_b,
     gen_ref, mu_ref, logvar_ref, z_ref) = refs

    def dot(a, b):
        return jnp.dot(a, b, preferred_element_type=jnp.float32)

    def conv(a, s_ref, w_ref, bias_ref, act):
        # 3x3 conv = sum over 3 kernel rows of (row-shift) @ banded-weight.
        y = dot(dot(s_ref[0], a), w_ref[0])
        for ki in (1, 2):
            y = y + dot(dot(s_ref[ki], a), w_ref[ki])
        y = y + bias_ref[...]
        if act == "relu":
            return jnp.maximum(y, 0.0)
        return jax.nn.sigmoid(y)

    def pool(a, r_ref, c_ref):
        t = jnp.maximum(dot(r_ref[0], a), dot(r_ref[1], a))
        return jnp.maximum(dot(t, c_ref[0]), dot(t, c_ref[1]))

    def up2(a, ur_ref, uc_ref):
        return dot(dot(ur_ref[...], a), uc_ref[...])

    # ---- encoder ----
    a = conv(x_ref[...], e1_s, e1_w, e1_b, "relu")     # (B*28, 448)
    a = pool(a, p1_r, p1_c)                            # (B*14, 224)
    a = conv(a, e2_s, e2_w, e2_b, "relu")              # (B*14, 112)
    a = pool(a, p2_r, p2_c)                            # (B*7, 56)
    a = conv(a, e3_s, e3_w, e3_b, "relu")              # (B*7, 56)
    a = pool(a, p3_r, p3_c)                            # ZeroPad2d + pool -> (B*4, 32)

    # ---- Flatten (NCHW order) -> (B, 128) ----
    h = dot(dot(fsel[0], a), fperm[0])
    for i in (1, 2, 3):
        h = h + dot(dot(fsel[i], a), fperm[i])

    # ---- bottleneck (fc1 + fc2 + reparameterize + fc3, fused) ----
    mu = dot(h, w1t[...]) + b1[...]                    # (B, 16)
    logvar = dot(h, w2t[...]) + b2[...]                # (B, 16)
    z = mu + jnp.exp(0.5 * logvar) * eps_ref[...]      # (B, 16)
    hd = dot(z, w3t[...]) + b3[...]                    # (B, 128)

    # ---- UnFlatten -> (B*4, 32) ----
    d = dot(esel[0], dot(hd, qperm[0]))
    for i in (1, 2, 3):
        d = d + dot(esel[i], dot(hd, qperm[i]))

    # ---- decoder ----
    d = conv(d, d1_s, d1_w, d1_b, "relu")              # (B*4, 32)
    d = up2(d, u1_r, u1_c)                             # (B*8, 64)
    d = conv(d, d2_s, d2_w, d2_b, "relu")              # (B*8, 64)
    d = up2(d, u2_r, u2_c)                             # (B*16, 128)
    d = conv(d, d3_s, d3_w, d3_b, "relu")              # (B*14, 224)
    d = up2(d, u3_r, u3_c)                             # (B*28, 448)
    d = conv(d, d4_s, d4_w, d4_b, "sigmoid")           # (B*28, 28)

    gen_ref[...] = d
    mu_ref[...] = mu
    logvar_ref[...] = logvar
    z_ref[...] = z


def convvae_forward(packed, x_nchw, eps):
    B, C, H, W = x_nchw.shape
    assert (C, H, W) == (1, 28, 28)  # h_dim = 128 => MNIST-sized inputs
    x2 = x_nchw.astype(jnp.float32).reshape(B * H, W)   # contiguous, free
    operands = [x2, eps.astype(jnp.float32)] + list(packed)

    out_shape = (
        jax.ShapeDtypeStruct((B * 28, 28), jnp.float32),   # generated image rows
        jax.ShapeDtypeStruct((B, Z_DIM), jnp.float32),     # mu
        jax.ShapeDtypeStruct((B, Z_DIM), jnp.float32),     # logvar
        jax.ShapeDtypeStruct((B, Z_DIM), jnp.float32),     # z
    )

    def full_spec(shape):
        nd = len(shape)
        return pl.BlockSpec(shape, lambda i, _nd=nd: (0,) * _nd)

    gen, mu, logvar, z = pl.pallas_call(
        _vae_kernel,
        out_shape=out_shape,
        grid=(1,),
        in_specs=[full_spec(op.shape) for op in operands],
        out_specs=tuple(full_spec(s.shape) for s in out_shape),
        compiler_params=pltpu.CompilerParams(
            dimension_semantics=("arbitrary",)),
    )(*operands)

    generated_x = gen.reshape(B, 1, 28, 28)  # contiguous -> metadata-only
    return generated_x, mu, logvar, z


# --------------------------------------- pure-JAX reference (for self-check) ---

def _reference_forward(params, x_nchw, eps):
    prec = jax.lax.Precision.HIGHEST

    def conv2d(x, w, b, pad, act=None):
        B, H, W, Cin = x.shape
        Cout, _, KH, KW = w.shape
        xp = jnp.pad(x, ((0, 0), (pad, pad), (pad, pad), (0, 0)))
        Ho, Wo = H + 2 * pad - KH + 1, W + 2 * pad - KW + 1
        patches = jnp.concatenate(
            [xp[:, i:i + Ho, j:j + Wo, :] for i in range(KH) for j in range(KW)],
            axis=-1)
        X = patches.reshape(B * Ho * Wo, KH * KW * Cin)
        Wm = jnp.transpose(w, (2, 3, 1, 0)).reshape(KH * KW * Cin, Cout)
        y = jnp.dot(X, Wm, precision=prec) + b
        if act == "relu":
            y = jnp.maximum(y, 0.0)
        elif act == "sigmoid":
            y = jax.nn.sigmoid(y)
        return y.reshape(B, Ho, Wo, Cout)

    def maxpool2(x):
        B, H, W, C = x.shape
        return x.reshape(B, H // 2, 2, W // 2, 2, C).max(axis=(2, 4))

    def up2(x):
        return jnp.repeat(jnp.repeat(x, 2, axis=1), 2, axis=2)

    def linear(h, w, b):
        return jnp.dot(h, w.T, precision=prec) + b

    B = x_nchw.shape[0]
    x = jnp.transpose(x_nchw, (0, 2, 3, 1))
    x = conv2d(x, params["ec1_w"], params["ec1_b"], 1, "relu")
    x = maxpool2(x)
    x = conv2d(x, params["ec2_w"], params["ec2_b"], 1, "relu")
    x = maxpool2(x)
    x = conv2d(x, params["ec3_w"], params["ec3_b"], 1, "relu")
    x = jnp.pad(x, ((0, 0), (1, 0), (1, 0), (0, 0)))   # ZeroPad2d((1,0,1,0))
    x = maxpool2(x)
    h = jnp.transpose(x, (0, 3, 1, 2)).reshape(B, -1)
    mu = linear(h, params["fc1_w"], params["fc1_b"])
    logvar = linear(h, params["fc2_w"], params["fc2_b"])
    z = mu + jnp.exp(0.5 * logvar) * eps
    y = linear(z, params["fc3_w"], params["fc3_b"]).reshape(B, 8, 4, 4)
    y = jnp.transpose(y, (0, 2, 3, 1))
    y = conv2d(y, params["dc1_w"], params["dc1_b"], 1, "relu")
    y = up2(y)
    y = conv2d(y, params["dc2_w"], params["dc2_b"], 1, "relu")
    y = up2(y)
    y = conv2d(y, params["dc3_w"], params["dc3_b"], 0, "relu")
    y = up2(y)
    y = conv2d(y, params["dc4_w"], params["dc4_b"], 1, "sigmoid")
    return jnp.transpose(y, (0, 3, 1, 2)), mu, logvar, z


# --------------------------------------------------------------------- main --

if __name__ == "__main__":
    key = jax.random.PRNGKey(0)
    k_param, k_x, k_eps = jax.random.split(key, 3)

    B = 2
    x = jax.random.normal(k_x, (B, 1, 28, 28), jnp.float32)
    eps = jax.random.normal(k_eps, (B, Z_DIM), jnp.float32)

    params = init_params(k_param)
    packed = pack_params(params, B)          # one-time weight packing

    fwd = jax.jit(convvae_forward)
    generated_x, mu, logvar, z = fwd(packed, x, eps)
    jax.block_until_ready((generated_x, mu, logvar, z))

    assert generated_x.shape == (B, 1, 28, 28)
    assert mu.shape == (B, Z_DIM) and logvar.shape == (B, Z_DIM) and z.shape == (B, Z_DIM)
    assert bool(jnp.all(generated_x >= 0.0)) and bool(jnp.all(generated_x <= 1.0))

    # numerical self-check against a plain-JAX reference of the same module
    r_gen, r_mu, r_logvar, r_z = _reference_forward(params, x, eps)
    for got, want in ((generated_x, r_gen), (mu, r_mu), (logvar, r_logvar), (z, r_z)):
        assert bool(jnp.allclose(got, want, atol=3e-2, rtol=3e-2)), \
            float(jnp.max(jnp.abs(got - want)))

    print("KERNEL_OK")
</pallas_src>

<mosaic_0001>
module attributes {stable_mosaic.version = 11 : i64} {
  func.func @_vae_kernel(%arg0: i32, %arg1: memref<56x28xf32, #tpu.memory_space<vmem>>, %arg2: memref<2x16xf32, #tpu.memory_space<vmem>>, %arg3: memref<3x56x56xf32, #tpu.memory_space<vmem>>, %arg4: memref<3x28x448xf32, #tpu.memory_space<vmem>>, %arg5: memref<1x448xf32, #tpu.memory_space<vmem>>, %arg6: memref<2x28x56xf32, #tpu.memory_space<vmem>>, %arg7: memref<2x448x224xf32, #tpu.memory_space<vmem>>, %arg8: memref<3x28x28xf32, #tpu.memory_space<vmem>>, %arg9: memref<3x224x112xf32, #tpu.memory_space<vmem>>, %arg10: memref<1x112xf32, #tpu.memory_space<vmem>>, %arg11: memref<2x14x28xf32, #tpu.memory_space<vmem>>, %arg12: memref<2x112x56xf32, #tpu.memory_space<vmem>>, %arg13: memref<3x14x14xf32, #tpu.memory_space<vmem>>, %arg14: memref<3x56x56xf32, #tpu.memory_space<vmem>>, %arg15: memref<1x56xf32, #tpu.memory_space<vmem>>, %arg16: memref<2x8x14xf32, #tpu.memory_space<vmem>>, %arg17: memref<2x56x32xf32, #tpu.memory_space<vmem>>, %arg18: memref<4x2x8xf32, #tpu.memory_space<vmem>>, %arg19: memref<4x32x128xf32, #tpu.memory_space<vmem>>, %arg20: memref<128x16xf32, #tpu.memory_space<vmem>>, %arg21: memref<1x16xf32, #tpu.memory_space<vmem>>, %arg22: memref<128x16xf32, #tpu.memory_space<vmem>>, %arg23: memref<1x16xf32, #tpu.memory_space<vmem>>, %arg24: memref<16x128xf32, #tpu.memory_space<vmem>>, %arg25: memref<1x128xf32, #tpu.memory_space<vmem>>, %arg26: memref<4x8x2xf32, #tpu.memory_space<vmem>>, %arg27: memref<4x128x32xf32, #tpu.memory_space<vmem>>, %arg28: memref<3x8x8xf32, #tpu.memory_space<vmem>>, %arg29: memref<3x32x32xf32, #tpu.memory_space<vmem>>, %arg30: memref<1x32xf32, #tpu.memory_space<vmem>>, %arg31: memref<16x8xf32, #tpu.memory_space<vmem>>, %arg32: memref<32x64xf32, #tpu.memory_space<vmem>>, %arg33: memref<3x16x16xf32, #tpu.memory_space<vmem>>, %arg34: memref<3x64x64xf32, #tpu.memory_space<vmem>>, %arg35: memref<1x64xf32, #tpu.memory_space<vmem>>, %arg36: memref<32x16xf32, #tpu.memory_space<vmem>>, %arg37: memref<64x128xf32, #tpu.memory_space<vmem>>, %arg38: memref<3x28x32xf32, #tpu.memory_space<vmem>>, %arg39: memref<3x128x224xf32, #tpu.memory_space<vmem>>, %arg40: memref<1x224xf32, #tpu.memory_space<vmem>>, %arg41: memref<56x28xf32, #tpu.memory_space<vmem>>, %arg42: memref<224x448xf32, #tpu.memory_space<vmem>>, %arg43: memref<3x56x56xf32, #tpu.memory_space<vmem>>, %arg44: memref<3x448x28xf32, #tpu.memory_space<vmem>>, %arg45: memref<1x28xf32, #tpu.memory_space<vmem>>, %arg46: memref<56x28xf32, #tpu.memory_space<vmem>>, %arg47: memref<2x16xf32, #tpu.memory_space<vmem>>, %arg48: memref<2x16xf32, #tpu.memory_space<vmem>>, %arg49: memref<2x16xf32, #tpu.memory_space<vmem>>) attributes {dimension_semantics = [#tpu.dimension_semantics<arbitrary>], iteration_bounds = array<i64: 1>, scalar_prefetch = 0 : i64, scratch_operands = 0 : i64, tpu.core_type = #tpu.core_type<tc>, window_params = [{pipeline_mode = #tpu.pipeline_mode<synchronous>, transform_indices = @transform_0, window_bounds = array<i64: 56, 28>}, {pipeline_mode = #tpu.pipeline_mode<synchronous>, transform_indices = @transform_1, window_bounds = array<i64: 2, 16>}, {pipeline_mode = #tpu.pipeline_mode<synchronous>, transform_indices = @transform_2, window_bounds = array<i64: 3, 56, 56>}, {pipeline_mode = #tpu.pipeline_mode<synchronous>, transform_indices = @transform_3, window_bounds = array<i64: 3, 28, 448>}, {pipeline_mode = #tpu.pipeline_mode<synchronous>, transform_indices = @transform_4, window_bounds = array<i64: 1, 448>}, {pipeline_mode = #tpu.pipeline_mode<synchronous>, transform_indices = @transform_5, window_bounds = array<i64: 2, 28, 56>}, {pipeline_mode = #tpu.pipeline_mode<synchronous>, transform_indices = @transform_6, window_bounds = array<i64: 2, 448, 224>}, {pipeline_mode = #tpu.pipeline_mode<synchronous>, transform_indices = @transform_7, window_bounds = array<i64: 3, 28, 28>}, {pipeline_mode = #tpu.pipeline_mode<synchronous>, transform_indices = @transform_8, window_bounds = array<i64: 3, 224, 112>}, {pipeline_mode = #tpu.pipeline_mode<synchronous>, transform_indices = @transform_9, window_bounds = array<i64: 1, 112>}, {pipeline_mode = #tpu.pipeline_mode<synchronous>, transform_indices = @transform_10, window_bounds = array<i64: 2, 14, 28>}, {pipeline_mode = #tpu.pipeline_mode<synchronous>, transform_indices = @transform_11, window_bounds = array<i64: 2, 112, 56>}, {pipeline_mode = #tpu.pipeline_mode<synchronous>, transform_indices = @transform_12, window_bounds = array<i64: 3, 14, 14>}, {pipeline_mode = #tpu.pipeline_mode<synchronous>, transform_indices = @transform_13, window_bounds = array<i64: 3, 56, 56>}, {pipeline_mode = #tpu.pipeline_mode<synchronous>, transform_indices = @transform_14, window_bounds = array<i64: 1, 56>}, {pipeline_mode = #tpu.pipeline_mode<synchronous>, transform_indices = @transform_15, window_bounds = array<i64: 2, 8, 14>}, {pipeline_mode = #tpu.pipeline_mode<synchronous>, transform_indices = @transform_16, window_bounds = array<i64: 2, 56, 32>}, {pipeline_mode = #tpu.pipeline_mode<synchronous>, transform_indices = @transform_17, window_bounds = array<i64: 4, 2, 8>}, {pipeline_mode = #tpu.pipeline_mode<synchronous>, transform_indices = @transform_18, window_bounds = array<i64: 4, 32, 128>}, {pipeline_mode = #tpu.pipeline_mode<synchronous>, transform_indices = @transform_19, window_bounds = array<i64: 128, 16>}, {pipeline_mode = #tpu.pipeline_mode<synchronous>, transform_indices = @transform_20, window_bounds = array<i64: 1, 16>}, {pipeline_mode = #tpu.pipeline_mode<synchronous>, transform_indices = @transform_21, window_bounds = array<i64: 128, 16>}, {pipeline_mode = #tpu.pipeline_mode<synchronous>, transform_indices = @transform_22, window_bounds = array<i64: 1, 16>}, {pipeline_mode = #tpu.pipeline_mode<synchronous>, transform_indices = @transform_23, window_bounds = array<i64: 16, 128>}, {pipeline_mode = #tpu.pipeline_mode<synchronous>, transform_indices = @transform_24, window_bounds = array<i64: 1, 128>}, {pipeline_mode = #tpu.pipeline_mode<synchronous>, transform_indices = @transform_25, window_bounds = array<i64: 4, 8, 2>}, {pipeline_mode = #tpu.pipeline_mode<synchronous>, transform_indices = @transform_26, window_bounds = array<i64: 4, 128, 32>}, {pipeline_mode = #tpu.pipeline_mode<synchronous>, transform_indices = @transform_27, window_bounds = array<i64: 3, 8, 8>}, {pipeline_mode = #tpu.pipeline_mode<synchronous>, transform_indices = @transform_28, window_bounds = array<i64: 3, 32, 32>}, {pipeline_mode = #tpu.pipeline_mode<synchronous>, transform_indices = @transform_29, window_bounds = array<i64: 1, 32>}, {pipeline_mode = #tpu.pipeline_mode<synchronous>, transform_indices = @transform_30, window_bounds = array<i64: 16, 8>}, {pipeline_mode = #tpu.pipeline_mode<synchronous>, transform_indices = @transform_31, window_bounds = array<i64: 32, 64>}, {pipeline_mode = #tpu.pipeline_mode<synchronous>, transform_indices = @transform_32, window_bounds = array<i64: 3, 16, 16>}, {pipeline_mode = #tpu.pipeline_mode<synchronous>, transform_indices = @transform_33, window_bounds = array<i64: 3, 64, 64>}, {pipeline_mode = #tpu.pipeline_mode<synchronous>, transform_indices = @transform_34, window_bounds = array<i64: 1, 64>}, {pipeline_mode = #tpu.pipeline_mode<synchronous>, transform_indices = @transform_35, window_bounds = array<i64: 32, 16>}, {pipeline_mode = #tpu.pipeline_mode<synchronous>, transform_indices = @transform_36, window_bounds = array<i64: 64, 128>}, {pipeline_mode = #tpu.pipeline_mode<synchronous>, transform_indices = @transform_37, window_bounds = array<i64: 3, 28, 32>}, {pipeline_mode = #tpu.pipeline_mode<synchronous>, transform_indices = @transform_38, window_bounds = array<i64: 3, 128, 224>}, {pipeline_mode = #tpu.pipeline_mode<synchronous>, transform_indices = @transform_39, window_bounds = array<i64: 1, 224>}, {pipeline_mode = #tpu.pipeline_mode<synchronous>, transform_indices = @transform_40, window_bounds = array<i64: 56, 28>}, {pipeline_mode = #tpu.pipeline_mode<synchronous>, transform_indices = @transform_41, window_bounds = array<i64: 224, 448>}, {pipeline_mode = #tpu.pipeline_mode<synchronous>, transform_indices = @transform_42, window_bounds = array<i64: 3, 56, 56>}, {pipeline_mode = #tpu.pipeline_mode<synchronous>, transform_indices = @transform_43, window_bounds = array<i64: 3, 448, 28>}, {pipeline_mode = #tpu.pipeline_mode<synchronous>, transform_indices = @transform_44, window_bounds = array<i64: 1, 28>}, {pipeline_mode = #tpu.pipeline_mode<synchronous>, transform_indices = @transform_45, window_bounds = array<i64: 56, 28>}, {pipeline_mode = #tpu.pipeline_mode<synchronous>, transform_indices = @transform_46, window_bounds = array<i64: 2, 16>}, {pipeline_mode = #tpu.pipeline_mode<synchronous>, transform_indices = @transform_47, window_bounds = array<i64: 2, 16>}, {pipeline_mode = #tpu.pipeline_mode<synchronous>, transform_indices = @transform_48, window_bounds = array<i64: 2, 16>}]} {
    %c0 = arith.constant 0 : index
    %c0_0 = arith.constant 0 : index
    %0 = vector.load %arg1[%c0, %c0_0] : memref<56x28xf32, #tpu.memory_space<vmem>>, vector<56x28xf32>
    %c0_1 = arith.constant 0 : index
    %c0_2 = arith.constant 0 : index
    %c0_3 = arith.constant 0 : index
    %1 = vector.load %arg3[%c0_1, %c0_2, %c0_3] : memref<3x56x56xf32, #tpu.memory_space<vmem>>, vector<1x56x56xf32>
    %2 = vector.shape_cast %1 : vector<1x56x56xf32> to vector<56x56xf32>
    %cst = arith.constant dense<0.000000e+00> : vector<56x28xf32>
    %3 = tpu.matmul %2, %0, %cst {dimension_numbers = #tpu.dot_dimension_numbers<[1], [0], [0], [1], [0, 0, 1, 1], [], []>} : vector<56x56xf32>, vector<56x28xf32>, vector<56x28xf32> -> vector<56x28xf32>
    %c0_4 = arith.constant 0 : index
    %c0_5 = arith.constant 0 : index
    %c0_6 = arith.constant 0 : index
    %4 = vector.load %arg4[%c0_4, %c0_5, %c0_6] : memref<3x28x448xf32, #tpu.memory_space<vmem>>, vector<1x28x448xf32>
    %5 = vector.shape_cast %4 : vector<1x28x448xf32> to vector<28x448xf32>
    %cst_7 = arith.constant dense<0.000000e+00> : vector<56x448xf32>
    %6 = tpu.matmul %3, %5, %cst_7 {dimension_numbers = #tpu.dot_dimension_numbers<[1], [0], [0], [1], [0, 0, 1, 1], [], []>} : vector<56x28xf32>, vector<28x448xf32>, vector<56x448xf32> -> vector<56x448xf32>
    %c1 = arith.constant 1 : index
    %c0_8 = arith.constant 0 : index
    %c0_9 = arith.constant 0 : index
    %7 = vector.load %arg3[%c1, %c0_8, %c0_9] : memref<3x56x56xf32, #tpu.memory_space<vmem>>, vector<1x56x56xf32>
    %8 = vector.shape_cast %7 : vector<1x56x56xf32> to vector<56x56xf32>
    %cst_10 = arith.constant dense<0.000000e+00> : vector<56x28xf32>
    %9 = tpu.matmul %8, %0, %cst_10 {dimension_numbers = #tpu.dot_dimension_numbers<[1], [0], [0], [1], [0, 0, 1, 1], [], []>} : vector<56x56xf32>, vector<56x28xf32>, vector<56x28xf32> -> vector<56x28xf32>
    %c1_11 = arith.constant 1 : index
    %c0_12 = arith.constant 0 : index
    %c0_13 = arith.constant 0 : index
    %10 = vector.load %arg4[%c1_11, %c0_12, %c0_13] : memref<3x28x448xf32, #tpu.memory_space<vmem>>, vector<1x28x448xf32>
    %11 = vector.shape_cast %10 : vector<1x28x448xf32> to vector<28x448xf32>
    %cst_14 = arith.constant dense<0.000000e+00> : vector<56x448xf32>
    %12 = tpu.matmul %9, %11, %cst_14 {dimension_numbers = #tpu.dot_dimension_numbers<[1], [0], [0], [1], [0, 0, 1, 1], [], []>} : vector<56x28xf32>, vector<28x448xf32>, vector<56x448xf32> -> vector<56x448xf32>
    %13 = arith.addf %6, %12 : vector<56x448xf32>
    %c2 = arith.constant 2 : index
    %c0_15 = arith.constant 0 : index
    %c0_16 = arith.constant 0 : index
    %14 = vector.load %arg3[%c2, %c0_15, %c0_16] : memref<3x56x56xf32, #tpu.memory_space<vmem>>, vector<1x56x56xf32>
    %15 = vector.shape_cast %14 : vector<1x56x56xf32> to vector<56x56xf32>
    %cst_17 = arith.constant dense<0.000000e+00> : vector<56x28xf32>
    %16 = tpu.matmul %15, %0, %cst_17 {dimension_numbers = #tpu.dot_dimension_numbers<[1], [0], [0], [1], [0, 0, 1, 1], [], []>} : vector<56x56xf32>, vector<56x28xf32>, vector<56x28xf32> -> vector<56x28xf32>
    %c2_18 = arith.constant 2 : index
    %c0_19 = arith.constant 0 : index
    %c0_20 = arith.constant 0 : index
    %17 = vector.load %arg4[%c2_18, %c0_19, %c0_20] : memref<3x28x448xf32, #tpu.memory_space<vmem>>, vector<1x28x448xf32>
    %18 = vector.shape_cast %17 : vector<1x28x448xf32> to vector<28x448xf32>
    %cst_21 = arith.constant dense<0.000000e+00> : vector<56x448xf32>
    %19 = tpu.matmul %16, %18, %cst_21 {dimension_numbers = #tpu.dot_dimension_numbers<[1], [0], [0], [1], [0, 0, 1, 1], [], []>} : vector<56x28xf32>, vector<28x448xf32>, vector<56x448xf32> -> vector<56x448xf32>
    %20 = arith.addf %13, %19 : vector<56x448xf32>
    %c0_22 = arith.constant 0 : index
    %c0_23 = arith.constant 0 : index
    %21 = vector.load %arg5[%c0_22, %c0_23] : memref<1x448xf32, #tpu.memory_space<vmem>>, vector<1x448xf32>
    %22 = vector.broadcast %21 : vector<1x448xf32> to vector<56x448xf32>
    %23 = arith.addf %20, %22 : vector<56x448xf32>
    %cst_24 = arith.constant 0.000000e+00 : f32
    %24 = vector.broadcast %cst_24 : f32 to vector<56x448xf32>
    %25 = arith.maximumf %23, %24 : vector<56x448xf32>
    %c0_25 = arith.constant 0 : index
    %c0_26 = arith.constant 0 : index
    %c0_27 = arith.constant 0 : index
    %26 = vector.load %arg6[%c0_25, %c0_26, %c0_27] : memref<2x28x56xf32, #tpu.memory_space<vmem>>, vector<1x28x56xf32>
    %27 = vector.shape_cast %26 : vector<1x28x56xf32> to vector<28x56xf32>
    %cst_28 = arith.constant dense<0.000000e+00> : vector<28x448xf32>
    %28 = tpu.matmul %27, %25, %cst_28 {dimension_numbers = #tpu.dot_dimension_numbers<[1], [0], [0], [1], [0, 0, 1, 1], [], []>} : vector<28x56xf32>, vector<56x448xf32>, vector<28x448xf32> -> vector<28x448xf32>
    %c1_29 = arith.constant 1 : index
    %c0_30 = arith.constant 0 : index
    %c0_31 = arith.constant 0 : index
    %29 = vector.load %arg6[%c1_29, %c0_30, %c0_31] : memref<2x28x56xf32, #tpu.memory_space<vmem>>, vector<1x28x56xf32>
    %30 = vector.shape_cast %29 : vector<1x28x56xf32> to vector<28x56xf32>
    %cst_32 = arith.constant dense<0.000000e+00> : vector<28x448xf32>
    %31 = tpu.matmul %30, %25, %cst_32 {dimension_numbers = #tpu.dot_dimension_numbers<[1], [0], [0], [1], [0, 0, 1, 1], [], []>} : vector<28x56xf32>, vector<56x448xf32>, vector<28x448xf32> -> vector<28x448xf32>
    %32 = arith.maximumf %28, %31 : vector<28x448xf32>
    %c0_33 = arith.constant 0 : index
    %c0_34 = arith.constant 0 : index
    %c0_35 = arith.constant 0 : index
    %33 = vector.load %arg7[%c0_33, %c0_34, %c0_35] : memref<2x448x224xf32, #tpu.memory_space<vmem>>, vector<1x448x224xf32>
    %34 = vector.shape_cast %33 : vector<1x448x224xf32> to vector<448x224xf32>
    %cst_36 = arith.constant dense<0.000000e+00> : vector<28x224xf32>
    %35 = tpu.matmul %32, %34, %cst_36 {dimension_numbers = #tpu.dot_dimension_numbers<[1], [0], [0], [1], [0, 0, 1, 1], [], []>} : vector<28x448xf32>, vector<448x224xf32>, vector<28x224xf32> -> vector<28x224xf32>
    %c1_37 = arith.constant 1 : index
    %c0_38 = arith.constant 0 : index
    %c0_39 = arith.constant 0 : index
    %36 = vector.load %arg7[%c1_37, %c0_38, %c0_39] : memref<2x448x224xf32, #tpu.memory_space<vmem>>, vector<1x448x224xf32>
    %37 = vector.shape_cast %36 : vector<1x448x224xf32> to vector<448x224xf32>
    %cst_40 = arith.constant dense<0.000000e+00> : vector<28x224xf32>
    %38 = tpu.matmul %32, %37, %cst_40 {dimension_numbers = #tpu.dot_dimension_numbers<[1], [0], [0], [1], [0, 0, 1, 1], [], []>} : vector<28x448xf32>, vector<448x224xf32>, vector<28x224xf32> -> vector<28x224xf32>
    %39 = arith.maximumf %35, %38 : vector<28x224xf32>
    %c0_41 = arith.constant 0 : index
    %c0_42 = arith.constant 0 : index
    %c0_43 = arith.constant 0 : index
    %40 = vector.load %arg8[%c0_41, %c0_42, %c0_43] : memref<3x28x28xf32, #tpu.memory_space<vmem>>, vector<1x28x28xf32>
    %41 = vector.shape_cast %40 : vector<1x28x28xf32> to vector<28x28xf32>
    %cst_44 = arith.constant dense<0.000000e+00> : vector<28x224xf32>
    %42 = tpu.matmul %41, %39, %cst_44 {dimension_numbers = #tpu.dot_dimension_numbers<[1], [0], [0], [1], [0, 0, 1, 1], [], []>} : vector<28x28xf32>, vector<28x224xf32>, vector<28x224xf32> -> vector<28x224xf32>
    %c0_45 = arith.constant 0 : index
    %c0_46 = arith.constant 0 : index
    %c0_47 = arith.constant 0 : index
    %43 = vector.load %arg9[%c0_45, %c0_46, %c0_47] : memref<3x224x112xf32, #tpu.memory_space<vmem>>, vector<1x224x112xf32>
    %44 = vector.shape_cast %43 : vector<1x224x112xf32> to vector<224x112xf32>
    %cst_48 = arith.constant dense<0.000000e+00> : vector<28x112xf32>
    %45 = tpu.matmul %42, %44, %cst_48 {dimension_numbers = #tpu.dot_dimension_numbers<[1], [0], [0], [1], [0, 0, 1, 1], [], []>} : vector<28x224xf32>, vector<224x112xf32>, vector<28x112xf32> -> vector<28x112xf32>
    %c1_49 = arith.constant 1 : index
    %c0_50 = arith.constant 0 : index
    %c0_51 = arith.constant 0 : index
    %46 = vector.load %arg8[%c1_49, %c0_50, %c0_51] : memref<3x28x28xf32, #tpu.memory_space<vmem>>, vector<1x28x28xf32>
    %47 = vector.shape_cast %46 : vector<1x28x28xf32> to vector<28x28xf32>
    %cst_52 = arith.constant dense<0.000000e+00> : vector<28x224xf32>
    %48 = tpu.matmul %47, %39, %cst_52 {dimension_numbers = #tpu.dot_dimension_numbers<[1], [0], [0], [1], [0, 0, 1, 1], [], []>} : vector<28x28xf32>, vector<28x224xf32>, vector<28x224xf32> -> vector<28x224xf32>
    %c1_53 = arith.constant 1 : index
    %c0_54 = arith.constant 0 : index
    %c0_55 = arith.constant 0 : index
    %49 = vector.load %arg9[%c1_53, %c0_54, %c0_55] : memref<3x224x112xf32, #tpu.memory_space<vmem>>, vector<1x224x112xf32>
    %50 = vector.shape_cast %49 : vector<1x224x112xf32> to vector<224x112xf32>
    %cst_56 = arith.constant dense<0.000000e+00> : vector<28x112xf32>
    %51 = tpu.matmul %48, %50, %cst_56 {dimension_numbers = #tpu.dot_dimension_numbers<[1], [0], [0], [1], [0, 0, 1, 1], [], []>} : vector<28x224xf32>, vector<224x112xf32>, vector<28x112xf32> -> vector<28x112xf32>
    %52 = arith.addf %45, %51 : vector<28x112xf32>
    %c2_57 = arith.constant 2 : index
    %c0_58 = arith.constant 0 : index
    %c0_59 = arith.constant 0 : index
    %53 = vector.load %arg8[%c2_57, %c0_58, %c0_59] : memref<3x28x28xf32, #tpu.memory_space<vmem>>, vector<1x28x28xf32>
    %54 = vector.shape_cast %53 : vector<1x28x28xf32> to vector<28x28xf32>
    %cst_60 = arith.constant dense<0.000000e+00> : vector<28x224xf32>
    %55 = tpu.matmul %54, %39, %cst_60 {dimension_numbers = #tpu.dot_dimension_numbers<[1], [0], [0], [1], [0, 0, 1, 1], [], []>} : vector<28x28xf32>, vector<28x224xf32>, vector<28x224xf32> -> vector<28x224xf32>
    %c2_61 = arith.constant 2 : index
    %c0_62 = arith.constant 0 : index
    %c0_63 = arith.constant 0 : index
    %56 = vector.load %arg9[%c2_61, %c0_62, %c0_63] : memref<3x224x112xf32, #tpu.memory_space<vmem>>, vector<1x224x112xf32>
    %57 = vector.shape_cast %56 : vector<1x224x112xf32> to vector<224x112xf32>
    %cst_64 = arith.constant dense<0.000000e+00> : vector<28x112xf32>
    %58 = tpu.matmul %55, %57, %cst_64 {dimension_numbers = #tpu.dot_dimension_numbers<[1], [0], [0], [1], [0, 0, 1, 1], [], []>} : vector<28x224xf32>, vector<224x112xf32>, vector<28x112xf32> -> vector<28x112xf32>
    %59 = arith.addf %52, %58 : vector<28x112xf32>
    %c0_65 = arith.constant 0 : index
    %c0_66 = arith.constant 0 : index
    %60 = vector.load %arg10[%c0_65, %c0_66] : memref<1x112xf32, #tpu.memory_space<vmem>>, vector<1x112xf32>
    %61 = vector.broadcast %60 : vector<1x112xf32> to vector<28x112xf32>
    %62 = arith.addf %59, %61 : vector<28x112xf32>
    %cst_67 = arith.constant 0.000000e+00 : f32
    %63 = vector.broadcast %cst_67 : f32 to vector<28x112xf32>
    %64 = arith.maximumf %62, %63 : vector<28x112xf32>
    %c0_68 = arith.constant 0 : index
    %c0_69 = arith.constant 0 : index
    %c0_70 = arith.constant 0 : index
    %65 = vector.load %arg11[%c0_68, %c0_69, %c0_70] : memref<2x14x28xf32, #tpu.memory_space<vmem>>, vector<1x14x28xf32>
    %66 = vector.shape_cast %65 : vector<1x14x28xf32> to vector<14x28xf32>
    %cst_71 = arith.constant dense<0.000000e+00> : vector<14x112xf32>
    %67 = tpu.matmul %66, %64, %cst_71 {dimension_numbers = #tpu.dot_dimension_numbers<[1], [0], [0], [1], [0, 0, 1, 1], [], []>} : vector<14x28xf32>, vector<28x112xf32>, vector<14x112xf32> -> vector<14x112xf32>
    %c1_72 = arith.constant 1 : index
    %c0_73 = arith.constant 0 : index
    %c0_74 = arith.constant 0 : index
    %68 = vector.load %arg11[%c1_72, %c0_73, %c0_74] : memref<2x14x28xf32, #tpu.memory_space<vmem>>, vector<1x14x28xf32>
    %69 = vector.shape_cast %68 : vector<1x14x28xf32> to vector<14x28xf32>
    %cst_75 = arith.constant dense<0.000000e+00> : vector<14x112xf32>
    %70 = tpu.matmul %69, %64, %cst_75 {dimension_numbers = #tpu.dot_dimension_numbers<[1], [0], [0], [1], [0, 0, 1, 1], [], []>} : vector<14x28xf32>, vector<28x112xf32>, vector<14x112xf32> -> vector<14x112xf32>
    %71 = arith.maximumf %67, %70 : vector<14x112xf32>
    %c0_76 = arith.constant 0 : index
    %c0_77 = arith.constant 0 : index
    %c0_78 = arith.constant 0 : index
    %72 = vector.load %arg12[%c0_76, %c0_77, %c0_78] : memref<2x112x56xf32, #tpu.memory_space<vmem>>, vector<1x112x56xf32>
    %73 = vector.shape_cast %72 : vector<1x112x56xf32> to vector<112x56xf32>
    %cst_79 = arith.constant dense<0.000000e+00> : vector<14x56xf32>
    %74 = tpu.matmul %71, %73, %cst_79 {dimension_numbers = #tpu.dot_dimension_numbers<[1], [0], [0], [1], [0, 0, 1, 1], [], []>} : vector<14x112xf32>, vector<112x56xf32>, vector<14x56xf32> -> vector<14x56xf32>
    %c1_80 = arith.constant 1 : index
    %c0_81 = arith.constant 0 : index
    %c0_82 = arith.constant 0 : index
    %75 = vector.load %arg12[%c1_80, %c0_81, %c0_82] : memref<2x112x56xf32, #tpu.memory_space<vmem>>, vector<1x112x56xf32>
    %76 = vector.shape_cast %75 : vector<1x112x56xf32> to vector<112x56xf32>
    %cst_83 = arith.constant dense<0.000000e+00> : vector<14x56xf32>
    %77 = tpu.matmul %71, %76, %cst_83 {dimension_numbers = #tpu.dot_dimension_numbers<[1], [0], [0], [1], [0, 0, 1, 1], [], []>} : vector<14x112xf32>, vector<112x56xf32>, vector<14x56xf32> -> vector<14x56xf32>
    %78 = arith.maximumf %74, %77 : vector<14x56xf32>
    %c0_84 = arith.constant 0 : index
    %c0_85 = arith.constant 0 : index
    %c0_86 = arith.constant 0 : index
    %79 = vector.load %arg13[%c0_84, %c0_85, %c0_86] : memref<3x14x14xf32, #tpu.memory_space<vmem>>, vector<1x14x14xf32>
    %80 = vector.shape_cast %79 : vector<1x14x14xf32> to vector<14x14xf32>
    %cst_87 = arith.constant dense<0.000000e+00> : vector<14x56xf32>
    %81 = tpu.matmul %80, %78, %cst_87 {dimension_numbers = #tpu.dot_dimension_numbers<[1], [0], [0], [1], [0, 0, 1, 1], [], []>} : vector<14x14xf32>, vector<14x56xf32>, vector<14x56xf32> -> vector<14x56xf32>
    %c0_88 = arith.constant 0 : index
    %c0_89 = arith.constant 0 : index
    %c0_90 = arith.constant 0 : index
    %82 = vector.load %arg14[%c0_88, %c0_89, %c0_90] : memref<3x56x56xf32, #tpu.memory_space<vmem>>, vector<1x56x56xf32>
    %83 = vector.shape_cast %82 : vector<1x56x56xf32> to vector<56x56xf32>
    %cst_91 = arith.constant dense<0.000000e+00> : vector<14x56xf32>
    %84 = tpu.matmul %81, %83, %cst_91 {dimension_numbers = #tpu.dot_dimension_numbers<[1], [0], [0], [1], [0, 0, 1, 1], [], []>} : vector<14x56xf32>, vector<56x56xf32>, vector<14x56xf32> -> vector<14x56xf32>
    %c1_92 = arith.constant 1 : index
    %c0_93 = arith.constant 0 : index
    %c0_94 = arith.constant 0 : index
    %85 = vector.load %arg13[%c1_92, %c0_93, %c0_94] : memref<3x14x14xf32, #tpu.memory_space<vmem>>, vector<1x14x14xf32>
    %86 = vector.shape_cast %85 : vector<1x14x14xf32> to vector<14x14xf32>
    %cst_95 = arith.constant dense<0.000000e+00> : vector<14x56xf32>
    %87 = tpu.matmul %86, %78, %cst_95 {dimension_numbers = #tpu.dot_dimension_numbers<[1], [0], [0], [1], [0, 0, 1, 1], [], []>} : vector<14x14xf32>, vector<14x56xf32>, vector<14x56xf32> -> vector<14x56xf32>
    %c1_96 = arith.constant 1 : index
    %c0_97 = arith.constant 0 : index
    %c0_98 = arith.constant 0 : index
    %88 = vector.load %arg14[%c1_96, %c0_97, %c0_98] : memref<3x56x56xf32, #tpu.memory_space<vmem>>, vector<1x56x56xf32>
    %89 = vector.shape_cast %88 : vector<1x56x56xf32> to vector<56x56xf32>
    %cst_99 = arith.constant dense<0.000000e+00> : vector<14x56xf32>
    %90 = tpu.matmul %87, %89, %cst_99 {dimension_numbers = #tpu.dot_dimension_numbers<[1], [0], [0], [1], [0, 0, 1, 1], [], []>} : vector<14x56xf32>, vector<56x56xf32>, vector<14x56xf32> -> vector<14x56xf32>
    %91 = arith.addf %84, %90 : vector<14x56xf32>
    %c2_100 = arith.constant 2 : index
    %c0_101 = arith.constant 0 : index
    %c0_102 = arith.constant 0 : index
    %92 = vector.load %arg13[%c2_100, %c0_101, %c0_102] : memref<3x14x14xf32, #tpu.memory_space<vmem>>, vector<1x14x14xf32>
    %93 = vector.shape_cast %92 : vector<1x14x14xf32> to vector<14x14xf32>
    %cst_103 = arith.constant dense<0.000000e+00> : vector<14x56xf32>
    %94 = tpu.matmul %93, %78, %cst_103 {dimension_numbers = #tpu.dot_dimension_numbers<[1], [0], [0], [1], [0, 0, 1, 1], [], []>} : vector<14x14xf32>, vector<14x56xf32>, vector<14x56xf32> -> vector<14x56xf32>
    %c2_104 = arith.constant 2 : index
    %c0_105 = arith.constant 0 : index
    %c0_106 = arith.constant 0 : index
    %95 = vector.load %arg14[%c2_104, %c0_105, %c0_106] : memref<3x56x56xf32, #tpu.memory_space<vmem>>, vector<1x56x56xf32>
    %96 = vector.shape_cast %95 : vector<1x56x56xf32> to vector<56x56xf32>
    %cst_107 = arith.constant dense<0.000000e+00> : vector<14x56xf32>
    %97 = tpu.matmul %94, %96, %cst_107 {dimension_numbers = #tpu.dot_dimension_numbers<[1], [0], [0], [1], [0, 0, 1, 1], [], []>} : vector<14x56xf32>, vector<56x56xf32>, vector<14x56xf32> -> vector<14x56xf32>
    %98 = arith.addf %91, %97 : vector<14x56xf32>
    %c0_108 = arith.constant 0 : index
    %c0_109 = arith.constant 0 : index
    %99 = vector.load %arg15[%c0_108, %c0_109] : memref<1x56xf32, #tpu.memory_space<vmem>>, vector<1x56xf32>
    %100 = vector.broadcast %99 : vector<1x56xf32> to vector<14x56xf32>
    %101 = arith.addf %98, %100 : vector<14x56xf32>
    %cst_110 = arith.constant 0.000000e+00 : f32
    %102 = vector.broadcast %cst_110 : f32 to vector<14x56xf32>
    %103 = arith.maximumf %101, %102 : vector<14x56xf32>
    %c0_111 = arith.constant 0 : index
    %c0_112 = arith.constant 0 : index
    %c0_113 = arith.constant 0 : index
    %104 = vector.load %arg16[%c0_111, %c0_112, %c0_113] : memref<2x8x14xf32, #tpu.memory_space<vmem>>, vector<1x8x14xf32>
    %105 = vector.shape_cast %104 : vector<1x8x14xf32> to vector<8x14xf32>
    %cst_114 = arith.constant dense<0.000000e+00> : vector<8x56xf32>
    %106 = tpu.matmul %105, %103, %cst_114 {dimension_numbers = #tpu.dot_dimension_numbers<[1], [0], [0], [1], [0, 0, 1, 1], [], []>} : vector<8x14xf32>, vector<14x56xf32>, vector<8x56xf32> -> vector<8x56xf32>
    %c1_115 = arith.constant 1 : index
    %c0_116 = arith.constant 0 : index
    %c0_117 = arith.constant 0 : index
    %107 = vector.load %arg16[%c1_115, %c0_116, %c0_117] : memref<2x8x14xf32, #tpu.memory_space<vmem>>, vector<1x8x14xf32>
    %108 = vector.shape_cast %107 : vector<1x8x14xf32> to vector<8x14xf32>
    %cst_118 = arith.constant dense<0.000000e+00> : vector<8x56xf32>
    %109 = tpu.matmul %108, %103, %cst_118 {dimension_numbers = #tpu.dot_dimension_numbers<[1], [0], [0], [1], [0, 0, 1, 1], [], []>} : vector<8x14xf32>, vector<14x56xf32>, vector<8x56xf32> -> vector<8x56xf32>
    %110 = arith.maximumf %106, %109 : vector<8x56xf32>
    %c0_119 = arith.constant 0 : index
    %c0_120 = arith.constant 0 : index
    %c0_121 = arith.constant 0 : index
    %111 = vector.load %arg17[%c0_119, %c0_120, %c0_121] : memref<2x56x32xf32, #tpu.memory_space<vmem>>, vector<1x56x32xf32>
    %112 = vector.shape_cast %111 : vector<1x56x32xf32> to vector<56x32xf32>
    %cst_122 = arith.constant dense<0.000000e+00> : vector<8x32xf32>
    %113 = tpu.matmul %110, %112, %cst_122 {dimension_numbers = #tpu.dot_dimension_numbers<[1], [0], [0], [1], [0, 0, 1, 1], [], []>} : vector<8x56xf32>, vector<56x32xf32>, vector<8x32xf32> -> vector<8x32xf32>
    %c1_123 = arith.constant 1 : index
    %c0_124 = arith.constant 0 : index
    %c0_125 = arith.constant 0 : index
    %114 = vector.load %arg17[%c1_123, %c0_124, %c0_125] : memref<2x56x32xf32, #tpu.memory_space<vmem>>, vector<1x56x32xf32>
    %115 = vector.shape_cast %114 : vector<1x56x32xf32> to vector<56x32xf32>
    %cst_126 = arith.constant dense<0.000000e+00> : vector<8x32xf32>
    %116 = tpu.matmul %110, %115, %cst_126 {dimension_numbers = #tpu.dot_dimension_numbers<[1], [0], [0], [1], [0, 0, 1, 1], [], []>} : vector<8x56xf32>, vector<56x32xf32>, vector<8x32xf32> -> vector<8x32xf32>
    %117 = arith.maximumf %113, %116 : vector<8x32xf32>
    %c0_127 = arith.constant 0 : index
    %c0_128 = arith.constant 0 : index
    %c0_129 = arith.constant 0 : index
    %118 = vector.load %arg18[%c0_127, %c0_128, %c0_129] : memref<4x2x8xf32, #tpu.memory_space<vmem>>, vector<1x2x8xf32>
    %119 = vector.shape_cast %118 : vector<1x2x8xf32> to vector<2x8xf32>
    %cst_130 = arith.constant dense<0.000000e+00> : vector<2x32xf32>
    %120 = tpu.matmul %119, %117, %cst_130 {dimension_numbers = #tpu.dot_dimension_numbers<[1], [0], [0], [1], [0, 0, 1, 1], [], []>} : vector<2x8xf32>, vector<8x32xf32>, vector<2x32xf32> -> vector<2x32xf32>
    %c0_131 = arith.constant 0 : index
    %c0_132 = arith.constant 0 : index
    %c0_133 = arith.constant 0 : index
    %121 = vector.load %arg19[%c0_131, %c0_132, %c0_133] : memref<4x32x128xf32, #tpu.memory_space<vmem>>, vector<1x32x128xf32>
    %122 = vector.shape_cast %121 : vector<1x32x128xf32> to vector<32x128xf32>
    %cst_134 = arith.constant dense<0.000000e+00> : vector<2x128xf32>
    %123 = tpu.matmul %120, %122, %cst_134 {dimension_numbers = #tpu.dot_dimension_numbers<[1], [0], [0], [1], [0, 0, 1, 1], [], []>} : vector<2x32xf32>, vector<32x128xf32>, vector<2x128xf32> -> vector<2x128xf32>
    %c1_135 = arith.constant 1 : index
    %c0_136 = arith.constant 0 : index
    %c0_137 = arith.constant 0 : index
    %124 = vector.load %arg18[%c1_135, %c0_136, %c0_137] : memref<4x2x8xf32, #tpu.memory_space<vmem>>, vector<1x2x8xf32>
    %125 = vector.shape_cast %124 : vector<1x2x8xf32> to vector<2x8xf32>
    %cst_138 = arith.constant dense<0.000000e+00> : vector<2x32xf32>
    %126 = tpu.matmul %125, %117, %cst_138 {dimension_numbers = #tpu.dot_dimension_numbers<[1], [0], [0], [1], [0, 0, 1, 1], [], []>} : vector<2x8xf32>, vector<8x32xf32>, vector<2x32xf32> -> vector<2x32xf32>
    %c1_139 = arith.constant 1 : index
    %c0_140 = arith.constant 0 : index
    %c0_141 = arith.constant 0 : index
    %127 = vector.load %arg19[%c1_139, %c0_140, %c0_141] : memref<4x32x128xf32, #tpu.memory_space<vmem>>, vector<1x32x128xf32>
    %128 = vector.shape_cast %127 : vector<1x32x128xf32> to vector<32x128xf32>
    %cst_142 = arith.constant dense<0.000000e+00> : vector<2x128xf32>
    %129 = tpu.matmul %126, %128, %cst_142 {dimension_numbers = #tpu.dot_dimension_numbers<[1], [0], [0], [1], [0, 0, 1, 1], [], []>} : vector<2x32xf32>, vector<32x128xf32>, vector<2x128xf32> -> vector<2x128xf32>
    %130 = arith.addf %123, %129 : vector<2x128xf32>
    %c2_143 = arith.constant 2 : index
    %c0_144 = arith.constant 0 : index
    %c0_145 = arith.constant 0 : index
    %131 = vector.load %arg18[%c2_143, %c0_144, %c0_145] : memref<4x2x8xf32, #tpu.memory_space<vmem>>, vector<1x2x8xf32>
    %132 = vector.shape_cast %131 : vector<1x2x8xf32> to vector<2x8xf32>
    %cst_146 = arith.constant dense<0.000000e+00> : vector<2x32xf32>
    %133 = tpu.matmul %132, %117, %cst_146 {dimension_numbers = #tpu.dot_dimension_numbers<[1], [0], [0], [1], [0, 0, 1, 1], [], []>} : vector<2x8xf32>, vector<8x32xf32>, vector<2x32xf32> -> vector<2x32xf32>
    %c2_147 = arith.constant 2 : index
    %c0_148 = arith.constant 0 : index
    %c0_149 = arith.constant 0 : index
    %134 = vector.load %arg19[%c2_147, %c0_148, %c0_149] : memref<4x32x128xf32, #tpu.memory_space<vmem>>, vector<1x32x128xf32>
    %135 = vector.shape_cast %134 : vector<1x32x128xf32> to vector<32x128xf32>
    %cst_150 = arith.constant dense<0.000000e+00> : vector<2x128xf32>
    %136 = tpu.matmul %133, %135, %cst_150 {dimension_numbers = #tpu.dot_dimension_numbers<[1], [0], [0], [1], [0, 0, 1, 1], [], []>} : vector<2x32xf32>, vector<32x128xf32>, vector<2x128xf32> -> vector<2x128xf32>
    %137 = arith.addf %130, %136 : vector<2x128xf32>
    %c3 = arith.constant 3 : index
    %c0_151 = arith.constant 0 : index
    %c0_152 = arith.constant 0 : index
    %138 = vector.load %arg18[%c3, %c0_151, %c0_152] : memref<4x2x8xf32, #tpu.memory_space<vmem>>, vector<1x2x8xf32>
    %139 = vector.shape_cast %138 : vector<1x2x8xf32> to vector<2x8xf32>
    %cst_153 = arith.constant dense<0.000000e+00> : vector<2x32xf32>
    %140 = tpu.matmul %139, %117, %cst_153 {dimension_numbers = #tpu.dot_dimension_numbers<[1], [0], [0], [1], [0, 0, 1, 1], [], []>} : vector<2x8xf32>, vector<8x32xf32>, vector<2x32xf32> -> vector<2x32xf32>
    %c3_154 = arith.constant 3 : index
    %c0_155 = arith.constant 0 : index
    %c0_156 = arith.constant 0 : index
    %141 = vector.load %arg19[%c3_154, %c0_155, %c0_156] : memref<4x32x128xf32, #tpu.memory_space<vmem>>, vector<1x32x128xf32>
    %142 = vector.shape_cast %141 : vector<1x32x128xf32> to vector<32x128xf32>
    %cst_157 = arith.constant dense<0.000000e+00> : vector<2x128xf32>
    %143 = tpu.matmul %140, %142, %cst_157 {dimension_numbers = #tpu.dot_dimension_numbers<[1], [0], [0], [1], [0, 0, 1, 1], [], []>} : vector<2x32xf32>, vector<32x128xf32>, vector<2x128xf32> -> vector<2x128xf32>
    %144 = arith.addf %137, %143 : vector<2x128xf32>
    %c0_158 = arith.constant 0 : index
    %c0_159 = arith.constant 0 : index
    %145 = vector.load %arg20[%c0_158, %c0_159] : memref<128x16xf32, #tpu.memory_space<vmem>>, vector<128x16xf32>
    %cst_160 = arith.constant dense<0.000000e+00> : vector<2x16xf32>
    %146 = tpu.matmul %144, %145, %cst_160 {dimension_numbers = #tpu.dot_dimension_numbers<[1], [0], [0], [1], [0, 0, 1, 1], [], []>} : vector<2x128xf32>, vector<128x16xf32>, vector<2x16xf32> -> vector<2x16xf32>
    %c0_161 = arith.constant 0 : index
    %c0_162 = arith.constant 0 : index
    %147 = vector.load %arg21[%c0_161, %c0_162] : memref<1x16xf32, #tpu.memory_space<vmem>>, vector<1x16xf32>
    %148 = vector.broadcast %147 : vector<1x16xf32> to vector<2x16xf32>
    %149 = arith.addf %146, %148 : vector<2x16xf32>
    %c0_163 = arith.constant 0 : index
    %c0_164 = arith.constant 0 : index
    %150 = vector.load %arg22[%c0_163, %c0_164] : memref<128x16xf32, #tpu.memory_space<vmem>>, vector<128x16xf32>
    %cst_165 = arith.constant dense<0.000000e+00> : vector<2x16xf32>
    %151 = tpu.matmul %144, %150, %cst_165 {dimension_numbers = #tpu.dot_dimension_numbers<[1], [0], [0], [1], [0, 0, 1, 1], [], []>} : vector<2x128xf32>, vector<128x16xf32>, vector<2x16xf32> -> vector<2x16xf32>
    %c0_166 = arith.constant 0 : index
    %c0_167 = arith.constant 0 : index
    %152 = vector.load %arg23[%c0_166, %c0_167] : memref<1x16xf32, #tpu.memory_space<vmem>>, vector<1x16xf32>
    %153 = vector.broadcast %152 : vector<1x16xf32> to vector<2x16xf32>
    %154 = arith.addf %151, %153 : vector<2x16xf32>
    %cst_168 = arith.constant 5.000000e-01 : f32
    %155 = vector.broadcast %cst_168 : f32 to vector<2x16xf32>
    %156 = arith.mulf %155, %154 : vector<2x16xf32>
    %157 = math.exp %156 : vector<2x16xf32>
    %c0_169 = arith.constant 0 : index
    %c0_170 = arith.constant 0 : index
    %158 = vector.load %arg2[%c0_169, %c0_170] : memref<2x16xf32, #tpu.memory_space<vmem>>, vector<2x16xf32>
    %159 = arith.mulf %157, %158 : vector<2x16xf32>
    %160 = arith.addf %149, %159 : vector<2x16xf32>
    %c0_171 = arith.constant 0 : index
    %c0_172 = arith.constant 0 : index
    %161 = vector.load %arg24[%c0_171, %c0_172] : memref<16x128xf32, #tpu.memory_space<vmem>>, vector<16x128xf32>
    %cst_173 = arith.constant dense<0.000000e+00> : vector<2x128xf32>
    %162 = tpu.matmul %160, %161, %cst_173 {dimension_numbers = #tpu.dot_dimension_numbers<[1], [0], [0], [1], [0, 0, 1, 1], [], []>} : vector<2x16xf32>, vector<16x128xf32>, vector<2x128xf32> -> vector<2x128xf32>
    %c0_174 = arith.constant 0 : index
    %c0_175 = arith.constant 0 : index
    %163 = vector.load %arg25[%c0_174, %c0_175] : memref<1x128xf32, #tpu.memory_space<vmem>>, vector<1x128xf32>
    %164 = vector.broadcast %163 : vector<1x128xf32> to vector<2x128xf32>
    %165 = arith.addf %162, %164 : vector<2x128xf32>
    %c0_176 = arith.constant 0 : index
    %c0_177 = arith.constant 0 : index
    %c0_178 = arith.constant 0 : index
    %166 = vector.load %arg26[%c0_176, %c0_177, %c0_178] : memref<4x8x2xf32, #tpu.memory_space<vmem>>, vector<1x8x2xf32>
    %167 = vector.shape_cast %166 : vector<1x8x2xf32> to vector<8x2xf32>
    %c0_179 = arith.constant 0 : index
    %c0_180 = arith.constant 0 : index
    %c0_181 = arith.constant 0 : index
    %168 = vector.load %arg27[%c0_179, %c0_180, %c0_181] : memref<4x128x32xf32, #tpu.memory_space<vmem>>, vector<1x128x32xf32>
    %169 = vector.shape_cast %168 : vector<1x128x32xf32> to vector<128x32xf32>
    %cst_182 = arith.constant dense<0.000000e+00> : vector<2x32xf32>
    %170 = tpu.matmul %165, %169, %cst_182 {dimension_numbers = #tpu.dot_dimension_numbers<[1], [0], [0], [1], [0, 0, 1, 1], [], []>} : vector<2x128xf32>, vector<128x32xf32>, vector<2x32xf32> -> vector<2x32xf32>
    %cst_183 = arith.constant dense<0.000000e+00> : vector<8x32xf32>
    %171 = tpu.matmul %167, %170, %cst_183 {dimension_numbers = #tpu.dot_dimension_numbers<[1], [0], [0], [1], [0, 0, 1, 1], [], []>} : vector<8x2xf32>, vector<2x32xf32>, vector<8x32xf32> -> vector<8x32xf32>
    %c1_184 = arith.constant 1 : index
    %c0_185 = arith.constant 0 : index
    %c0_186 = arith.constant 0 : index
    %172 = vector.load %arg26[%c1_184, %c0_185, %c0_186] : memref<4x8x2xf32, #tpu.memory_space<vmem>>, vector<1x8x2xf32>
    %173 = vector.shape_cast %172 : vector<1x8x2xf32> to vector<8x2xf32>
    %c1_187 = arith.constant 1 : index
    %c0_188 = arith.constant 0 : index
    %c0_189 = arith.constant 0 : index
    %174 = vector.load %arg27[%c1_187, %c0_188, %c0_189] : memref<4x128x32xf32, #tpu.memory_space<vmem>>, vector<1x128x32xf32>
    %175 = vector.shape_cast %174 : vector<1x128x32xf32> to vector<128x32xf32>
    %cst_190 = arith.constant dense<0.000000e+00> : vector<2x32xf32>
    %176 = tpu.matmul %165, %175, %cst_190 {dimension_numbers = #tpu.dot_dimension_numbers<[1], [0], [0], [1], [0, 0, 1, 1], [], []>} : vector<2x128xf32>, vector<128x32xf32>, vector<2x32xf32> -> vector<2x32xf32>
    %cst_191 = arith.constant dense<0.000000e+00> : vector<8x32xf32>
    %177 = tpu.matmul %173, %176, %cst_191 {dimension_numbers = #tpu.dot_dimension_numbers<[1], [0], [0], [1], [0, 0, 1, 1], [], []>} : vector<8x2xf32>, vector<2x32xf32>, vector<8x32xf32> -> vector<8x32xf32>
    %178 = arith.addf %171, %177 : vector<8x32xf32>
    %c2_192 = arith.constant 2 : index
    %c0_193 = arith.constant 0 : index
    %c0_194 = arith.constant 0 : index
    %179 = vector.load %arg26[%c2_192, %c0_193, %c0_194] : memref<4x8x2xf32, #tpu.memory_space<vmem>>, vector<1x8x2xf32>
    %180 = vector.shape_cast %179 : vector<1x8x2xf32> to vector<8x2xf32>
    %c2_195 = arith.constant 2 : index
    %c0_196 = arith.constant 0 : index
    %c0_197 = arith.constant 0 : index
    %181 = vector.load %arg27[%c2_195, %c0_196, %c0_197] : memref<4x128x32xf32, #tpu.memory_space<vmem>>, vector<1x128x32xf32>
    %182 = vector.shape_cast %181 : vector<1x128x32xf32> to vector<128x32xf32>
    %cst_198 = arith.constant dense<0.000000e+00> : vector<2x32xf32>
    %183 = tpu.matmul %165, %182, %cst_198 {dimension_numbers = #tpu.dot_dimension_numbers<[1], [0], [0], [1], [0, 0, 1, 1], [], []>} : vector<2x128xf32>, vector<128x32xf32>, vector<2x32xf32> -> vector<2x32xf32>
    %cst_199 = arith.constant dense<0.000000e+00> : vector<8x32xf32>
    %184 = tpu.matmul %180, %183, %cst_199 {dimension_numbers = #tpu.dot_dimension_numbers<[1], [0], [0], [1], [0, 0, 1, 1], [], []>} : vector<8x2xf32>, vector<2x32xf32>, vector<8x32xf32> -> vector<8x32xf32>
    %185 = arith.addf %178, %184 : vector<8x32xf32>
    %c3_200 = arith.constant 3 : index
    %c0_201 = arith.constant 0 : index
    %c0_202 = arith.constant 0 : index
    %186 = vector.load %arg26[%c3_200, %c0_201, %c0_202] : memref<4x8x2xf32, #tpu.memory_space<vmem>>, vector<1x8x2xf32>
    %187 = vector.shape_cast %186 : vector<1x8x2xf32> to vector<8x2xf32>
    %c3_203 = arith.constant 3 : index
    %c0_204 = arith.constant 0 : index
    %c0_205 = arith.constant 0 : index
    %188 = vector.load %arg27[%c3_203, %c0_204, %c0_205] : memref<4x128x32xf32, #tpu.memory_space<vmem>>, vector<1x128x32xf32>
    %189 = vector.shape_cast %188 : vector<1x128x32xf32> to vector<128x32xf32>
    %cst_206 = arith.constant dense<0.000000e+00> : vector<2x32xf32>
    %190 = tpu.matmul %165, %189, %cst_206 {dimension_numbers = #tpu.dot_dimension_numbers<[1], [0], [0], [1], [0, 0, 1, 1], [], []>} : vector<2x128xf32>, vector<128x32xf32>, vector<2x32xf32> -> vector<2x32xf32>
    %cst_207 = arith.constant dense<0.000000e+00> : vector<8x32xf32>
    %191 = tpu.matmul %187, %190, %cst_207 {dimension_numbers = #tpu.dot_dimension_numbers<[1], [0], [0], [1], [0, 0, 1, 1], [], []>} : vector<8x2xf32>, vector<2x32xf32>, vector<8x32xf32> -> vector<8x32xf32>
    %192 = arith.addf %185, %191 : vector<8x32xf32>
    %c0_208 = arith.constant 0 : index
    %c0_209 = arith.constant 0 : index
    %c0_210 = arith.constant 0 : index
    %193 = vector.load %arg28[%c0_208, %c0_209, %c0_210] : memref<3x8x8xf32, #tpu.memory_space<vmem>>, vector<1x8x8xf32>
    %194 = vector.shape_cast %193 : vector<1x8x8xf32> to vector<8x8xf32>
    %cst_211 = arith.constant dense<0.000000e+00> : vector<8x32xf32>
    %195 = tpu.matmul %194, %192, %cst_211 {dimension_numbers = #tpu.dot_dimension_numbers<[1], [0], [0], [1], [0, 0, 1, 1], [], []>} : vector<8x8xf32>, vector<8x32xf32>, vector<8x32xf32> -> vector<8x32xf32>
    %c0_212 = arith.constant 0 : index
    %c0_213 = arith.constant 0 : index
    %c0_214 = arith.constant 0 : index
    %196 = vector.load %arg29[%c0_212, %c0_213, %c0_214] : memref<3x32x32xf32, #tpu.memory_space<vmem>>, vector<1x32x32xf32>
    %197 = vector.shape_cast %196 : vector<1x32x32xf32> to vector<32x32xf32>
    %cst_215 = arith.constant dense<0.000000e+00> : vector<8x32xf32>
    %198 = tpu.matmul %195, %197, %cst_215 {dimension_numbers = #tpu.dot_dimension_numbers<[1], [0], [0], [1], [0, 0, 1, 1], [], []>} : vector<8x32xf32>, vector<32x32xf32>, vector<8x32xf32> -> vector<8x32xf32>
    %c1_216 = arith.constant 1 : index
    %c0_217 = arith.constant 0 : index
    %c0_218 = arith.constant 0 : index
    %199 = vector.load %arg28[%c1_216, %c0_217, %c0_218] : memref<3x8x8xf32, #tpu.memory_space<vmem>>, vector<1x8x8xf32>
    %200 = vector.shape_cast %199 : vector<1x8x8xf32> to vector<8x8xf32>
    %cst_219 = arith.constant dense<0.000000e+00> : vector<8x32xf32>
    %201 = tpu.matmul %200, %192, %cst_219 {dimension_numbers = #tpu.dot_dimension_numbers<[1], [0], [0], [1], [0, 0, 1, 1], [], []>} : vector<8x8xf32>, vector<8x32xf32>, vector<8x32xf32> -> vector<8x32xf32>
    %c1_220 = arith.constant 1 : index
    %c0_221 = arith.constant 0 : index
    %c0_222 = arith.constant 0 : index
    %202 = vector.load %arg29[%c1_220, %c0_221, %c0_222] : memref<3x32x32xf32, #tpu.memory_space<vmem>>, vector<1x32x32xf32>
    %203 = vector.shape_cast %202 : vector<1x32x32xf32> to vector<32x32xf32>
    %cst_223 = arith.constant dense<0.000000e+00> : vector<8x32xf32>
    %204 = tpu.matmul %201, %203, %cst_223 {dimension_numbers = #tpu.dot_dimension_numbers<[1], [0], [0], [1], [0, 0, 1, 1], [], []>} : vector<8x32xf32>, vector<32x32xf32>, vector<8x32xf32> -> vector<8x32xf32>
    %205 = arith.addf %198, %204 : vector<8x32xf32>
    %c2_224 = arith.constant 2 : index
    %c0_225 = arith.constant 0 : index
    %c0_226 = arith.constant 0 : index
    %206 = vector.load %arg28[%c2_224, %c0_225, %c0_226] : memref<3x8x8xf32, #tpu.memory_space<vmem>>, vector<1x8x8xf32>
    %207 = vector.shape_cast %206 : vector<1x8x8xf32> to vector<8x8xf32>
    %cst_227 = arith.constant dense<0.000000e+00> : vector<8x32xf32>
    %208 = tpu.matmul %207, %192, %cst_227 {dimension_numbers = #tpu.dot_dimension_numbers<[1], [0], [0], [1], [0, 0, 1, 1], [], []>} : vector<8x8xf32>, vector<8x32xf32>, vector<8x32xf32> -> vector<8x32xf32>
    %c2_228 = arith.constant 2 : index
    %c0_229 = arith.constant 0 : index
    %c0_230 = arith.constant 0 : index
    %209 = vector.load %arg29[%c2_228, %c0_229, %c0_230] : memref<3x32x32xf32, #tpu.memory_space<vmem>>, vector<1x32x32xf32>
    %210 = vector.shape_cast %209 : vector<1x32x32xf32> to vector<32x32xf32>
    %cst_231 = arith.constant dense<0.000000e+00> : vector<8x32xf32>
    %211 = tpu.matmul %208, %210, %cst_231 {dimension_numbers = #tpu.dot_dimension_numbers<[1], [0], [0], [1], [0, 0, 1, 1], [], []>} : vector<8x32xf32>, vector<32x32xf32>, vector<8x32xf32> -> vector<8x32xf32>
    %212 = arith.addf %205, %211 : vector<8x32xf32>
    %c0_232 = arith.constant 0 : index
    %c0_233 = arith.constant 0 : index
    %213 = vector.load %arg30[%c0_232, %c0_233] : memref<1x32xf32, #tpu.memory_space<vmem>>, vector<1x32xf32>
    %214 = vector.broadcast %213 : vector<1x32xf32> to vector<8x32xf32>
    %215 = arith.addf %212, %214 : vector<8x32xf32>
    %cst_234 = arith.constant 0.000000e+00 : f32
    %216 = vector.broadcast %cst_234 : f32 to vector<8x32xf32>
    %217 = arith.maximumf %215, %216 : vector<8x32xf32>
    %c0_235 = arith.constant 0 : index
    %c0_236 = arith.constant 0 : index
    %218 = vector.load %arg31[%c0_235, %c0_236] : memref<16x8xf32, #tpu.memory_space<vmem>>, vector<16x8xf32>
    %cst_237 = arith.constant dense<0.000000e+00> : vector<16x32xf32>
    %219 = tpu.matmul %218, %217, %cst_237 {dimension_numbers = #tpu.dot_dimension_numbers<[1], [0], [0], [1], [0, 0, 1, 1], [], []>} : vector<16x8xf32>, vector<8x32xf32>, vector<16x32xf32> -> vector<16x32xf32>
    %c0_238 = arith.constant 0 : index
    %c0_239 = arith.constant 0 : index
    %220 = vector.load %arg32[%c0_238, %c0_239] : memref<32x64xf32, #tpu.memory_space<vmem>>, vector<32x64xf32>
    %cst_240 = arith.constant dense<0.000000e+00> : vector<16x64xf32>
    %221 = tpu.matmul %219, %220, %cst_240 {dimension_numbers = #tpu.dot_dimension_numbers<[1], [0], [0], [1], [0, 0, 1, 1], [], []>} : vector<16x32xf32>, vector<32x64xf32>, vector<16x64xf32> -> vector<16x64xf32>
    %c0_241 = arith.constant 0 : index
    %c0_242 = arith.constant 0 : index
    %c0_243 = arith.constant 0 : index
    %222 = vector.load %arg33[%c0_241, %c0_242, %c0_243] : memref<3x16x16xf32, #tpu.memory_space<vmem>>, vector<1x16x16xf32>
    %223 = vector.shape_cast %222 : vector<1x16x16xf32> to vector<16x16xf32>
    %cst_244 = arith.constant dense<0.000000e+00> : vector<16x64xf32>
    %224 = tpu.matmul %223, %221, %cst_244 {dimension_numbers = #tpu.dot_dimension_numbers<[1], [0], [0], [1], [0, 0, 1, 1], [], []>} : vector<16x16xf32>, vector<16x64xf32>, vector<16x64xf32> -> vector<16x64xf32>
    %c0_245 = arith.constant 0 : index
    %c0_246 = arith.constant 0 : index
    %c0_247 = arith.constant 0 : index
    %225 = vector.load %arg34[%c0_245, %c0_246, %c0_247] : memref<3x64x64xf32, #tpu.memory_space<vmem>>, vector<1x64x64xf32>
    %226 = vector.shape_cast %225 : vector<1x64x64xf32> to vector<64x64xf32>
    %cst_248 = arith.constant dense<0.000000e+00> : vector<16x64xf32>
    %227 = tpu.matmul %224, %226, %cst_248 {dimension_numbers = #tpu.dot_dimension_numbers<[1], [0], [0], [1], [0, 0, 1, 1], [], []>} : vector<16x64xf32>, vector<64x64xf32>, vector<16x64xf32> -> vector<16x64xf32>
    %c1_249 = arith.constant 1 : index
    %c0_250 = arith.constant 0 : index
    %c0_251 = arith.constant 0 : index
    %228 = vector.load %arg33[%c1_249, %c0_250, %c0_251] : memref<3x16x16xf32, #tpu.memory_space<vmem>>, vector<1x16x16xf32>
    %229 = vector.shape_cast %228 : vector<1x16x16xf32> to vector<16x16xf32>
    %cst_252 = arith.constant dense<0.000000e+00> : vector<16x64xf32>
    %230 = tpu.matmul %229, %221, %cst_252 {dimension_numbers = #tpu.dot_dimension_numbers<[1], [0], [0], [1], [0, 0, 1, 1], [], []>} : vector<16x16xf32>, vector<16x64xf32>, vector<16x64xf32> -> vector<16x64xf32>
    %c1_253 = arith.constant 1 : index
    %c0_254 = arith.constant 0 : index
    %c0_255 = arith.constant 0 : index
    %231 = vector.load %arg34[%c1_253, %c0_254, %c0_255] : memref<3x64x64xf32, #tpu.memory_space<vmem>>, vector<1x64x64xf32>
    %232 = vector.shape_cast %231 : vector<1x64x64xf32> to vector<64x64xf32>
    %cst_256 = arith.constant dense<0.000000e+00> : vector<16x64xf32>
    %233 = tpu.matmul %230, %232, %cst_256 {dimension_numbers = #tpu.dot_dimension_numbers<[1], [0], [0], [1], [0, 0, 1, 1], [], []>} : vector<16x64xf32>, vector<64x64xf32>, vector<16x64xf32> -> vector<16x64xf32>
    %234 = arith.addf %227, %233 : vector<16x64xf32>
    %c2_257 = arith.constant 2 : index
    %c0_258 = arith.constant 0 : index
    %c0_259 = arith.constant 0 : index
    %235 = vector.load %arg33[%c2_257, %c0_258, %c0_259] : memref<3x16x16xf32, #tpu.memory_space<vmem>>, vector<1x16x16xf32>
    %236 = vector.shape_cast %235 : vector<1x16x16xf32> to vector<16x16xf32>
    %cst_260 = arith.constant dense<0.000000e+00> : vector<16x64xf32>
    %237 = tpu.matmul %236, %221, %cst_260 {dimension_numbers = #tpu.dot_dimension_numbers<[1], [0], [0], [1], [0, 0, 1, 1], [], []>} : vector<16x16xf32>, vector<16x64xf32>, vector<16x64xf32> -> vector<16x64xf32>
    %c2_261 = arith.constant 2 : index
    %c0_262 = arith.constant 0 : index
    %c0_263 = arith.constant 0 : index
    %238 = vector.load %arg34[%c2_261, %c0_262, %c0_263] : memref<3x64x64xf32, #tpu.memory_space<vmem>>, vector<1x64x64xf32>
    %239 = vector.shape_cast %238 : vector<1x64x64xf32> to vector<64x64xf32>
    %cst_264 = arith.constant dense<0.000000e+00> : vector<16x64xf32>
    %240 = tpu.matmul %237, %239, %cst_264 {dimension_numbers = #tpu.dot_dimension_numbers<[1], [0], [0], [1], [0, 0, 1, 1], [], []>} : vector<16x64xf32>, vector<64x64xf32>, vector<16x64xf32> -> vector<16x64xf32>
    %241 = arith.addf %234, %240 : vector<16x64xf32>
    %c0_265 = arith.constant 0 : index
    %c0_266 = arith.constant 0 : index
    %242 = vector.load %arg35[%c0_265, %c0_266] : memref<1x64xf32, #tpu.memory_space<vmem>>, vector<1x64xf32>
    %243 = vector.broadcast %242 : vector<1x64xf32> to vector<16x64xf32>
    %244 = arith.addf %241, %243 : vector<16x64xf32>
    %cst_267 = arith.constant 0.000000e+00 : f32
    %245 = vector.broadcast %cst_267 : f32 to vector<16x64xf32>
    %246 = arith.maximumf %244, %245 : vector<16x64xf32>
    %c0_268 = arith.constant 0 : index
    %c0_269 = arith.constant 0 : index
    %247 = vector.load %arg36[%c0_268, %c0_269] : memref<32x16xf32, #tpu.memory_space<vmem>>, vector<32x16xf32>
    %cst_270 = arith.constant dense<0.000000e+00> : vector<32x64xf32>
    %248 = tpu.matmul %247, %246, %cst_270 {dimension_numbers = #tpu.dot_dimension_numbers<[1], [0], [0], [1], [0, 0, 1, 1], [], []>} : vector<32x16xf32>, vector<16x64xf32>, vector<32x64xf32> -> vector<32x64xf32>
    %c0_271 = arith.constant 0 : index
    %c0_272 = arith.constant 0 : index
    %249 = vector.load %arg37[%c0_271, %c0_272] : memref<64x128xf32, #tpu.memory_space<vmem>>, vector<64x128xf32>
    %cst_273 = arith.constant dense<0.000000e+00> : vector<32x128xf32>
    %250 = tpu.matmul %248, %249, %cst_273 {dimension_numbers = #tpu.dot_dimension_numbers<[1], [0], [0], [1], [0, 0, 1, 1], [], []>} : vector<32x64xf32>, vector<64x128xf32>, vector<32x128xf32> -> vector<32x128xf32>
    %c0_274 = arith.constant 0 : index
    %c0_275 = arith.constant 0 : index
    %c0_276 = arith.constant 0 : index
    %251 = vector.load %arg38[%c0_274, %c0_275, %c0_276] : memref<3x28x32xf32, #tpu.memory_space<vmem>>, vector<1x28x32xf32>
    %252 = vector.shape_cast %251 : vector<1x28x32xf32> to vector<28x32xf32>
    %cst_277 = arith.constant dense<0.000000e+00> : vector<28x128xf32>
    %253 = tpu.matmul %252, %250, %cst_277 {dimension_numbers = #tpu.dot_dimension_numbers<[1], [0], [0], [1], [0, 0, 1, 1], [], []>} : vector<28x32xf32>, vector<32x128xf32>, vector<28x128xf32> -> vector<28x128xf32>
    %c0_278 = arith.constant 0 : index
    %c0_279 = arith.constant 0 : index
    %c0_280 = arith.constant 0 : index
    %254 = vector.load %arg39[%c0_278, %c0_279, %c0_280] : memref<3x128x224xf32, #tpu.memory_space<vmem>>, vector<1x128x224xf32>
    %255 = vector.shape_cast %254 : vector<1x128x224xf32> to vector<128x224xf32>
    %cst_281 = arith.constant dense<0.000000e+00> : vector<28x224xf32>
    %256 = tpu.matmul %253, %255, %cst_281 {dimension_numbers = #tpu.dot_dimension_numbers<[1], [0], [0], [1], [0, 0, 1, 1], [], []>} : vector<28x128xf32>, vector<128x224xf32>, vector<28x224xf32> -> vector<28x224xf32>
    %c1_282 = arith.constant 1 : index
    %c0_283 = arith.constant 0 : index
    %c0_284 = arith.constant 0 : index
    %257 = vector.load %arg38[%c1_282, %c0_283, %c0_284] : memref<3x28x32xf32, #tpu.memory_space<vmem>>, vector<1x28x32xf32>
    %258 = vector.shape_cast %257 : vector<1x28x32xf32> to vector<28x32xf32>
    %cst_285 = arith.constant dense<0.000000e+00> : vector<28x128xf32>
    %259 = tpu.matmul %258, %250, %cst_285 {dimension_numbers = #tpu.dot_dimension_numbers<[1], [0], [0], [1], [0, 0, 1, 1], [], []>} : vector<28x32xf32>, vector<32x128xf32>, vector<28x128xf32> -> vector<28x128xf32>
    %c1_286 = arith.constant 1 : index
    %c0_287 = arith.constant 0 : index
    %c0_288 = arith.constant 0 : index
    %260 = vector.load %arg39[%c1_286, %c0_287, %c0_288] : memref<3x128x224xf32, #tpu.memory_space<vmem>>, vector<1x128x224xf32>
    %261 = vector.shape_cast %260 : vector<1x128x224xf32> to vector<128x224xf32>
    %cst_289 = arith.constant dense<0.000000e+00> : vector<28x224xf32>
    %262 = tpu.matmul %259, %261, %cst_289 {dimension_numbers = #tpu.dot_dimension_numbers<[1], [0], [0], [1], [0, 0, 1, 1], [], []>} : vector<28x128xf32>, vector<128x224xf32>, vector<28x224xf32> -> vector<28x224xf32>
    %263 = arith.addf %256, %262 : vector<28x224xf32>
    %c2_290 = arith.constant 2 : index
    %c0_291 = arith.constant 0 : index
    %c0_292 = arith.constant 0 : index
    %264 = vector.load %arg38[%c2_290, %c0_291, %c0_292] : memref<3x28x32xf32, #tpu.memory_space<vmem>>, vector<1x28x32xf32>
    %265 = vector.shape_cast %264 : vector<1x28x32xf32> to vector<28x32xf32>
    %cst_293 = arith.constant dense<0.000000e+00> : vector<28x128xf32>
    %266 = tpu.matmul %265, %250, %cst_293 {dimension_numbers = #tpu.dot_dimension_numbers<[1], [0], [0], [1], [0, 0, 1, 1], [], []>} : vector<28x32xf32>, vector<32x128xf32>, vector<28x128xf32> -> vector<28x128xf32>
    %c2_294 = arith.constant 2 : index
    %c0_295 = arith.constant 0 : index
    %c0_296 = arith.constant 0 : index
    %267 = vector.load %arg39[%c2_294, %c0_295, %c0_296] : memref<3x128x224xf32, #tpu.memory_space<vmem>>, vector<1x128x224xf32>
    %268 = vector.shape_cast %267 : vector<1x128x224xf32> to vector<128x224xf32>
    %cst_297 = arith.constant dense<0.000000e+00> : vector<28x224xf32>
    %269 = tpu.matmul %266, %268, %cst_297 {dimension_numbers = #tpu.dot_dimension_numbers<[1], [0], [0], [1], [0, 0, 1, 1], [], []>} : vector<28x128xf32>, vector<128x224xf32>, vector<28x224xf32> -> vector<28x224xf32>
    %270 = arith.addf %263, %269 : vector<28x224xf32>
    %c0_298 = arith.constant 0 : index
    %c0_299 = arith.constant 0 : index
    %271 = vector.load %arg40[%c0_298, %c0_299] : memref<1x224xf32, #tpu.memory_space<vmem>>, vector<1x224xf32>
    %272 = vector.broadcast %271 : vector<1x224xf32> to vector<28x224xf32>
    %273 = arith.addf %270, %272 : vector<28x224xf32>
    %cst_300 = arith.constant 0.000000e+00 : f32
    %274 = vector.broadcast %cst_300 : f32 to vector<28x224xf32>
    %275 = arith.maximumf %273, %274 : vector<28x224xf32>
    %c0_301 = arith.constant 0 : index
    %c0_302 = arith.constant 0 : index
    %276 = vector.load %arg41[%c0_301, %c0_302] : memref<56x28xf32, #tpu.memory_space<vmem>>, vector<56x28xf32>
    %cst_303 = arith.constant dense<0.000000e+00> : vector<56x224xf32>
    %277 = tpu.matmul %276, %275, %cst_303 {dimension_numbers = #tpu.dot_dimension_numbers<[1], [0], [0], [1], [0, 0, 1, 1], [], []>} : vector<56x28xf32>, vector<28x224xf32>, vector<56x224xf32> -> vector<56x224xf32>
    %c0_304 = arith.constant 0 : index
    %c0_305 = arith.constant 0 : index
    %278 = vector.load %arg42[%c0_304, %c0_305] : memref<224x448xf32, #tpu.memory_space<vmem>>, vector<224x448xf32>
    %cst_306 = arith.constant dense<0.000000e+00> : vector<56x448xf32>
    %279 = tpu.matmul %277, %278, %cst_306 {dimension_numbers = #tpu.dot_dimension_numbers<[1], [0], [0], [1], [0, 0, 1, 1], [], []>} : vector<56x224xf32>, vector<224x448xf32>, vector<56x448xf32> -> vector<56x448xf32>
    %c0_307 = arith.constant 0 : index
    %c0_308 = arith.constant 0 : index
    %c0_309 = arith.constant 0 : index
    %280 = vector.load %arg43[%c0_307, %c0_308, %c0_309] : memref<3x56x56xf32, #tpu.memory_space<vmem>>, vector<1x56x56xf32>
    %281 = vector.shape_cast %280 : vector<1x56x56xf32> to vector<56x56xf32>
    %cst_310 = arith.constant dense<0.000000e+00> : vector<56x448xf32>
    %282 = tpu.matmul %281, %279, %cst_310 {dimension_numbers = #tpu.dot_dimension_numbers<[1], [0], [0], [1], [0, 0, 1, 1], [], []>} : vector<56x56xf32>, vector<56x448xf32>, vector<56x448xf32> -> vector<56x448xf32>
    %c0_311 = arith.constant 0 : index
    %c0_312 = arith.constant 0 : index
    %c0_313 = arith.constant 0 : index
    %283 = vector.load %arg44[%c0_311, %c0_312, %c0_313] : memref<3x448x28xf32, #tpu.memory_space<vmem>>, vector<1x448x28xf32>
    %284 = vector.shape_cast %283 : vector<1x448x28xf32> to vector<448x28xf32>
    %cst_314 = arith.constant dense<0.000000e+00> : vector<56x28xf32>
    %285 = tpu.matmul %282, %284, %cst_314 {dimension_numbers = #tpu.dot_dimension_numbers<[1], [0], [0], [1], [0, 0, 1, 1], [], []>} : vector<56x448xf32>, vector<448x28xf32>, vector<56x28xf32> -> vector<56x28xf32>
    %c1_315 = arith.constant 1 : index
    %c0_316 = arith.constant 0 : index
    %c0_317 = arith.constant 0 : index
    %286 = vector.load %arg43[%c1_315, %c0_316, %c0_317] : memref<3x56x56xf32, #tpu.memory_space<vmem>>, vector<1x56x56xf32>
    %287 = vector.shape_cast %286 : vector<1x56x56xf32> to vector<56x56xf32>
    %cst_318 = arith.constant dense<0.000000e+00> : vector<56x448xf32>
    %288 = tpu.matmul %287, %279, %cst_318 {dimension_numbers = #tpu.dot_dimension_numbers<[1], [0], [0], [1], [0, 0, 1, 1], [], []>} : vector<56x56xf32>, vector<56x448xf32>, vector<56x448xf32> -> vector<56x448xf32>
    %c1_319 = arith.constant 1 : index
    %c0_320 = arith.constant 0 : index
    %c0_321 = arith.constant 0 : index
    %289 = vector.load %arg44[%c1_319, %c0_320, %c0_321] : memref<3x448x28xf32, #tpu.memory_space<vmem>>, vector<1x448x28xf32>
    %290 = vector.shape_cast %289 : vector<1x448x28xf32> to vector<448x28xf32>
    %cst_322 = arith.constant dense<0.000000e+00> : vector<56x28xf32>
    %291 = tpu.matmul %288, %290, %cst_322 {dimension_numbers = #tpu.dot_dimension_numbers<[1], [0], [0], [1], [0, 0, 1, 1], [], []>} : vector<56x448xf32>, vector<448x28xf32>, vector<56x28xf32> -> vector<56x28xf32>
    %292 = arith.addf %285, %291 : vector<56x28xf32>
    %c2_323 = arith.constant 2 : index
    %c0_324 = arith.constant 0 : index
    %c0_325 = arith.constant 0 : index
    %293 = vector.load %arg43[%c2_323, %c0_324, %c0_325] : memref<3x56x56xf32, #tpu.memory_space<vmem>>, vector<1x56x56xf32>
    %294 = vector.shape_cast %293 : vector<1x56x56xf32> to vector<56x56xf32>
    %cst_326 = arith.constant dense<0.000000e+00> : vector<56x448xf32>
    %295 = tpu.matmul %294, %279, %cst_326 {dimension_numbers = #tpu.dot_dimension_numbers<[1], [0], [0], [1], [0, 0, 1, 1], [], []>} : vector<56x56xf32>, vector<56x448xf32>, vector<56x448xf32> -> vector<56x448xf32>
    %c2_327 = arith.constant 2 : index
    %c0_328 = arith.constant 0 : index
    %c0_329 = arith.constant 0 : index
    %296 = vector.load %arg44[%c2_327, %c0_328, %c0_329] : memref<3x448x28xf32, #tpu.memory_space<vmem>>, vector<1x448x28xf32>
    %297 = vector.shape_cast %296 : vector<1x448x28xf32> to vector<448x28xf32>
    %cst_330 = arith.constant dense<0.000000e+00> : vector<56x28xf32>
    %298 = tpu.matmul %295, %297, %cst_330 {dimension_numbers = #tpu.dot_dimension_numbers<[1], [0], [0], [1], [0, 0, 1, 1], [], []>} : vector<56x448xf32>, vector<448x28xf32>, vector<56x28xf32> -> vector<56x28xf32>
    %299 = arith.addf %292, %298 : vector<56x28xf32>
    %c0_331 = arith.constant 0 : index
    %c0_332 = arith.constant 0 : index
    %300 = vector.load %arg45[%c0_331, %c0_332] : memref<1x28xf32, #tpu.memory_space<vmem>>, vector<1x28xf32>
    %301 = vector.broadcast %300 : vector<1x28xf32> to vector<56x28xf32>
    %302 = arith.addf %299, %301 : vector<56x28xf32>
    %303 = arith.negf %302 : vector<56x28xf32>
    %304 = math.exp %303 : vector<56x28xf32>
    %cst_333 = arith.constant 1.000000e+00 : f32
    %305 = vector.broadcast %cst_333 : f32 to vector<56x28xf32>
    %306 = arith.addf %305, %304 : vector<56x28xf32>
    %307 = arith.divf %305, %306 : vector<56x28xf32>
    %c0_334 = arith.constant 0 : index
    %c0_335 = arith.constant 0 : index
    %308 = vector.load %arg46[%c0_334, %c0_335] : memref<56x28xf32, #tpu.memory_space<vmem>>, vector<56x28xf32>
    tpu.vector_store %arg46[%c0_334, %c0_335], %307 {strides = array<i32>} : memref<56x28xf32, #tpu.memory_space<vmem>>, vector<56x28xf32>,
    %c0_336 = arith.constant 0 : index
    %c0_337 = arith.constant 0 : index
    %309 = vector.load %arg47[%c0_336, %c0_337] : memref<2x16xf32, #tpu.memory_space<vmem>>, vector<2x16xf32>
    tpu.vector_store %arg47[%c0_336, %c0_337], %149 {strides = array<i32>} : memref<2x16xf32, #tpu.memory_space<vmem>>, vector<2x16xf32>,
    %c0_338 = arith.constant 0 : index
    %c0_339 = arith.constant 0 : index
    %310 = vector.load %arg48[%c0_338, %c0_339] : memref<2x16xf32, #tpu.memory_space<vmem>>, vector<2x16xf32>
    tpu.vector_store %arg48[%c0_338, %c0_339], %154 {strides = array<i32>} : memref<2x16xf32, #tpu.memory_space<vmem>>, vector<2x16xf32>,
    %c0_340 = arith.constant 0 : index
    %c0_341 = arith.constant 0 : index
    %311 = vector.load %arg49[%c0_340, %c0_341] : memref<2x16xf32, #tpu.memory_space<vmem>>, vector<2x16xf32>
    tpu.vector_store %arg49[%c0_340, %c0_341], %160 {strides = array<i32>} : memref<2x16xf32, #tpu.memory_space<vmem>>, vector<2x16xf32>,
    return
  }
  func.func @transform_0(%arg0: i32) -> (i32, i32) {
    %c0_i32 = arith.constant 0 : i32
    %c0_i32_0 = arith.constant 0 : i32
    %c0_i32_1 = arith.constant 0 : i32
    return %c0_i32, %c0_i32_0 : i32, i32
  }
  func.func @transform_1(%arg0: i32) -> (i32, i32) {
    %c0_i32 = arith.constant 0 : i32
    %c0_i32_0 = arith.constant 0 : i32
    %c0_i32_1 = arith.constant 0 : i32
    return %c0_i32, %c0_i32_0 : i32, i32
  }
  func.func @transform_2(%arg0: i32) -> (i32, i32, i32) {
    %c0_i32 = arith.constant 0 : i32
    %c0_i32_0 = arith.constant 0 : i32
    %c0_i32_1 = arith.constant 0 : i32
    %c0_i32_2 = arith.constant 0 : i32
    return %c0_i32, %c0_i32_0, %c0_i32_1 : i32, i32, i32
  }
  func.func @transform_3(%arg0: i32) -> (i32, i32, i32) {
    %c0_i32 = arith.constant 0 : i32
    %c0_i32_0 = arith.constant 0 : i32
    %c0_i32_1 = arith.constant 0 : i32
    %c0_i32_2 = arith.constant 0 : i32
    return %c0_i32, %c0_i32_0, %c0_i32_1 : i32, i32, i32
  }
  func.func @transform_4(%arg0: i32) -> (i32, i32) {
    %c0_i32 = arith.constant 0 : i32
    %c0_i32_0 = arith.constant 0 : i32
    %c0_i32_1 = arith.constant 0 : i32
    return %c0_i32, %c0_i32_0 : i32, i32
  }
  func.func @transform_5(%arg0: i32) -> (i32, i32, i32) {
    %c0_i32 = arith.constant 0 : i32
    %c0_i32_0 = arith.constant 0 : i32
    %c0_i32_1 = arith.constant 0 : i32
    %c0_i32_2 = arith.constant 0 : i32
    return %c0_i32, %c0_i32_0, %c0_i32_1 : i32, i32, i32
  }
  func.func @transform_6(%arg0: i32) -> (i32, i32, i32) {
    %c0_i32 = arith.constant 0 : i32
    %c0_i32_0 = arith.constant 0 : i32
    %c0_i32_1 = arith.constant 0 : i32
    %c0_i32_2 = arith.constant 0 : i32
    return %c0_i32, %c0_i32_0, %c0_i32_1 : i32, i32, i32
  }
  func.func @transform_7(%arg0: i32) -> (i32, i32, i32) {
    %c0_i32 = arith.constant 0 : i32
    %c0_i32_0 = arith.constant 0 : i32
    %c0_i32_1 = arith.constant 0 : i32
    %c0_i32_2 = arith.constant 0 : i32
    return %c0_i32, %c0_i32_0, %c0_i32_1 : i32, i32, i32
  }
  func.func @transform_8(%arg0: i32) -> (i32, i32, i32) {
    %c0_i32 = arith.constant 0 : i32
    %c0_i32_0 = arith.constant 0 : i32
    %c0_i32_1 = arith.constant 0 : i32
    %c0_i32_2 = arith.constant 0 : i32
    return %c0_i32, %c0_i32_0, %c0_i32_1 : i32, i32, i32
  }
  func.func @transform_9(%arg0: i32) -> (i32, i32) {
    %c0_i32 = arith.constant 0 : i32
    %c0_i32_0 = arith.constant 0 : i32
    %c0_i32_1 = arith.constant 0 : i32
    return %c0_i32, %c0_i32_0 : i32, i32
  }
  func.func @transform_10(%arg0: i32) -> (i32, i32, i32) {
    %c0_i32 = arith.constant 0 : i32
    %c0_i32_0 = arith.constant 0 : i32
    %c0_i32_1 = arith.constant 0 : i32
    %c0_i32_2 = arith.constant 0 : i32
    return %c0_i32, %c0_i32_0, %c0_i32_1 : i32, i32, i32
  }
  func.func @transform_11(%arg0: i32) -> (i32, i32, i32) {
    %c0_i32 = arith.constant 0 : i32
    %c0_i32_0 = arith.constant 0 : i32
    %c0_i32_1 = arith.constant 0 : i32
    %c0_i32_2 = arith.constant 0 : i32
    return %c0_i32, %c0_i32_0, %c0_i32_1 : i32, i32, i32
  }
  func.func @transform_12(%arg0: i32) -> (i32, i32, i32) {
    %c0_i32 = arith.constant 0 : i32
    %c0_i32_0 = arith.constant 0 : i32
    %c0_i32_1 = arith.constant 0 : i32
    %c0_i32_2 = arith.constant 0 : i32
    return %c0_i32, %c0_i32_0, %c0_i32_1 : i32, i32, i32
  }
  func.func @transform_13(%arg0: i32) -> (i32, i32, i32) {
    %c0_i32 = arith.constant 0 : i32
    %c0_i32_0 = arith.constant 0 : i32
    %c0_i32_1 = arith.constant 0 : i32
    %c0_i32_2 = arith.constant 0 : i32
    return %c0_i32, %c0_i32_0, %c0_i32_1 : i32, i32, i32
  }
  func.func @transform_14(%arg0: i32) -> (i32, i32) {
    %c0_i32 = arith.constant 0 : i32
    %c0_i32_0 = arith.constant 0 : i32
    %c0_i32_1 = arith.constant 0 : i32
    return %c0_i32, %c0_i32_0 : i32, i32
  }
  func.func @transform_15(%arg0: i32) -> (i32, i32, i32) {
    %c0_i32 = arith.constant 0 : i32
    %c0_i32_0 = arith.constant 0 : i32
    %c0_i32_1 = arith.constant 0 : i32
    %c0_i32_2 = arith.constant 0 : i32
    return %c0_i32, %c0_i32_0, %c0_i32_1 : i32, i32, i32
  }
  func.func @transform_16(%arg0: i32) -> (i32, i32, i32) {
    %c0_i32 = arith.constant 0 : i32
    %c0_i32_0 = arith.constant 0 : i32
    %c0_i32_1 = arith.constant 0 : i32
    %c0_i32_2 = arith.constant 0 : i32
    return %c0_i32, %c0_i32_0, %c0_i32_1 : i32, i32, i32
  }
  func.func @transform_17(%arg0: i32) -> (i32, i32, i32) {
    %c0_i32 = arith.constant 0 : i32
    %c0_i32_0 = arith.constant 0 : i32
    %c0_i32_1 = arith.constant 0 : i32
    %c0_i32_2 = arith.constant 0 : i32
    return %c0_i32, %c0_i32_0, %c0_i32_1 : i32, i32, i32
  }
  func.func @transform_18(%arg0: i32) -> (i32, i32, i32) {
    %c0_i32 = arith.constant 0 : i32
    %c0_i32_0 = arith.constant 0 : i32
    %c0_i32_1 = arith.constant 0 : i32
    %c0_i32_2 = arith.constant 0 : i32
    return %c0_i32, %c0_i32_0, %c0_i32_1 : i32, i32, i32
  }
  func.func @transform_19(%arg0: i32) -> (i32, i32) {
    %c0_i32 = arith.constant 0 : i32
    %c0_i32_0 = arith.constant 0 : i32
    %c0_i32_1 = arith.constant 0 : i32
    return %c0_i32, %c0_i32_0 : i32, i32
  }
  func.func @transform_20(%arg0: i32) -> (i32, i32) {
    %c0_i32 = arith.constant 0 : i32
    %c0_i32_0 = arith.constant 0 : i32
    %c0_i32_1 = arith.constant 0 : i32
    return %c0_i32, %c0_i32_0 : i32, i32
  }
  func.func @transform_21(%arg0: i32) -> (i32, i32) {
    %c0_i32 = arith.constant 0 : i32
    %c0_i32_0 = arith.constant 0 : i32
    %c0_i32_1 = arith.constant 0 : i32
    return %c0_i32, %c0_i32_0 : i32, i32
  }
  func.func @transform_22(%arg0: i32) -> (i32, i32) {
    %c0_i32 = arith.constant 0 : i32
    %c0_i32_0 = arith.constant 0 : i32
    %c0_i32_1 = arith.constant 0 : i32
    return %c0_i32, %c0_i32_0 : i32, i32
  }
  func.func @transform_23(%arg0: i32) -> (i32, i32) {
    %c0_i32 = arith.constant 0 : i32
    %c0_i32_0 = arith.constant 0 : i32
    %c0_i32_1 = arith.constant 0 : i32
    return %c0_i32, %c0_i32_0 : i32, i32
  }
  func.func @transform_24(%arg0: i32) -> (i32, i32) {
    %c0_i32 = arith.constant 0 : i32
    %c0_i32_0 = arith.constant 0 : i32
    %c0_i32_1 = arith.constant 0 : i32
    return %c0_i32, %c0_i32_0 : i32, i32
  }
  func.func @transform_25(%arg0: i32) -> (i32, i32, i32) {
    %c0_i32 = arith.constant 0 : i32
    %c0_i32_0 = arith.constant 0 : i32
    %c0_i32_1 = arith.constant 0 : i32
    %c0_i32_2 = arith.constant 0 : i32
    return %c0_i32, %c0_i32_0, %c0_i32_1 : i32, i32, i32
  }
  func.func @transform_26(%arg0: i32) -> (i32, i32, i32) {
    %c0_i32 = arith.constant 0 : i32
    %c0_i32_0 = arith.constant 0 : i32
    %c0_i32_1 = arith.constant 0 : i32
    %c0_i32_2 = arith.constant 0 : i32
    return %c0_i32, %c0_i32_0, %c0_i32_1 : i32, i32, i32
  }
  func.func @transform_27(%arg0: i32) -> (i32, i32, i32) {
    %c0_i32 = arith.constant 0 : i32
    %c0_i32_0 = arith.constant 0 : i32
    %c0_i32_1 = arith.constant 0 : i32
    %c0_i32_2 = arith.constant 0 : i32
    return %c0_i32, %c0_i32_0, %c0_i32_1 : i32, i32, i32
  }
  func.func @transform_28(%arg0: i32) -> (i32, i32, i32) {
    %c0_i32 = arith.constant 0 : i32
    %c0_i32_0 = arith.constant 0 : i32
    %c0_i32_1 = arith.constant 0 : i32
    %c0_i32_2 = arith.constant 0 : i32
    return %c0_i32, %c0_i32_0, %c0_i32_1 : i32, i32, i32
  }
  func.func @transform_29(%arg0: i32) -> (i32, i32) {
    %c0_i32 = arith.constant 0 : i32
    %c0_i32_0 = arith.constant 0 : i32
    %c0_i32_1 = arith.constant 0 : i32
    return %c0_i32, %c0_i32_0 : i32, i32
  }
  func.func @transform_30(%arg0: i32) -> (i32, i32) {
    %c0_i32 = arith.constant 0 : i32
    %c0_i32_0 = arith.constant 0 : i32
    %c0_i32_1 = arith.constant 0 : i32
    return %c0_i32, %c0_i32_0 : i32, i32
  }
  func.func @transform_31(%arg0: i32) -> (i32, i32) {
    %c0_i32 = arith.constant 0 : i32
    %c0_i32_0 = arith.constant 0 : i32
    %c0_i32_1 = arith.constant 0 : i32
    return %c0_i32, %c0_i32_0 : i32, i32
  }
  func.func @transform_32(%arg0: i32) -> (i32, i32, i32) {
    %c0_i32 = arith.constant 0 : i32
    %c0_i32_0 = arith.constant 0 : i32
    %c0_i32_1 = arith.constant 0 : i32
    %c0_i32_2 = arith.constant 0 : i32
    return %c0_i32, %c0_i32_0, %c0_i32_1 : i32, i32, i32
  }
  func.func @transform_33(%arg0: i32) -> (i32, i32, i32) {
    %c0_i32 = arith.constant 0 : i32
    %c0_i32_0 = arith.constant 0 : i32
    %c0_i32_1 = arith.constant 0 : i32
    %c0_i32_2 = arith.constant 0 : i32
    return %c0_i32, %c0_i32_0, %c0_i32_1 : i32, i32, i32
  }
  func.func @transform_34(%arg0: i32) -> (i32, i32) {
    %c0_i32 = arith.constant 0 : i32
    %c0_i32_0 = arith.constant 0 : i32
    %c0_i32_1 = arith.constant 0 : i32
    return %c0_i32, %c0_i32_0 : i32, i32
  }
  func.func @transform_35(%arg0: i32) -> (i32, i32) {
    %c0_i32 = arith.constant 0 : i32
    %c0_i32_0 = arith.constant 0 : i32
    %c0_i32_1 = arith.constant 0 : i32
    return %c0_i32, %c0_i32_0 : i32, i32
  }
  func.func @transform_36(%arg0: i32) -> (i32, i32) {
    %c0_i32 = arith.constant 0 : i32
    %c0_i32_0 = arith.constant 0 : i32
    %c0_i32_1 = arith.constant 0 : i32
    return %c0_i32, %c0_i32_0 : i32, i32
  }
  func.func @transform_37(%arg0: i32) -> (i32, i32, i32) {
    %c0_i32 = arith.constant 0 : i32
    %c0_i32_0 = arith.constant 0 : i32
    %c0_i32_1 = arith.constant 0 : i32
    %c0_i32_2 = arith.constant 0 : i32
    return %c0_i32, %c0_i32_0, %c0_i32_1 : i32, i32, i32
  }
  func.func @transform_38(%arg0: i32) -> (i32, i32, i32) {
    %c0_i32 = arith.constant 0 : i32
    %c0_i32_0 = arith.constant 0 : i32
    %c0_i32_1 = arith.constant 0 : i32
    %c0_i32_2 = arith.constant 0 : i32
    return %c0_i32, %c0_i32_0, %c0_i32_1 : i32, i32, i32
  }
  func.func @transform_39(%arg0: i32) -> (i32, i32) {
    %c0_i32 = arith.constant 0 : i32
    %c0_i32_0 = arith.constant 0 : i32
    %c0_i32_1 = arith.constant 0 : i32
    return %c0_i32, %c0_i32_0 : i32, i32
  }
  func.func @transform_40(%arg0: i32) -> (i32, i32) {
    %c0_i32 = arith.constant 0 : i32
    %c0_i32_0 = arith.constant 0 : i32
    %c0_i32_1 = arith.constant 0 : i32
    return %c0_i32, %c0_i32_0 : i32, i32
  }
  func.func @transform_41(%arg0: i32) -> (i32, i32) {
    %c0_i32 = arith.constant 0 : i32
    %c0_i32_0 = arith.constant 0 : i32
    %c0_i32_1 = arith.constant 0 : i32
    return %c0_i32, %c0_i32_0 : i32, i32
  }
  func.func @transform_42(%arg0: i32) -> (i32, i32, i32) {
    %c0_i32 = arith.constant 0 : i32
    %c0_i32_0 = arith.constant 0 : i32
    %c0_i32_1 = arith.constant 0 : i32
    %c0_i32_2 = arith.constant 0 : i32
    return %c0_i32, %c0_i32_0, %c0_i32_1 : i32, i32, i32
  }
  func.func @transform_43(%arg0: i32) -> (i32, i32, i32) {
    %c0_i32 = arith.constant 0 : i32
    %c0_i32_0 = arith.constant 0 : i32
    %c0_i32_1 = arith.constant 0 : i32
    %c0_i32_2 = arith.constant 0 : i32
    return %c0_i32, %c0_i32_0, %c0_i32_1 : i32, i32, i32
  }
  func.func @transform_44(%arg0: i32) -> (i32, i32) {
    %c0_i32 = arith.constant 0 : i32
    %c0_i32_0 = arith.constant 0 : i32
    %c0_i32_1 = arith.constant 0 : i32
    return %c0_i32, %c0_i32_0 : i32, i32
  }
  func.func @transform_45(%arg0: i32) -> (i32, i32) {
    %c0_i32 = arith.constant 0 : i32
    %c0_i32_0 = arith.constant 0 : i32
    %c0_i32_1 = arith.constant 0 : i32
    return %c0_i32, %c0_i32_0 : i32, i32
  }
  func.func @transform_46(%arg0: i32) -> (i32, i32) {
    %c0_i32 = arith.constant 0 : i32
    %c0_i32_0 = arith.constant 0 : i32
    %c0_i32_1 = arith.constant 0 : i32
    return %c0_i32, %c0_i32_0 : i32, i32
  }
  func.func @transform_47(%arg0: i32) -> (i32, i32) {
    %c0_i32 = arith.constant 0 : i32
    %c0_i32_0 = arith.constant 0 : i32
    %c0_i32_1 = arith.constant 0 : i32
    return %c0_i32, %c0_i32_0 : i32, i32
  }
  func.func @transform_48(%arg0: i32) -> (i32, i32) {
    %c0_i32 = arith.constant 0 : i32
    %c0_i32_0 = arith.constant 0 : i32
    %c0_i32_1 = arith.constant 0 : i32
    return %c0_i32, %c0_i32_0 : i32, i32
  }
}

</mosaic_0001>

<bundles_post_ra>
// kernel: convvae_forward.1
= control target key start
LH: loop header
LB: loop body
LE: loop exit
PB: predicated region body
PF: predicated region fallthrough
CT: control target
= control target key end

     0   :  { %s15129_s6 = smov 1   ;;  %s15130_s10 = smov 2   ;;  %s17919_s0 = inlined_call_operand.smem [shape: u32[49], index: -1, kind: input, shape index: {}] }
   0x1   :  { %s15221_s5 = sld [smem:[%s17919_s0]]   ;;  %s15131_s14 = smov 3  }
   0x2   :  { %s15226_s9 = sld [smem:[%s17919_s0 + %s15129_s6]]   ;;  %s15132_s18 = smov 4  }
   0x3   :  { %s15231_s13 = sld [smem:[%s17919_s0 + %s15130_s10]]   ;;  %s15133_s22 = smov 5  }
   0x4   :  { %s15236_s17 = sld [smem:[%s17919_s0 + %s15131_s14]]   ;;  %s15134_s26 = smov 6  }
   0x5   :  { %s15241_s21 = sld [smem:[%s17919_s0 + %s15132_s18]]   ;;  %s15135_s30 = smov 7  }
   0x6   :  { %s15246_s25 = sld [smem:[%s17919_s0 + %s15133_s22]]   ;;  %s15136_s4 = smov 8  }
   0x7   :  { %s15251_s29 = sld [smem:[%s17919_s0 + %s15134_s26]]   ;;  %s15137_s10 = smov 9  }
   0x8   :  { %s15256_s3 = sld [smem:[%s17919_s0 + %s15135_s30]]   ;;  %s15138_s15 = smov 10  }
   0x9   :  { %s15261_s8 = sld [smem:[%s17919_s0 + %s15136_s4]]   ;;  %s15139_s20 = smov 11  }
   0xa   :  { %17950 = sst [smem:[#allocation62_spill]] %s15236_s17  ;;  %s15140_s26 = smov 12  }
   0xb   :  { %17951 = sst [smem:[#allocation63_spill]] %s15241_s21  ;;  %s15141_s1 = smov 13  }
   0xc   :  { %17952 = sst [smem:[#allocation64_spill]] %s15246_s25  ;;  %s15142_s7 = smov 14  }
   0xd   :  { %17953 = sst [smem:[#allocation65_spill]] %s15251_s29  ;;  %s15144_s22 = smov 16  }
   0xe   :  { %s15266_s14 = sld [smem:[%s17919_s0 + %s15137_s10]]   ;;  %s15145_s28 = smov 17  }
   0xf   :  { %17954 = sst [smem:[#allocation66_spill]] %s15261_s8 }
  0x10   :  { %s15271_s19 = sld [smem:[%s17919_s0 + %s15138_s15]]   ;;  %s15143_s15 = smov 15  }
  0x11   :  { %s15276_s24 = sld [smem:[%s17919_s0 + %s15139_s20]]  }
  0x12   :  { %s15281_s30 = sld [smem:[%s17919_s0 + %s15140_s26]]  }
  0x13   :  { %s15286_s6 = sld [smem:[%s17919_s0 + %s15141_s1]]  }
  0x14   :  { %s15291_s12 = sld [smem:[%s17919_s0 + %s15142_s7]]   ;;  %s15146_s7 = smov 18  }
  0x15   :  { %s15296_s20 = sld [smem:[%s17919_s0 + %s15143_s15]]   ;;  %s15147_s15 = smov 19  }
  0x16   :  { %17955 = sst [smem:[#allocation67_spill]] %s15271_s19 }
  0x17   :  { %17956 = sst [smem:[#allocation68_spill]] %s15276_s24 }
  0x18   :  { %s15301_s27 = sld [smem:[%s17919_s0 + %s15144_s22]]   ;;  %s15148_s22 = smov 20  }
  0x19   :  { %17957 = sst [smem:[#allocation69_spill]] %s15286_s6 }
  0x1a   :  { %s15306_s4 = sld [smem:[%s17919_s0 + %s15145_s28]]   ;;  %s15149_s28 = smov 21  }
  0x1b   :  { %17958 = sst [smem:[#allocation70_spill]] %s15296_s20 }
  0x1c   :  { %s15311_s24 = sld [smem:[%s17919_s0 + %s15146_s7]]   ;;  %s15150_s7 = smov 22  }
  0x1d   :  { %s15316_s19 = sld [smem:[%s17919_s0 + %s15147_s15]]   ;;  %s15151_s15 = smov 23  }
  0x1e   :  { %17959 = sst [smem:[#allocation71_spill]] %s15301_s27 }
  0x1f   :  { %s15321_s27 = sld [smem:[%s17919_s0 + %s15148_s22]]   ;;  %s15152_s22 = smov 24  }
  0x20   :  { %s15326_s8 = sld [smem:[%s17919_s0 + %s15149_s28]]   ;;  %s15153_s28 = smov 25  }
  0x21   :  { %s15331_s25 = sld [smem:[%s17919_s0 + %s15150_s7]]   ;;  %s15154_s7 = smov 26  }
  0x22   :  { %17960 = sst [smem:[#allocation72_spill]] %s15311_s24 }
  0x23   :  { %17961 = sst [smem:[#allocation73_spill]] %s15316_s19 }
  0x24   :  { %s15336_s19 = sld [smem:[%s17919_s0 + %s15151_s15]]   ;;  %s15155_s15 = smov 27  }
  0x25   :  { %s15341_s29 = sld [smem:[%s17919_s0 + %s15152_s22]]   ;;  %s15156_s22 = smov 28  }
  0x26   :  { %17962 = sst [smem:[#allocation74_spill]] %s15326_s8 }
  0x27   :  { %17963 = sst [smem:[#allocation75_spill]] %s15331_s25 }
  0x28   :  { %s15346_s8 = sld [smem:[%s17919_s0 + %s15153_s28]]   ;;  %s15157_s28 = smov 29  }
  0x29   :  { %s15351_s21 = sld [smem:[%s17919_s0 + %s15154_s7]]   ;;  %s15158_s7 = smov 30  }
  0x2a   :  { %s15356_s17 = sld [smem:[%s17919_s0 + %s15155_s15]]   ;;  %s15159_s15 = smov 31  }
  0x2b   :  { %17964 = sst [smem:[#allocation76_spill]] %s15341_s29 }
  0x2c   :  { %s15361_s29 = sld [smem:[%s17919_s0 + %s15156_s22]]   ;;  %s15160_s22 = smov 32  }
  0x2d   :  { %s15376_s25 = sld [smem:[%s17919_s0 + %s15159_s15]]   ;;  %s15163_s15 = smov 35  }
  0x2e   :  { %17965 = sst [smem:[#allocation77_spill]] %s15346_s8 }
  0x2f   :  { %17966 = sst [smem:[#allocation78_spill]] %s15351_s21 }
  0x30   :  { %s15366_s8 = sld [smem:[%s17919_s0 + %s15157_s28]]   ;;  %s15161_s28 = smov 33  }
  0x31   :  { %s15371_s21 = sld [smem:[%s17919_s0 + %s15158_s7]]   ;;  %s15162_s7 = smov 34  }
  0x32   :  { %17967 = sst [smem:[#allocation79_spill]] %s15361_s29 }
  0x33   :  { %17969 = sst [smem:[#allocation81_spill]] %s15376_s25 }
  0x34   :  { %s15381_s29 = sld [smem:[%s17919_s0 + %s15160_s22]]   ;;  %s15164_s22 = smov 36  }
  0x35   :  { %s15386_s24 = sld [smem:[%s17919_s0 + %s15161_s28]]   ;;  %s15165_s28 = smov 37  }
  0x36   :  { %s15396_s25 = sld [smem:[%s17919_s0 + %s15163_s15]]   ;;  %s15167_s15 = smov 39  }
  0x37   :  { %17968 = sst [smem:[#allocation80_spill]] %s15371_s21 }
  0x38   :  { %s15391_s21 = sld [smem:[%s17919_s0 + %s15162_s7]]   ;;  %s15166_s7 = smov 38  }
  0x39   :  { %s15411_s20 = sld [smem:[%s17919_s0 + %s15166_s7]]   ;;  %s15170_s7 = smov 42  }
  0x3a   :  { %17970 = sst [smem:[#allocation82_spill]] %s15381_s29 }
  0x3b   :  { %17971 = sst [smem:[#allocation83_spill]] %s15386_s24 }
  0x3c   :  { %17972 = sst [smem:[#allocation84_spill]] %s15396_s25 }
  0x3d   :  { %s15401_s29 = sld [smem:[%s17919_s0 + %s15164_s22]]   ;;  %s15168_s22 = smov 40  }
  0x3e   :  { %s15406_s24 = sld [smem:[%s17919_s0 + %s15165_s28]]   ;;  %s15169_s28 = smov 41  }
  0x3f   :  { %17975 = sst [smem:[#allocation87_spill]] %s15411_s20 }
  0x40   :  { %s15416_s25 = sld [smem:[%s17919_s0 + %s15167_s15]]   ;;  %s15171_s15 = smov 43  }
  0x41   :  { %s15431_s20 = sld [smem:[%s17919_s0 + %s15170_s7]]   ;;  %s15174_s7 = smov 46  }
  0x42   :  { %s15436_s6 = sld [smem:[%s17919_s0 + %s15171_s15]]   ;;  %s15175_s15 = smov 47  }
  0x43   :  { %17973 = sst [smem:[#allocation85_spill]] %s15401_s29 }
  0x44   :  { %17974 = sst [smem:[#allocation86_spill]] %s15406_s24 }
  0x45   :  { %s15421_s29 = sld [smem:[%s17919_s0 + %s15168_s22]]   ;;  %s15172_s22 = smov 44  }
  0x46   :  { %s15426_s24 = sld [smem:[%s17919_s0 + %s15169_s28]]   ;;  %s15173_s28 = smov 45  }
  0x47   :  { %17978 = sst [smem:[#allocation90_spill]] %s15431_s20 }
  0x48   :  { %17979 = sst [smem:[#allocation91_spill]] %s15436_s6 }
  0x49   :  { %s15451_s20 = sld [smem:[%s17919_s0 + %s15174_s7]]  }
  0x4a   :  { %s15456_s6 = sld [smem:[%s17919_s0 + %s15175_s15]]  }
  0x4b   :  { %17976 = sst [smem:[#allocation88_spill]] %s15421_s29 }
  0x4c   :  { %17977 = sst [smem:[#allocation89_spill]] %s15426_s24 }
  0x4d   :  { %s15441_s29 = sld [smem:[%s17919_s0 + %s15172_s22]]   ;;  %s15176_s22 = smov 48  }
  0x4e   :  { %s15446_s24 = sld [smem:[%s17919_s0 + %s15173_s28]]  }
  0x53   :  { %17980 = sst [smem:[#allocation92_spill]] %s15441_s29 }
  0x54   :  { %s15461_s29 = sld [smem:[%s17919_s0 + %s15176_s22]]  }
  0x55   :  { %103 = vsyncpa [#allocation3], 0 }
  0x56   :  { %104 = vsyncpa [#allocation6], 0 }
  0x57   :  { %105 = vsyncpa [#allocation9], 0 }
  0x58   :  { %106 = vsyncpa [#allocation12], 0 }
  0x59   :  { %107 = vsyncpa [#allocation15], 0 }
  0x5a   :  { %108 = vsyncpa [#allocation18], 0 }
  0x5b   :  { %109 = vsyncpa [#allocation21], 0 }
  0x5c   :  { %110 = vsyncpa [#allocation24], 0 }
  0x5d   :  { %111 = vsyncpa [#allocation27], 0 }
  0x5e   :  { %112 = vsyncpa [#allocation30], 0 }
  0x5f   :  { %113 = vsyncpa [#allocation33], 0 }
  0x60   :  { %114 = vsyncpa [#allocation36], 0 }
  0x61   :  { %115 = vsyncpa [#allocation39], 0 }
  0x62   :  { %116 = vsyncpa [#allocation4], 0 }
  0x63   :  { %117 = vsyncpa [#allocation42], 0 }
  0x64   :  { %118 = vsyncpa [#allocation45], 0  ;;  %s15177_s0 = smov [#allocation5]   ;;  %s14481_s1 = scalar_lea.hbm %s15226_s9, 32 }
  0x65   :  { %s137_s28 = sshll.u32 %s15177_s0, 4  ;;  %p14482_p0 = scmp.ne.s32.totalorder %s15226_s9, %s14481_s1  ;;  %s138_s28 = int_to_ptr.vmem [resolvable:$true] %s137_s28 }
  0x66   :  { %p14485_p1 = scmp.lt.u32.totalorder %s14481_s1, %s15226_s9 }
  0x68   :  { %p14487_p2 = pnand %p14485_p1, %p14482_p0 }
  0x6a   :  { %14490 = shalt.err (!%p14487_p2)
}
  0x6b   :  { %s14491_s2 = scalar_lea.vmem %s138_s28, 32  ;;  %p14496_p4 = scmp.lt.s32.totalorder %s138_s28, %s138_s28 }
  0x6c   :  { %p14492_p3 = scmp.ne.s32.totalorder %s138_s28, %s14491_s2  ;;  %p14497_p5 = scmp.lt.s32.totalorder %s14491_s2, %s14491_s2 }
  0x6e   :  { %p14498_p6 = por %p14497_p5, %p14496_p4 }
  0x70   :  { %p14499_p7 = pnand %p14498_p6, %p14492_p3 }
  0x72   :  { %14502 = shalt.err (!%p14499_p7)
}
  0x73   :  { %140 = dma.hbm_to_vmem [thread:$0]  %s15226_s9, 32, %s138_s28, [#allocation6]  }
  0x74   :  { %s15178_s7 = smov [#allocation8]   ;;  %s15179_s11 = smov [#allocation11]  }
  0x75   :  { %s166_s10 = sshll.u32 %s15178_s7, 4  ;;  %s194_s15 = sshll.u32 %s15179_s11, 4  ;;  %s167_s10 = int_to_ptr.vmem [resolvable:$true] %s166_s10  ;;  %s195_s15 = int_to_ptr.vmem [resolvable:$true] %s194_s15 }
  0x76   :  { %s14503_s16 = scalar_lea.hbm %s15256_s3, 1536 }
  0x77   :  { %p14504_p8 = scmp.ne.s32.totalorder %s15256_s3, %s14503_s16  ;;  %p14507_p9 = scmp.lt.u32.totalorder %s14503_s16, %s15256_s3 }
  0x79   :  { %p14509_p10 = pnand %p14507_p9, %p14504_p8 }
  0x7b   :  { %14512 = shalt.err (!%p14509_p10)
}
  0x7c   :  { %s14513_s18 = scalar_lea.vmem %s167_s10, 1536  ;;  %p14518_p12 = scmp.lt.s32.totalorder %s167_s10, %s167_s10 }
  0x7d   :  { %p14514_p11 = scmp.ne.s32.totalorder %s167_s10, %s14513_s18  ;;  %p14519_p13 = scmp.lt.s32.totalorder %s14513_s18, %s14513_s18 }
  0x7f   :  { %p14520_p0 = por %p14519_p13, %p14518_p12 }
  0x81   :  { %p14521_p1 = pnand %p14520_p0, %p14514_p11 }
  0x83   :  { %14524 = shalt.err (!%p14521_p1)
}
  0x84   :  { %s15180_s22 = smov 128   ;;  %s15181_s9 = smov 8  }
  0x85   :  { %172 = dma.hbm_to_vmem [thread:$0]  %s15256_s3, 1536, %s167_s10, [#allocation9], %s15180_s22, %s15180_s22, %s15181_s9  }
  0x86   :  { %s14525_s23 = scalar_lea.hbm %s15281_s30, 768 }
  0x87   :  { %p14526_p2 = scmp.ne.s32.totalorder %s15281_s30, %s14525_s23  ;;  %p14529_p3 = scmp.lt.u32.totalorder %s14525_s23, %s15281_s30 }
  0x89   :  { %p14531_p4 = pnand %p14529_p3, %p14526_p2 }
  0x8b   :  { %14534 = shalt.err (!%p14531_p4)
}
  0x8c   :  { %s14535_s26 = scalar_lea.vmem %s195_s15, 768  ;;  %p14540_p6 = scmp.lt.s32.totalorder %s195_s15, %s195_s15 }
  0x8d   :  { %p14536_p5 = scmp.ne.s32.totalorder %s195_s15, %s14535_s26  ;;  %p14541_p7 = scmp.lt.s32.totalorder %s14535_s26, %s14535_s26 }
  0x8f   :  { %p14542_p8 = por %p14541_p7, %p14540_p6 }
  0x91   :  { %p14543_p9 = pnand %p14542_p8, %p14536_p5 }
  0x93   :  { %14546 = shalt.err (!%p14543_p9)
}
  0x94   :  { %200 = dma.hbm_to_vmem [thread:$0]  %s15281_s30, 768, %s195_s15, [#allocation12], %s15180_s22, %s15180_s22, %s15181_s9  }
  0x95   :  { %s15182_s3 = smov [#allocation14]   ;;  %s15183_s28 = smov [#allocation17]  }
  0x96   :  { %s219_s0 = sshll.u32 %s15182_s3, 4  ;;  %s242_s1 = sshll.u32 %s15183_s28, 4  ;;  %s220_s0 = int_to_ptr.vmem [resolvable:$true] %s219_s0  ;;  %s243_s1 = int_to_ptr.vmem [resolvable:$true] %s242_s1 }
  0x97   :  { %s14547_s2 = scalar_lea.hbm %s15291_s12, 16 }
  0x98   :  { %p14548_p10 = scmp.ne.s32.totalorder %s15291_s12, %s14547_s2  ;;  %p14551_p11 = scmp.lt.u32.totalorder %s14547_s2, %s15291_s12 }
  0x9a   :  { %p14553_p12 = pnand %p14551_p11, %p14548_p10 }
  0x9c   :  { %14556 = shalt.err (!%p14553_p12)
}
  0x9d   :  { %s14557_s7 = scalar_lea.vmem %s220_s0, 16  ;;  %s14561_s10 = scalar_lea.vmem %s220_s0, 32 }
  0x9e   :  { %p14558_p13 = scmp.ne.s32.totalorder %s220_s0, %s14557_s7  ;;  %p14562_p0 = scmp.lt.s32.totalorder %s220_s0, %s220_s0 }
  0x9f   :  { %p14563_p1 = scmp.lt.s32.totalorder %s14561_s10, %s14557_s7 }
  0xa1   :  { %p14564_p2 = por %p14563_p1, %p14562_p0 }
  0xa3   :  { %p14565_p3 = pnand %p14564_p2, %p14558_p13 }
  0xa5   :  { %14568 = shalt.err (!%p14565_p3)
}
  0xa6   :  { %222 = dma.hbm_to_vmem [thread:$0]  %s15291_s12, 16, %s220_s0, [#allocation15]  }
  0xa7   :  { %s14569_s30 = scalar_lea.hbm %s15306_s4, 128 }
  0xa8   :  { %p14570_p4 = scmp.ne.s32.totalorder %s15306_s4, %s14569_s30  ;;  %p14573_p5 = scmp.lt.u32.totalorder %s14569_s30, %s15306_s4 }
  0xaa   :  { %p14575_p6 = pnand %p14573_p5, %p14570_p4 }
  0xac   :  { %14578 = shalt.err (!%p14575_p6)
}
  0xad   :  { %s14579_s11 = scalar_lea.vmem %s243_s1, 128  ;;  %p14584_p8 = scmp.lt.s32.totalorder %s243_s1, %s243_s1 }
  0xae   :  { %p14580_p7 = scmp.ne.s32.totalorder %s243_s1, %s14579_s11  ;;  %p14585_p9 = scmp.lt.s32.totalorder %s14579_s11, %s14579_s11 }
  0xb0   :  { %p14586_p10 = por %p14585_p9, %p14584_p8 }
  0xb2   :  { %p14587_p11 = pnand %p14586_p10, %p14580_p7 }
  0xb4   :  { %14590 = shalt.err (!%p14587_p11)
}
  0xb5   :  { %s15184_s15 = smov 32   ;;  %s15185_s16 = smov 2  }
  0xb6   :  { %248 = dma.hbm_to_vmem [thread:$0]  %s15306_s4, 128, %s243_s1, [#allocation18], %s15184_s15, %s15184_s15, %s15185_s16  }
  0xb7   :  { %s15186_s12 = smov [#allocation20]   ;;  %s15187_s23 = smov [#allocation23]  }
  0xb8   :  { %s269_s18 = sshll.u32 %s15186_s12, 4  ;;  %s290_s26 = sshll.u32 %s15187_s23, 4  ;;  %s270_s18 = int_to_ptr.vmem [resolvable:$true] %s269_s18  ;;  %s291_s26 = int_to_ptr.vmem [resolvable:$true] %s290_s26 }
  0xb9   :  { %s14591_s3 = scalar_lea.hbm %s15321_s27, 16 }
  0xba   :  { %p14592_p12 = scmp.ne.s32.totalorder %s15321_s27, %s14591_s3  ;;  %p14595_p13 = scmp.lt.u32.totalorder %s14591_s3, %s15321_s27 }
  0xbc   :  { %p14597_p0 = pnand %p14595_p13, %p14592_p12 }
  0xbe   :  { %14600 = shalt.err (!%p14597_p0)
}
  0xbf   :  { %s14601_s0 = scalar_lea.vmem %s270_s18, 16  ;;  %s14605_s28 = scalar_lea.vmem %s270_s18, 32 }
  0xc0   :  { %p14602_p1 = scmp.ne.s32.totalorder %s270_s18, %s14601_s0  ;;  %p14606_p2 = scmp.lt.s32.totalorder %s270_s18, %s270_s18 }
  0xc1   :  { %p14607_p3 = scmp.lt.s32.totalorder %s14605_s28, %s14601_s0 }
  0xc3   :  { %p14608_p4 = por %p14607_p3, %p14606_p2 }
  0xc5   :  { %p14609_p5 = pnand %p14608_p4, %p14602_p1 }
  0xc7   :  { %14612 = shalt.err (!%p14609_p5)
}
  0xc8   :  { %272 = dma.hbm_to_vmem [thread:$0]  %s15321_s27, 16, %s270_s18, [#allocation21]  }
  0xc9   :  { %s14613_s4 = scalar_lea.hbm %s15336_s19, 256 }
  0xca   :  { %p14614_p6 = scmp.ne.s32.totalorder %s15336_s19, %s14613_s4  ;;  %p14617_p7 = scmp.lt.u32.totalorder %s14613_s4, %s15336_s19 }
  0xcc   :  { %p14619_p8 = pnand %p14617_p7, %p14614_p6 }
  0xce   :  { %14622 = shalt.err (!%p14619_p8)
}
  0xcf   :  { %s14623_s1 = scalar_lea.vmem %s291_s26, 256  ;;  %p14628_p10 = scmp.lt.s32.totalorder %s291_s26, %s291_s26 }
  0xd0   :  { %p14624_p9 = scmp.ne.s32.totalorder %s291_s26, %s14623_s1  ;;  %p14629_p11 = scmp.lt.s32.totalorder %s14623_s1, %s14623_s1 }
  0xd2   :  { %p14630_p12 = por %p14629_p11, %p14628_p10 }
  0xd4   :  { %p14631_p13 = pnand %p14630_p12, %p14624_p9 }
  0xd6   :  { %14634 = shalt.err (!%p14631_p13)
}
  0xd7   :  { %296 = dma.hbm_to_vmem [thread:$0]  %s15336_s19, 256, %s291_s26, [#allocation24], %s15180_s22, %s15180_s22, %s15181_s9  }
  0xd8   :  { %s15188_s27 = smov [#allocation26]   ;;  %s15189_s7 = smov [#allocation29]  }
  0xd9   :  { %s316_s2 = sshll.u32 %s15188_s27, 4  ;;  %s341_s10 = sshll.u32 %s15189_s7, 4  ;;  %s317_s2 = int_to_ptr.vmem [resolvable:$true] %s316_s2  ;;  %s342_s10 = int_to_ptr.vmem [resolvable:$true] %s341_s10 }
  0xda   :  { %s14635_s30 = scalar_lea.hbm %s15356_s17, 384 }
  0xdb   :  { %p14636_p0 = scmp.ne.s32.totalorder %s15356_s17, %s14635_s30  ;;  %p14639_p1 = scmp.lt.u32.totalorder %s14635_s30, %s15356_s17 }
  0xdd   :  { %p14641_p2 = pnand %p14639_p1, %p14636_p0 }
  0xdf   :  { %14644 = shalt.err (!%p14641_p2)
}
  0xe0   :  { %s14645_s11 = scalar_lea.vmem %s317_s2, 384  ;;  %p14650_p4 = scmp.lt.s32.totalorder %s317_s2, %s317_s2 }
  0xe1   :  { %p14646_p3 = scmp.ne.s32.totalorder %s317_s2, %s14645_s11  ;;  %p14651_p5 = scmp.lt.s32.totalorder %s14645_s11, %s14645_s11 }
  0xe3   :  { %p14652_p6 = por %p14651_p5, %p14650_p4 }
  0xe5   :  { %p14653_p7 = pnand %p14652_p6, %p14646_p3 }
  0xe7   :  { %14656 = shalt.err (!%p14653_p7)
}
  0xe8   :  { %322 = dma.hbm_to_vmem [thread:$0]  %s15356_s17, 384, %s317_s2, [#allocation27], %s15180_s22, %s15180_s22, %s15181_s9  }
  0xe9   :  { %s14657_s19 = scalar_lea.hbm %s15366_s8, 16 }
  0xea   :  { %p14658_p8 = scmp.ne.s32.totalorder %s15366_s8, %s14657_s19  ;;  %p14661_p9 = scmp.lt.u32.totalorder %s14657_s19, %s15366_s8 }
  0xec   :  { %p14663_p10 = pnand %p14661_p9, %p14658_p8 }
  0xee   :  { %14666 = shalt.err (!%p14663_p10)
}
  0xef   :  { %s14667_s15 = scalar_lea.vmem %s342_s10, 16  ;;  %s14671_s16 = scalar_lea.vmem %s342_s10, 32 }
  0xf0   :  { %p14668_p11 = scmp.ne.s32.totalorder %s342_s10, %s14667_s15  ;;  %p14672_p12 = scmp.lt.s32.totalorder %s342_s10, %s342_s10 }
  0xf1   :  { %p14673_p13 = scmp.lt.s32.totalorder %s14671_s16, %s14667_s15 }
  0xf3   :  { %p14674_p0 = por %p14673_p13, %p14672_p12 }
  0xf5   :  { %p14675_p1 = pnand %p14674_p0, %p14668_p11 }
  0xf7   :  { %14678 = shalt.err (!%p14675_p1)
}
  0xf8   :  { %344 = dma.hbm_to_vmem [thread:$0]  %s15366_s8, 16, %s342_s10, [#allocation30]  }
  0xf9   :  { %s15190_s17 = smov [#allocation32]   ;;  %s15191_s18 = smov [#allocation35]  }
  0xfa   :  { %s369_s12 = sshll.u32 %s15190_s17, 4  ;;  %s397_s23 = sshll.u32 %s15191_s18, 4  ;;  %s370_s12 = int_to_ptr.vmem [resolvable:$true] %s369_s12  ;;  %s398_s23 = int_to_ptr.vmem [resolvable:$true] %s397_s23 }
  0xfb   :  { %s14679_s26 = scalar_lea.hbm %s15391_s21, 16 }
  0xfc   :  { %p14680_p2 = scmp.ne.s32.totalorder %s15391_s21, %s14679_s26  ;;  %p14683_p3 = scmp.lt.u32.totalorder %s14679_s26, %s15391_s21 }
  0xfe   :  { %p14685_p4 = pnand %p14683_p3, %p14680_p2 }
 0x100   :  { %14688 = shalt.err (!%p14685_p4)
}
 0x101   :  { %s14689_s3 = scalar_lea.vmem %s370_s12, 16  ;;  %s14693_s0 = scalar_lea.vmem %s370_s12, 32 }
 0x102   :  { %p14690_p5 = scmp.ne.s32.totalorder %s370_s12, %s14689_s3  ;;  %p14694_p6 = scmp.lt.s32.totalorder %s370_s12, %s370_s12 }
 0x103   :  { %p14695_p7 = scmp.lt.s32.totalorder %s14693_s0, %s14689_s3 }
 0x105   :  { %p14696_p8 = por %p14695_p7, %p14694_p6 }
 0x107   :  { %p14697_p9 = pnand %p14696_p8, %p14690_p5 }
 0x109   :  { %14700 = shalt.err (!%p14697_p9)
}
 0x10a   :  { %372 = dma.hbm_to_vmem [thread:$0]  %s15391_s21, 16, %s370_s12, [#allocation33]  }
 0x10b   :  { %s14701_s8 = scalar_lea.hbm %s15416_s25, 32 }
 0x10c   :  { %p14702_p10 = scmp.ne.s32.totalorder %s15416_s25, %s14701_s8  ;;  %p14705_p11 = scmp.lt.u32.totalorder %s14701_s8, %s15416_s25 }
 0x10e   :  { %p14707_p12 = pnand %p14705_p11, %p14702_p10 }
 0x110   :  { %14710 = shalt.err (!%p14707_p12)
}
 0x111   :  { %s14711_s28 = scalar_lea.vmem %s398_s23, 32  ;;  %p14716_p0 = scmp.lt.s32.totalorder %s398_s23, %s398_s23 }
 0x112   :  { %p14712_p13 = scmp.ne.s32.totalorder %s398_s23, %s14711_s28  ;;  %p14717_p1 = scmp.lt.s32.totalorder %s14711_s28, %s14711_s28 }
 0x114   :  { %p14718_p2 = por %p14717_p1, %p14716_p0 }
 0x116   :  { %p14719_p3 = pnand %p14718_p2, %p14712_p13 }
 0x118   :  { %14722 = shalt.err (!%p14719_p3)
}
 0x119   :  { %400 = dma.hbm_to_vmem [thread:$0]  %s15416_s25, 32, %s398_s23, [#allocation36]  }
 0x11a   :  { %s15192_s4 = smov [#allocation2]   ;;  %s15193_s1 = smov [#allocation7]  }
 0x11b   :  { %s124_s21 = sshll.u32 %s15192_s4, 4  ;;  %s146_s27 = sshll.u32 %s15193_s1, 4  ;;  %s125_s21 = int_to_ptr.vmem [resolvable:$true] %s124_s21  ;;  %s147_s27 = int_to_ptr.vmem [resolvable:$true] %s146_s27 }
 0x11c   :  { %s14723_s2 = scalar_lea.hbm %s15221_s5, 896 }
 0x11d   :  { %p14724_p4 = scmp.ne.s32.totalorder %s15221_s5, %s14723_s2  ;;  %p14727_p5 = scmp.lt.u32.totalorder %s14723_s2, %s15221_s5 }
 0x11f   :  { %p14729_p6 = pnand %p14727_p5, %p14724_p4 }
 0x121   :  { %14732 = shalt.err (!%p14729_p6)
}
 0x122   :  { %s14733_s7 = scalar_lea.vmem %s125_s21, 896  ;;  %p14738_p8 = scmp.lt.s32.totalorder %s125_s21, %s125_s21 }
 0x123   :  { %p14734_p7 = scmp.ne.s32.totalorder %s125_s21, %s14733_s7  ;;  %p14739_p9 = scmp.lt.s32.totalorder %s14733_s7, %s14733_s7 }
 0x125   :  { %p14740_p10 = por %p14739_p9, %p14738_p8 }
 0x127   :  { %p14741_p11 = pnand %p14740_p10, %p14734_p7 }
 0x129   :  { %14744 = shalt.err (!%p14741_p11)
}
 0x12a   :  { %130 = dma.hbm_to_vmem [thread:$0]  %s15221_s5, 896, %s125_s21, [#allocation3], %s15180_s22, %s15180_s22, %s15181_s9  }
 0x12b   :  { %s14745_s25 = scalar_lea.hbm %s15231_s13, 2688 }
 0x12c   :  { %p14746_p12 = scmp.ne.s32.totalorder %s15231_s13, %s14745_s25  ;;  %p14749_p13 = scmp.lt.u32.totalorder %s14745_s25, %s15231_s13 }
 0x12e   :  { %p14751_p0 = pnand %p14749_p13, %p14746_p12 }
 0x130   :  { %14754 = shalt.err (!%p14751_p0)
}
 0x131   :  { %s14755_s10 = scalar_lea.vmem %s147_s27, 2688  ;;  %p14760_p2 = scmp.lt.s32.totalorder %s147_s27, %s147_s27 }
 0x132   :  { %p14756_p1 = scmp.ne.s32.totalorder %s147_s27, %s14755_s10  ;;  %p14761_p3 = scmp.lt.s32.totalorder %s14755_s10, %s14755_s10 }
 0x134   :  { %p14762_p4 = por %p14761_p3, %p14760_p2 }
 0x136   :  { %p14763_p5 = pnand %p14762_p4, %p14756_p1 }
 0x138   :  { %14766 = shalt.err (!%p14763_p5)
}
 0x139   :  { %152 = dma.hbm_to_vmem [thread:$0]  %s15231_s13, 2688, %s147_s27, [#allocation6], %s15180_s22, %s15180_s22, %s15181_s9  }
 0x13a   :  { %s15194_s5 = smov [#allocation10]   ;;  %s15195_s11 = smov [#allocation13]  }
 0x13b   :  { %s181_s30 = sshll.u32 %s15194_s5, 4  ;;  %s206_s19 = sshll.u32 %s15195_s11, 4  ;;  %s182_s30 = int_to_ptr.vmem [resolvable:$true] %s181_s30  ;;  %s207_s19 = int_to_ptr.vmem [resolvable:$true] %s206_s19 }
 0x13c   :  { %s14767_s15 = scalar_lea.hbm %s15266_s14, 16 }
 0x13d   :  { %p14768_p6 = scmp.ne.s32.totalorder %s15266_s14, %s14767_s15  ;;  %p14771_p7 = scmp.lt.u32.totalorder %s14767_s15, %s15266_s14 }
 0x13f   :  { %p14773_p8 = pnand %p14771_p7, %p14768_p6 }
 0x141   :  { %14776 = shalt.err (!%p14773_p8)
}
 0x142   :  { %s14777_s16 = scalar_lea.vmem %s182_s30, 16  ;;  %s14781_s17 = scalar_lea.vmem %s182_s30, 32 }
 0x143   :  { %p14778_p9 = scmp.ne.s32.totalorder %s182_s30, %s14777_s16  ;;  %p14782_p10 = scmp.lt.s32.totalorder %s182_s30, %s182_s30 }
 0x144   :  { %p14783_p11 = scmp.lt.s32.totalorder %s14781_s17, %s14777_s16 }
 0x146   :  { %p14784_p12 = por %p14783_p11, %p14782_p10 }
 0x148   :  { %p14785_p13 = pnand %p14784_p12, %p14778_p9 }
 0x14a   :  { %14788 = shalt.err (!%p14785_p13)
}
 0x14b   :  { %s17981_s13 = sld [smem:[#allocation69_spill]] }
 0x14c   :  { %184 = dma.hbm_to_vmem [thread:$0]  %s15266_s14, 16, %s182_s30, [#allocation9]  }
 0x151   :  { %s14789_s12 = scalar_lea.hbm %s17981_s13, 2688 }
 0x152   :  { %p14790_p0 = scmp.ne.s32.totalorder %s17981_s13, %s14789_s12  ;;  %p14793_p1 = scmp.lt.u32.totalorder %s14789_s12, %s17981_s13 }
 0x154   :  { %p14795_p2 = pnand %p14793_p1, %p14790_p0 }
 0x156   :  { %14798 = shalt.err (!%p14795_p2)
}
 0x157   :  { %s14799_s18 = scalar_lea.vmem %s207_s19, 2688  ;;  %p14804_p4 = scmp.lt.s32.totalorder %s207_s19, %s207_s19 }
 0x158   :  { %p14800_p3 = scmp.ne.s32.totalorder %s207_s19, %s14799_s18  ;;  %p14805_p5 = scmp.lt.s32.totalorder %s14799_s18, %s14799_s18 }
 0x15a   :  { %p14806_p6 = por %p14805_p5, %p14804_p4 }
 0x15c   :  { %p14807_p7 = pnand %p14806_p6, %p14800_p3 }
 0x15e   :  { %14810 = shalt.err (!%p14807_p7)
}
 0x15f   :  { %s17982_s23 = sld [smem:[#allocation70_spill]]  ;;  %s15196_s14 = smov [#allocation16]  }
 0x160   :  { %212 = dma.hbm_to_vmem [thread:$0]  %s17981_s13, 2688, %s207_s19, [#allocation12], %s15180_s22, %s15180_s22, %s15181_s9  }
 0x161   :  { %s228_s26 = sshll.u32 %s15196_s14, 4  ;;  %s15197_s3 = smov [#allocation19]   ;;  %s229_s26 = int_to_ptr.vmem [resolvable:$true] %s228_s26 }
 0x162   :  { %s254_s0 = sshll.u32 %s15197_s3, 4  ;;  %s255_s0 = int_to_ptr.vmem [resolvable:$true] %s254_s0 }
 0x165   :  { %s14811_s8 = scalar_lea.hbm %s17982_s23, 256 }
 0x166   :  { %p14812_p8 = scmp.ne.s32.totalorder %s17982_s23, %s14811_s8  ;;  %p14815_p9 = scmp.lt.u32.totalorder %s14811_s8, %s17982_s23 }
 0x168   :  { %p14817_p10 = pnand %p14815_p9, %p14812_p8 }
 0x16a   :  { %14820 = shalt.err (!%p14817_p10)
}
 0x16b   :  { %s14821_s28 = scalar_lea.vmem %s229_s26, 256  ;;  %p14826_p12 = scmp.lt.s32.totalorder %s229_s26, %s229_s26 }
 0x16c   :  { %p14822_p11 = scmp.ne.s32.totalorder %s229_s26, %s14821_s28  ;;  %p14827_p13 = scmp.lt.s32.totalorder %s14821_s28, %s14821_s28 }
 0x16e   :  { %p14828_p0 = por %p14827_p13, %p14826_p12 }
 0x170   :  { %p14829_p1 = pnand %p14828_p0, %p14822_p11 }
 0x172   :  { %14832 = shalt.err (!%p14829_p1)
}
 0x173   :  { %s17983_s4 = sld [smem:[#allocation72_spill]] }
 0x174   :  { %234 = dma.hbm_to_vmem [thread:$0]  %s17982_s23, 256, %s229_s26, [#allocation15], %s15180_s22, %s15180_s22, %s15181_s9  }
 0x179   :  { %s14833_s21 = scalar_lea.hbm %s17983_s4, 2048 }
 0x17a   :  { %p14834_p2 = scmp.ne.s32.totalorder %s17983_s4, %s14833_s21  ;;  %p14837_p3 = scmp.lt.u32.totalorder %s14833_s21, %s17983_s4 }
 0x17c   :  { %p14839_p4 = pnand %p14837_p3, %p14834_p2 }
 0x17e   :  { %14842 = shalt.err (!%p14839_p4)
}
 0x17f   :  { %s14843_s1 = scalar_lea.vmem %s255_s0, 2048  ;;  %p14848_p6 = scmp.lt.s32.totalorder %s255_s0, %s255_s0 }
 0x180   :  { %p14844_p5 = scmp.ne.s32.totalorder %s255_s0, %s14843_s1  ;;  %p14849_p7 = scmp.lt.s32.totalorder %s14843_s1, %s14843_s1 }
 0x182   :  { %p14850_p8 = por %p14849_p7, %p14848_p6 }
 0x184   :  { %p14851_p9 = pnand %p14850_p8, %p14844_p5 }
 0x186   :  { %14854 = shalt.err (!%p14851_p9)
}
 0x187   :  { %s17984_s27 = sld [smem:[#allocation75_spill]]  ;;  %s15198_s2 = smov [#allocation22]  }
 0x188   :  { %260 = dma.hbm_to_vmem [thread:$0]  %s17983_s4, 2048, %s255_s0, [#allocation18], %s15180_s22, %s15180_s22, %s15181_s9  }
 0x189   :  { %s281_s7 = sshll.u32 %s15198_s2, 4  ;;  %s15199_s25 = smov [#allocation25]   ;;  %s282_s7 = int_to_ptr.vmem [resolvable:$true] %s281_s7 }
 0x18a   :  { %s303_s10 = sshll.u32 %s15199_s25, 4  ;;  %s304_s10 = int_to_ptr.vmem [resolvable:$true] %s303_s10 }
 0x18d   :  { %s14855_s5 = scalar_lea.hbm %s17984_s27, 16 }
 0x18e   :  { %p14856_p10 = scmp.ne.s32.totalorder %s17984_s27, %s14855_s5  ;;  %p14859_p11 = scmp.lt.u32.totalorder %s14855_s5, %s17984_s27 }
 0x190   :  { %p14861_p12 = pnand %p14859_p11, %p14856_p10 }
 0x192   :  { %14864 = shalt.err (!%p14861_p12)
}
 0x193   :  { %s14865_s30 = scalar_lea.vmem %s282_s7, 16  ;;  %s14869_s11 = scalar_lea.vmem %s282_s7, 32 }
 0x194   :  { %p14866_p13 = scmp.ne.s32.totalorder %s282_s7, %s14865_s30  ;;  %p14870_p0 = scmp.lt.s32.totalorder %s282_s7, %s282_s7 }
 0x195   :  { %p14871_p1 = scmp.lt.s32.totalorder %s14869_s11, %s14865_s30 }
 0x197   :  { %p14872_p2 = por %p14871_p1, %p14870_p0 }
 0x199   :  { %p14873_p3 = pnand %p14872_p2, %p14866_p13 }
 0x19b   :  { %14876 = shalt.err (!%p14873_p3)
}
 0x19c   :  { %s17985_s19 = sld [smem:[#allocation76_spill]] }
 0x19d   :  { %284 = dma.hbm_to_vmem [thread:$0]  %s17984_s27, 16, %s282_s7, [#allocation21]  }
 0x1a2   :  { %s14877_s15 = scalar_lea.hbm %s17985_s19, 16 }
 0x1a3   :  { %p14878_p4 = scmp.ne.s32.totalorder %s17985_s19, %s14877_s15  ;;  %p14881_p5 = scmp.lt.u32.totalorder %s14877_s15, %s17985_s19 }
 0x1a5   :  { %p14883_p6 = pnand %p14881_p5, %p14878_p4 }
 0x1a7   :  { %14886 = shalt.err (!%p14883_p6)
}
 0x1a8   :  { %s14887_s16 = scalar_lea.vmem %s304_s10, 16  ;;  %s14891_s17 = scalar_lea.vmem %s304_s10, 32 }
 0x1a9   :  { %p14888_p7 = scmp.ne.s32.totalorder %s304_s10, %s14887_s16  ;;  %p14892_p8 = scmp.lt.s32.totalorder %s304_s10, %s304_s10 }
 0x1aa   :  { %p14893_p9 = scmp.lt.s32.totalorder %s14891_s17, %s14887_s16 }
 0x1ac   :  { %p14894_p10 = por %p14893_p9, %p14892_p8 }
 0x1ae   :  { %p14895_p11 = pnand %p14894_p10, %p14888_p7 }
 0x1b0   :  { %14898 = shalt.err (!%p14895_p11)
}
 0x1b1   :  { %s17986_s13 = sld [smem:[#allocation79_spill]]  ;;  %s15200_s12 = smov [#allocation28]  }
 0x1b2   :  { %306 = dma.hbm_to_vmem [thread:$0]  %s17985_s19, 16, %s304_s10, [#allocation24]  }
 0x1b3   :  { %s328_s18 = sshll.u32 %s15200_s12, 4  ;;  %s15201_s23 = smov [#allocation31]   ;;  %s329_s18 = int_to_ptr.vmem [resolvable:$true] %s328_s18 }
 0x1b4   :  { %s354_s14 = sshll.u32 %s15201_s23, 4  ;;  %s355_s14 = int_to_ptr.vmem [resolvable:$true] %s354_s14 }
 0x1b7   :  { %s14899_s26 = scalar_lea.hbm %s17986_s13, 1536 }
 0x1b8   :  { %p14900_p12 = scmp.ne.s32.totalorder %s17986_s13, %s14899_s26  ;;  %p14903_p13 = scmp.lt.u32.totalorder %s14899_s26, %s17986_s13 }
 0x1ba   :  { %p14905_p0 = pnand %p14903_p13, %p14900_p12 }
 0x1bc   :  { %14908 = shalt.err (!%p14905_p0)
}
 0x1bd   :  { %s14909_s3 = scalar_lea.vmem %s329_s18, 1536  ;;  %p14914_p2 = scmp.lt.s32.totalorder %s329_s18, %s329_s18 }
 0x1be   :  { %p14910_p1 = scmp.ne.s32.totalorder %s329_s18, %s14909_s3  ;;  %p14915_p3 = scmp.lt.s32.totalorder %s14909_s3, %s14909_s3 }
 0x1c0   :  { %p14916_p4 = por %p14915_p3, %p14914_p2 }
 0x1c2   :  { %p14917_p5 = pnand %p14916_p4, %p14910_p1 }
 0x1c4   :  { %14920 = shalt.err (!%p14917_p5)
}
 0x1c5   :  { %s17987_s0 = sld [smem:[#allocation82_spill]] }
 0x1c6   :  { %334 = dma.hbm_to_vmem [thread:$0]  %s17986_s13, 1536, %s329_s18, [#allocation27], %s15180_s22, %s15180_s22, %s15181_s9  }
 0x1cb   :  { %s14921_s8 = scalar_lea.hbm %s17987_s0, 768 }
 0x1cc   :  { %p14922_p6 = scmp.ne.s32.totalorder %s17987_s0, %s14921_s8  ;;  %p14925_p7 = scmp.lt.u32.totalorder %s14921_s8, %s17987_s0 }
 0x1ce   :  { %p14927_p8 = pnand %p14925_p7, %p14922_p6 }
 0x1d0   :  { %14930 = shalt.err (!%p14927_p8)
}
 0x1d1   :  { %s14931_s28 = scalar_lea.vmem %s355_s14, 768  ;;  %p14936_p10 = scmp.lt.s32.totalorder %s355_s14, %s355_s14 }
 0x1d2   :  { %p14932_p9 = scmp.ne.s32.totalorder %s355_s14, %s14931_s28  ;;  %p14937_p11 = scmp.lt.s32.totalorder %s14931_s28, %s14931_s28 }
 0x1d4   :  { %p14938_p12 = por %p14937_p11, %p14936_p10 }
 0x1d6   :  { %p14939_p13 = pnand %p14938_p12, %p14932_p9 }
 0x1d8   :  { %14942 = shalt.err (!%p14939_p13)
}
 0x1d9   :  { %s17988_s4 = sld [smem:[#allocation85_spill]]  ;;  %s15202_s21 = smov [#allocation34]  }
 0x1da   :  { %360 = dma.hbm_to_vmem [thread:$0]  %s17987_s0, 768, %s355_s14, [#allocation30], %s15180_s22, %s15180_s22, %s15181_s9  }
 0x1db   :  { %s380_s1 = sshll.u32 %s15202_s21, 4  ;;  %s15203_s27 = smov [#allocation37]   ;;  %s381_s1 = int_to_ptr.vmem [resolvable:$true] %s380_s1 }
 0x1dc   :  { %s410_s2 = sshll.u32 %s15203_s27, 4  ;;  %s411_s2 = int_to_ptr.vmem [resolvable:$true] %s410_s2 }
 0x1df   :  { %s14943_s7 = scalar_lea.hbm %s17988_s4, 1024 }
 0x1e0   :  { %p14944_p0 = scmp.ne.s32.totalorder %s17988_s4, %s14943_s7  ;;  %p14947_p1 = scmp.lt.u32.totalorder %s14943_s7, %s17988_s4 }
 0x1e2   :  { %p14949_p2 = pnand %p14947_p1, %p14944_p0 }
 0x1e4   :  { %14952 = shalt.err (!%p14949_p2)
}
 0x1e5   :  { %s14953_s25 = scalar_lea.vmem %s381_s1, 1024  ;;  %p14958_p4 = scmp.lt.s32.totalorder %s381_s1, %s381_s1 }
 0x1e6   :  { %p14954_p3 = scmp.ne.s32.totalorder %s381_s1, %s14953_s25  ;;  %p14959_p5 = scmp.lt.s32.totalorder %s14953_s25, %s14953_s25 }
 0x1e8   :  { %p14960_p6 = por %p14959_p5, %p14958_p4 }
 0x1ea   :  { %p14961_p7 = pnand %p14960_p6, %p14954_p3 }
 0x1ec   :  { %14964 = shalt.err (!%p14961_p7)
}
 0x1ed   :  { %s17989_s10 = sld [smem:[#allocation90_spill]] }
 0x1ee   :  { %386 = dma.hbm_to_vmem [thread:$0]  %s17988_s4, 1024, %s381_s1, [#allocation33], %s15180_s22, %s15180_s22, %s15181_s9  }
 0x1f3   :  { %s14965_s5 = scalar_lea.hbm %s17989_s10, 2688 }
 0x1f4   :  { %p14966_p8 = scmp.ne.s32.totalorder %s17989_s10, %s14965_s5  ;;  %p14969_p9 = scmp.lt.u32.totalorder %s14965_s5, %s17989_s10 }
 0x1f6   :  { %p14971_p10 = pnand %p14969_p9, %p14966_p8 }
 0x1f8   :  { %14974 = shalt.err (!%p14971_p10)
}
 0x1f9   :  { %s14975_s30 = scalar_lea.vmem %s411_s2, 2688  ;;  %p14980_p12 = scmp.lt.s32.totalorder %s411_s2, %s411_s2 }
 0x1fa   :  { %p14976_p11 = scmp.ne.s32.totalorder %s411_s2, %s14975_s30  ;;  %p14981_p13 = scmp.lt.s32.totalorder %s14975_s30, %s14975_s30 }
 0x1fc   :  { %p14982_p0 = por %p14981_p13, %p14980_p12 }
 0x1fe   :  { %p14983_p1 = pnand %p14982_p0, %p14976_p11 }
 0x200   :  { %14986 = shalt.err (!%p14983_p1)
}
 0x201   :  { %s17990_s11 = sld [smem:[#allocation92_spill]]  ;;  %s15204_s19 = smov [#allocation38]  }
 0x202   :  { %416 = dma.hbm_to_vmem [thread:$0]  %s17989_s10, 2688, %s411_s2, [#allocation36], %s15180_s22, %s15180_s22, %s15181_s9  }
 0x203   :  { %s425_s15 = sshll.u32 %s15204_s19, 4  ;;  %s426_s15 = int_to_ptr.vmem [resolvable:$true] %s425_s15 }
 0x207   :  { %s14987_s16 = scalar_lea.hbm %s17990_s11, 16 }
 0x208   :  { %p14988_p2 = scmp.ne.s32.totalorder %s17990_s11, %s14987_s16  ;;  %p14991_p3 = scmp.lt.u32.totalorder %s14987_s16, %s17990_s11 }
 0x20a   :  { %p14993_p4 = pnand %p14991_p3, %p14988_p2 }
 0x20c   :  { %14996 = shalt.err (!%p14993_p4)
}
 0x20d   :  { %s14997_s17 = scalar_lea.vmem %s426_s15, 16  ;;  %s15001_s13 = scalar_lea.vmem %s426_s15, 32 }
 0x20e   :  { %p14998_p5 = scmp.ne.s32.totalorder %s426_s15, %s14997_s17  ;;  %p15002_p6 = scmp.lt.s32.totalorder %s426_s15, %s426_s15 }
 0x20f   :  { %p15003_p7 = scmp.lt.s32.totalorder %s15001_s13, %s14997_s17 }
 0x211   :  { %p15004_p8 = por %p15003_p7, %p15002_p6 }
 0x213   :  { %p15005_p9 = pnand %p15004_p8, %p14998_p5 }
 0x215   :  { %15008 = shalt.err (!%p15005_p9)
}
 0x216   :  { %428 = dma.hbm_to_vmem [thread:$0]  %s17990_s11, 16, %s426_s15, [#allocation39]  }
 0x217   :  { %15097 = dma.done.wait [#allocation3], 896  }
 0x218   :  { %15098 = vsyncadd [#allocation3], 4294966400 }
 0x219   :  { %15099 = dma.done.wait [#allocation6], 2720  }
 0x21a   :  { %15100 = vsyncadd [#allocation6], 4294964576 }
 0x21b   :  { %15101 = dma.done.wait [#allocation9], 1552  }
 0x21c   :  { %15102 = vsyncadd [#allocation9], 4294965744 }
 0x21d   :  { %15103 = dma.done.wait [#allocation12], 3456  }
 0x21e   :  { %15104 = vsyncadd [#allocation12], 4294963840 }
 0x21f   :  { %15105 = dma.done.wait [#allocation15], 272  }
 0x220   :  { %15106 = vsyncadd [#allocation15], 4294967024 }
 0x221   :  { %15107 = dma.done.wait [#allocation18], 2176  }
 0x222   :  { %15108 = vsyncadd [#allocation18], 4294965120 }
 0x223   :  { %15109 = dma.done.wait [#allocation21], 32  }
 0x224   :  { %15110 = vsyncadd [#allocation21], 4294967264 }
 0x225   :  { %15111 = dma.done.wait [#allocation24], 272  }
 0x226   :  { %15112 = vsyncadd [#allocation24], 4294967024 }
 0x227   :  { %15113 = dma.done.wait [#allocation27], 1920  }
 0x228   :  { %15114 = vsyncadd [#allocation27], 4294965376 }
 0x229   :  { %15115 = dma.done.wait [#allocation30], 784  }
 0x22a   :  { %15116 = vsyncadd [#allocation30], 4294966512 }
 0x22b   :  { %15117 = dma.done.wait [#allocation33], 1040  }
 0x22c   :  { %15118 = vsyncadd [#allocation33], 4294966256 }
 0x22d   :  { %15119 = dma.done.wait [#allocation36], 2720  }
 0x22e   :  { %15120 = vsyncadd [#allocation36], 4294964576 }
 0x22f   :  { %15121 = dma.done.wait [#allocation39], 16  }
 0x230   :  { %15122 = vsyncadd [#allocation39], 4294967280  ;;  %v15205_v0 = vmov 0.0|0.0   ;;  %vm15206_vm0 = vmmov 0   ;;  %v15207_v1 = vmov 0.0   ;;  %v501_v2 = vld [vmem:[#allocation2] sm:$0xff] }
 0x231   :  { %12785 = vmatprep.subr.bf16.mxu0 %v15205_v0  ;;  %11973 = vmatprep.mubr.msk.f32.mxu0 %vm15206_vm0, %v15207_v1  ;;  %v502_v3 = vld [vmem:[#allocation2 + $0x8] sm:$0xff]  ;;  %v503_v4 = vld [vmem:[#allocation2 + $0x10] sm:$0xff]  ;;  %v504_v6 = vld [vmem:[#allocation2 + $0x18] sm:$0xff]  ;;  %vm515_vm1 = vcmask 457728   ;;  %s17991_s12 = sld [smem:[#allocation62_spill]]  ;;  %vm821_vm2 = vcmask 1043456  }
 0x232   :  { %14251 = vmatprep.subr.bf16.mxu1 %v15205_v0  ;;  %12020 = vmatprep.mubr.msk.f32.mxu1 %vm15206_vm0, %v15207_v1  ;;  %v15604_v5 = vpack.c.bf16 %v502_v3, %v501_v2  ;;  %v15607_v7 = vpack.c.bf16 %v504_v6, %v503_v4  ;;  %v505_v8 = vld [vmem:[#allocation2 + $0x20] sm:$0xff]  ;;  %v506_v9 = vld [vmem:[#allocation2 + $0x28] sm:$0xff]  ;;  %v15621_v11 = vld [vmem:[#allocation2 + $0x30] sm:$0xff]  ;;  %vm15208_vm3 = vmmov 1   ;;  %vm799_vm5 = vcmask 228352   ;;  %s17994_s18 = sld [smem:[#allocation63_spill]] }
 0x233   :  { %v15613_v10 = vpack.c.bf16 %v506_v9, %v505_v8  ;;  %v508_v12 = vld [vmem:[#allocation7] sm:$0xff]  ;;  %v658_v13 = vld [vmem:[#allocation7 + $0x58] sm:$0xff]  ;;  %v509_v14 = vld [vmem:[#allocation7 + $0x8] sm:$0xff]  ;;  %s17995_s23 = sld [smem:[#allocation65_spill]]  ;;  %s17996_s14 = sld [smem:[#allocation64_spill]]  ;;  %vm2311_vm6 = vcmask 523264  }
 0x234   :  { %12787 = vmatpush3.bf16.msra.mxu0 %v15604_v5  ;;  %14255 = vmatpush3.bf16.msra.mxu1 %v15604_v5  ;;  %v659_v15 = vld [vmem:[#allocation7 + $0x60] sm:$0xff]  ;;  %v510_v16 = vld [vmem:[#allocation7 + $0x10] sm:$0xff]  ;;  %v660_v17 = vld [vmem:[#allocation7 + $0x68] sm:$0xff]  ;;  %s17997_s26 = sld [smem:[#allocation66_spill]]  ;;  %vm3075_vm7 = vcmask 785408   ;;  %s17998_s3 = sld [smem:[#allocation67_spill]] }
 0x235   :  { %12788 = vmatprep.subr.bf16.mxu0 %v15205_v0  ;;  %14252 = vmatprep.subr.bf16.mxu1 %v15205_v0  ;;  %v511_v18 = vld [vmem:[#allocation7 + $0x18] sm:$0xff]  ;;  %v512_v19 = vld [vmem:[#allocation7 + $0x20] sm:$0xff]  ;;  %v513_v20 = vld [vmem:[#allocation7 + $0x28] sm:$0xff]  ;;  %s17999_s0 = sld [smem:[#allocation68_spill]]  ;;  %vm3707_vm8 = vcmask 916480   ;;  %vm3883_vm9 = vcmask 113664  }
 0x236   :  { %v514_v21 = vld [vmem:[#allocation7 + $0x30] sm:$0xff]  ;;  %v654_v22 = vld [vmem:[#allocation7 + $0x38] sm:$0xff]  ;;  %v655_v23 = vld [vmem:[#allocation7 + $0x40] sm:$0xff]  ;;  %vm3890_vm10 = vcmask 1045504   ;;  %s18002_s8 = sld [smem:[#allocation71_spill]]  ;;  %vm4729_vm12 = vcmask 64512  }
 0x237   :  { %v656_v24 = vld [vmem:[#allocation7 + $0x48] sm:$0xff]  ;;  %v657_v25 = vld [vmem:[#allocation7 + $0x50] sm:$0xff]  ;;  %v10617_v28 = vld [vmem:[%s17991_s12 + $0x98] sm:$0xff]  ;;  %s18003_s28 = sld [smem:[#allocation73_spill]]  ;;  %vm4887_vm13 = vcmask 261120   ;;  %s18004_s4 = sld [smem:[#allocation74_spill]] }
 0x238   :  { %12790 = vmatpush3.bf16.msra.mxu0 %v15607_v7  ;;  %14256 = vmatpush3.bf16.msra.mxu1 %v15607_v7  ;;  %v10615_v26 = vld [vmem:[%s17991_s12 + $0x88] sm:$0xff]  ;;  %v10621_v30 = vld [vmem:[%s17991_s12 + $0xb8] sm:$0xff]  ;;  %v10614_v31 = vld [vmem:[%s17991_s12 + $0x80] sm:$0xff]  ;;  %s18005_s21 = sld [smem:[#allocation78_spill]]  ;;  %vm10478_vm14 = vcmask 123904   ;;  %vm5543_vm15 = vcmask 130048  }
 0x239   :  { %12791 = vmatprep.subr.bf16.mxu0 %v15205_v0  ;;  %14253 = vmatprep.subr.bf16.mxu1 %v15205_v0  ;;  %v10619_v27 = vld [vmem:[%s17991_s12 + $0xa8] sm:$0xff]  ;;  %v10618_v32 = vld [vmem:[%s17991_s12 + $0xa0] sm:$0xff]  ;;  %v12813_v33 = vpack.c.bf16 %v10621_v30, %v10617_v28  ;;  %v10616_v35 = vld [vmem:[%s17991_s12 + $0x90] sm:$0xff]  ;;  %s18006_s1 = sld [smem:[#allocation77_spill]]  ;;  %s18007_s27 = sld [smem:[#allocation80_spill]] }
 0x23a   :  { %v12803_v29 = vpack.c.bf16 %v10619_v27, %v10615_v26  ;;  %v12805_v34 = vpack.c.bf16 %v10618_v32, %v10614_v31  ;;  %v10620_v36 = vld [vmem:[%s17991_s12 + $0xb0] sm:$0xff]  ;;  %v10623_v38 = vld [vmem:[%s17991_s12 + $0xc8] sm:$0xff]  ;;  %v10625_v40 = vld [vmem:[%s17991_s12 + $0xd8] sm:$0xff]  ;;  %s18008_s2 = sld [smem:[#allocation81_spill]]  ;;  %s18009_s7 = sld [smem:[#allocation83_spill]] }
 0x23b   :  { %v12815_v37 = vpack.c.bf16 %v10620_v36, %v10616_v35  ;;  %v10627_v39 = vld [vmem:[%s17991_s12 + $0xe8] sm:$0xf]  ;;  %v10629_v42 = vld [vmem:[%s17991_s12 + $0xf8] sm:$0xf]  ;;  %v10622_v43 = vld [vmem:[%s17991_s12 + $0xc0] sm:$0xff]  ;;  %s18010_s25 = sld [smem:[#allocation84_spill]] }
 0x23c   :  { %12793 = vmatpush3.bf16.msra.mxu0 %v15613_v10  ;;  %14257 = vmatpush3.bf16.msra.mxu1 %v15613_v10  ;;  %v12807_v41 = vpack.c.bf16 %v10627_v39, %v10623_v38  ;;  %v10624_v44 = vld [vmem:[%s17991_s12 + $0xd0] sm:$0xff]  ;;  %vm15689_vm4 = vmpackc.low %vm821_vm2, %vm15208_vm3  ;;  %v12817_v46 = vpack.c.bf16 %v10629_v42, %v10625_v40  ;;  %v10626_v47 = vld [vmem:[%s17991_s12 + $0xe0] sm:$0xf]  ;;  %vm5797_vm2 = vcmask 1041408   ;;  %s18011_s10 = sld [smem:[#allocation86_spill]]  ;;  %s18012_s5 = sld [smem:[#allocation87_spill]] }
 0x23d   :  { %11971 = vmatprep.subr.mxu0 %v15207_v1  ;;  %14254 = vmatprep.subr.mxu1 %v15207_v1  ;;  %v10628_v48 = vld [vmem:[%s17991_s12 + $0xf0] sm:$0xf]  ;;  %v12810_v49 = vpack.c.bf16 %v10626_v47, %v10622_v43  ;;  %v638_v51 = vld [vmem:[%s17991_s12 + $0x8] sm:$0xff]  ;;  %v640_v54 = vld [vmem:[%s17991_s12 + $0x18] sm:$0xff]  ;;  %s18013_s30 = sld [smem:[#allocation89_spill]]  ;;  %s18014_s11 = sld [smem:[#allocation88_spill]] }
 0x23e   :  { %v12820_v50 = vpack.c.bf16 %v10628_v48, %v10624_v44  ;;  %v642_v52 = vld [vmem:[%s17991_s12 + $0x28] sm:$0xff]  ;;  %v644_v55 = vld [vmem:[%s17991_s12 + $0x38] sm:$0xff]  ;;  %v649_v32 = vld [vmem:[%s17991_s12 + $0x60] sm:$0xf]  ;;  %s18015_s19 = sld [smem:[#allocation91_spill]]  ;;  %s15209_s15 = smov [#allocation41]  }
 0x23f   :  { %v12823_v53 = vpack.c.bf16 %v642_v52, %v638_v51  ;;  %v12833_v56 = vpack.c.bf16 %v644_v55, %v640_v54  ;;  %v652_v26 = vld [vmem:[%s17991_s12 + $0x78] sm:$0xf]  ;;  %v651_v35 = vld [vmem:[%s17991_s12 + $0x70] sm:$0xf]  ;;  %vm16560_vm11 = vmpackc.low %vm3890_vm10, %vm15208_vm3  ;;  %vm5793_vm3 = vcmask 15360   ;;  %s10500_s16 = sshll.u32 %s15209_s15, 4  ;;  %s10501_s16 = int_to_ptr.vmem [resolvable:$true] %s10500_s16 }
 0x240   :  { %11972 = vmatpush3.msra.mxu0 %v15621_v11  ;;  %14258 = vmatpush3.msra.mxu1 %v15621_v11  ;;  %v10680_v38 = vld [vmem:[%s17991_s12 + $0x138] sm:$0xff]  ;;  %v10683_v55 = vld [vmem:[%s17991_s12 + $0x150] sm:$0xff]  ;;  %s15009_s17 = scalar_lea.vmem %s10501_s16, 32  ;;  %p15014_p11 = scmp.lt.s32.totalorder %s10501_s16, %s10501_s16 }
 0x241   :  { %11974 = vmatmul.mubr.msk.f32.vlgmr.msra.gmra.mrb[0].mxu0 %vm515_vm1, %v508_v12  ;;  %12794 = vmatprep.subr.bf16.mxu0 %v15205_v0  ;;  %v10684_v51 = vld [vmem:[%s17991_s12 + $0x158] sm:$0xff]  ;;  %p15010_p10 = scmp.ne.s32.totalorder %s10501_s16, %s15009_s17  ;;  %p15015_p12 = scmp.lt.s32.totalorder %s15009_s17, %s15009_s17 }
 0x242   :  { %11976 = vmatprep.mubr.msk.f32.mxu0 %vm15206_vm0, %v15207_v1  ;;  %12796 = vmatpush3.bf16.msra.mxu0 %v15604_v5  ;;  %v10688_v52 = vld [vmem:[%s17991_s12 + $0x178] sm:$0xf] }
 0x243   :  { %12797 = vmatprep.subr.bf16.mxu0 %v15205_v0  ;;  %12021 = vmatmul.mubr.msk.f32.vlgmr.msra.gmra.mrb[0].mxu1 %vm515_vm1, %v658_v13  ;;  %v12866_v54 = vpack.c.bf16 %v10688_v52, %v10684_v51  ;;  %p15016_p13 = por %p15015_p12, %p15014_p11 }
 0x244   :  { %12023 = vmatprep.mubr.msk.f32.mxu1 %vm15206_vm0, %v15207_v1  ;;  %12814 = vmatprep.subr.bf16.mxu1 %v12813_v33 }
 0x245   :  { %11977 = vmatmul.mubr.msk.f32.gmra.mrb[2].mxu0 %vm515_vm1, %v509_v14  ;;  %12816 = vmatpush1.bf16.msra.mxu1 %v12815_v37  ;;  %v10676_v37 = vld [vmem:[%s17991_s12 + $0x118] sm:$0xff]  ;;  %p15017_p0 = pnand %p15016_p13, %p15010_p10 }
 0x246   :  { %11979 = vmatprep.mubr.msk.f32.mxu0 %vm15206_vm0, %v15207_v1  ;;  %12799 = vmatpush3.bf16.msra.mxu0 %v15607_v7  ;;  %v12862_v42 = vpack.c.bf16 %v10680_v38, %v10676_v37 }
 0x247   :  { %12800 = vmatprep.subr.bf16.mxu0 %v15205_v0  ;;  %12024 = vmatmul.mubr.msk.f32.gmra.mrb[2].mxu1 %vm515_vm1, %v659_v15 }
 0x248   :  { %12026 = vmatprep.mubr.msk.f32.mxu1 %vm15206_vm0, %v15207_v1  ;;  %12819 = vmatprep.subr.msk.bf16.mxu1 %vm15689_vm4, %v12817_v46 }
 0x249   :  { %11980 = vmatmul.mubr.msk.f32.gmra.mrb[4].mxu0 %vm515_vm1, %v510_v16  ;;  %12822 = vmatpush1.bf16.msk.msra.mxu1 %vm15689_vm4, %v12820_v50  ;;  %v10679_v50 = vld [vmem:[%s17991_s12 + $0x130] sm:$0xff] }
 0x24a   :  { %11982 = vmatprep.mubr.msk.f32.mxu0 %vm15206_vm0, %v15207_v1  ;;  %12802 = vmatpush3.bf16.msra.mxu0 %v15613_v10 }
 0x24b   :  { %12006 = vmatprep.subr.mxu0 %v15207_v1  ;;  %12027 = vmatmul.mubr.msk.f32.gmra.mrb[4].mxu1 %vm515_vm1, %v660_v17  ;;  %v637_v17 = vld [vmem:[%s17991_s12] sm:$0xff] }
 0x24c   :  { %1005 = vmatprep.mubr.f32.mxu1 %v15207_v1  ;;  %12834 = vmatprep.subr.bf16.mxu1 %v12833_v56  ;;  %v10687_v56 = vld [vmem:[%s17991_s12 + $0x170] sm:$0xf] }
 0x24d   :  { %11983 = vmatmul.mubr.msk.f32.gmra.mrb[6].mxu0 %vm515_vm1, %v511_v18  ;;  %v641_v18 = vld [vmem:[%s17991_s12 + $0x20] sm:$0xff] }
 0x24e   :  { %11985 = vmatprep.mubr.msk.f32.mxu0 %vm15206_vm0, %v15207_v1  ;;  %12007 = vmatpush3.msra.mxu0 %v15621_v11  ;;  %v12825_v27 = vpack.c.bf16 %v641_v18, %v637_v17 }
 0x24f   :  { %12804 = vmatprep.subr.bf16.mxu0 %v12803_v29  ;;  %v645_v29 = vld [vmem:[%s17991_s12 + $0x40] sm:$0xff] }
 0x250   :  { %v12830_v39 = vpack.c.bf16 %v649_v32, %v645_v29  ;;  %v1718_v29 = vlaneseq }
 0x251   :  { %11986 = vmatmul.mubr.msk.f32.gmra.mrb[8].mxu0 %vm515_vm1, %v512_v19 }
 0x252   :  { %11988 = vmatprep.mubr.msk.f32.mxu0 %vm15206_vm0, %v15207_v1 }
 0x255   :  { %11989 = vmatmul.mubr.msk.f32.gmra.mrb[10].mxu0 %vm515_vm1, %v513_v20  ;;  %v639_v20 = vld [vmem:[%s17991_s12 + $0x10] sm:$0xff] }
 0x256   :  { %11991 = vmatprep.mubr.msk.f32.mxu0 %vm15206_vm0, %v15207_v1 }
 0x259   :  { %11992 = vmatmul.mubr.msk.f32.gmra.mrb[12].mxu0 %vm515_vm1, %v514_v21  ;;  %v643_v21 = vld [vmem:[%s17991_s12 + $0x30] sm:$0xff] }
 0x25a   :  { %12008 = vmatprep.mubr.msk.f32.mxu0 %vm15206_vm0, %v15207_v1  ;;  %v12835_v28 = vpack.c.bf16 %v643_v21, %v639_v20 }
 0x25d   :  { %12009 = vmatmul.mubr.msk.f32.vlgmr.msra.gmra.mrb[14].mxu0 %vm515_vm1, %v654_v22  ;;  %v646_v22 = vld [vmem:[%s17991_s12 + $0x48] sm:$0xff] }
 0x25e   :  { %12011 = vmatprep.mubr.msk.f32.mxu0 %vm15206_vm0, %v15207_v1  ;;  %12806 = vmatpush1.bf16.msra.mxu0 %v12805_v34  ;;  %v647_v34 = vld [vmem:[%s17991_s12 + $0x50] sm:$0xff] }
 0x25f   :  { %12809 = vmatprep.subr.msk.bf16.mxu0 %vm15689_vm4, %v12807_v41  ;;  %v12840_v40 = vpack.c.bf16 %v651_v35, %v647_v34 }
 0x261   :  { %12012 = vmatmul.mubr.msk.f32.gmra.mrb[16].mxu0 %vm515_vm1, %v655_v23 }
 0x262   :  { %12014 = vmatprep.mubr.msk.f32.mxu0 %vm15206_vm0, %v15207_v1  ;;  %12812 = vmatpush1.bf16.msk.msra.mxu0 %vm15689_vm4, %v12810_v49  ;;  %v10675_v49 = vld [vmem:[%s17991_s12 + $0x110] sm:$0xff] }
 0x263   :  { %12824 = vmatprep.subr.bf16.mxu0 %v12823_v53  ;;  %v12864_v53 = vpack.c.bf16 %v10679_v50, %v10675_v49 }
 0x265   :  { %12015 = vmatmul.mubr.msk.f32.gmra.mrb[18].mxu0 %vm515_vm1, %v656_v24  ;;  %v650_v24 = vld [vmem:[%s17991_s12 + $0x68] sm:$0xf] }
 0x266   :  { %12017 = vmatprep.mubr.msk.f32.mxu0 %vm15206_vm0, %v15207_v1  ;;  %v12827_v31 = vpack.c.bf16 %v650_v24, %v646_v22 }
 0x269   :  { %12018 = vmatmul.mubr.msk.f32.gmra.mrb[20].mxu0 %vm515_vm1, %v657_v25  ;;  %v648_v25 = vld [vmem:[%s17991_s12 + $0x58] sm:$0xff] }
 0x26a   :  { %898 = vmatprep.mubr.f32.mxu0 %v15207_v1  ;;  %v12837_v33 = vpack.c.bf16 %v652_v26, %v648_v25 }
 0x314   :  { %v15707_v57 = vpop.f32.mrb[0].mxu0 }
 0x315   :  { %v11975_v58 = vpop.f32.mrb[1].mxu0 }
 0x316   :  { %v15709_v59 = vpop.f32.mrb[0].mxu1  ;;  %v12869_v58 = vpack.c.bf16 %v10687_v56, %v10683_v55 }
 0x317   :  { %v12022_v60 = vpop.f32.mrb[1].mxu1 }
 0x318   :  { %v15711_v61 = vpop.f32.mrb[2].mxu0  ;;  %v10686_v60 = vld [vmem:[%s17991_s12 + $0x168] sm:$0xf] }
 0x319   :  { %v11978_v62 = vpop.f32.mrb[3].mxu0 }
 0x31a   :  { %v15713_v63 = vpop.f32.mrb[2].mxu1 }
 0x31b   :  { %v12025_v2 = vpop.f32.mrb[3].mxu1 }
 0x31c   :  { %v15715_v3 = vpop.f32.mrb[4].mxu0  ;;  %v10681_v2 = vld [vmem:[%s17991_s12 + $0x140] sm:$0xff] }
 0x31d   :  { %v11981_v4 = vpop.f32.mrb[5].mxu0 }
 0x31e   :  { %v15717_v6 = vpop.f32.mrb[4].mxu1  ;;  %v1297_v4 = vld [vmem:[#allocation7 + $0x78] sm:$0xff] }
 0x31f   :  { %v12028_v8 = vpop.f32.mrb[5].mxu1 }
 0x320   :  { %v15719_v9 = vpop.f32.mrb[6].mxu0  ;;  %v1298_v8 = vld [vmem:[#allocation7 + $0x80] sm:$0xff] }
 0x321   :  { %v11984_v12 = vpop.f32.mrb[7].mxu0 }
 0x322   :  { %v1300_v12 = vld [vmem:[#allocation7 + $0x90] sm:$0xff] }
 0x324   :  { %v15721_v13 = vpop.f32.mrb[8].mxu0 }
 0x325   :  { %v11987_v14 = vpop.f32.mrb[9].mxu0 }
 0x326   :  { %v1302_v14 = vld [vmem:[#allocation7 + $0xa0] sm:$0xff] }
 0x328   :  { %v15723_v15 = vpop.f32.mrb[10].mxu0 }
 0x329   :  { %v11990_v16 = vpop.f32.mrb[11].mxu0 }
 0x32c   :  { %v15727_v19 = vpop.f32.mrb[12].mxu0 }
 0x32d   :  { %v11993_v23 = vpop.f32.mrb[13].mxu0 }
 0x330   :  { %v748_v30 = vpop.f32.mrb[14].mxu0 }
 0x331   :  { %v12010_v36 = vpop.f32.mrb[15].mxu0  ;;  %10632 = vmatmul.mubr.msk.f32.vlgmr.msra.gmra.mrb[22].mxu0 %vm799_vm5, %v748_v30  ;;  %10641 = vmatmul.mubr.msk.f32.vlgmr.msra.gmra.mrb[6].mxu1 %vm799_vm5, %v748_v30  ;;  %v15904_v30 = vshrl.u32 %v1718_v29, 7 }
 0x332   :  { %904 = vmatprep.mubr.f32.mxu0 %v15207_v1  ;;  %1011 = vmatprep.mubr.f32.mxu1 %v15207_v1 }
 0x333   :  { %12826 = vmatpush1.bf16.msra.mxu0 %v12825_v27  ;;  %12836 = vmatpush1.bf16.msra.mxu1 %v12835_v28  ;;  %v1728_v32 = vsub.s32 2, %v15904_v30  ;;  %v1724_v34 = vsub.s32 1, %v15904_v30  ;;  %v1732_v35 = vsub.s32 3, %v15904_v30 }
 0x334   :  { %v753_v41 = vpop.f32.mrb[16].mxu0  ;;  %12829 = vmatprep.subr.msk.bf16.mxu0 %vm15689_vm4, %v12827_v31  ;;  %12839 = vmatprep.subr.msk.bf16.mxu1 %vm15689_vm4, %v12837_v33  ;;  %v1720_v31 = vsub.s32 0, %v15904_v30  ;;  %v1716_v33 = vld [vmem:[%s17994_s18] sm:$0xf] }
 0x335   :  { %v12013_v43 = vpop.f32.mrb[17].mxu0  ;;  %10633 = vmatmul.mubr.msk.f32.gmra.mrb[24].mxu0 %vm799_vm5, %v753_v41  ;;  %10642 = vmatmul.mubr.msk.f32.gmra.mrb[8].mxu1 %vm799_vm5, %v753_v41  ;;  %v15915_v37 = vrot.slane %v1716_v33, %v1728_v32  ;;  %v15921_v41 = vrot.slane %v1716_v33, %v1732_v35 }
 0x336   :  { %910 = vmatprep.mubr.f32.mxu0 %v15207_v1  ;;  %1017 = vmatprep.mubr.f32.mxu1 %v15207_v1  ;;  %v15913_v36 = vrot.slane %v1716_v33, %v1720_v31 }
 0x337   :  { %12832 = vmatpush1.bf16.msk.msra.mxu0 %vm15689_vm4, %v12830_v39  ;;  %12842 = vmatpush1.bf16.msk.msra.mxu1 %vm15689_vm4, %v12840_v40  ;;  %v15919_v40 = vrot.slane %v1716_v33, %v1724_v34 }
 0x338   :  { %v758_v44 = vpop.f32.mrb[18].mxu0  ;;  %12843 = vmatprep.subr.bf16.mxu0 %v15205_v0  ;;  %12863 = vmatprep.subr.bf16.mxu1 %v12862_v42 }
 0x339   :  { %v12016_v46 = vpop.f32.mrb[19].mxu0  ;;  %10634 = vmatmul.mubr.msk.f32.gmra.mrb[26].mxu0 %vm799_vm5, %v758_v44  ;;  %10643 = vmatmul.mubr.msk.f32.gmra.mrb[10].mxu1 %vm799_vm5, %v758_v44 }
 0x33a   :  { %916 = vmatprep.mubr.f32.mxu0 %v15207_v1  ;;  %1023 = vmatprep.mubr.f32.mxu1 %v15207_v1 }
 0x33c   :  { %v763_v47 = vpop.f32.mrb[20].mxu0 }
 0x33d   :  { %v12019_v48 = vpop.f32.mrb[21].mxu0  ;;  %10635 = vmatmul.mubr.msk.f32.gmra.mrb[28].mxu0 %vm799_vm5, %v763_v47  ;;  %10644 = vmatmul.mubr.msk.f32.gmra.mrb[12].mxu1 %vm799_vm5, %v763_v47 }
 0x33e   :  { %922 = vmatprep.mubr.f32.mxu0 %v15207_v1  ;;  %1029 = vmatprep.mubr.f32.mxu1 %v15207_v1 }
 0x341   :  { %10636 = vmatmul.mubr.msk.f32.gmra.mrb[30].mxu0 %vm799_vm5, %v15709_v59  ;;  %10645 = vmatmul.mubr.msk.f32.gmra.mrb[14].mxu1 %vm799_vm5, %v15709_v59  ;;  %v10682_v59 = vld [vmem:[%s17991_s12 + $0x148] sm:$0xff] }
 0x342   :  { %928 = vmatprep.mubr.f32.mxu0 %v15207_v1  ;;  %1035 = vmatprep.mubr.f32.mxu1 %v15207_v1 }
 0x345   :  { %10637 = vmatmul.mubr.msk.f32.gmra.mrb[32].mxu0 %vm799_vm5, %v15713_v63  ;;  %10646 = vmatmul.mubr.msk.f32.gmra.mrb[16].mxu1 %vm799_vm5, %v15713_v63  ;;  %v12856_v63 = vpack.c.bf16 %v10686_v60, %v10682_v59 }
 0x346   :  { %934 = vmatprep.mubr.f32.mxu0 %v15207_v1  ;;  %1041 = vmatprep.mubr.f32.mxu1 %v15207_v1 }
 0x349   :  { %10638 = vmatmul.mubr.msk.f32.gmra.mrb[34].mxu0 %vm799_vm5, %v15717_v6  ;;  %10647 = vmatmul.mubr.msk.f32.gmra.mrb[18].mxu1 %vm799_vm5, %v15717_v6 }
 0x34a   :  { %1145 = vmatprep.mubr.f32.mxu0 %v15207_v1  ;;  %1252 = vmatprep.mubr.f32.mxu1 %v15207_v1 }
 0x34d   :  { %10650 = vmatmul.mubr.msk.f32.vlgmr.msra.gmra.mrb[22].mxu0 %vm799_vm5, %v15707_v57  ;;  %10659 = vmatmul.mubr.msk.f32.vlgmr.msra.gmra.mrb[6].mxu1 %vm799_vm5, %v15707_v57  ;;  %v10678_v57 = vld [vmem:[%s17991_s12 + $0x128] sm:$0xff] }
 0x34e   :  { %1151 = vmatprep.mubr.f32.mxu0 %v15207_v1  ;;  %1258 = vmatprep.mubr.f32.mxu1 %v15207_v1 }
 0x34f   :  { %12845 = vmatpush3.bf16.msra.mxu0 %v15604_v5  ;;  %12865 = vmatpush1.bf16.msra.mxu1 %v12864_v53  ;;  %v10674_v5 = vld [vmem:[%s17991_s12 + $0x108] sm:$0xff] }
 0x350   :  { %12846 = vmatprep.subr.bf16.mxu0 %v15205_v0  ;;  %12868 = vmatprep.subr.msk.bf16.mxu1 %vm15689_vm4, %v12866_v54 }
 0x351   :  { %10651 = vmatmul.mubr.msk.f32.gmra.mrb[24].mxu0 %vm799_vm5, %v15711_v61  ;;  %10660 = vmatmul.mubr.msk.f32.gmra.mrb[8].mxu1 %vm799_vm5, %v15711_v61  ;;  %v1296_v61 = vld [vmem:[#allocation7 + $0x70] sm:$0xff] }
 0x352   :  { %1157 = vmatprep.mubr.f32.mxu0 %v15207_v1  ;;  %1264 = vmatprep.mubr.f32.mxu1 %v15207_v1 }
 0x353   :  { %12848 = vmatpush3.bf16.msra.mxu0 %v15607_v7  ;;  %12871 = vmatpush1.bf16.msk.msra.mxu1 %vm15689_vm4, %v12869_v58  ;;  %v12852_v7 = vpack.c.bf16 %v10678_v57, %v10674_v5 }
 0x354   :  { %12849 = vmatprep.subr.bf16.mxu0 %v15205_v0 }
 0x355   :  { %10652 = vmatmul.mubr.msk.f32.gmra.mrb[26].mxu0 %vm799_vm5, %v15715_v3  ;;  %10661 = vmatmul.mubr.msk.f32.gmra.mrb[10].mxu1 %vm799_vm5, %v15715_v3  ;;  %v10685_v3 = vld [vmem:[%s17991_s12 + $0x160] sm:$0xf] }
 0x356   :  { %1163 = vmatprep.mubr.f32.mxu0 %v15207_v1  ;;  %1270 = vmatprep.mubr.f32.mxu1 %v15207_v1  ;;  %v12859_v6 = vpack.c.bf16 %v10685_v3, %v10681_v2 }
 0x357   :  { %12851 = vmatpush3.bf16.msra.mxu0 %v15613_v10  ;;  %v10673_v10 = vld [vmem:[%s17991_s12 + $0x100] sm:$0xff] }
 0x358   :  { %12041 = vmatprep.subr.mxu0 %v15207_v1 }
 0x359   :  { %10653 = vmatmul.mubr.msk.f32.gmra.mrb[28].mxu0 %vm799_vm5, %v15719_v9  ;;  %10662 = vmatmul.mubr.msk.f32.gmra.mrb[12].mxu1 %vm799_vm5, %v15719_v9  ;;  %v1299_v9 = vld [vmem:[#allocation7 + $0x88] sm:$0xff] }
 0x35a   :  { %1169 = vmatprep.mubr.f32.mxu0 %v15207_v1  ;;  %1276 = vmatprep.mubr.f32.mxu1 %v15207_v1 }
 0x35b   :  { %12042 = vmatpush3.msra.mxu0 %v15621_v11  ;;  %v10677_v11 = vld [vmem:[%s17991_s12 + $0x120] sm:$0xff] }
 0x35c   :  { %12853 = vmatprep.subr.bf16.mxu0 %v12852_v7  ;;  %v12854_v62 = vpack.c.bf16 %v10677_v11, %v10673_v10 }
 0x35d   :  { %10654 = vmatmul.mubr.msk.f32.gmra.mrb[30].mxu0 %vm799_vm5, %v15721_v13  ;;  %10663 = vmatmul.mubr.msk.f32.gmra.mrb[14].mxu1 %vm799_vm5, %v15721_v13  ;;  %v1301_v13 = vld [vmem:[#allocation7 + $0x98] sm:$0xff] }
 0x35e   :  { %1175 = vmatprep.mubr.f32.mxu0 %v15207_v1  ;;  %1282 = vmatprep.mubr.f32.mxu1 %v15207_v1 }
 0x361   :  { %10655 = vmatmul.mubr.msk.f32.gmra.mrb[32].mxu0 %vm799_vm5, %v15723_v15  ;;  %10664 = vmatmul.mubr.msk.f32.gmra.mrb[16].mxu1 %vm799_vm5, %v15723_v15 }
 0x362   :  { %1181 = vmatprep.mubr.f32.mxu0 %v15207_v1  ;;  %1288 = vmatprep.mubr.f32.mxu1 %v15207_v1 }
 0x365   :  { %10656 = vmatmul.mubr.msk.f32.gmra.mrb[34].mxu0 %vm799_vm5, %v15727_v19  ;;  %10665 = vmatmul.mubr.msk.f32.gmra.mrb[18].mxu1 %vm799_vm5, %v15727_v19 }
 0x366   :  { %12043 = vmatprep.mubr.msk.f32.mxu0 %vm15206_vm0, %v15207_v1  ;;  %1645 = vmatprep.mubr.f32.mxu1 %v15207_v1 }
 0x369   :  { %12044 = vmatmul.mubr.msk.f32.vlgmr.msra.gmra.mrb[36].mxu0 %vm515_vm1, %v1296_v61 }
 0x36a   :  { %12046 = vmatprep.mubr.msk.f32.mxu0 %vm15206_vm0, %v15207_v1  ;;  %12855 = vmatpush1.bf16.msra.mxu0 %v12854_v62 }
 0x36b   :  { %12858 = vmatprep.subr.msk.bf16.mxu0 %vm15689_vm4, %v12856_v63 }
 0x36d   :  { %12047 = vmatmul.mubr.msk.f32.gmra.mrb[38].mxu0 %vm515_vm1, %v1297_v4 }
 0x36e   :  { %12049 = vmatprep.mubr.msk.f32.mxu0 %vm15206_vm0, %v15207_v1  ;;  %12861 = vmatpush1.bf16.msk.msra.mxu0 %vm15689_vm4, %v12859_v6 }
 0x371   :  { %12050 = vmatmul.mubr.msk.f32.gmra.mrb[40].mxu0 %vm515_vm1, %v1298_v8 }
 0x372   :  { %12052 = vmatprep.mubr.msk.f32.mxu0 %vm15206_vm0, %v15207_v1 }
 0x375   :  { %12053 = vmatmul.mubr.msk.f32.gmra.mrb[42].mxu0 %vm515_vm1, %v1299_v9 }
 0x376   :  { %12055 = vmatprep.mubr.msk.f32.mxu0 %vm15206_vm0, %v15207_v1 }
 0x379   :  { %12056 = vmatmul.mubr.msk.f32.gmra.mrb[44].mxu0 %vm515_vm1, %v1300_v12 }
 0x37a   :  { %12058 = vmatprep.mubr.msk.f32.mxu0 %vm15206_vm0, %v15207_v1 }
 0x37d   :  { %12059 = vmatmul.mubr.msk.f32.gmra.mrb[46].mxu0 %vm515_vm1, %v1301_v13 }
 0x37e   :  { %12061 = vmatprep.mubr.msk.f32.mxu0 %vm15206_vm0, %v15207_v1 }
 0x381   :  { %12062 = vmatmul.mubr.msk.f32.gmra.mrb[48].mxu0 %vm515_vm1, %v1302_v14 }
 0x382   :  { %1538 = vmatprep.mubr.f32.mxu0 %v15207_v1 }
 0x43c   :  { %v1390_v15 = vpop.f32.mrb[36].mxu0 }
 0x43d   :  { %v12045_v16 = vpop.f32.mrb[37].mxu0  ;;  %10691 = vmatmul.mubr.msk.f32.vlgmr.msra.gmra.mrb[22].mxu0 %vm799_vm5, %v1390_v15  ;;  %10700 = vmatmul.mubr.msk.f32.vlgmr.msra.gmra.mrb[6].mxu1 %vm799_vm5, %v1390_v15 }
 0x43e   :  { %1544 = vmatprep.mubr.f32.mxu0 %v15207_v1  ;;  %1651 = vmatprep.mubr.f32.mxu1 %v15207_v1 }
 0x440   :  { %v1395_v17 = vpop.f32.mrb[38].mxu0 }
 0x441   :  { %v12048_v18 = vpop.f32.mrb[39].mxu0  ;;  %10692 = vmatmul.mubr.msk.f32.gmra.mrb[24].mxu0 %vm799_vm5, %v1395_v17  ;;  %10701 = vmatmul.mubr.msk.f32.gmra.mrb[8].mxu1 %vm799_vm5, %v1395_v17 }
 0x442   :  { %1550 = vmatprep.mubr.f32.mxu0 %v15207_v1  ;;  %1657 = vmatprep.mubr.f32.mxu1 %v15207_v1 }
 0x444   :  { %v1400_v19 = vpop.f32.mrb[40].mxu0 }
 0x445   :  { %v12051_v20 = vpop.f32.mrb[41].mxu0  ;;  %10693 = vmatmul.mubr.msk.f32.gmra.mrb[26].mxu0 %vm799_vm5, %v1400_v19  ;;  %10702 = vmatmul.mubr.msk.f32.gmra.mrb[10].mxu1 %vm799_vm5, %v1400_v19 }
 0x446   :  { %1556 = vmatprep.mubr.f32.mxu0 %v15207_v1  ;;  %1663 = vmatprep.mubr.f32.mxu1 %v15207_v1 }
 0x448   :  { %v1405_v21 = vpop.f32.mrb[42].mxu0 }
 0x449   :  { %v12054_v22 = vpop.f32.mrb[43].mxu0  ;;  %10694 = vmatmul.mubr.msk.f32.gmra.mrb[28].mxu0 %vm799_vm5, %v1405_v21  ;;  %10703 = vmatmul.mubr.msk.f32.gmra.mrb[12].mxu1 %vm799_vm5, %v1405_v21 }
 0x44a   :  { %1562 = vmatprep.mubr.f32.mxu0 %v15207_v1  ;;  %1669 = vmatprep.mubr.f32.mxu1 %v15207_v1 }
 0x44c   :  { %v1410_v23 = vpop.f32.mrb[44].mxu0 }
 0x44d   :  { %v12057_v24 = vpop.f32.mrb[45].mxu0  ;;  %10695 = vmatmul.mubr.msk.f32.gmra.mrb[30].mxu0 %vm799_vm5, %v1410_v23  ;;  %10704 = vmatmul.mubr.msk.f32.gmra.mrb[14].mxu1 %vm799_vm5, %v1410_v23 }
 0x44e   :  { %1568 = vmatprep.mubr.f32.mxu0 %v15207_v1  ;;  %1675 = vmatprep.mubr.f32.mxu1 %v15207_v1 }
 0x450   :  { %v1415_v25 = vpop.f32.mrb[46].mxu0 }
 0x451   :  { %v12060_v26 = vpop.f32.mrb[47].mxu0  ;;  %10696 = vmatmul.mubr.msk.f32.gmra.mrb[32].mxu0 %vm799_vm5, %v1415_v25  ;;  %10705 = vmatmul.mubr.msk.f32.gmra.mrb[16].mxu1 %vm799_vm5, %v1415_v25 }
 0x452   :  { %1574 = vmatprep.mubr.f32.mxu0 %v15207_v1  ;;  %1681 = vmatprep.mubr.f32.mxu1 %v15207_v1 }
 0x454   :  { %v1420_v27 = vpop.f32.mrb[48].mxu0 }
 0x455   :  { %10697 = vmatmul.mubr.msk.f32.gmra.mrb[34].mxu0 %vm799_vm5, %v1420_v27  ;;  %10706 = vmatmul.mubr.msk.f32.gmra.mrb[18].mxu1 %vm799_vm5, %v1420_v27  ;;  %v12063_v28 = vpop.f32.mrb[49].mxu0 }
 0x456   :  { %1874 = vmatprep.mubr.f32.mxu1 %v15207_v1  ;;  %2069 = vmatprep.mubr.f32.mxu0 %v15207_v1 }
 0x510   :  { %v1540_v38 = vpop.f32.mrb[22].mxu0  ;;  %v1647_v39 = vpop.f32.mrb[6].mxu1 }
 0x511   :  { %v1542_v42 = vpop.f32.mrb[23].mxu0  ;;  %v1649_v43 = vpop.f32.mrb[7].mxu1  ;;  %v1738_v44 = vadd.f32 %v15913_v36, %v1540_v38  ;;  %v1740_v46 = vadd.f32 %v15915_v37, %v1647_v39 }
 0x512   :  { %v1739_v47 = vadd.f32 %v15919_v40, %v1542_v42  ;;  %v1741_v48 = vadd.f32 %v15921_v41, %v1649_v43 }
 0x513   :  { %v1766_v58 = vmax.f32 %v1738_v44, 0.0  ;;  %v1768_v5 = vmax.f32 %v1740_v46, 0.0 }
 0x514   :  { %v1546_v49 = vpop.f32.mrb[24].mxu0  ;;  %v1653_v50 = vpop.f32.mrb[8].mxu1  ;;  %v1767_v10 = vmax.f32 %v1739_v47, 0.0  ;;  %v1769_v11 = vmax.f32 %v1741_v48, 0.0 }
 0x515   :  { %v1742_v51 = vadd.f32 %v15913_v36, %v1546_v49  ;;  %v1744_v52 = vadd.f32 %v15915_v37, %v1653_v50  ;;  %v1548_v53 = vpop.f32.mrb[25].mxu0  ;;  %v1655_v54 = vpop.f32.mrb[9].mxu1 }
 0x516   :  { %v1743_v55 = vadd.f32 %v15919_v40, %v1548_v53  ;;  %v1745_v56 = vadd.f32 %v15921_v41, %v1655_v54 }
 0x517   :  { %v1770_v57 = vmax.f32 %v1742_v51, 0.0  ;;  %v1772_v7 = vmax.f32 %v1744_v52, 0.0 }
 0x518   :  { %v1771_v59 = vmax.f32 %v1743_v55, 0.0  ;;  %v1773_v60 = vmax.f32 %v1745_v56, 0.0  ;;  %v1552_v61 = vpop.f32.mrb[26].mxu0  ;;  %v1659_v62 = vpop.f32.mrb[10].mxu1 }
 0x519   :  { %v12874_v63 = vpack.c.bf16 %v1770_v57, %v1766_v58  ;;  %v15931_v2 = vpack.c.bf16 %v1772_v7, %v1768_v5  ;;  %v1554_v3 = vpop.f32.mrb[27].mxu0  ;;  %v1661_v4 = vpop.f32.mrb[11].mxu1  ;;  %v1746_v9 = vadd.f32 %v15913_v36, %v1552_v61  ;;  %v1748_v12 = vadd.f32 %v15915_v37, %v1659_v62 }
 0x51a   :  { %v12872_v6 = vpack.c.bf16 %v1771_v59, %v1767_v10  ;;  %v15933_v8 = vpack.c.bf16 %v1773_v60, %v1769_v11  ;;  %v1747_v13 = vadd.f32 %v15919_v40, %v1554_v3  ;;  %v1749_v14 = vadd.f32 %v15921_v41, %v1661_v4 }
 0x51b   :  { %v1774_v23 = vmax.f32 %v1746_v9, 0.0  ;;  %v1776_v24 = vmax.f32 %v1748_v12, 0.0 }
 0x51c   :  { %v1558_v15 = vpop.f32.mrb[28].mxu0  ;;  %v1665_v16 = vpop.f32.mrb[12].mxu1  ;;  %12873 = vmatprep.subr.bf16.mxu1 %v12872_v6  ;;  %12897 = vmatprep.subr.bf16.mxu0 %v12872_v6  ;;  %v1775_v27 = vmax.f32 %v1747_v13, 0.0  ;;  %v1777_v28 = vmax.f32 %v1749_v14, 0.0 }
 0x51d   :  { %v1750_v17 = vadd.f32 %v15913_v36, %v1558_v15  ;;  %v1752_v18 = vadd.f32 %v15915_v37, %v1665_v16  ;;  %v1560_v19 = vpop.f32.mrb[29].mxu0  ;;  %v1667_v20 = vpop.f32.mrb[13].mxu1  ;;  %12875 = vmatpush1.bf16.msra.mxu1 %v12874_v63  ;;  %12899 = vmatpush1.bf16.msra.mxu0 %v12874_v63 }
 0x51e   :  { %v1751_v21 = vadd.f32 %v15919_v40, %v1560_v19  ;;  %v1753_v22 = vadd.f32 %v15921_v41, %v1667_v20  ;;  %v2202_v19 = vld [vmem:[%s17995_s23 + $0x18] sm:$0xff] }
 0x51f   :  { %v1778_v25 = vmax.f32 %v1750_v17, 0.0  ;;  %v1780_v26 = vmax.f32 %v1752_v18, 0.0  ;;  %v2200_v18 = vld [vmem:[%s17995_s23 + $0x8] sm:$0xff] }
 0x520   :  { %v1779_v29 = vmax.f32 %v1751_v21, 0.0  ;;  %v1781_v32 = vmax.f32 %v1753_v22, 0.0  ;;  %v1564_v33 = vpop.f32.mrb[30].mxu0  ;;  %v1671_v35 = vpop.f32.mrb[14].mxu1  ;;  %v15964_v21 = vld [vmem:[%s17996_s14] sm:$0xff]  ;;  %v2201_v22 = vld [vmem:[%s17995_s23 + $0x10] sm:$0xff] }
 0x521   :  { %v12878_v38 = vpack.c.bf16 %v1778_v25, %v1774_v23  ;;  %v15943_v39 = vpack.c.bf16 %v1780_v26, %v1776_v24  ;;  %v1566_v42 = vpop.f32.mrb[31].mxu0  ;;  %v1673_v43 = vpop.f32.mrb[15].mxu1  ;;  %v1754_v47 = vadd.f32 %v15913_v36, %v1564_v33  ;;  %v1756_v48 = vadd.f32 %v15915_v37, %v1671_v35  ;;  %v2204_v25 = vld [vmem:[%s17995_s23 + $0x28] sm:$0xff]  ;;  %v2206_v26 = vld [vmem:[%s17995_s23 + $0x38] sm:$0xff] }
 0x522   :  { %v12876_v44 = vpack.c.bf16 %v1779_v29, %v1775_v27  ;;  %v15945_v46 = vpack.c.bf16 %v1781_v32, %v1777_v28  ;;  %v1755_v49 = vadd.f32 %v15919_v40, %v1566_v42  ;;  %v1757_v50 = vadd.f32 %v15921_v41, %v1673_v43  ;;  %v15980_v27 = vld [vmem:[%s17996_s14 + $0x8] sm:$0xff]  ;;  %v2203_v28 = vld [vmem:[%s17995_s23 + $0x20] sm:$0xff]  ;;  %v2205_v29 = vld [vmem:[%s17995_s23 + $0x30] sm:$0xff] }
 0x523   :  { %v1782_v57 = vmax.f32 %v1754_v47, 0.0  ;;  %v1784_v7 = vmax.f32 %v1756_v48, 0.0  ;;  %v12920_v23 = vpack.c.bf16 %v2202_v19, %v2200_v18  ;;  %v15988_v32 = vld [vmem:[%s17996_s14 + $0x28] sm:$0xff]  ;;  %v12924_v33 = vpack.c.bf16 %v2206_v26, %v2204_v25  ;;  %v2210_v43 = vld [vmem:[%s17995_s23 + $0x58] sm:$0xff]  ;;  %v2207_v47 = vld [vmem:[%s17995_s23 + $0x40] sm:$0xff] }
 0x524   :  { %v1570_v51 = vpop.f32.mrb[32].mxu0  ;;  %v1677_v52 = vpop.f32.mrb[16].mxu1  ;;  %12877 = vmatprep.subr.bf16.mxu1 %v12876_v44  ;;  %12901 = vmatprep.subr.bf16.mxu0 %v12876_v44  ;;  %v1783_v59 = vmax.f32 %v1755_v49, 0.0  ;;  %v1785_v60 = vmax.f32 %v1757_v50, 0.0  ;;  %v2208_v42 = vld [vmem:[%s17995_s23 + $0x48] sm:$0xff]  ;;  %v16000_v44 = vld [vmem:[%s17996_s14 + $0x10] sm:$0xff] }
 0x525   :  { %v1758_v53 = vadd.f32 %v15913_v36, %v1570_v51  ;;  %v1760_v54 = vadd.f32 %v15915_v37, %v1677_v52  ;;  %v1572_v55 = vpop.f32.mrb[33].mxu0  ;;  %v1679_v56 = vpop.f32.mrb[17].mxu1  ;;  %12879 = vmatpush1.bf16.msra.mxu1 %v12878_v38  ;;  %12903 = vmatpush1.bf16.msra.mxu0 %v12878_v38  ;;  %v12926_v38 = vpack.c.bf16 %v2205_v29, %v2203_v28  ;;  %v2209_v48 = vld [vmem:[%s17995_s23 + $0x50] sm:$0xff]  ;;  %v10734_v18 = vld [vmem:[%s17995_s23 + $0x398] sm:$0xff]  ;;  %v2228_v19 = vld [vmem:[%s17995_s23 + $0xe8] sm:$0xff] }
 0x526   :  { %v1759_v58 = vadd.f32 %v15919_v40, %v1572_v55  ;;  %v1761_v5 = vadd.f32 %v15921_v41, %v1679_v56  ;;  %v16012_v49 = vld [vmem:[%s17996_s14 + $0x30] sm:$0xff]  ;;  %v12928_v50 = vpack.c.bf16 %v2210_v43, %v2208_v42  ;;  %v12930_v52 = vpack.c.bf16 %v2209_v48, %v2207_v47  ;;  %v2211_v55 = vld [vmem:[%s17995_s23 + $0x60] sm:$0xff]  ;;  %v10738_v26 = vld [vmem:[%s17995_s23 + $0x3b8] sm:$0xff] }
 0x527   :  { %v1786_v10 = vmax.f32 %v1758_v53, 0.0  ;;  %v1788_v11 = vmax.f32 %v1760_v54, 0.0  ;;  %v2212_v53 = vld [vmem:[%s17995_s23 + $0x68] sm:$0xff]  ;;  %v2214_v54 = vld [vmem:[%s17995_s23 + $0x78] sm:$0xff]  ;;  %v2213_v56 = vld [vmem:[%s17995_s23 + $0x70] sm:$0xff] }
 0x528   :  { %v1787_v61 = vmax.f32 %v1759_v58, 0.0  ;;  %v1789_v62 = vmax.f32 %v1761_v5, 0.0  ;;  %v1576_v63 = vpop.f32.mrb[34].mxu0  ;;  %v1683_v3 = vpop.f32.mrb[18].mxu1  ;;  %v16033_v5 = vld [vmem:[%s17996_s14 + $0x38] sm:$0xf] }
 0x529   :  { %v12882_v4 = vpack.c.bf16 %v1786_v10, %v1782_v57  ;;  %v15955_v6 = vpack.c.bf16 %v1788_v11, %v1784_v7  ;;  %v1578_v9 = vpop.f32.mrb[35].mxu0  ;;  %v1685_v12 = vpop.f32.mrb[19].mxu1  ;;  %v1762_v16 = vadd.f32 %v15913_v36, %v1576_v63  ;;  %v15969_v36 = vld [vmem:[%s17996_s14 + $0x20] sm:$0xff]  ;;  %v12932_v57 = vpack.c.bf16 %v2214_v54, %v2212_v53  ;;  %v2216_v7 = vld [vmem:[%s17995_s23 + $0x88] sm:$0xff]  ;;  %v2218_v10 = vld [vmem:[%s17995_s23 + $0x98] sm:$0xff] }
 0x52a   :  { %v12880_v13 = vpack.c.bf16 %v1787_v61, %v1783_v59  ;;  %v15957_v14 = vpack.c.bf16 %v1789_v62, %v1785_v60  ;;  %v1763_v15 = vadd.f32 %v15919_v40, %v1578_v9  ;;  %v2199_v40 = vld [vmem:[%s17995_s23] sm:$0xff]  ;;  %v15991_v35 = vadd.f32 %v15921_v41, %v1685_v12  ;;  %v2217_v60 = vld [vmem:[%s17995_s23 + $0x90] sm:$0xff]  ;;  %v2220_v62 = vld [vmem:[%s17995_s23 + $0xa8] sm:$0xff] }
 0x52b   :  { %v1790_v20 = vmax.f32 %v1762_v16, 0.0  ;;  %v12922_v24 = vpack.c.bf16 %v2201_v22, %v2199_v40  ;;  %v16008_v41 = vadd.f32 %v15915_v37, %v1683_v3  ;;  %v16022_v37 = vld [vmem:[%s17996_s14 + $0x18] sm:$0xf]  ;;  %v12934_v11 = vpack.c.bf16 %v2213_v56, %v2211_v55  ;;  %v2215_v59 = vld [vmem:[%s17995_s23 + $0x80] sm:$0xff]  ;;  %v2224_v12 = vld [vmem:[%s17995_s23 + $0xc8] sm:$0xff] }
 0x52c   :  { %v1791_v17 = vmax.f32 %v1763_v15, 0.0  ;;  %12881 = vmatprep.subr.bf16.mxu1 %v12880_v13  ;;  %12905 = vmatprep.subr.bf16.mxu0 %v12880_v13  ;;  %v1793_v51 = vmax.f32 %v15991_v35, 0.0  ;;  %v12936_v61 = vpack.c.bf16 %v2218_v10, %v2216_v7  ;;  %v2222_v63 = vld [vmem:[%s17995_s23 + $0xb8] sm:$0xff]  ;;  %v12938_v3 = vpack.c.bf16 %v2217_v60, %v2215_v59  ;;  %v10732_v16 = vld [vmem:[%s17995_s23 + $0x388] sm:$0xff]  ;;  %v10731_v22 = vld [vmem:[%s17995_s23 + $0x380] sm:$0xff] }
 0x52d   :  { %12883 = vmatpush1.bf16.msra.mxu1 %v12882_v4  ;;  %12907 = vmatpush1.bf16.msra.mxu0 %v12882_v4  ;;  %v1792_v58 = vmax.f32 %v16008_v41, 0.0  ;;  %v2221_v4 = vld [vmem:[%s17995_s23 + $0xb0] sm:$0xff]  ;;  %v12940_v9 = vpack.c.bf16 %v2222_v63, %v2220_v62  ;;  %v2226_v13 = vld [vmem:[%s17995_s23 + $0xd8] sm:$0xff]  ;;  %v13032_v40 = vpack.c.bf16 %v10734_v18, %v10732_v16  ;;  %v10735_v42 = vld [vmem:[%s17995_s23 + $0x3a0] sm:$0xff] }
 0x52e   :  { %1822 = vmatprep.subr.mxu1 %v1791_v17  ;;  %2017 = vmatprep.subr.mxu0 %v1791_v17  ;;  %v12944_v17 = vpack.c.bf16 %v2226_v13, %v2224_v12  ;;  %v2233_v35 = vld [vmem:[%s17995_s23 + $0x110] sm:$0xff]  ;;  %v10742_v48 = vld [vmem:[%s17995_s23 + $0x3d8] sm:$0xff]  ;;  %v2236_v41 = vld [vmem:[%s17995_s23 + $0x128] sm:$0xff] }
 0x52f   :  { %v10737_v43 = vld [vmem:[%s17995_s23 + $0x3b0] sm:$0xff]  ;;  %v2235_v53 = vld [vmem:[%s17995_s23 + $0x120] sm:$0xff]  ;;  %v2240_v7 = vld [vmem:[%s17995_s23 + $0x148] sm:$0xff] }
 0x530   :  { %v2237_v54 = vld [vmem:[%s17995_s23 + $0x130] sm:$0xff]  ;;  %v10739_v55 = vld [vmem:[%s17995_s23 + $0x3c0] sm:$0xff]  ;;  %v2242_v10 = vld [vmem:[%s17995_s23 + $0x158] sm:$0xff] }
 0x531   :  { %1823 = vmatpush1.msra.mxu1 %v1790_v20  ;;  %2018 = vmatpush1.msra.mxu0 %v1790_v20  ;;  %v2230_v20 = vld [vmem:[%s17995_s23 + $0xf8] sm:$0xff]  ;;  %v10741_v56 = vld [vmem:[%s17995_s23 + $0x3d0] sm:$0xff]  ;;  %v10743_v60 = vld [vmem:[%s17995_s23 + $0x3e0] sm:$0xff] }
 0x532   :  { %10707 = vmatmul.mubr.msk.f32.vlgmr.msra.gmra.mrb[20].mxu1 %vm515_vm1, %v15964_v21  ;;  %12885 = vmatprep.subr.bf16.mxu1 %v15933_v8  ;;  %v12948_v25 = vpack.c.bf16 %v2230_v20, %v2228_v19  ;;  %v13042_v59 = vpack.c.bf16 %v10741_v56, %v10739_v55  ;;  %v2241_v62 = vld [vmem:[%s17995_s23 + $0x150] sm:$0xff]  ;;  %v10750_v12 = vld [vmem:[%s17995_s23 + $0x418] sm:$0xff]  ;;  %v2243_v16 = vld [vmem:[%s17995_s23 + $0x160] sm:$0xff] }
 0x533   :  { %10719 = vmatmul.mubr.msk.f32.vlgmr.msra.gmra.mrb[50].mxu0 %vm515_vm1, %v15969_v36  ;;  %12887 = vmatpush1.bf16.msra.mxu1 %v15931_v2  ;;  %v10749_v19 = vld [vmem:[%s17995_s23 + $0x410] sm:$0xff]  ;;  %v2250_v20 = vld [vmem:[%s17995_s23 + $0x198] sm:$0xff]  ;;  %v2255_v55 = vld [vmem:[%s17995_s23 + $0x1c0] sm:$0xff] }
 0x534   :  { %12889 = vmatprep.subr.bf16.mxu1 %v15945_v46  ;;  %1880 = vmatprep.mubr.f32.mxu1 %v15207_v1  ;;  %v2257_v56 = vld [vmem:[%s17995_s23 + $0x1d0] sm:$0xff] }
 0x535   :  { %2075 = vmatprep.mubr.f32.mxu0 %v15207_v1  ;;  %12921 = vmatprep.subr.bf16.mxu0 %v12920_v23  ;;  %v10733_v23 = vld [vmem:[%s17995_s23 + $0x390] sm:$0xff] }
 0x536   :  { %10708 = vmatmul.mubr.msk.f32.gmra.mrb[22].mxu1 %vm515_vm1, %v15980_v27  ;;  %12923 = vmatpush1.bf16.msra.mxu0 %v12922_v24  ;;  %v10736_v24 = vld [vmem:[%s17995_s23 + $0x3a8] sm:$0xff]  ;;  %v13034_v29 = vpack.c.bf16 %v10733_v23, %v10731_v22  ;;  %v10751_v22 = vld [vmem:[%s17995_s23 + $0x420] sm:$0xff] }
 0x537   :  { %12891 = vmatpush1.bf16.msra.mxu1 %v15943_v39  ;;  %1886 = vmatprep.mubr.f32.mxu1 %v15207_v1 }
 0x538   :  { %12893 = vmatprep.subr.bf16.mxu1 %v15957_v14  ;;  %10720 = vmatmul.mubr.msk.f32.gmra.mrb[52].mxu0 %vm515_vm1, %v15988_v32 }
 0x539   :  { %2081 = vmatprep.mubr.f32.mxu0 %v15207_v1  ;;  %12925 = vmatprep.subr.bf16.mxu0 %v12924_v33  ;;  %v2231_v33 = vld [vmem:[%s17995_s23 + $0x100] sm:$0xff] }
 0x53a   :  { %10709 = vmatmul.mubr.msk.f32.gmra.mrb[24].mxu1 %vm515_vm1, %v16000_v44  ;;  %12927 = vmatpush1.bf16.msra.mxu0 %v12926_v38  ;;  %v13036_v38 = vpack.c.bf16 %v10738_v26, %v10736_v24  ;;  %v2247_v24 = vld [vmem:[%s17995_s23 + $0x180] sm:$0xff] }
 0x53b   :  { %12895 = vmatpush1.bf16.msra.mxu1 %v15955_v6  ;;  %1892 = vmatprep.mubr.f32.mxu1 %v15207_v1 }
 0x53c   :  { %1911 = vmatprep.subr.mxu1 %v1793_v51  ;;  %10721 = vmatmul.mubr.msk.f32.gmra.mrb[54].mxu0 %vm515_vm1, %v16012_v49 }
 0x53d   :  { %2087 = vmatprep.mubr.f32.mxu0 %v15207_v1  ;;  %12929 = vmatprep.subr.bf16.mxu0 %v12928_v50  ;;  %v2238_v50 = vld [vmem:[%s17995_s23 + $0x138] sm:$0xff] }
 0x53e   :  { %10710 = vmatmul.mubr.msk.f32.gmra.mrb[26].mxu1 %vm515_vm1, %v16022_v37  ;;  %12931 = vmatpush1.bf16.msra.mxu0 %v12930_v52  ;;  %v13038_v52 = vpack.c.bf16 %v10737_v43, %v10735_v42  ;;  %v2251_v43 = vld [vmem:[%s17995_s23 + $0x1a0] sm:$0xff] }
 0x53f   :  { %1912 = vmatpush1.msra.mxu1 %v1792_v58  ;;  %1963 = vmatprep.mubr.f32.mxu1 %v15207_v1 }
 0x540   :  { %12909 = vmatprep.subr.bf16.mxu1 %v15933_v8  ;;  %10722 = vmatmul.mubr.msk.f32.gmra.mrb[56].mxu0 %vm515_vm1, %v16033_v5  ;;  %v2219_v8 = vld [vmem:[%s17995_s23 + $0xa0] sm:$0xff] }
 0x541   :  { %12933 = vmatprep.subr.bf16.mxu0 %v12932_v57  ;;  %v12942_v15 = vpack.c.bf16 %v2221_v4, %v2219_v8  ;;  %v10746_v57 = vld [vmem:[%s17995_s23 + $0x3f8] sm:$0xff]  ;;  %v12960_v8 = vpack.c.bf16 %v2242_v10, %v2240_v7  ;;  %v10764_v7 = vld [vmem:[%s17995_s23 + $0x488] sm:$0xff] }
 0x542   :  { %10711 = vmatmul.mubr.msk.f32.vlgmr.msra.gmra.mrb[28].mxu1 %vm515_vm1, %v15964_v21  ;;  %12935 = vmatpush1.bf16.msra.mxu0 %v12934_v11  ;;  %v2229_v21 = vld [vmem:[%s17995_s23 + $0xf0] sm:$0xff]  ;;  %v12958_v11 = vpack.c.bf16 %v2237_v54, %v2235_v53  ;;  %v2246_v4 = vld [vmem:[%s17995_s23 + $0x178] sm:$0xff] }
 0x543   :  { %12911 = vmatpush1.bf16.msra.mxu1 %v15931_v2  ;;  %1969 = vmatprep.mubr.f32.mxu1 %v15207_v1  ;;  %v2223_v2 = vld [vmem:[%s17995_s23 + $0xc0] sm:$0xff]  ;;  %v10766_v10 = vld [vmem:[%s17995_s23 + $0x498] sm:$0xff] }
 0x544   :  { %12913 = vmatprep.subr.bf16.mxu1 %v15945_v46  ;;  %12937 = vmatprep.subr.bf16.mxu0 %v12936_v61  ;;  %v2225_v46 = vld [vmem:[%s17995_s23 + $0xd0] sm:$0xff]  ;;  %v2239_v61 = vld [vmem:[%s17995_s23 + $0x140] sm:$0xff] }
 0x545   :  { %v12962_v13 = vpack.c.bf16 %v2241_v62, %v2239_v61  ;;  %v10763_v61 = vld [vmem:[%s17995_s23 + $0x480] sm:$0xff]  ;;  %v10765_v62 = vld [vmem:[%s17995_s23 + $0x490] sm:$0xff] }
 0x546   :  { %10712 = vmatmul.mubr.msk.f32.gmra.mrb[30].mxu1 %vm515_vm1, %v15980_v27  ;;  %12939 = vmatpush1.bf16.msra.mxu0 %v12938_v3  ;;  %v2234_v27 = vld [vmem:[%s17995_s23 + $0x118] sm:$0xff]  ;;  %v10745_v3 = vld [vmem:[%s17995_s23 + $0x3f0] sm:$0xff] }
 0x547   :  { %12915 = vmatpush1.bf16.msra.mxu1 %v15943_v39  ;;  %1975 = vmatprep.mubr.f32.mxu1 %v15207_v1  ;;  %v12946_v39 = vpack.c.bf16 %v2225_v46, %v2223_v2  ;;  %v10747_v2 = vld [vmem:[%s17995_s23 + $0x400] sm:$0xff] }
 0x548   :  { %12917 = vmatprep.subr.bf16.mxu1 %v15957_v14  ;;  %12941 = vmatprep.subr.bf16.mxu0 %v12940_v9  ;;  %v2227_v14 = vld [vmem:[%s17995_s23 + $0xe0] sm:$0xff]  ;;  %v10748_v9 = vld [vmem:[%s17995_s23 + $0x408] sm:$0xff] }
 0x549   :  { %v12950_v28 = vpack.c.bf16 %v2229_v21, %v2227_v14  ;;  %v13048_v18 = vpack.c.bf16 %v10750_v12, %v10748_v9  ;;  %v10754_v14 = vld [vmem:[%s17995_s23 + $0x438] sm:$0xff]  ;;  %v10769_v9 = vld [vmem:[%s17995_s23 + $0x4b0] sm:$0xff]  ;;  %v10772_v12 = vld [vmem:[%s17995_s23 + $0x4c8] sm:$0xff] }
 0x54a   :  { %10713 = vmatmul.mubr.msk.f32.gmra.mrb[32].mxu1 %vm515_vm1, %v16000_v44  ;;  %12943 = vmatpush1.bf16.msra.mxu0 %v12942_v15  ;;  %v10740_v44 = vld [vmem:[%s17995_s23 + $0x3c8] sm:$0xff]  ;;  %v13046_v15 = vpack.c.bf16 %v10745_v3, %v10743_v60  ;;  %v13064_v60 = vpack.c.bf16 %v10766_v10, %v10764_v7  ;;  %v10770_v3 = vld [vmem:[%s17995_s23 + $0x4b8] sm:$0xff] }
 0x54b   :  { %12919 = vmatpush1.bf16.msra.mxu1 %v15955_v6  ;;  %1981 = vmatprep.mubr.f32.mxu1 %v15207_v1  ;;  %v2232_v6 = vld [vmem:[%s17995_s23 + $0x108] sm:$0xff]  ;;  %v10798_v10 = vld [vmem:[%s17995_s23 + $0x598] sm:$0xff] }
 0x54c   :  { %2106 = vmatprep.subr.mxu1 %v1793_v51  ;;  %12945 = vmatprep.subr.bf16.mxu0 %v12944_v17  ;;  %v12952_v47 = vpack.c.bf16 %v2234_v27, %v2232_v6  ;;  %v12954_v51 = vpack.c.bf16 %v2233_v35, %v2231_v33  ;;  %v2245_v17 = vld [vmem:[%s17995_s23 + $0x170] sm:$0xff]  ;;  %v2252_v27 = vld [vmem:[%s17995_s23 + $0x1a8] sm:$0xff] }
 0x54d   :  { %v12966_v21 = vpack.c.bf16 %v2245_v17, %v2243_v16  ;;  %v10753_v6 = vld [vmem:[%s17995_s23 + $0x430] sm:$0xff]  ;;  %v10776_v17 = vld [vmem:[%s17995_s23 + $0x4e8] sm:$0xff] }
 0x54e   :  { %10714 = vmatmul.mubr.msk.f32.gmra.mrb[34].mxu1 %vm515_vm1, %v16022_v37  ;;  %12947 = vmatpush1.bf16.msra.mxu0 %v12946_v39  ;;  %v13040_v37 = vpack.c.bf16 %v10742_v48, %v10740_v44  ;;  %v10752_v39 = vld [vmem:[%s17995_s23 + $0x428] sm:$0xff]  ;;  %v13054_v35 = vpack.c.bf16 %v10753_v6, %v10751_v22  ;;  %v2253_v44 = vld [vmem:[%s17995_s23 + $0x1b0] sm:$0xff] }
 0x54f   :  { %2107 = vmatpush1.msra.mxu1 %v1792_v58  ;;  %2158 = vmatprep.mubr.f32.mxu1 %v15207_v1  ;;  %v10744_v58 = vld [vmem:[%s17995_s23 + $0x3e8] sm:$0xff]  ;;  %v13052_v26 = vpack.c.bf16 %v10754_v14, %v10752_v39  ;;  %v10757_v48 = vld [vmem:[%s17995_s23 + $0x450] sm:$0xff]  ;;  %v12974_v53 = vpack.c.bf16 %v2253_v44, %v2251_v43  ;;  %v2262_v43 = vld [vmem:[%s17995_s23 + $0x1f8] sm:$0xff] }
 0x550   :  { %13033 = vmatprep.subr.bf16.mxu1 %v13032_v40  ;;  %12949 = vmatprep.subr.bf16.mxu0 %v12948_v25  ;;  %v13044_v63 = vpack.c.bf16 %v10746_v57, %v10744_v58  ;;  %v13050_v40 = vpack.c.bf16 %v10749_v19, %v10747_v2  ;;  %v2249_v25 = vld [vmem:[%s17995_s23 + $0x190] sm:$0xff]  ;;  %v10780_v14 = vld [vmem:[%s17995_s23 + $0x508] sm:$0xff] }
 0x551   :  { %v12970_v33 = vpack.c.bf16 %v2249_v25, %v2247_v24  ;;  %v10761_v57 = vld [vmem:[%s17995_s23 + $0x470] sm:$0xff]  ;;  %v10784_v25 = vld [vmem:[%s17995_s23 + $0x528] sm:$0xff] }
 0x552   :  { %10723 = vmatmul.mubr.msk.f32.vlgmr.msra.gmra.mrb[36].mxu1 %vm515_vm1, %v15969_v36  ;;  %12951 = vmatpush1.bf16.msra.mxu0 %v12950_v28  ;;  %v12956_v36 = vpack.c.bf16 %v2238_v50, %v2236_v41  ;;  %v10756_v28 = vld [vmem:[%s17995_s23 + $0x448] sm:$0xff]  ;;  %v2258_v50 = vld [vmem:[%s17995_s23 + $0x1d8] sm:$0xff]  ;;  %v10773_v16 = vld [vmem:[%s17995_s23 + $0x4d0] sm:$0xff] }
 0x553   :  { %2164 = vmatprep.mubr.f32.mxu1 %v15207_v1  ;;  %13035 = vmatpush1.bf16.msra.mxu1 %v13034_v29  ;;  %v10758_v29 = vld [vmem:[%s17995_s23 + $0x458] sm:$0xff]  ;;  %v2256_v41 = vld [vmem:[%s17995_s23 + $0x1c8] sm:$0xff]  ;;  %v10777_v39 = vld [vmem:[%s17995_s23 + $0x4f0] sm:$0xff] }
 0x554   :  { %13037 = vmatprep.subr.bf16.mxu1 %v13036_v38  ;;  %12953 = vmatprep.subr.bf16.mxu0 %v12952_v47  ;;  %v10755_v38 = vld [vmem:[%s17995_s23 + $0x440] sm:$0xff]  ;;  %v13056_v47 = vpack.c.bf16 %v10758_v29, %v10756_v28  ;;  %v10781_v24 = vld [vmem:[%s17995_s23 + $0x510] sm:$0xff]  ;;  %v10788_v29 = vld [vmem:[%s17995_s23 + $0x548] sm:$0xff] }
 0x555   :  { %v13058_v54 = vpack.c.bf16 %v10757_v48, %v10755_v38  ;;  %v10785_v28 = vld [vmem:[%s17995_s23 + $0x530] sm:$0xff]  ;;  %v10787_v38 = vld [vmem:[%s17995_s23 + $0x540] sm:$0xff]  ;;  %v10796_v7 = vld [vmem:[%s17995_s23 + $0x588] sm:$0xff] }
 0x556   :  { %10724 = vmatmul.mubr.msk.f32.gmra.mrb[38].mxu1 %vm515_vm1, %v15988_v32  ;;  %12955 = vmatpush1.bf16.msra.mxu0 %v12954_v51  ;;  %v2244_v32 = vld [vmem:[%s17995_s23 + $0x168] sm:$0xff] }
 0x557   :  { %2170 = vmatprep.mubr.f32.mxu1 %v15207_v1  ;;  %13039 = vmatpush1.bf16.msra.mxu1 %v13038_v52  ;;  %v12964_v46 = vpack.c.bf16 %v2246_v4, %v2244_v32  ;;  %v10760_v51 = vld [vmem:[%s17995_s23 + $0x468] sm:$0xff]  ;;  %v10762_v52 = vld [vmem:[%s17995_s23 + $0x478] sm:$0xff]  ;;  %v10767_v4 = vld [vmem:[%s17995_s23 + $0x4a0] sm:$0xff] }
 0x558   :  { %13041 = vmatprep.subr.bf16.mxu1 %v13040_v37  ;;  %12957 = vmatprep.subr.bf16.mxu0 %v12956_v36  ;;  %v12976_v37 = vpack.c.bf16 %v2258_v50, %v2256_v41  ;;  %v13060_v58 = vpack.c.bf16 %v10762_v52, %v10760_v51  ;;  %v10759_v36 = vld [vmem:[%s17995_s23 + $0x460] sm:$0xff]  ;;  %v2261_v50 = vld [vmem:[%s17995_s23 + $0x1f0] sm:$0xff]  ;;  %v10792_v51 = vld [vmem:[%s17995_s23 + $0x568] sm:$0xff] }
 0x559   :  { %v2259_v41 = vld [vmem:[%s17995_s23 + $0x1e0] sm:$0xff]  ;;  %v10794_v52 = vld [vmem:[%s17995_s23 + $0x578] sm:$0xff] }
 0x55a   :  { %10725 = vmatmul.mubr.msk.f32.gmra.mrb[40].mxu1 %vm515_vm1, %v16012_v49  ;;  %12959 = vmatpush1.bf16.msra.mxu0 %v12958_v11  ;;  %v2248_v49 = vld [vmem:[%s17995_s23 + $0x188] sm:$0xff]  ;;  %v12978_v11 = vpack.c.bf16 %v2257_v56, %v2255_v55  ;;  %v2266_v55 = vld [vmem:[%s17995_s23 + $0x218] sm:$0xff]  ;;  %v13092_v56 = vpack.c.bf16 %v10794_v52, %v10792_v51 }
 0x55b   :  { %2176 = vmatprep.mubr.f32.mxu1 %v15207_v1  ;;  %13043 = vmatpush1.bf16.msra.mxu1 %v13042_v59  ;;  %v12968_v23 = vpack.c.bf16 %v2250_v20, %v2248_v49  ;;  %v13062_v59 = vpack.c.bf16 %v10761_v57, %v10759_v36  ;;  %v10775_v20 = vld [vmem:[%s17995_s23 + $0x4e0] sm:$0xff]  ;;  %v10793_v36 = vld [vmem:[%s17995_s23 + $0x570] sm:$0xff]  ;;  %v10810_v51 = vld [vmem:[%s17995_s23 + $0x5f8] sm:$0xff] }
 0x55c   :  { %13045 = vmatprep.subr.bf16.mxu1 %v13044_v63  ;;  %12961 = vmatprep.subr.bf16.mxu0 %v12960_v8  ;;  %v10768_v63 = vld [vmem:[%s17995_s23 + $0x4a8] sm:$0xff]  ;;  %v13066_v8 = vpack.c.bf16 %v10765_v62, %v10763_v61  ;;  %v2265_v61 = vld [vmem:[%s17995_s23 + $0x210] sm:$0xff] }
 0x55d   :  { %v13068_v32 = vpack.c.bf16 %v10770_v3, %v10768_v63  ;;  %v10795_v63 = vld [vmem:[%s17995_s23 + $0x580] sm:$0xff]  ;;  %v10797_v3 = vld [vmem:[%s17995_s23 + $0x590] sm:$0xff] }
 0x55e   :  { %10726 = vmatmul.mubr.msk.f32.gmra.mrb[42].mxu1 %vm515_vm1, %v16033_v5  ;;  %12963 = vmatpush1.bf16.msra.mxu0 %v12962_v13  ;;  %v2254_v5 = vld [vmem:[%s17995_s23 + $0x1b8] sm:$0xff] }
 0x55f   :  { %13047 = vmatpush1.bf16.msra.mxu1 %v13046_v15  ;;  %12965 = vmatprep.subr.bf16.mxu0 %v12964_v46  ;;  %v12972_v42 = vpack.c.bf16 %v2254_v5, %v2252_v27  ;;  %v10774_v13 = vld [vmem:[%s17995_s23 + $0x4d8] sm:$0xff]  ;;  %v13070_v15 = vpack.c.bf16 %v10769_v9, %v10767_v4  ;;  %v10771_v46 = vld [vmem:[%s17995_s23 + $0x4c0] sm:$0xff] }
 0x560   :  { %13049 = vmatprep.subr.bf16.mxu1 %v13048_v18  ;;  %v13072_v2 = vpack.c.bf16 %v10774_v13, %v10772_v12  ;;  %v10778_v18 = vld [vmem:[%s17995_s23 + $0x4f8] sm:$0xff]  ;;  %v13074_v19 = vpack.c.bf16 %v10773_v16, %v10771_v46  ;;  %v10783_v5 = vld [vmem:[%s17995_s23 + $0x520] sm:$0xff]  ;;  %v10800_v12 = vld [vmem:[%s17995_s23 + $0x5a8] sm:$0xff] }
 0x561   :  { %v13076_v49 = vpack.c.bf16 %v10778_v18, %v10776_v17  ;;  %v2270_v9 = vld [vmem:[%s17995_s23 + $0x238] sm:$0xff]  ;;  %v13098_v17 = vpack.c.bf16 %v10797_v3, %v10795_v63  ;;  %v2267_v18 = vld [vmem:[%s17995_s23 + $0x220] sm:$0xff]  ;;  %v10812_v63 = vld [vmem:[%s17995_s23 + $0x608] sm:$0xff] }
 0x562   :  { %12967 = vmatpush1.bf16.msra.mxu0 %v12966_v21  ;;  %v10782_v21 = vld [vmem:[%s17995_s23 + $0x518] sm:$0xff] }
 0x563   :  { %13051 = vmatpush1.bf16.msra.mxu1 %v13050_v40  ;;  %12969 = vmatprep.subr.bf16.mxu0 %v12968_v23  ;;  %v13078_v40 = vpack.c.bf16 %v10777_v39, %v10775_v20  ;;  %v13080_v22 = vpack.c.bf16 %v10782_v21, %v10780_v14  ;;  %v10779_v23 = vld [vmem:[%s17995_s23 + $0x500] sm:$0xff]  ;;  %v10802_v13 = vld [vmem:[%s17995_s23 + $0x5b8] sm:$0xff]  ;;  %v10801_v14 = vld [vmem:[%s17995_s23 + $0x5b0] sm:$0xff] }
 0x564   :  { %13053 = vmatprep.subr.bf16.mxu1 %v13052_v26  ;;  %v10786_v26 = vld [vmem:[%s17995_s23 + $0x538] sm:$0xff]  ;;  %v13082_v6 = vpack.c.bf16 %v10781_v24, %v10779_v23  ;;  %v13100_v20 = vpack.c.bf16 %v10802_v13, %v10800_v12  ;;  %v10799_v39 = vld [vmem:[%s17995_s23 + $0x5a0] sm:$0xff]  ;;  %v2272_v21 = vld [vmem:[%s17995_s23 + $0x248] sm:$0xff] }
 0x565   :  { %v13084_v27 = vpack.c.bf16 %v10786_v26, %v10784_v25  ;;  %v10804_v23 = vld [vmem:[%s17995_s23 + $0x5c8] sm:$0xff]  ;;  %v10806_v24 = vld [vmem:[%s17995_s23 + $0x5d8] sm:$0xff]  ;;  %v2279_v12 = vld [vmem:[%s17995_s23 + $0x280] sm:$0xff] }
 0x566   :  { %12971 = vmatpush1.bf16.msra.mxu0 %v12970_v33  ;;  %v10790_v33 = vld [vmem:[%s17995_s23 + $0x558] sm:$0xff]  ;;  %v2281_v13 = vld [vmem:[%s17995_s23 + $0x290] sm:$0xff] }
 0x567   :  { %13055 = vmatpush1.bf16.msra.mxu1 %v13054_v35  ;;  %12973 = vmatprep.subr.bf16.mxu0 %v12972_v42  ;;  %v13086_v35 = vpack.c.bf16 %v10785_v28, %v10783_v5  ;;  %v2260_v42 = vld [vmem:[%s17995_s23 + $0x1e8] sm:$0xff]  ;;  %v13088_v44 = vpack.c.bf16 %v10790_v33, %v10788_v29  ;;  %v2271_v5 = vld [vmem:[%s17995_s23 + $0x240] sm:$0xff]  ;;  %v2273_v28 = vld [vmem:[%s17995_s23 + $0x250] sm:$0xff] }
 0x568   :  { %13057 = vmatprep.subr.bf16.mxu1 %v13056_v47  ;;  %v10789_v47 = vld [vmem:[%s17995_s23 + $0x550] sm:$0xff]  ;;  %v12980_v48 = vpack.c.bf16 %v2262_v43, %v2260_v42  ;;  %v10803_v42 = vld [vmem:[%s17995_s23 + $0x5c0] sm:$0xff]  ;;  %v10814_v3 = vld [vmem:[%s17995_s23 + $0x618] sm:$0xff] }
 0x569   :  { %v10805_v43 = vld [vmem:[%s17995_s23 + $0x5d0] sm:$0xff] }
 0x56a   :  { %12975 = vmatpush1.bf16.msra.mxu0 %v12974_v53  ;;  %v12982_v53 = vpack.c.bf16 %v2261_v50, %v2259_v41  ;;  %v2278_v41 = vld [vmem:[%s17995_s23 + $0x278] sm:$0xff]  ;;  %v10808_v50 = vld [vmem:[%s17995_s23 + $0x5e8] sm:$0xff] }
 0x56b   :  { %13059 = vmatpush1.bf16.msra.mxu1 %v13058_v54  ;;  %12977 = vmatprep.subr.bf16.mxu0 %v12976_v37  ;;  %v13090_v54 = vpack.c.bf16 %v10789_v47, %v10787_v38  ;;  %v2264_v37 = vld [vmem:[%s17995_s23 + $0x208] sm:$0xff]  ;;  %v13104_v38 = vpack.c.bf16 %v10806_v24, %v10804_v23  ;;  %v2283_v24 = vld [vmem:[%s17995_s23 + $0x2a0] sm:$0xff] }
 0x56c   :  { %13061 = vmatprep.subr.bf16.mxu1 %v13060_v58  ;;  %v10791_v58 = vld [vmem:[%s17995_s23 + $0x560] sm:$0xff]  ;;  %v12984_v57 = vpack.c.bf16 %v2266_v55, %v2264_v37  ;;  %v13106_v37 = vpack.c.bf16 %v10805_v43, %v10803_v42  ;;  %v10822_v42 = vld [vmem:[%s17995_s23 + $0x658] sm:$0xff] }
 0x56d   :  { %v2275_v55 = vld [vmem:[%s17995_s23 + $0x260] sm:$0xff] }
 0x56e   :  { %12979 = vmatpush1.bf16.msra.mxu0 %v12978_v11  ;;  %v13094_v11 = vpack.c.bf16 %v10793_v36, %v10791_v58 }
 0x56f   :  { %13063 = vmatpush1.bf16.msra.mxu1 %v13062_v59  ;;  %12981 = vmatprep.subr.bf16.mxu0 %v12980_v48  ;;  %v13096_v59 = vpack.c.bf16 %v10798_v10, %v10796_v7  ;;  %v13108_v7 = vpack.c.bf16 %v10810_v51, %v10808_v50  ;;  %v10807_v10 = vld [vmem:[%s17995_s23 + $0x5e0] sm:$0xff] }
 0x570   :  { %13065 = vmatprep.subr.bf16.mxu1 %v13064_v60  ;;  %v2263_v60 = vld [vmem:[%s17995_s23 + $0x200] sm:$0xff] }
 0x571   :  { %v12986_v16 = vpack.c.bf16 %v2265_v61, %v2263_v60 }
 0x572   :  { %12983 = vmatpush1.bf16.msra.mxu0 %v12982_v53 }
 0x573   :  { %13067 = vmatpush1.bf16.msra.mxu1 %v13066_v8  ;;  %12985 = vmatprep.subr.bf16.mxu0 %v12984_v57  ;;  %v2268_v8 = vld [vmem:[%s17995_s23 + $0x228] sm:$0xff] }
 0x574   :  { %13069 = vmatprep.subr.bf16.mxu1 %v13068_v32 }
 0x577   :  { %13071 = vmatpush1.bf16.msra.mxu1 %v13070_v15 }
 0x578   :  { %13073 = vmatprep.subr.bf16.mxu1 %v13072_v2 }
 0x57b   :  { %13075 = vmatpush1.bf16.msra.mxu1 %v13074_v19  ;;  %v2269_v19 = vld [vmem:[%s17995_s23 + $0x230] sm:$0xff] }
 0x57c   :  { %13077 = vmatprep.subr.bf16.mxu1 %v13076_v49  ;;  %v12988_v49 = vpack.c.bf16 %v2270_v9, %v2268_v8 }
 0x57f   :  { %13079 = vmatpush1.bf16.msra.mxu1 %v13078_v40 }
 0x580   :  { %13081 = vmatprep.subr.bf16.mxu1 %v13080_v22  ;;  %v2274_v22 = vld [vmem:[%s17995_s23 + $0x258] sm:$0xff] }
 0x583   :  { %13083 = vmatpush1.bf16.msra.mxu1 %v13082_v6  ;;  %v12990_v6 = vpack.c.bf16 %v2269_v19, %v2267_v18  ;;  %v10813_v18 = vld [vmem:[%s17995_s23 + $0x610] sm:$0xff] }
 0x584   :  { %13085 = vmatprep.subr.bf16.mxu1 %v13084_v27  ;;  %v13102_v27 = vpack.c.bf16 %v10801_v14, %v10799_v39  ;;  %v2286_v39 = vld [vmem:[%s17995_s23 + $0x2b8] sm:$0xff]  ;;  %v10816_v14 = vld [vmem:[%s17995_s23 + $0x628] sm:$0xff] }
 0x587   :  { %13087 = vmatpush1.bf16.msra.mxu1 %v13086_v35  ;;  %v12992_v35 = vpack.c.bf16 %v2274_v22, %v2272_v21  ;;  %v10818_v21 = vld [vmem:[%s17995_s23 + $0x638] sm:$0xff]  ;;  %v13002_v22 = vpack.c.bf16 %v2281_v13, %v2279_v12  ;;  %v2295_v13 = vld [vmem:[%s17995_s23 + $0x300] sm:$0xff] }
 0x588   :  { %13089 = vmatprep.subr.bf16.mxu1 %v13088_v44  ;;  %v2276_v44 = vld [vmem:[%s17995_s23 + $0x268] sm:$0xff] }
 0x589   :  { %v12996_v57 = vpack.c.bf16 %v2278_v41, %v2276_v44 }
 0x58b   :  { %13091 = vmatpush1.bf16.msra.mxu1 %v13090_v54  ;;  %v12994_v54 = vpack.c.bf16 %v2273_v28, %v2271_v5  ;;  %v10817_v5 = vld [vmem:[%s17995_s23 + $0x630] sm:$0xff] }
 0x58c   :  { %13093 = vmatprep.subr.bf16.mxu1 %v13092_v56  ;;  %v2277_v56 = vld [vmem:[%s17995_s23 + $0x270] sm:$0xff] }
 0x58f   :  { %13095 = vmatpush1.bf16.msra.mxu1 %v13094_v11  ;;  %v10809_v11 = vld [vmem:[%s17995_s23 + $0x5f0] sm:$0xff] }
 0x590   :  { %13097 = vmatprep.subr.bf16.mxu1 %v13096_v59  ;;  %v2280_v59 = vld [vmem:[%s17995_s23 + $0x288] sm:$0xff]  ;;  %v13110_v9 = vpack.c.bf16 %v10809_v11, %v10807_v10 }
 0x605   :  { %v1876_v62 = vpop.f32.mrb[20].mxu1 }
 0x606   :  { %v2071_v32 = vpop.f32.mrb[50].mxu0  ;;  %v1878_v4 = vpop.f32.mrb[21].mxu1 }
 0x607   :  { %v2183_v15 = vmax.f32 %v1876_v62, %v2071_v32  ;;  %v2073_v2 = vpop.f32.mrb[51].mxu0  ;;  %v2282_v62 = vld [vmem:[%s17995_s23 + $0x298] sm:$0xff] }
 0x608   :  { %v2184_v46 = vmax.f32 %v1878_v4, %v2073_v2  ;;  %v12998_v4 = vpack.c.bf16 %v2277_v56, %v2275_v55  ;;  %v2294_v55 = vld [vmem:[%s17995_s23 + $0x2f8] sm:$0xff]  ;;  %v10824_v56 = vld [vmem:[%s17995_s23 + $0x668] sm:$0xff] }
 0x609   :  { %v1882_v40 = vpop.f32.mrb[22].mxu1 }
 0x60a   :  { %2388 = vmatprep.mubr.f32.mxu0 %v2184_v46  ;;  %2679 = vmatprep.mubr.f32.mxu1 %v2184_v46  ;;  %v1884_v25 = vpop.f32.mrb[23].mxu1  ;;  %v13000_v46 = vpack.c.bf16 %v2282_v62, %v2280_v59  ;;  %v10825_v62 = vld [vmem:[%s17995_s23 + $0x670] sm:$0xff] }
 0x60b   :  { %2389 = vmatmul.mubr.f32.vlgmr.msra.gmra.mrb[58].mxu0 %v2183_v15  ;;  %2680 = vmatmul.mubr.f32.vlgmr.msra.gmra.mrb[44].mxu1 %v2183_v15  ;;  %v2077_v26 = vpop.f32.mrb[52].mxu0 }
 0x60c   :  { %12987 = vmatpush1.bf16.msra.mxu0 %v12986_v16  ;;  %13099 = vmatpush1.bf16.msra.mxu1 %v13098_v17  ;;  %v2187_v29 = vmax.f32 %v1882_v40, %v2077_v26  ;;  %v2079_v33 = vpop.f32.mrb[53].mxu0  ;;  %v13112_v16 = vpack.c.bf16 %v10814_v3, %v10812_v63  ;;  %v10811_v17 = vld [vmem:[%s17995_s23 + $0x600] sm:$0xff]  ;;  %v2296_v3 = vld [vmem:[%s17995_s23 + $0x308] sm:$0xff] }
 0x60d   :  { %12989 = vmatprep.subr.bf16.mxu0 %v12988_v49  ;;  %13101 = vmatprep.subr.bf16.mxu1 %v13100_v20  ;;  %v2188_v47 = vmax.f32 %v1884_v25, %v2079_v33  ;;  %v1888_v48 = vpop.f32.mrb[24].mxu1  ;;  %v2284_v49 = vld [vmem:[%s17995_s23 + $0x2a8] sm:$0xff]  ;;  %v13114_v23 = vpack.c.bf16 %v10813_v18, %v10811_v17  ;;  %v2285_v25 = vld [vmem:[%s17995_s23 + $0x2b0] sm:$0xff] }
 0x60e   :  { %v1890_v52 = vpop.f32.mrb[25].mxu1  ;;  %v13004_v26 = vpack.c.bf16 %v2286_v39, %v2284_v49  ;;  %v13006_v43 = vpack.c.bf16 %v2285_v25, %v2283_v24  ;;  %v10829_v17 = vld [vmem:[%s17995_s23 + $0x690] sm:$0xff]  ;;  %v2300_v18 = vld [vmem:[%s17995_s23 + $0x328] sm:$0xff] }
 0x60f   :  { %v2083_v53 = vpop.f32.mrb[54].mxu0  ;;  %2394 = vmatprep.mubr.f32.mxu0 %v2188_v47  ;;  %2685 = vmatprep.mubr.f32.mxu1 %v2188_v47  ;;  %v2287_v47 = vld [vmem:[%s17995_s23 + $0x2c0] sm:$0xff] }
 0x610   :  { %12991 = vmatpush1.bf16.msra.mxu0 %v12990_v6  ;;  %13103 = vmatpush1.bf16.msra.mxu1 %v13102_v27  ;;  %v2191_v58 = vmax.f32 %v1888_v48, %v2083_v53  ;;  %v2085_v36 = vpop.f32.mrb[55].mxu0  ;;  %v13116_v6 = vpack.c.bf16 %v10818_v21, %v10816_v14  ;;  %v10815_v27 = vld [vmem:[%s17995_s23 + $0x620] sm:$0xff]  ;;  %v2289_v48 = vld [vmem:[%s17995_s23 + $0x2d0] sm:$0xff]  ;;  %v2302_v14 = vld [vmem:[%s17995_s23 + $0x338] sm:$0xff] }
 0x611   :  { %12993 = vmatprep.subr.bf16.mxu0 %v12992_v35  ;;  %13105 = vmatprep.subr.bf16.mxu1 %v13104_v38  ;;  %v1894_v60 = vpop.f32.mrb[26].mxu1  ;;  %v2192_v61 = vmax.f32 %v1890_v52, %v2085_v36  ;;  %v2290_v35 = vld [vmem:[%s17995_s23 + $0x2d8] sm:$0xff]  ;;  %v10820_v38 = vld [vmem:[%s17995_s23 + $0x648] sm:$0xff]  ;;  %v13118_v44 = vpack.c.bf16 %v10817_v5, %v10815_v27  ;;  %v10819_v52 = vld [vmem:[%s17995_s23 + $0x640] sm:$0xff]  ;;  %v13010_v36 = vpack.c.bf16 %v2289_v48, %v2287_v47 }
 0x612   :  { %2395 = vmatmul.mubr.f32.gmra.mrb[60].mxu0 %v2187_v29  ;;  %2686 = vmatmul.mubr.f32.gmra.mrb[46].mxu1 %v2187_v29  ;;  %v1896_v8 = vpop.f32.mrb[27].mxu1  ;;  %v2288_v29 = vld [vmem:[%s17995_s23 + $0x2c8] sm:$0xff]  ;;  %v13120_v51 = vpack.c.bf16 %v10822_v42, %v10820_v38  ;;  %v10821_v53 = vld [vmem:[%s17995_s23 + $0x650] sm:$0xff]  ;;  %v13020_v27 = vpack.c.bf16 %v2302_v14, %v2300_v18  ;;  %v10838_v47 = vld [vmem:[%s17995_s23 + $0x6d8] sm:$0xff] }
 0x613   :  { %v2089_v32 = vpop.f32.mrb[56].mxu0  ;;  %2400 = vmatprep.mubr.f32.mxu0 %v2192_v61  ;;  %2691 = vmatprep.mubr.f32.mxu1 %v2192_v61  ;;  %v13008_v50 = vpack.c.bf16 %v2290_v35, %v2288_v29  ;;  %v10823_v61 = vld [vmem:[%s17995_s23 + $0x660] sm:$0xff]  ;;  %v10832_v21 = vld [vmem:[%s17995_s23 + $0x6a8] sm:$0xff]  ;;  %v10833_v35 = vld [vmem:[%s17995_s23 + $0x6b0] sm:$0xff] }
 0x614   :  { %12995 = vmatpush1.bf16.msra.mxu0 %v12994_v54  ;;  %13107 = vmatpush1.bf16.msra.mxu1 %v13106_v37  ;;  %v2195_v15 = vmax.f32 %v1894_v60, %v2089_v32  ;;  %v2091_v2 = vpop.f32.mrb[57].mxu0  ;;  %v2292_v54 = vld [vmem:[%s17995_s23 + $0x2e8] sm:$0xff]  ;;  %v2293_v60 = vld [vmem:[%s17995_s23 + $0x2f0] sm:$0xff]  ;;  %v13126_v12 = vpack.c.bf16 %v10825_v62, %v10823_v61  ;;  %v10831_v29 = vld [vmem:[%s17995_s23 + $0x6a0] sm:$0xff] }
 0x615   :  { %12997 = vmatprep.subr.bf16.mxu0 %v12996_v57  ;;  %13109 = vmatprep.subr.bf16.mxu1 %v13108_v7  ;;  %v16227_v19 = vpop.f32.mrb[28].mxu1  ;;  %v2196_v20 = vmax.f32 %v1896_v8, %v2091_v2  ;;  %v13122_v57 = vpack.c.bf16 %v10821_v53, %v10819_v52  ;;  %v2291_v7 = vld [vmem:[%s17995_s23 + $0x2e0] sm:$0xff]  ;;  %v13012_v11 = vpack.c.bf16 %v2294_v55, %v2292_v54  ;;  %v2298_v8 = vld [vmem:[%s17995_s23 + $0x318] sm:$0xff]  ;;  %v10828_v32 = vld [vmem:[%s17995_s23 + $0x688] sm:$0xff] }
 0x616   :  { %v16233_v40 = vpop.f32.mrb[29].mxu1  ;;  %2401 = vmatmul.mubr.f32.gmra.mrb[62].mxu0 %v2191_v58  ;;  %2692 = vmatmul.mubr.f32.gmra.mrb[48].mxu1 %v2191_v58  ;;  %v10826_v58 = vld [vmem:[%s17995_s23 + $0x678] sm:$0xff]  ;;  %v2305_v52 = vld [vmem:[%s17995_s23 + $0x350] sm:$0xff] }
 0x617   :  { %2406 = vmatprep.mubr.f32.mxu0 %v2196_v20  ;;  %2697 = vmatprep.mubr.f32.mxu1 %v2196_v20  ;;  %v13124_v59 = vpack.c.bf16 %v10826_v58, %v10824_v56  ;;  %v10835_v56 = vld [vmem:[%s17995_s23 + $0x6c0] sm:$0xff]  ;;  %v10837_v58 = vld [vmem:[%s17995_s23 + $0x6d0] sm:$0xff] }
 0x618   :  { %12999 = vmatpush1.bf16.msra.mxu0 %v12998_v4  ;;  %13111 = vmatpush1.bf16.msra.mxu1 %v13110_v9  ;;  %v10830_v4 = vld [vmem:[%s17995_s23 + $0x698] sm:$0xff]  ;;  %v13014_v9 = vpack.c.bf16 %v2293_v60, %v2291_v7  ;;  %v13138_v62 = vpack.c.bf16 %v10837_v58, %v10835_v56  ;;  %v10861_v56 = vld [vmem:[%s17997_s26 + $0xf0] sm:$0xff] }
 0x619   :  { %13001 = vmatprep.subr.bf16.mxu0 %v13000_v46  ;;  %13113 = vmatprep.subr.bf16.mxu1 %v13112_v16  ;;  %v16239_v28 = vpop.f32.mrb[30].mxu1  ;;  %v13016_v46 = vpack.c.bf16 %v2298_v8, %v2296_v3  ;;  %v10827_v16 = vld [vmem:[%s17995_s23 + $0x680] sm:$0xff]  ;;  %v13128_v39 = vpack.c.bf16 %v10830_v4, %v10828_v32  ;;  %v2310_v7 = vld [vmem:[%s17995_s23 + $0x378] sm:$0xff] }
 0x61a   :  { %v16242_v33 = vpop.f32.mrb[31].mxu1  ;;  %2407 = vmatmul.mubr.f32.gmra.mrb[64].mxu0 %v2195_v15  ;;  %2698 = vmatmul.mubr.f32.gmra.mrb[50].mxu1 %v2195_v15  ;;  %v2297_v15 = vld [vmem:[%s17995_s23 + $0x310] sm:$0xff]  ;;  %v13130_v25 = vpack.c.bf16 %v10829_v17, %v10827_v16  ;;  %v2307_v3 = vld [vmem:[%s17995_s23 + $0x360] sm:$0xff]  ;;  %v10862_v58 = vld [vmem:[%s17997_s26 + $0xf8] sm:$0xff] }
 0x61b   :  { %v13018_v24 = vpack.c.bf16 %v2297_v15, %v2295_v13 }
 0x61c   :  { %13003 = vmatpush1.bf16.msra.mxu0 %v13002_v22  ;;  %13115 = vmatpush1.bf16.msra.mxu1 %v13114_v23  ;;  %v10834_v22 = vld [vmem:[%s17995_s23 + $0x6b8] sm:$0xff] }
 0x61d   :  { %13005 = vmatprep.subr.bf16.mxu0 %v13004_v26  ;;  %13117 = vmatprep.subr.bf16.mxu1 %v13116_v6  ;;  %v16249_v41 = vpop.f32.mrb[32].mxu1  ;;  %v2299_v26 = vld [vmem:[%s17995_s23 + $0x320] sm:$0xff]  ;;  %v13132_v5 = vpack.c.bf16 %v10834_v22, %v10832_v21 }
 0x61e   :  { %v16254_v37 = vpop.f32.mrb[33].mxu1 }
 0x620   :  { %13007 = vmatpush1.bf16.msra.mxu0 %v13006_v43  ;;  %13119 = vmatpush1.bf16.msra.mxu1 %v13118_v44  ;;  %v2306_v43 = vld [vmem:[%s17995_s23 + $0x358] sm:$0xff]  ;;  %v10836_v44 = vld [vmem:[%s17995_s23 + $0x6c8] sm:$0xff] }
 0x621   :  { %13009 = vmatprep.subr.bf16.mxu0 %v13008_v50  ;;  %13121 = vmatprep.subr.bf16.mxu1 %v13120_v51  ;;  %v16260_v10 = vpop.f32.mrb[34].mxu1  ;;  %v13134_v51 = vpack.c.bf16 %v10833_v35, %v10831_v29  ;;  %v13136_v55 = vpack.c.bf16 %v10838_v47, %v10836_v44 }
 0x622   :  { %v16265_v63 = vpop.f32.mrb[35].mxu1 }
 0x624   :  { %13011 = vmatpush1.bf16.msra.mxu0 %v13010_v36  ;;  %13123 = vmatpush1.bf16.msra.mxu1 %v13122_v57  ;;  %v2308_v36 = vld [vmem:[%s17995_s23 + $0x368] sm:$0xff] }
 0x625   :  { %v2160_v2 = vpop.f32.mrb[36].mxu1  ;;  %13013 = vmatprep.subr.bf16.mxu0 %v13012_v11  ;;  %13125 = vmatprep.subr.bf16.mxu1 %v13124_v59  ;;  %v10840_v11 = vld [vmem:[%s17995_s23 + $0x6e8] sm:$0xff]  ;;  %v10842_v59 = vld [vmem:[%s17995_s23 + $0x6f8] sm:$0xff]  ;;  %v13028_v32 = vpack.c.bf16 %v2310_v7, %v2308_v36  ;;  %v13168_v7 = vpack.c.bf16 %v10862_v58, %v10861_v56  ;;  %v2928_v56 = vld [vmem:[%s17997_s26 + $0x80] sm:$0xff] }
 0x626   :  { %v16277_v49 = vmax.f32 %v16227_v19, %v2160_v2  ;;  %v2162_v20 = vpop.f32.mrb[37].mxu1  ;;  %v2301_v19 = vld [vmem:[%s17995_s23 + $0x330] sm:$0xff]  ;;  %v13140_v4 = vpack.c.bf16 %v10842_v59, %v10840_v11  ;;  %v10863_v11 = vld [vmem:[%s17997_s26 + $0x100] sm:$0xff]  ;;  %v10864_v59 = vld [vmem:[%s17997_s26 + $0x108] sm:$0xff] }
 0x627   :  { %v2186_v23 = vmax.f32 %v16233_v40, %v2162_v20  ;;  %v2304_v40 = vld [vmem:[%s17995_s23 + $0x348] sm:$0xff]  ;;  %v13022_v50 = vpack.c.bf16 %v2301_v19, %v2299_v26 }
 0x628   :  { %13015 = vmatpush1.bf16.msra.mxu0 %v13014_v9  ;;  %13127 = vmatpush1.bf16.msra.mxu1 %v13126_v12  ;;  %v13024_v54 = vpack.c.bf16 %v2306_v43, %v2304_v40  ;;  %v10839_v9 = vld [vmem:[%s17995_s23 + $0x6e0] sm:$0xff]  ;;  %v10841_v12 = vld [vmem:[%s17995_s23 + $0x6f0] sm:$0xff]  ;;  %v2929_v58 = vld [vmem:[%s17997_s26 + $0x88] sm:$0xff] }
 0x629   :  { %v2166_v6 = vpop.f32.mrb[38].mxu1  ;;  %13017 = vmatprep.subr.bf16.mxu0 %v13016_v46  ;;  %10727 = vmatprep.mubr.msk.f32.mxu0 %vm2311_vm6, %v2186_v23  ;;  %v13142_v46 = vpack.c.bf16 %v10841_v12, %v10839_v9  ;;  %v2916_v9 = vld [vmem:[%s17997_s26 + $0x20] sm:$0xff]  ;;  %v2917_v12 = vld [vmem:[%s17997_s26 + $0x28] sm:$0xff] }
 0x62a   :  { %v2189_v38 = vmax.f32 %v16239_v28, %v2166_v6  ;;  %13129 = vmatprep.subr.bf16.mxu1 %v13128_v39  ;;  %10843 = vmatprep.mubr.msk.f32.mxu1 %vm2311_vm6, %v2186_v23  ;;  %v2168_v42 = vpop.f32.mrb[39].mxu1  ;;  %v2303_v28 = vld [vmem:[%s17995_s23 + $0x340] sm:$0xff] }
 0x62b   :  { %v2190_v48 = vmax.f32 %v16242_v33, %v2168_v42  ;;  %v13026_v61 = vpack.c.bf16 %v2305_v52, %v2303_v28  ;;  %v2912_v28 = vld [vmem:[%s17997_s26] sm:$0xff]  ;;  %v2913_v52 = vld [vmem:[%s17997_s26 + $0x8] sm:$0xff] }
 0x62c   :  { %13019 = vmatpush1.bf16.msra.mxu0 %v13018_v24  ;;  %13131 = vmatpush1.bf16.msra.mxu1 %v13130_v25  ;;  %v13207_v36 = vpack.c.bf16 %v2913_v52, %v2912_v28  ;;  %v2927_v28 = vld [vmem:[%s17997_s26 + $0x78] sm:$0xff] }
 0x62d   :  { %v2172_v53 = vpop.f32.mrb[40].mxu1  ;;  %13021 = vmatprep.subr.bf16.mxu0 %v13020_v27  ;;  %13133 = vmatprep.subr.bf16.mxu1 %v13132_v5 }
 0x62e   :  { %v2193_v33 = vmax.f32 %v16249_v41, %v2172_v53  ;;  %v2174_v57 = vpop.f32.mrb[41].mxu1  ;;  %v2309_v41 = vld [vmem:[%s17995_s23 + $0x370] sm:$0xff]  ;;  %v2801_v53 = vld [vmem:[#allocation8] sm:$0xff] }
 0x62f   :  { %v2194_v60 = vmax.f32 %v16254_v37, %v2174_v57  ;;  %v13030_v37 = vpack.c.bf16 %v2309_v41, %v2307_v3  ;;  %v2942_v57 = vld [vmem:[#allocation8 + $0x28] sm:$0xff]  ;;  %v2943_v3 = vld [vmem:[#allocation8 + $0x30] sm:$0xff] }
 0x630   :  { %13023 = vmatpush1.bf16.msra.mxu0 %v13022_v50  ;;  %13135 = vmatpush1.bf16.msra.mxu1 %v13134_v51  ;;  %v10859_v50 = vld [vmem:[%s17997_s26 + $0xe0] sm:$0xff]  ;;  %v10860_v51 = vld [vmem:[%s17997_s26 + $0xe8] sm:$0xff] }
 0x631   :  { %v2178_v8 = vpop.f32.mrb[42].mxu1  ;;  %13025 = vmatprep.subr.bf16.mxu0 %v13024_v54  ;;  %13137 = vmatprep.subr.bf16.mxu1 %v13136_v55  ;;  %v2941_v54 = vld [vmem:[#allocation8 + $0x20] sm:$0xff]  ;;  %v13165_v55 = vpack.c.bf16 %v10860_v51, %v10859_v50  ;;  %v2926_v51 = vld [vmem:[%s17997_s26 + $0x70] sm:$0xff] }
 0x632   :  { %v2197_v13 = vmax.f32 %v16260_v10, %v2178_v8  ;;  %v2180_v15 = vpop.f32.mrb[43].mxu1  ;;  %v13171_v8 = vpack.c.bf16 %v10864_v59, %v10863_v11  ;;  %v2930_v11 = vld [vmem:[%s17997_s26 + $0x90] sm:$0xff]  ;;  %v2931_v59 = vld [vmem:[%s17997_s26 + $0x98] sm:$0xff] }
 0x633   :  { %v2198_v2 = vmax.f32 %v16265_v63, %v2180_v15  ;;  %v2944_v15 = vld [vmem:[#allocation8 + $0x38] sm:$0xf] }
 0x634   :  { %13027 = vmatpush1.bf16.msra.mxu0 %v13026_v61  ;;  %13139 = vmatpush1.bf16.msra.mxu1 %v13138_v62  ;;  %v2915_v61 = vld [vmem:[%s17997_s26 + $0x18] sm:$0xff] }
 0x635   :  { %13029 = vmatprep.subr.bf16.mxu0 %v13028_v32  ;;  %13141 = vmatprep.subr.bf16.mxu1 %v13140_v4  ;;  %v2803_v62 = vld [vmem:[#allocation8 + $0x10] sm:$0xff] }
 0x636   :  { %v10865_v32 = vld [vmem:[%s17997_s26 + $0x110] sm:$0xff]  ;;  %v10866_v4 = vld [vmem:[%s17997_s26 + $0x118] sm:$0xff] }
 0x638   :  { %13031 = vmatpush1.bf16.msra.mxu0 %v13030_v37  ;;  %13143 = vmatpush1.bf16.msra.mxu1 %v13142_v46  ;;  %v10867_v37 = vld [vmem:[%s17997_s26 + $0x120] sm:$0xff]  ;;  %v10868_v46 = vld [vmem:[%s17997_s26 + $0x128] sm:$0xff] }
 0x63b   :  { %2478 = vmatmul.mubr.f32.vlgmr.msra.gmra.mrb[58].mxu0 %v16277_v49  ;;  %2769 = vmatmul.mubr.f32.vlgmr.msra.gmra.mrb[44].mxu1 %v16277_v49 }
 0x63c   :  { %10728 = vmatprep.mubr.msk.f32.mxu0 %vm2311_vm6, %v2190_v48  ;;  %10844 = vmatprep.mubr.msk.f32.mxu1 %vm2311_vm6, %v2190_v48 }
 0x63f   :  { %2484 = vmatmul.mubr.f32.gmra.mrb[60].mxu0 %v2189_v38  ;;  %2775 = vmatmul.mubr.f32.gmra.mrb[46].mxu1 %v2189_v38 }
 0x640   :  { %10729 = vmatprep.mubr.msk.f32.mxu0 %vm2311_vm6, %v2194_v60  ;;  %10845 = vmatprep.mubr.msk.f32.mxu1 %vm2311_vm6, %v2194_v60  ;;  %v2914_v60 = vld [vmem:[%s17997_s26 + $0x10] sm:$0xff] }
 0x641   :  { %v13210_v41 = vpack.c.bf16 %v2915_v61, %v2914_v60  ;;  %v10881_v61 = vld [vmem:[%s17997_s26 + $0x190] sm:$0xff] }
 0x643   :  { %2490 = vmatmul.mubr.f32.gmra.mrb[62].mxu0 %v2193_v33  ;;  %2781 = vmatmul.mubr.f32.gmra.mrb[48].mxu1 %v2193_v33  ;;  %v2802_v33 = vld [vmem:[#allocation8 + $0x8] sm:$0xff] }
 0x644   :  { %10730 = vmatprep.mubr.msk.f32.mxu0 %vm2311_vm6, %v2198_v2  ;;  %10846 = vmatprep.mubr.msk.f32.mxu1 %vm2311_vm6, %v2198_v2  ;;  %v13174_v2 = vpack.c.bf16 %v10866_v4, %v10865_v32  ;;  %v2933_v32 = vld [vmem:[%s17997_s26 + $0xa8] sm:$0xff] }
 0x647   :  { %2496 = vmatmul.mubr.f32.gmra.mrb[64].mxu0 %v2197_v13  ;;  %2787 = vmatmul.mubr.f32.gmra.mrb[50].mxu1 %v2197_v13  ;;  %v2804_v13 = vld [vmem:[#allocation8 + $0x18] sm:$0xf] }
 0x648   :  { %2887 = vmatprep.mubr.f32.mxu0 %v15207_v1  ;;  %3021 = vmatprep.mubr.f32.mxu1 %v15207_v1 }
 0x70e   :  { %v2479_v10 = vpop.f32.mrb[58].mxu0  ;;  %v2770_v63 = vpop.f32.mrb[44].mxu1 }
 0x70f   :  { %v2793_v16 = vmax.f32 %v2479_v10, %v2770_v63  ;;  %v2481_v17 = vpop.f32.mrb[59].mxu0  ;;  %v2772_v18 = vpop.f32.mrb[45].mxu1  ;;  %v13213_v10 = vpack.c.bf16 %v2917_v12, %v2916_v9  ;;  %v2918_v63 = vld [vmem:[%s17997_s26 + $0x30] sm:$0xff]  ;;  %v10884_v9 = vld [vmem:[%s17997_s26 + $0x1a8] sm:$0xff] }
 0x710   :  { %v2794_v49 = vmax.f32 %v2481_v17, %v2772_v18  ;;  %v13177_v17 = vpack.c.bf16 %v10868_v46, %v10867_v37  ;;  %v10869_v18 = vld [vmem:[%s17997_s26 + $0x130] sm:$0xff]  ;;  %v10886_v46 = vld [vmem:[%s17997_s26 + $0x1b8] sm:$0xff] }
 0x711   :  { %v10885_v37 = vld [vmem:[%s17997_s26 + $0x1b0] sm:$0xff] }
 0x712   :  { %v2485_v20 = vpop.f32.mrb[60].mxu0  ;;  %v2776_v39 = vpop.f32.mrb[46].mxu1 }
 0x713   :  { %v2795_v14 = vmax.f32 %v2485_v20, %v2776_v39  ;;  %v2487_v21 = vpop.f32.mrb[61].mxu0  ;;  %v2778_v22 = vpop.f32.mrb[47].mxu1  ;;  %v2920_v39 = vld [vmem:[%s17997_s26 + $0x40] sm:$0xff] }
 0x714   :  { %v2796_v23 = vmax.f32 %v2487_v21, %v2778_v22  ;;  %v10871_v22 = vld [vmem:[%s17997_s26 + $0x140] sm:$0xff] }
 0x715   :  { %v16321_v24 = vpack.c.bf16 %v2795_v14, %v2793_v16  ;;  %v2919_v16 = vld [vmem:[%s17997_s26 + $0x38] sm:$0xff]  ;;  %v2921_v14 = vld [vmem:[%s17997_s26 + $0x48] sm:$0xff] }
 0x716   :  { %v16323_v25 = vpack.c.bf16 %v2796_v23, %v2794_v49  ;;  %v2491_v26 = vpop.f32.mrb[62].mxu0  ;;  %v2782_v19 = vpop.f32.mrb[48].mxu1  ;;  %v10870_v49 = vld [vmem:[%s17997_s26 + $0x138] sm:$0xff]  ;;  %v13216_v20 = vpack.c.bf16 %v2919_v16, %v2918_v63  ;;  %v10872_v23 = vld [vmem:[%s17997_s26 + $0x148] sm:$0xff]  ;;  %v2936_v63 = vld [vmem:[%s17997_s26 + $0xc0] sm:$0xff] }
 0x717   :  { %v2797_v6 = vmax.f32 %v2491_v26, %v2782_v19  ;;  %v2493_v27 = vpop.f32.mrb[63].mxu0  ;;  %v2784_v5 = vpop.f32.mrb[49].mxu1  ;;  %v13180_v21 = vpack.c.bf16 %v10870_v49, %v10869_v18  ;;  %v13219_v26 = vpack.c.bf16 %v2921_v14, %v2920_v39  ;;  %v2922_v19 = vld [vmem:[%s17997_s26 + $0x50] sm:$0xff]  ;;  %v2937_v16 = vld [vmem:[%s17997_s26 + $0xc8] sm:$0xff]  ;;  %v10901_v14 = vld [vmem:[%s17997_s26 + $0x1c0] sm:$0xff] }
 0x718   :  { %v2798_v29 = vmax.f32 %v2493_v27, %v2784_v5  ;;  %13145 = vmatprep.subr.bf16.mxu0 %v16323_v25  ;;  %13155 = vmatprep.subr.bf16.mxu1 %v16323_v25  ;;  %v13183_v27 = vpack.c.bf16 %v10872_v23, %v10871_v22  ;;  %v10873_v5 = vld [vmem:[%s17997_s26 + $0x150] sm:$0xff]  ;;  %v13243_v18 = vpack.c.bf16 %v2937_v16, %v2936_v63  ;;  %v10922_v63 = vld [vmem:[%s17997_s26 + $0x268] sm:$0xff] }
 0x719   :  { %13147 = vmatpush1.bf16.msra.mxu0 %v16321_v24  ;;  %13157 = vmatpush1.bf16.msra.mxu1 %v16321_v24  ;;  %v2938_v49 = vld [vmem:[%s17997_s26 + $0xd0] sm:$0xff] }
 0x71a   :  { %v2497_v35 = vpop.f32.mrb[64].mxu0  ;;  %v2788_v40 = vpop.f32.mrb[50].mxu1 }
 0x71b   :  { %v2799_v38 = vmax.f32 %v2497_v35, %v2788_v40  ;;  %v2499_v42 = vpop.f32.mrb[65].mxu0  ;;  %v2790_v43 = vpop.f32.mrb[51].mxu1  ;;  %v2924_v40 = vld [vmem:[%s17997_s26 + $0x60] sm:$0xff] }
 0x71c   :  { %v2800_v44 = vmax.f32 %v2499_v42, %v2790_v43  ;;  %v10875_v43 = vld [vmem:[%s17997_s26 + $0x160] sm:$0xff] }
 0x71d   :  { %v16329_v47 = vpack.c.bf16 %v2799_v38, %v2797_v6  ;;  %v2923_v6 = vld [vmem:[%s17997_s26 + $0x58] sm:$0xff]  ;;  %v2925_v38 = vld [vmem:[%s17997_s26 + $0x68] sm:$0xff] }
 0x71e   :  { %v16331_v48 = vpack.c.bf16 %v2800_v44, %v2798_v29  ;;  %v10874_v29 = vld [vmem:[%s17997_s26 + $0x158] sm:$0xff]  ;;  %v13222_v35 = vpack.c.bf16 %v2923_v6, %v2922_v19  ;;  %v10876_v44 = vld [vmem:[%s17997_s26 + $0x168] sm:$0xff]  ;;  %v13225_v50 = vpack.c.bf16 %v2925_v38, %v2924_v40 }
 0x71f   :  { %v13186_v42 = vpack.c.bf16 %v10874_v29, %v10873_v5  ;;  %v13189_v52 = vpack.c.bf16 %v10876_v44, %v10875_v43  ;;  %v10906_v43 = vld [vmem:[%s17997_s26 + $0x1e8] sm:$0xff] }
 0x720   :  { %13150 = vmatprep.subr.msk.bf16.mxu0 %vm15689_vm4, %v16331_v48  ;;  %13160 = vmatprep.subr.msk.bf16.mxu1 %vm15689_vm4, %v16331_v48 }
 0x721   :  { %13153 = vmatpush1.bf16.msk.msra.mxu0 %vm15689_vm4, %v16329_v47  ;;  %13163 = vmatpush1.bf16.msk.msra.mxu1 %vm15689_vm4, %v16329_v47 }
 0x722   :  { %13164 = vmatprep.subr.bf16.mxu0 %v15205_v0  ;;  %13206 = vmatprep.subr.bf16.mxu1 %v15205_v0 }
 0x724   :  { %10849 = vmatmul.mubr.msk.f32.vlgmr.msra.gmra.mrb[66].mxu0 %vm799_vm5, %v2801_v53  ;;  %10855 = vmatmul.mubr.msk.f32.vlgmr.msra.gmra.mrb[52].mxu1 %vm799_vm5, %v2941_v54  ;;  %v10877_v53 = vld [vmem:[%s17997_s26 + $0x170] sm:$0xff]  ;;  %v10878_v54 = vld [vmem:[%s17997_s26 + $0x178] sm:$0xff] }
 0x725   :  { %13166 = vmatpush1.bf16.msra.mxu0 %v13165_v55  ;;  %2893 = vmatprep.mubr.f32.mxu0 %v15207_v1  ;;  %v13228_v55 = vpack.c.bf16 %v2927_v28, %v2926_v51  ;;  %v10907_v28 = vld [vmem:[%s17997_s26 + $0x1f0] sm:$0xff] }
 0x726   :  { %3027 = vmatprep.mubr.f32.mxu1 %v15207_v1  ;;  %13167 = vmatprep.subr.bf16.mxu0 %v15205_v0 }
 0x727   :  { %13208 = vmatpush1.bf16.msra.mxu1 %v13207_v36  ;;  %v13192_v36 = vpack.c.bf16 %v10878_v54, %v10877_v53 }
 0x728   :  { %10850 = vmatmul.mubr.msk.f32.gmra.mrb[68].mxu0 %vm799_vm5, %v2802_v33  ;;  %10856 = vmatmul.mubr.msk.f32.gmra.mrb[54].mxu1 %vm799_vm5, %v2942_v57  ;;  %v10879_v33 = vld [vmem:[%s17997_s26 + $0x180] sm:$0xff]  ;;  %v10880_v57 = vld [vmem:[%s17997_s26 + $0x188] sm:$0xff] }
 0x729   :  { %13169 = vmatpush1.bf16.msra.mxu0 %v13168_v7  ;;  %2899 = vmatprep.mubr.f32.mxu0 %v15207_v1  ;;  %v13231_v7 = vpack.c.bf16 %v2929_v58, %v2928_v56  ;;  %v13195_v60 = vpack.c.bf16 %v10880_v57, %v10879_v33  ;;  %v10909_v58 = vld [vmem:[%s17997_s26 + $0x200] sm:$0xff] }
 0x72a   :  { %3033 = vmatprep.mubr.f32.mxu1 %v15207_v1  ;;  %13170 = vmatprep.subr.bf16.mxu0 %v15205_v0  ;;  %v3271_v33 = vld [vmem:[#allocation8 + $0x40] sm:$0xff] }
 0x72b   :  { %13209 = vmatprep.subr.bf16.mxu1 %v15205_v0 }
 0x72c   :  { %10851 = vmatmul.mubr.msk.f32.gmra.mrb[70].mxu0 %vm799_vm5, %v2803_v62  ;;  %10857 = vmatmul.mubr.msk.f32.gmra.mrb[56].mxu1 %vm799_vm5, %v2943_v3  ;;  %v10882_v62 = vld [vmem:[%s17997_s26 + $0x198] sm:$0xff]  ;;  %v13234_v3 = vpack.c.bf16 %v2931_v59, %v2930_v11  ;;  %v3272_v59 = vld [vmem:[#allocation8 + $0x48] sm:$0xff] }
 0x72d   :  { %13172 = vmatpush1.bf16.msra.mxu0 %v13171_v8  ;;  %2905 = vmatprep.mubr.f32.mxu0 %v15207_v1  ;;  %v2932_v8 = vld [vmem:[%s17997_s26 + $0xa0] sm:$0xff]  ;;  %v13198_v4 = vpack.c.bf16 %v10882_v62, %v10881_v61  ;;  %v10912_v11 = vld [vmem:[%s17997_s26 + $0x218] sm:$0xff]  ;;  %v10914_v62 = vld [vmem:[%s17997_s26 + $0x228] sm:$0xff] }
 0x72e   :  { %3039 = vmatprep.mubr.f32.mxu1 %v15207_v1  ;;  %13173 = vmatprep.subr.bf16.mxu0 %v15205_v0  ;;  %v13237_v12 = vpack.c.bf16 %v2933_v32, %v2932_v8  ;;  %v10913_v61 = vld [vmem:[%s17997_s26 + $0x220] sm:$0xff]  ;;  %v10915_v32 = vld [vmem:[%s17997_s26 + $0x230] sm:$0xff] }
 0x72f   :  { %13211 = vmatpush1.bf16.msra.mxu1 %v13210_v41  ;;  %v10883_v41 = vld [vmem:[%s17997_s26 + $0x1a0] sm:$0xff]  ;;  %v13277_v8 = vpack.c.bf16 %v10914_v62, %v10913_v61  ;;  %v10947_v62 = vld [vmem:[%s17999_s0 + $0x88] sm:$0xff] }
 0x730   :  { %10852 = vmatmul.mubr.msk.f32.gmra.mrb[72].mxu0 %vm799_vm5, %v2804_v13  ;;  %10858 = vmatmul.mubr.msk.f32.gmra.mrb[58].mxu1 %vm799_vm5, %v2944_v15  ;;  %v2934_v13 = vld [vmem:[%s17997_s26 + $0xb0] sm:$0xff]  ;;  %v2935_v15 = vld [vmem:[%s17997_s26 + $0xb8] sm:$0xff]  ;;  %v10946_v61 = vld [vmem:[%s17999_s0 + $0x80] sm:$0xff] }
 0x731   :  { %13175 = vmatpush1.bf16.msra.mxu0 %v13174_v2  ;;  %13212 = vmatprep.subr.bf16.mxu1 %v15205_v0  ;;  %v13201_v2 = vpack.c.bf16 %v10884_v9, %v10883_v41  ;;  %v3274_v41 = vld [vmem:[#allocation8 + $0x58] sm:$0xf] }
 0x732   :  { %13176 = vmatprep.subr.bf16.mxu0 %v15205_v0 }
 0x733   :  { %13214 = vmatpush1.bf16.msra.mxu1 %v13213_v10  ;;  %v13240_v10 = vpack.c.bf16 %v2935_v15, %v2934_v13  ;;  %v10918_v13 = vld [vmem:[%s17997_s26 + $0x248] sm:$0xff] }
 0x734   :  { %13215 = vmatprep.subr.bf16.mxu1 %v15205_v0 }
 0x735   :  { %13178 = vmatpush1.bf16.msra.mxu0 %v13177_v17  ;;  %v13204_v17 = vpack.c.bf16 %v10886_v46, %v10885_v37  ;;  %v10920_v37 = vld [vmem:[%s17997_s26 + $0x258] sm:$0xff] }
 0x736   :  { %13179 = vmatprep.subr.bf16.mxu0 %v15205_v0 }
 0x737   :  { %13217 = vmatpush1.bf16.msra.mxu1 %v13216_v20  ;;  %v2939_v20 = vld [vmem:[%s17997_s26 + $0xd8] sm:$0xff] }
 0x738   :  { %13218 = vmatprep.subr.bf16.mxu1 %v15205_v0  ;;  %v13246_v39 = vpack.c.bf16 %v2939_v20, %v2938_v49  ;;  %v10925_v20 = vld [vmem:[%s17997_s26 + $0x280] sm:$0xff] }
 0x739   :  { %13181 = vmatpush1.bf16.msra.mxu0 %v13180_v21  ;;  %v10902_v21 = vld [vmem:[%s17997_s26 + $0x1c8] sm:$0xff] }
 0x73a   :  { %13182 = vmatprep.subr.bf16.mxu0 %v15205_v0 }
 0x73b   :  { %13220 = vmatpush1.bf16.msra.mxu1 %v13219_v26  ;;  %v13259_v26 = vpack.c.bf16 %v10902_v21, %v10901_v14  ;;  %v10927_v21 = vld [vmem:[%s17997_s26 + $0x290] sm:$0xff] }
 0x73c   :  { %13221 = vmatprep.subr.bf16.mxu1 %v15205_v0 }
 0x73d   :  { %13184 = vmatpush1.bf16.msra.mxu0 %v13183_v27  ;;  %v10904_v27 = vld [vmem:[%s17997_s26 + $0x1d8] sm:$0xff] }
 0x73e   :  { %13185 = vmatprep.subr.bf16.mxu0 %v15205_v0 }
 0x73f   :  { %13223 = vmatpush1.bf16.msra.mxu1 %v13222_v35 }
 0x740   :  { %13224 = vmatprep.subr.bf16.mxu1 %v15205_v0 }
 0x741   :  { %13187 = vmatpush1.bf16.msra.mxu0 %v13186_v42  ;;  %v10905_v42 = vld [vmem:[%s17997_s26 + $0x1e0] sm:$0xff] }
 0x742   :  { %13188 = vmatprep.subr.bf16.mxu0 %v15205_v0  ;;  %v13265_v44 = vpack.c.bf16 %v10906_v43, %v10905_v42 }
 0x743   :  { %13226 = vmatpush1.bf16.msra.mxu1 %v13225_v50 }
 0x744   :  { %13227 = vmatprep.subr.bf16.mxu1 %v15205_v0 }
 0x745   :  { %13190 = vmatpush1.bf16.msra.mxu0 %v13189_v52  ;;  %v10908_v52 = vld [vmem:[%s17997_s26 + $0x1f8] sm:$0xff] }
 0x746   :  { %13191 = vmatprep.subr.bf16.mxu0 %v15205_v0  ;;  %v13268_v54 = vpack.c.bf16 %v10908_v52, %v10907_v28 }
 0x747   :  { %13229 = vmatpush1.bf16.msra.mxu1 %v13228_v55 }
 0x748   :  { %13230 = vmatprep.subr.bf16.mxu1 %v15205_v0 }
 0x749   :  { %13193 = vmatpush1.bf16.msra.mxu0 %v13192_v36  ;;  %v10910_v36 = vld [vmem:[%s17997_s26 + $0x208] sm:$0xff] }
 0x74a   :  { %13194 = vmatprep.subr.bf16.mxu0 %v15205_v0  ;;  %v13271_v57 = vpack.c.bf16 %v10910_v36, %v10909_v58 }
 0x74b   :  { %13232 = vmatpush1.bf16.msra.mxu1 %v13231_v7  ;;  %v10911_v7 = vld [vmem:[%s17997_s26 + $0x210] sm:$0xff] }
 0x74c   :  { %13233 = vmatprep.subr.bf16.mxu1 %v15205_v0 }
 0x74d   :  { %13196 = vmatpush1.bf16.msra.mxu0 %v13195_v60  ;;  %v13274_v60 = vpack.c.bf16 %v10912_v11, %v10911_v7  ;;  %v3521_v7 = vld [vmem:[%s17998_s3] sm:$0xff]  ;;  %v10944_v11 = vld [vmem:[%s17999_s0 + $0x70] sm:$0xff] }
 0x74e   :  { %13197 = vmatprep.subr.bf16.mxu0 %v15205_v0 }
 0x74f   :  { %13235 = vmatpush1.bf16.msra.mxu1 %v13234_v3  ;;  %v3273_v3 = vld [vmem:[#allocation8 + $0x50] sm:$0xff] }
 0x750   :  { %13236 = vmatprep.subr.bf16.mxu1 %v15205_v0 }
 0x751   :  { %13199 = vmatpush1.bf16.msra.mxu0 %v13198_v4  ;;  %v10916_v4 = vld [vmem:[%s17997_s26 + $0x238] sm:$0xff] }
 0x752   :  { %13200 = vmatprep.subr.bf16.mxu0 %v15205_v0  ;;  %v13280_v9 = vpack.c.bf16 %v10916_v4, %v10915_v32  ;;  %v10949_v32 = vld [vmem:[%s17999_s0 + $0x98] sm:$0xff] }
 0x753   :  { %13238 = vmatpush1.bf16.msra.mxu1 %v13237_v12  ;;  %v10917_v12 = vld [vmem:[%s17997_s26 + $0x240] sm:$0xff] }
 0x754   :  { %13239 = vmatprep.subr.bf16.mxu1 %v15205_v0  ;;  %v13283_v15 = vpack.c.bf16 %v10918_v13, %v10917_v12 }
 0x755   :  { %13202 = vmatpush1.bf16.msra.mxu0 %v13201_v2  ;;  %v10919_v2 = vld [vmem:[%s17997_s26 + $0x250] sm:$0xff] }
 0x756   :  { %13203 = vmatprep.subr.bf16.mxu0 %v15205_v0  ;;  %v13286_v46 = vpack.c.bf16 %v10920_v37, %v10919_v2  ;;  %v10933_v37 = vld [vmem:[#allocation10] ss:$0 sm:$0xff] }
 0x757   :  { %13241 = vmatpush1.bf16.msra.mxu1 %v13240_v10  ;;  %v10921_v10 = vld [vmem:[%s17997_s26 + $0x260] sm:$0xff] }
 0x758   :  { %13242 = vmatprep.subr.bf16.mxu1 %v15205_v0  ;;  %v13289_v16 = vpack.c.bf16 %v10922_v63, %v10921_v10 }
 0x759   :  { %13205 = vmatpush1.bf16.msra.mxu0 %v13204_v17  ;;  %v10923_v17 = vld [vmem:[%s17997_s26 + $0x270] sm:$0xff] }
 0x75a   :  { %13249 = vmatprep.subr.bf16.mxu0 %v16323_v25  ;;  %v10903_v25 = vld [vmem:[%s17997_s26 + $0x1d0] sm:$0xff] }
 0x75b   :  { %13244 = vmatpush1.bf16.msra.mxu1 %v13243_v18  ;;  %v13262_v35 = vpack.c.bf16 %v10904_v27, %v10903_v25  ;;  %v10924_v18 = vld [vmem:[%s17997_s26 + $0x278] sm:$0xff] }
 0x75c   :  { %13245 = vmatprep.subr.bf16.mxu1 %v15205_v0  ;;  %v13292_v49 = vpack.c.bf16 %v10924_v18, %v10923_v17 }
 0x75f   :  { %13247 = vmatpush1.bf16.msra.mxu1 %v13246_v39  ;;  %v10926_v39 = vld [vmem:[%s17997_s26 + $0x288] sm:$0xff] }
 0x760   :  { %13258 = vmatprep.subr.bf16.mxu1 %v15205_v0  ;;  %v13295_v14 = vpack.c.bf16 %v10926_v39, %v10925_v20 }
 0x7f7   :  { %v2889_v22 = vpop.f32.mrb[66].mxu0  ;;  %v3023_v23 = vpop.f32.mrb[52].mxu1 }
 0x7f8   :  { %v2891_v19 = vpop.f32.mrb[67].mxu0  ;;  %v3025_v6 = vpop.f32.mrb[53].mxu1 }
 0x7f9   :  { %10887 = vmatprep.mubr.msk.f32.mxu0 %vm3075_vm7, %v3025_v6  ;;  %10891 = vmatprep.mubr.msk.f32.mxu1 %vm3075_vm7, %v2891_v19 }
 0x7fa   :  { %3153 = vmatmul.mubr.f32.vlgmr.msra.gmra.mrb[74].mxu0 %v3023_v23  ;;  %3250 = vmatmul.mubr.f32.vlgmr.msra.gmra.mrb[60].mxu1 %v2889_v22  ;;  %v10928_v22 = vld [vmem:[%s17997_s26 + $0x298] sm:$0xff] }
 0x7fb   :  { %13251 = vmatpush1.bf16.msra.mxu0 %v16321_v24  ;;  %v2895_v5 = vpop.f32.mrb[68].mxu0  ;;  %v3029_v29 = vpop.f32.mrb[54].mxu1  ;;  %13260 = vmatpush1.bf16.msra.mxu1 %v13259_v26  ;;  %v13298_v23 = vpack.c.bf16 %v10928_v22, %v10927_v21 }
 0x7fc   :  { %13254 = vmatprep.subr.msk.bf16.mxu0 %vm15689_vm4, %v16331_v48  ;;  %v2897_v40 = vpop.f32.mrb[69].mxu0  ;;  %v3031_v38 = vpop.f32.mrb[55].mxu1  ;;  %13261 = vmatprep.subr.bf16.mxu1 %v15205_v0 }
 0x7fd   :  { %10888 = vmatprep.mubr.msk.f32.mxu0 %vm3075_vm7, %v3031_v38  ;;  %10892 = vmatprep.mubr.msk.f32.mxu1 %vm3075_vm7, %v2897_v40 }
 0x7fe   :  { %3158 = vmatmul.mubr.f32.gmra.mrb[76].mxu0 %v3029_v29  ;;  %3255 = vmatmul.mubr.f32.gmra.mrb[62].mxu1 %v2895_v5 }
 0x7ff   :  { %13257 = vmatpush1.bf16.msk.msra.mxu0 %vm15689_vm4, %v16329_v47  ;;  %v2901_v24 = vpop.f32.mrb[70].mxu0  ;;  %v3035_v48 = vpop.f32.mrb[56].mxu1  ;;  %13263 = vmatpush1.bf16.msra.mxu1 %v13262_v35 }
 0x800   :  { %v2903_v50 = vpop.f32.mrb[71].mxu0  ;;  %v3037_v51 = vpop.f32.mrb[57].mxu1  ;;  %13264 = vmatprep.subr.bf16.mxu1 %v15205_v0 }
 0x801   :  { %10889 = vmatprep.mubr.msk.f32.mxu0 %vm3075_vm7, %v3037_v51  ;;  %10893 = vmatprep.mubr.msk.f32.mxu1 %vm3075_vm7, %v2903_v50 }
 0x802   :  { %3163 = vmatmul.mubr.f32.gmra.mrb[78].mxu0 %v3035_v48  ;;  %3260 = vmatmul.mubr.f32.gmra.mrb[64].mxu1 %v2901_v24 }
 0x803   :  { %v2907_v53 = vpop.f32.mrb[72].mxu0  ;;  %v3041_v47 = vpop.f32.mrb[58].mxu1  ;;  %13266 = vmatpush1.bf16.msra.mxu1 %v13265_v44 }
 0x804   :  { %v2909_v55 = vpop.f32.mrb[73].mxu0  ;;  %v3043_v56 = vpop.f32.mrb[59].mxu1  ;;  %13267 = vmatprep.subr.bf16.mxu1 %v15205_v0 }
 0x805   :  { %10890 = vmatprep.mubr.msk.f32.mxu0 %vm3075_vm7, %v3043_v56  ;;  %10894 = vmatprep.mubr.msk.f32.mxu1 %vm3075_vm7, %v2909_v55 }
 0x806   :  { %3168 = vmatmul.mubr.f32.gmra.mrb[80].mxu0 %v3041_v47  ;;  %3265 = vmatmul.mubr.f32.gmra.mrb[66].mxu1 %v2907_v53 }
 0x807   :  { %3351 = vmatprep.mubr.f32.mxu0 %v15207_v1  ;;  %13269 = vmatpush1.bf16.msra.mxu1 %v13268_v54 }
 0x808   :  { %13270 = vmatprep.subr.bf16.mxu1 %v15205_v0 }
 0x80a   :  { %10897 = vmatmul.mubr.msk.f32.vlgmr.msra.gmra.mrb[82].mxu0 %vm799_vm5, %v3271_v33 }
 0x80b   :  { %3357 = vmatprep.mubr.f32.mxu0 %v15207_v1  ;;  %13272 = vmatpush1.bf16.msra.mxu1 %v13271_v57 }
 0x80c   :  { %13273 = vmatprep.subr.bf16.mxu1 %v15205_v0 }
 0x80e   :  { %10898 = vmatmul.mubr.msk.f32.gmra.mrb[84].mxu0 %vm799_vm5, %v3272_v59  ;;  %v10945_v59 = vld [vmem:[%s17999_s0 + $0x78] sm:$0xff] }
 0x80f   :  { %3363 = vmatprep.mubr.f32.mxu0 %v15207_v1  ;;  %13275 = vmatpush1.bf16.msra.mxu1 %v13274_v60  ;;  %v13348_v60 = vpack.c.bf16 %v10945_v59, %v10944_v11  ;;  %v10954_v11 = vld [vmem:[%s17999_s0 + $0xc0] sm:$0xff] }
 0x810   :  { %13276 = vmatprep.subr.bf16.mxu1 %v15205_v0 }
 0x812   :  { %10899 = vmatmul.mubr.msk.f32.gmra.mrb[86].mxu0 %vm799_vm5, %v3273_v3  ;;  %v13352_v3 = vpack.c.bf16 %v10947_v62, %v10946_v61  ;;  %v3705_v62 = vld [vmem:[%s17999_s0 + $0x60] sm:$0xff] }
 0x813   :  { %3369 = vmatprep.mubr.f32.mxu0 %v15207_v1  ;;  %13278 = vmatpush1.bf16.msra.mxu1 %v13277_v8  ;;  %v10948_v8 = vld [vmem:[%s17999_s0 + $0x90] sm:$0xff] }
 0x814   :  { %13279 = vmatprep.subr.bf16.mxu1 %v15205_v0  ;;  %v13356_v4 = vpack.c.bf16 %v10949_v32, %v10948_v8  ;;  %v10956_v8 = vld [vmem:[%s17999_s0 + $0xd0] sm:$0xff] }
 0x816   :  { %10900 = vmatmul.mubr.msk.f32.gmra.mrb[88].mxu0 %vm799_vm5, %v3274_v41  ;;  %v10950_v41 = vld [vmem:[%s17999_s0 + $0xa0] sm:$0xff] }
 0x817   :  { %13281 = vmatpush1.bf16.msra.mxu1 %v13280_v9  ;;  %12072 = vmatprep.mubr.msk.f32.mxu0 %vm799_vm5, %v3521_v7  ;;  %v10951_v9 = vld [vmem:[%s17999_s0 + $0xa8] sm:$0xff]  ;;  %v3704_v7 = vld [vmem:[%s17999_s0 + $0x58] sm:$0xff] }
 0x818   :  { %13282 = vmatprep.subr.bf16.mxu1 %v15205_v0  ;;  %v13360_v12 = vpack.c.bf16 %v10951_v9, %v10950_v41 }
 0x81b   :  { %13284 = vmatpush1.bf16.msra.mxu1 %v13283_v15 }
 0x81c   :  { %13285 = vmatprep.subr.bf16.mxu1 %v15205_v0 }
 0x81f   :  { %13287 = vmatpush1.bf16.msra.mxu1 %v13286_v46 }
 0x820   :  { %13288 = vmatprep.subr.bf16.mxu1 %v15205_v0 }
 0x823   :  { %13290 = vmatpush1.bf16.msra.mxu1 %v13289_v16 }
 0x824   :  { %13291 = vmatprep.subr.bf16.mxu1 %v15205_v0 }
 0x827   :  { %13293 = vmatpush1.bf16.msra.mxu1 %v13292_v49 }
 0x828   :  { %13294 = vmatprep.subr.bf16.mxu1 %v15205_v0 }
 0x82b   :  { %13296 = vmatpush1.bf16.msra.mxu1 %v13295_v14 }
 0x82c   :  { %13297 = vmatprep.subr.bf16.mxu1 %v15205_v0 }
 0x82f   :  { %13299 = vmatpush1.bf16.msra.mxu1 %v13298_v23 }
 0x830   :  { %13349 = vmatprep.subr.bf16.mxu1 %v13348_v60 }
 0x8cd   :  { %v3154_v26 = vpop.f32.mrb[74].mxu0  ;;  %v3251_v19 = vpop.f32.mrb[60].mxu1 }
 0x8ce   :  { %v3252_v6 = vadd.f32 %v3251_v19, %v3154_v26  ;;  %v3156_v25 = vpop.f32.mrb[75].mxu0  ;;  %v3253_v27 = vpop.f32.mrb[61].mxu1 }
 0x8d1   :  { %v3159_v5 = vpop.f32.mrb[76].mxu0  ;;  %v3256_v29 = vpop.f32.mrb[62].mxu1 }
 0x8d2   :  { %v3257_v35 = vadd.f32 %v3256_v29, %v3159_v5  ;;  %v3161_v40 = vpop.f32.mrb[77].mxu0  ;;  %v3258_v38 = vpop.f32.mrb[63].mxu1  ;;  %v3522_v29 = vld [vmem:[%s17998_s3 + $0x8] sm:$0x3f] }
 0x8d3   :  { %v3693_v40 = vld [vmem:[%s17999_s0] sm:$0xff]  ;;  %v3694_v38 = vld [vmem:[%s17999_s0 + $0x8] sm:$0xff] }
 0x8d5   :  { %v3164_v42 = vpop.f32.mrb[78].mxu0  ;;  %v3261_v43 = vpop.f32.mrb[64].mxu1 }
 0x8d6   :  { %v3262_v24 = vadd.f32 %v3261_v43, %v3164_v42  ;;  %v3166_v48 = vpop.f32.mrb[79].mxu0  ;;  %v3263_v44 = vpop.f32.mrb[65].mxu1  ;;  %v13320_v42 = vpack.c.bf16 %v3694_v38, %v3693_v40  ;;  %v3695_v43 = vld [vmem:[%s17999_s0 + $0x10] sm:$0xff] }
 0x8d7   :  { %v10938_v48 = vld [vmem:[%s17998_s3 + $0x18] sm:$0x3f] }
 0x8d8   :  { %v4066_v40 = vld [vmem:[#allocation13 + $0x60] sm:$0xff] }
 0x8d9   :  { %v3169_v50 = vpop.f32.mrb[80].mxu0  ;;  %v3266_v51 = vpop.f32.mrb[66].mxu1 }
 0x8da   :  { %v3267_v28 = vadd.f32 %v3266_v51, %v3169_v50  ;;  %v3171_v52 = vpop.f32.mrb[81].mxu0  ;;  %v3268_v53 = vpop.f32.mrb[67].mxu1  ;;  %v3697_v50 = vld [vmem:[%s17999_s0 + $0x20] sm:$0xff]  ;;  %v3698_v51 = vld [vmem:[%s17999_s0 + $0x28] sm:$0xff] }
 0x8db   :  { %v3699_v52 = vld [vmem:[%s17999_s0 + $0x30] sm:$0xff]  ;;  %v3700_v53 = vld [vmem:[%s17999_s0 + $0x38] sm:$0xff] }
 0x8dd   :  { %v3353_v47 = vpop.f32.mrb[82].mxu0 }
 0x8de   :  { %v3355_v54 = vpop.f32.mrb[83].mxu0 }
 0x8df   :  { %10929 = vmatprep.mubr.msk.f32.mxu1 %vm3075_vm7, %v3355_v54  ;;  %v3701_v54 = vld [vmem:[%s17999_s0 + $0x40] sm:$0xff] }
 0x8e0   :  { %3482 = vmatmul.mubr.f32.vlgmr.msra.gmra.mrb[68].mxu1 %v3353_v47  ;;  %v13332_v47 = vpack.c.bf16 %v3700_v53, %v3699_v52  ;;  %v3971_v52 = vld [vmem:[#allocation13 + $0x10] sm:$0xff]  ;;  %v3972_v53 = vld [vmem:[#allocation13 + $0x18] sm:$0xff] }
 0x8e1   :  { %v3359_v55 = vpop.f32.mrb[84].mxu0  ;;  %13351 = vmatpush3.bf16.msra.mxu1 %v13348_v60  ;;  %v10955_v60 = vld [vmem:[%s17999_s0 + $0xc8] sm:$0xff] }
 0x8e2   :  { %v3361_v56 = vpop.f32.mrb[85].mxu0  ;;  %13353 = vmatprep.subr.bf16.mxu1 %v13352_v3  ;;  %v13368_v61 = vpack.c.bf16 %v10955_v60, %v10954_v11  ;;  %v4317_v11 = vld [vmem:[#allocation13 + $0x80] sm:$0xff] }
 0x8e3   :  { %10930 = vmatprep.mubr.msk.f32.mxu1 %vm3075_vm7, %v3361_v56  ;;  %v10952_v56 = vld [vmem:[%s17999_s0 + $0xb0] sm:$0xff] }
 0x8e4   :  { %3487 = vmatmul.mubr.f32.gmra.mrb[70].mxu1 %v3359_v55  ;;  %v3702_v55 = vld [vmem:[%s17999_s0 + $0x48] sm:$0xff] }
 0x8e5   :  { %v3365_v58 = vpop.f32.mrb[86].mxu0  ;;  %13355 = vmatpush3.bf16.msra.mxu1 %v13352_v3  ;;  %v3706_v3 = vld [vmem:[%s17999_s0 + $0x68] sm:$0xff] }
 0x8e6   :  { %v3367_v36 = vpop.f32.mrb[87].mxu0  ;;  %13357 = vmatprep.subr.bf16.mxu1 %v13356_v4  ;;  %v13344_v32 = vpack.c.bf16 %v3706_v3, %v3705_v62  ;;  %v4319_v62 = vld [vmem:[#allocation13 + $0x90] sm:$0xff]  ;;  %v4320_v3 = vld [vmem:[#allocation13 + $0x98] sm:$0xff] }
 0x8e7   :  { %10931 = vmatprep.mubr.msk.f32.mxu1 %vm3075_vm7, %v3367_v36  ;;  %v10953_v36 = vld [vmem:[%s17999_s0 + $0xb8] sm:$0xff] }
 0x8e8   :  { %3492 = vmatmul.mubr.f32.gmra.mrb[72].mxu1 %v3365_v58  ;;  %v13336_v58 = vpack.c.bf16 %v3702_v55, %v3701_v54  ;;  %v13404_v55 = vpack.c.bf16 %v3972_v53, %v3971_v52  ;;  %v4728_v53 = vld [vmem:[#allocation17] sm:$0x3] }
 0x8e9   :  { %v3371_v33 = vpop.f32.mrb[88].mxu0  ;;  %13359 = vmatpush3.bf16.msra.mxu1 %v13356_v4  ;;  %v10957_v4 = vld [vmem:[%s17999_s0 + $0xd8] sm:$0xff] }
 0x8ea   :  { %v3373_v57 = vpop.f32.mrb[89].mxu0  ;;  %13361 = vmatprep.subr.bf16.mxu1 %v13360_v12  ;;  %v13372_v41 = vpack.c.bf16 %v10957_v4, %v10956_v8  ;;  %v13426_v8 = vpack.c.bf16 %v4320_v3, %v4319_v62  ;;  %v10975_v4 = vld [vmem:[#allocation14] ss:$0 sm:$0xff] }
 0x8eb   :  { %10932 = vmatprep.mubr.msk.f32.mxu1 %vm3075_vm7, %v3373_v57  ;;  %v3703_v57 = vld [vmem:[%s17999_s0 + $0x50] sm:$0xff]  ;;  %v5345_v62 = vld [vmem:[%s18003_s28 + $0x18] sm:$0xff] }
 0x8ec   :  { %3497 = vmatmul.mubr.f32.gmra.mrb[74].mxu1 %v3371_v33  ;;  %v13364_v33 = vpack.c.bf16 %v10953_v36, %v10952_v56  ;;  %v13340_v59 = vpack.c.bf16 %v3704_v7, %v3703_v57  ;;  %v3973_v56 = vld [vmem:[#allocation13 + $0x20] sm:$0xff]  ;;  %v4315_v57 = vld [vmem:[#allocation13 + $0x70] sm:$0xff]  ;;  %v4316_v7 = vld [vmem:[#allocation13 + $0x78] sm:$0xff] }
 0x8ed   :  { %13363 = vmatpush3.bf16.msra.mxu1 %v13360_v12  ;;  %v13418_v60 = vpack.c.bf16 %v4316_v7, %v4315_v57  ;;  %v4886_v57 = vld [vmem:[#allocation19 + $0x38] sm:$0xff] }
 0x8ee   :  { %13365 = vmatprep.subr.bf16.mxu1 %v13364_v33 }
 0x8f1   :  { %13367 = vmatpush3.bf16.msra.mxu1 %v13364_v33  ;;  %v3975_v33 = vld [vmem:[#allocation13 + $0x30] sm:$0xff] }
 0x8f2   :  { %13369 = vmatprep.subr.bf16.mxu1 %v13368_v61 }
 0x8f5   :  { %13371 = vmatpush3.bf16.msra.mxu1 %v13368_v61 }
 0x8f6   :  { %13373 = vmatprep.subr.bf16.mxu1 %v13372_v41 }
 0x8f9   :  { %13375 = vmatpush3.bf16.msra.mxu1 %v13372_v41 }
 0x9b3   :  { %v3483_v13 = vpop.f32.mrb[68].mxu1 }
 0x9b4   :  { %v3502_v15 = vadd.f32 %v3483_v13, %v3252_v6  ;;  %v3485_v2 = vpop.f32.mrb[69].mxu1 }
 0x9b6   :  { %v3513_v10 = vadd.f32 %v10933_v37, %v3502_v15 }
 0x9b7   :  { %v3488_v46 = vpop.f32.mrb[70].mxu1 }
 0x9b8   :  { %v3503_v63 = vadd.f32 %v3488_v46, %v3257_v35  ;;  %v3490_v16 = vpop.f32.mrb[71].mxu1  ;;  %v3517_v49 = vmax.f32 %v3513_v10, 0.0  ;;  %v10937_v35 = vld [vmem:[%s17998_s3 + $0x10] sm:$0xff]  ;;  %v3881_v46 = vld [vmem:[#allocation11] sm:$0xff] }
 0x9b9   :  { %v4231_v10 = vld [vmem:[#allocation11 + $0x20] sm:$0xff] }
 0x9ba   :  { %v3514_v17 = vadd.f32 %v10933_v37, %v3503_v63 }
 0x9bb   :  { %v3493_v18 = vpop.f32.mrb[72].mxu1 }
 0x9bc   :  { %v3518_v20 = vmax.f32 %v3514_v17, 0.0  ;;  %v3504_v39 = vadd.f32 %v3493_v18, %v3262_v24  ;;  %v3495_v14 = vpop.f32.mrb[73].mxu1  ;;  %v3696_v24 = vld [vmem:[%s17999_s0 + $0x18] sm:$0xff] }
 0x9bd   :  { %v13324_v44 = vpack.c.bf16 %v3696_v24, %v3695_v43  ;;  %v3969_v43 = vld [vmem:[#allocation13] sm:$0xff]  ;;  %v3970_v24 = vld [vmem:[#allocation13 + $0x8] sm:$0xff] }
 0x9be   :  { %v13300_v21 = vpack.c.bf16 %v3518_v20, %v3517_v49  ;;  %v3515_v23 = vadd.f32 %v10933_v37, %v3504_v39  ;;  %v4573_v39 = vld [vmem:[%s18002_s8 + $0x20] sm:$0xff] }
 0x9bf   :  { %v3498_v22 = vpop.f32.mrb[74].mxu1 }
 0x9c0   :  { %v3505_v26 = vadd.f32 %v3498_v22, %v3267_v28  ;;  %v3500_v19 = vpop.f32.mrb[75].mxu1  ;;  %13301 = vmatprep.subr.bf16.mxu0 %v13300_v21  ;;  %v3519_v25 = vmax.f32 %v3515_v23, 0.0  ;;  %v13328_v28 = vpack.c.bf16 %v3698_v51, %v3697_v50  ;;  %v4062_v22 = vld [vmem:[#allocation13 + $0x40] sm:$0xff]  ;;  %v3882_v23 = vld [vmem:[#allocation11 + $0x8] sm:$0x3f] }
 0x9c1   :  { %13303 = vmatpush3.bf16.msra.mxu0 %v13300_v21  ;;  %v3977_v19 = vld [vmem:[#allocation11 + $0x10] sm:$0xff] }
 0x9c2   :  { %v3516_v6 = vadd.f32 %v10933_v37, %v3505_v26  ;;  %v4232_v26 = vld [vmem:[#allocation11 + $0x28] sm:$0x3f] }
 0x9c4   :  { %v3520_v27 = vmax.f32 %v3516_v6, 0.0 }
 0x9c6   :  { %v13304_v5 = vpack.c.bf16 %v3520_v27, %v3519_v25  ;;  %v4063_v25 = vld [vmem:[#allocation13 + $0x48] sm:$0xff]  ;;  %v4064_v27 = vld [vmem:[#allocation13 + $0x50] sm:$0xff] }
 0x9c8   :  { %13306 = vmatprep.subr.msk.bf16.mxu0 %vm15689_vm4, %v13304_v5 }
 0x9c9   :  { %13309 = vmatpush3.bf16.msk.msra.mxu0 %vm15689_vm4, %v13304_v5 }
 0x9ca   :  { %13311 = vmatprep.subr.bf16.mxu0 %v13300_v21 }
 0x9cc   :  { %12073 = vmatmul.mubr.msk.f32.vlgmr.msra.gmra.mrb[90].mxu0 %vm799_vm5, %v3522_v29  ;;  %v13392_v29 = vpack.c.bf16 %v4064_v27, %v4063_v25 }
 0x9cd   :  { %13313 = vmatpush3.bf16.msra.mxu0 %v13300_v21  ;;  %12083 = vmatprep.mubr.msk.f32.mxu0 %vm799_vm5, %v10937_v35  ;;  %v4061_v21 = vld [vmem:[#allocation13 + $0x38] sm:$0xff] }
 0x9ce   :  { %13316 = vmatprep.subr.msk.bf16.mxu0 %vm15689_vm4, %v13304_v5  ;;  %v13388_v6 = vpack.c.bf16 %v4062_v22, %v4061_v21  ;;  %v4065_v35 = vld [vmem:[#allocation13 + $0x58] sm:$0xff] }
 0x9cf   :  { %v13396_v38 = vpack.c.bf16 %v4066_v40, %v4065_v35  ;;  %v4575_v22 = vld [vmem:[%s18002_s8 + $0x30] sm:$0xff]  ;;  %v10983_v35 = vld [vmem:[%s18002_s8 + $0x48] sm:$0xff] }
 0x9d0   :  { %v10984_v40 = vld [vmem:[%s18002_s8 + $0x50] sm:$0xff] }
 0x9d1   :  { %13319 = vmatpush3.bf16.msk.msra.mxu0 %vm15689_vm4, %v13304_v5  ;;  %v3978_v5 = vld [vmem:[#allocation11 + $0x18] sm:$0x3f] }
 0x9d2   :  { %13321 = vmatprep.subr.bf16.mxu0 %v13320_v42 }
 0x9d4   :  { %12084 = vmatmul.mubr.msk.f32.vlgmr.msra.gmra.mrb[92].mxu0 %vm799_vm5, %v10938_v48  ;;  %v13400_v48 = vpack.c.bf16 %v3970_v24, %v3969_v43  ;;  %v10986_v43 = vld [vmem:[%s18002_s8 + $0x60] sm:$0xff] }
 0x9d5   :  { %13323 = vmatpush3.bf16.msra.mxu0 %v13320_v42  ;;  %v4067_v42 = vld [vmem:[#allocation13 + $0x68] sm:$0xff] }
 0x9d6   :  { %13325 = vmatprep.subr.bf16.mxu0 %v13324_v44 }
 0x9d9   :  { %13327 = vmatpush3.bf16.msra.mxu0 %v13324_v44 }
 0x9da   :  { %13329 = vmatprep.subr.bf16.mxu0 %v13328_v28 }
 0x9dd   :  { %13331 = vmatpush3.bf16.msra.mxu0 %v13328_v28 }
 0x9de   :  { %13333 = vmatprep.subr.bf16.mxu0 %v13332_v47 }
 0x9e1   :  { %13335 = vmatpush3.bf16.msra.mxu0 %v13332_v47 }
 0x9e2   :  { %13337 = vmatprep.subr.bf16.mxu0 %v13336_v58 }
 0x9e5   :  { %13339 = vmatpush3.bf16.msra.mxu0 %v13336_v58  ;;  %v3974_v58 = vld [vmem:[#allocation13 + $0x28] sm:$0xff] }
 0x9e6   :  { %13341 = vmatprep.subr.bf16.mxu0 %v13340_v59  ;;  %v13408_v36 = vpack.c.bf16 %v3974_v58, %v3973_v56  ;;  %v4808_v56 = vld [vmem:[#allocation17 + $0x2] sm:$0x3] }
 0x9e9   :  { %13343 = vmatpush3.bf16.msra.mxu0 %v13340_v59  ;;  %v4318_v59 = vld [vmem:[#allocation13 + $0x88] sm:$0xff] }
 0x9ea   :  { %13345 = vmatprep.subr.bf16.mxu0 %v13344_v32  ;;  %v13422_v61 = vpack.c.bf16 %v4318_v59, %v4317_v11  ;;  %v5342_v11 = vld [vmem:[%s18003_s28] sm:$0xff]  ;;  %v5343_v59 = vld [vmem:[%s18003_s28 + $0x8] sm:$0xff] }
 0x9ed   :  { %13347 = vmatpush3.bf16.msra.mxu0 %v13344_v32  ;;  %v4321_v32 = vld [vmem:[#allocation13 + $0xa0] sm:$0xff] }
 0xa9f   :  { %v12074_v9 = vpop.f32.mrb[90].mxu0 }
 0xaa0   :  { %v3598_v12 = vpop.f32.mrb[91].mxu0 }
 0xaa7   :  { %v12085_v13 = vpop.f32.mrb[92].mxu0 }
 0xaa8   :  { %v3692_v15 = vmax.f32 %v12074_v9, %v12085_v13  ;;  %v3682_v2 = vpop.f32.mrb[93].mxu0 }
 0xaa9   :  { %v3691_v37 = vmax.f32 %v3598_v12, %v3682_v2 }
 0xaab   :  { %12114 = vmatprep.mubr.msk.f32.mxu0 %vm3707_vm8, %v3691_v37  ;;  %12145 = vmatprep.mubr.msk.f32.mxu1 %vm3707_vm8, %v3691_v37 }
 0xaac   :  { %12115 = vmatmul.mubr.msk.f32.vlgmr.msra.gmra.mrb[94].mxu0 %vm3707_vm8, %v3692_v15  ;;  %12146 = vmatmul.mubr.msk.f32.vlgmr.msra.gmra.mrb[76].mxu1 %vm3707_vm8, %v3692_v15 }
 0xaad   :  { %12152 = vmatprep.mubr.msk.f32.mxu0 %vm3883_vm9, %v3881_v46  ;;  %12200 = vmatprep.mubr.msk.f32.mxu1 %vm3883_vm9, %v4231_v10  ;;  %v4416_v46 = vld [vmem:[#allocation16] sm:$0xff] }
 0xaae   :  { %v4569_v10 = vld [vmem:[%s18002_s8] sm:$0xff] }
 0xb7f   :  { %v12116_v63 = vpop.f32.mrb[94].mxu0  ;;  %v12147_v16 = vpop.f32.mrb[76].mxu1 }
 0xb80   :  { %v3880_v17 = vmax.f32 %v12116_v63, %v12147_v16  ;;  %v3780_v18 = vpop.f32.mrb[95].mxu0  ;;  %v3870_v49 = vpop.f32.mrb[77].mxu1  ;;  %v4570_v63 = vld [vmem:[%s18002_s8 + $0x8] sm:$0xff] }
 0xb81   :  { %v3879_v20 = vmax.f32 %v3780_v18, %v3870_v49  ;;  %v4494_v16 = vld [vmem:[#allocation16 + $0x8] sm:$0xff]  ;;  %v4571_v18 = vld [vmem:[%s18002_s8 + $0x10] sm:$0xff]  ;;  %v4572_v49 = vld [vmem:[%s18002_s8 + $0x18] sm:$0xff] }
 0xb83   :  { %v13376_v14 = vpack.c.bf16 %v3880_v17, %v3879_v20  ;;  %v13439_v17 = vpack.c.bf16 %v4570_v63, %v4569_v10  ;;  %v13442_v20 = vpack.c.bf16 %v4572_v49, %v4571_v18  ;;  %v5354_v63 = vld [vmem:[%s18003_s28 + $0x60] sm:$0xff]  ;;  %v5356_v18 = vld [vmem:[%s18003_s28 + $0x70] sm:$0xff]  ;;  %v5357_v49 = vld [vmem:[%s18003_s28 + $0x78] sm:$0xff] }
 0xb85   :  { %13378 = vmatprep.subr.msk.bf16.mxu0 %vm16560_vm11, %v13376_v14  ;;  %13414 = vmatprep.subr.msk.bf16.mxu1 %vm16560_vm11, %v13376_v14 }
 0xb86   :  { %13381 = vmatpush3.bf16.msk.msra.mxu0 %vm16560_vm11, %v13376_v14  ;;  %13417 = vmatpush3.bf16.msk.msra.mxu1 %vm16560_vm11, %v13376_v14 }
 0xb87   :  { %13384 = vmatprep.subr.msk.bf16.mxu0 %vm16560_vm11, %v13376_v14  ;;  %13430 = vmatprep.subr.bf16.mxu1 %v15205_v0 }
 0xb89   :  { %12153 = vmatmul.mubr.msk.f32.vlgmr.msra.gmra.mrb[96].mxu0 %vm3883_vm9, %v3882_v23  ;;  %12201 = vmatmul.mubr.msk.f32.vlgmr.msra.gmra.mrb[78].mxu1 %vm3883_vm9, %v4232_v26 }
 0xb8a   :  { %13387 = vmatpush3.bf16.msk.msra.mxu0 %vm16560_vm11, %v13376_v14  ;;  %12159 = vmatprep.mubr.msk.f32.mxu0 %vm3883_vm9, %v3977_v19  ;;  %v4574_v14 = vld [vmem:[%s18002_s8 + $0x28] sm:$0xff]  ;;  %v10981_v19 = vld [vmem:[%s18002_s8 + $0x38] sm:$0xff] }
 0xb8b   :  { %13389 = vmatprep.subr.bf16.mxu0 %v13388_v6  ;;  %12224 = vmatprep.mubr.msk.f32.mxu1 %vm15206_vm0, %v15207_v1  ;;  %v13445_v21 = vpack.c.bf16 %v4574_v14, %v4573_v39  ;;  %v4803_v39 = vld [vmem:[#allocation19] sm:$0xff]  ;;  %v4804_v14 = vld [vmem:[#allocation19 + $0x8] sm:$0xff] }
 0xb8d   :  { %12160 = vmatmul.mubr.msk.f32.vlgmr.msra.gmra.mrb[98].mxu0 %vm3883_vm9, %v3978_v5 }
 0xb8e   :  { %13391 = vmatpush3.bf16.msra.mxu0 %v13388_v6  ;;  %v10982_v6 = vld [vmem:[%s18002_s8 + $0x40] sm:$0xff] }
 0xb8f   :  { %13393 = vmatprep.subr.bf16.mxu0 %v13392_v29  ;;  %v13448_v27 = vpack.c.bf16 %v10982_v6, %v10981_v19  ;;  %v4805_v19 = vld [vmem:[#allocation19 + $0x10] sm:$0xff]  ;;  %v4806_v6 = vld [vmem:[#allocation19 + $0x18] sm:$0xff] }
 0xb92   :  { %13395 = vmatpush3.bf16.msra.mxu0 %v13392_v29 }
 0xb93   :  { %13397 = vmatprep.subr.bf16.mxu0 %v13396_v38 }
 0xb96   :  { %13399 = vmatpush3.bf16.msra.mxu0 %v13396_v38  ;;  %v13451_v38 = vpack.c.bf16 %v10984_v40, %v10983_v35  ;;  %v5110_v40 = vld [vmem:[#allocation19 + $0x40] sm:$0xff] }
 0xb97   :  { %12174 = vmatprep.subr.mxu0 %v4067_v42 }
 0xb9a   :  { %12175 = vmatpush3.msra.mxu0 %v4067_v42  ;;  %v10985_v42 = vld [vmem:[%s18002_s8 + $0x58] sm:$0xff] }
 0xb9b   :  { %13401 = vmatprep.subr.bf16.mxu0 %v13400_v48  ;;  %v13454_v24 = vpack.c.bf16 %v10986_v43, %v10985_v42 }
 0xc5c   :  { %v12154_v44 = vpop.f32.mrb[96].mxu0  ;;  %v12202_v50 = vpop.f32.mrb[78].mxu1 }
 0xc5d   :  { %v3960_v51 = vpop.f32.mrb[97].mxu0  ;;  %v4305_v28 = vpop.f32.mrb[79].mxu1 }
 0xc60   :  { %v12161_v47 = vpop.f32.mrb[98].mxu0 }
 0xc61   :  { %v4051_v54 = vpop.f32.mrb[99].mxu0 }
 0xc62   :  { %12176 = vmatprep.mubr.msk.f32.mxu0 %vm515_vm1, %v4051_v54  ;;  %v4884_v54 = vld [vmem:[#allocation19 + $0x28] sm:$0xff] }
 0xc63   :  { %12177 = vmatmul.mubr.msk.f32.vlgmr.msra.gmra.mrb[100].mxu0 %vm515_vm1, %v12161_v47  ;;  %v4883_v47 = vld [vmem:[#allocation19 + $0x20] sm:$0xff] }
 0xc64   :  { %13403 = vmatpush3.bf16.msra.mxu0 %v13400_v48  ;;  %12193 = vmatprep.mubr.msk.f32.mxu0 %vm515_vm1, %v3960_v51  ;;  %v10987_v48 = vld [vmem:[%s18002_s8 + $0x68] sm:$0xff]  ;;  %v13457_v58 = vpack.c.bf16 %v4884_v54, %v4883_v47  ;;  %v5435_v54 = vld [vmem:[%s18004_s4] sm:$0xff] }
 0xc65   :  { %13405 = vmatprep.subr.bf16.mxu0 %v13404_v55 }
 0xc68   :  { %13407 = vmatpush3.bf16.msra.mxu0 %v13404_v55  ;;  %v5035_v55 = vld [vmem:[#allocation17 + $0x4] sm:$0x3] }
 0xc69   :  { %13409 = vmatprep.subr.bf16.mxu0 %v13408_v36 }
 0xc6c   :  { %13411 = vmatpush3.bf16.msra.mxu0 %v13408_v36  ;;  %v5189_v36 = vld [vmem:[#allocation17 + $0x6] sm:$0x3] }
 0xc6d   :  { %12191 = vmatprep.subr.mxu0 %v3975_v33 }
 0xc70   :  { %12192 = vmatpush3.msra.mxu0 %v3975_v33  ;;  %v4885_v33 = vld [vmem:[#allocation19 + $0x30] sm:$0xff] }
 0xc71   :  { %12194 = vmatmul.mubr.msk.f32.vlgmr.msra.gmra.mrb[100].mxu0 %vm515_vm1, %v12154_v44  ;;  %13419 = vmatprep.subr.bf16.mxu0 %v13418_v60  ;;  %v13460_v7 = vpack.c.bf16 %v4886_v57, %v4885_v33  ;;  %v5439_v57 = vld [vmem:[%s18004_s4 + $0x20] sm:$0xff] }
 0xc72   :  { %13421 = vmatpush3.bf16.msra.mxu0 %v13418_v60  ;;  %12217 = vmatprep.mubr.msk.f32.mxu0 %vm515_vm1, %v4305_v28  ;;  %v13481_v60 = vpack.c.bf16 %v5343_v59, %v5342_v11  ;;  %v5441_v59 = vld [vmem:[%s18004_s4 + $0x30] sm:$0xff] }
 0xc73   :  { %13423 = vmatprep.subr.bf16.mxu0 %v13422_v61 }
 0xc76   :  { %13425 = vmatpush3.bf16.msra.mxu0 %v13422_v61  ;;  %v5344_v61 = vld [vmem:[%s18003_s28 + $0x10] sm:$0xff] }
 0xc77   :  { %13427 = vmatprep.subr.bf16.mxu0 %v13426_v8  ;;  %v13484_v3 = vpack.c.bf16 %v5345_v62, %v5344_v61  ;;  %v5443_v62 = vld [vmem:[%s18004_s4 + $0x40] sm:$0xff] }
 0xc7a   :  { %13429 = vmatpush3.bf16.msra.mxu0 %v13426_v8  ;;  %v5346_v8 = vld [vmem:[%s18003_s28 + $0x20] sm:$0xff] }
 0xc7b   :  { %12215 = vmatprep.subr.mxu0 %v4321_v32 }
 0xc7e   :  { %12216 = vmatpush3.msra.mxu0 %v4321_v32  ;;  %v5347_v32 = vld [vmem:[%s18003_s28 + $0x28] sm:$0xff] }
 0xc7f   :  { %12218 = vmatmul.mubr.msk.f32.vlgmr.msra.gmra.mrb[100].mxu0 %vm515_vm1, %v12202_v50  ;;  %12268 = vmatprep.subr.mxu0 %v15207_v1 }
 0xc80   :  { %12270 = vmatprep.mubr.msk.f32.mxu0 %vm15206_vm0, %v15207_v1 }
 0xd52   :  { %v12219_v41 = vpop.f32.mrb[100].mxu0 }
 0xd53   :  { %v4413_v9 = vadd.f32 %v12219_v41, %v10975_v4  ;;  %v4394_v12 = vpop.f32.mrb[101].mxu0  ;;  %v5348_v41 = vld [vmem:[%s18003_s28 + $0x30] sm:$0xff] }
 0xd54   :  { %v4412_v13 = vadd.f32 %v10975_v4, %v4394_v12  ;;  %v13487_v4 = vpack.c.bf16 %v5347_v32, %v5346_v8  ;;  %v5445_v32 = vld [vmem:[%s18004_s4 + $0x50] sm:$0xff] }
 0xd55   :  { %v4415_v15 = vmax.f32 %v4413_v9, 0.0  ;;  %v5349_v9 = vld [vmem:[%s18003_s28 + $0x38] sm:$0xff] }
 0xd56   :  { %v4414_v2 = vmax.f32 %v4412_v13, 0.0  ;;  %v13490_v12 = vpack.c.bf16 %v5349_v9, %v5348_v41  ;;  %v5350_v13 = vld [vmem:[%s18003_s28 + $0x40] sm:$0xff] }
 0xd57   :  { %v5447_v9 = vld [vmem:[%s18004_s4 + $0x60] sm:$0xff] }
 0xd58   :  { %v13431_v37 = vpack.c.bf16 %v4415_v15, %v4414_v2  ;;  %v5351_v15 = vld [vmem:[%s18003_s28 + $0x48] sm:$0xff] }
 0xd59   :  { %v13493_v2 = vpack.c.bf16 %v5351_v15, %v5350_v13  ;;  %v5449_v15 = vld [vmem:[%s18004_s4 + $0x70] sm:$0xff] }
 0xd5a   :  { %13433 = vmatpush3.bf16.msk.msra.mxu1 %vm16560_vm11, %v13431_v37 }
 0xd5b   :  { %13434 = vmatprep.subr.bf16.mxu1 %v15205_v0 }
 0xd5d   :  { %12225 = vmatmul.mubr.msk.f32.vlgmr.msra.gmra.mrb[80].mxu1 %vm3883_vm9, %v4416_v46  ;;  %v5353_v46 = vld [vmem:[%s18003_s28 + $0x58] sm:$0xff] }
 0xd5e   :  { %13437 = vmatpush3.bf16.msk.msra.mxu1 %vm16560_vm11, %v13431_v37  ;;  %12231 = vmatprep.mubr.msk.f32.mxu1 %vm15206_vm0, %v15207_v1  ;;  %v5352_v37 = vld [vmem:[%s18003_s28 + $0x50] sm:$0xff] }
 0xd5f   :  { %13438 = vmatprep.subr.bf16.mxu1 %v15205_v0  ;;  %v13496_v10 = vpack.c.bf16 %v5353_v46, %v5352_v37 }
 0xd61   :  { %12232 = vmatmul.mubr.msk.f32.vlgmr.msra.gmra.mrb[82].mxu1 %vm3883_vm9, %v4494_v16  ;;  %v5355_v16 = vld [vmem:[%s18003_s28 + $0x68] sm:$0xff] }
 0xd62   :  { %13440 = vmatpush3.bf16.msra.mxu1 %v13439_v17  ;;  %12248 = vmatprep.mubr.msk.f32.mxu1 %vm15206_vm0, %v15207_v1  ;;  %v13499_v17 = vpack.c.bf16 %v5355_v16, %v5354_v63  ;;  %v5534_v63 = vld [vmem:[#allocation23] sm:$0xff]  ;;  %v5535_v16 = vld [vmem:[#allocation23 + $0x8] sm:$0xff] }
 0xd63   :  { %13441 = vmatprep.subr.bf16.mxu1 %v15205_v0 }
 0xd66   :  { %13443 = vmatpush3.bf16.msra.mxu1 %v13442_v20  ;;  %v13502_v20 = vpack.c.bf16 %v5357_v49, %v5356_v18  ;;  %v11002_v18 = vld [vmem:[%s18005_s21 + $0x80] sm:$0xff]  ;;  %v11003_v49 = vld [vmem:[%s18005_s21 + $0x88] sm:$0xff] }
 0xd67   :  { %13444 = vmatprep.subr.bf16.mxu1 %v15205_v0 }
 0xd6a   :  { %13446 = vmatpush3.bf16.msra.mxu1 %v13445_v21 }
 0xd6b   :  { %12246 = vmatprep.subr.mxu1 %v15207_v1 }
 0xd6e   :  { %12247 = vmatpush3.msra.mxu1 %v4575_v22 }
 0xd6f   :  { %13447 = vmatprep.subr.bf16.mxu1 %v15205_v0 }
 0xe30   :  { %v4489_v23 = vpop.f32.mrb[80].mxu1 }
 0xe31   :  { %v12226_v26 = vpop.f32.mrb[81].mxu1 }
 0xe34   :  { %v4564_v25 = vpop.f32.mrb[82].mxu1 }
 0xe35   :  { %v4568_v5 = vmax.f32 %v4489_v23, %v4564_v25  ;;  %v12233_v29 = vpop.f32.mrb[83].mxu1  ;;  %v13463_v23 = vpack.c.bf16 %v4804_v14, %v4803_v39  ;;  %v11004_v39 = vld [vmem:[%s18005_s21 + $0x90] sm:$0xff]  ;;  %v11005_v14 = vld [vmem:[%s18005_s21 + $0x98] sm:$0xff] }
 0xe36   :  { %v13466_v29 = vpack.c.bf16 %v4806_v6, %v4805_v19  ;;  %v11008_v19 = vld [vmem:[%s18005_s21 + $0xb0] sm:$0xff]  ;;  %v11009_v6 = vld [vmem:[%s18005_s21 + $0xb8] sm:$0xff] }
 0xe37   :  { %12249 = vmatmul.mubr.msk.f32.vlgmr.msra.gmra.mrb[84].mxu1 %vm515_vm1, %v4568_v5 }
 0xe38   :  { %13449 = vmatpush3.bf16.msra.mxu1 %v13448_v27  ;;  %12265 = vmatprep.mubr.msk.f32.mxu1 %vm15206_vm0, %v15207_v1 }
 0xe39   :  { %13450 = vmatprep.subr.bf16.mxu1 %v15205_v0 }
 0xe3c   :  { %13452 = vmatpush3.bf16.msra.mxu1 %v13451_v38  ;;  %v5111_v38 = vld [vmem:[#allocation19 + $0x48] sm:$0xff] }
 0xe3d   :  { %13453 = vmatprep.subr.bf16.mxu1 %v15205_v0  ;;  %v13469_v43 = vpack.c.bf16 %v5111_v38, %v5110_v40  ;;  %v11013_v40 = vld [vmem:[%s18005_s21 + $0xd8] sm:$0xff] }
 0xe40   :  { %13455 = vmatpush3.bf16.msra.mxu1 %v13454_v24  ;;  %v5112_v24 = vld [vmem:[#allocation19 + $0x50] sm:$0xff] }
 0xe41   :  { %12263 = vmatprep.subr.mxu1 %v15207_v1 }
 0xe44   :  { %12264 = vmatpush3.msra.mxu1 %v10987_v48  ;;  %v5113_v48 = vld [vmem:[#allocation19 + $0x58] sm:$0xff] }
 0xe45   :  { %12266 = vmatmul.mubr.msk.f32.vlgmr.msra.gmra.mrb[86].mxu1 %vm515_vm1, %v4568_v5  ;;  %12300 = vmatprep.subr.mxu1 %v15207_v1 }
 0xe46   :  { %12302 = vmatprep.mubr.msk.f32.mxu1 %vm15206_vm0, %v15207_v1 }
 0xf0a   :  { %v4645_v44 = vpop.f32.mrb[84].mxu1 }
 0xf0b   :  { %v12250_v50 = vpop.f32.mrb[85].mxu1 }
 0xf0c   :  { %v5264_v50 = vld [vmem:[#allocation19 + $0x60] sm:$0xff] }
 0xf18   :  { %v4723_v51 = vpop.f32.mrb[86].mxu1 }
 0xf19   :  { %v4727_v28 = vmax.f32 %v4645_v44, %v4723_v51  ;;  %v12267_v52 = vpop.f32.mrb[87].mxu1  ;;  %v13472_v44 = vpack.c.bf16 %v5113_v48, %v5112_v24  ;;  %v5265_v51 = vld [vmem:[#allocation19 + $0x68] sm:$0xff]  ;;  %v11016_v48 = vld [vmem:[%s18005_s21 + $0xf0] sm:$0xff] }
 0xf1a   :  { %v5266_v52 = vld [vmem:[#allocation19 + $0x70] sm:$0xff] }
 0xf1b   :  { %12269 = vmatpush3.msra.mxu0 %v4727_v28  ;;  %12301 = vmatpush3.msra.mxu1 %v4727_v28 }
 0xf1c   :  { %12271 = vmatmul.mubr.msk.f32.vlgmr.msra.gmra.mrb[102].mxu0 %vm4729_vm12, %v4728_v53  ;;  %12273 = vmatprep.subr.mxu0 %v15207_v1  ;;  %v5267_v53 = vld [vmem:[#allocation19 + $0x78] sm:$0xff] }
 0xf1d   :  { %12316 = vmatprep.subr.mxu1 %v15207_v1  ;;  %12274 = vmatpush3.msra.mxu0 %v4727_v28  ;;  %v13478_v47 = vpack.c.bf16 %v5267_v53, %v5266_v52 }
 0xf1e   :  { %12303 = vmatmul.mubr.msk.f32.vlgmr.msra.gmra.mrb[88].mxu1 %vm4729_vm12, %v5035_v55  ;;  %12275 = vmatprep.mubr.msk.f32.mxu0 %vm15206_vm0, %v15207_v1  ;;  %v5436_v55 = vld [vmem:[%s18004_s4 + $0x8] sm:$0xff] }
 0xf1f   :  { %12317 = vmatpush3.msra.mxu1 %v4727_v28  ;;  %12318 = vmatprep.mubr.msk.f32.mxu1 %vm15206_vm0, %v15207_v1  ;;  %v13475_v28 = vpack.c.bf16 %v5265_v51, %v5264_v50  ;;  %v10997_v51 = vld [vmem:[#allocation20] ss:$0 sm:$0xff] }
 0xf20   :  { %12276 = vmatmul.mubr.msk.f32.vlgmr.msra.gmra.mrb[104].mxu0 %vm4729_vm12, %v4808_v56  ;;  %13456 = vmatprep.subr.bf16.mxu0 %v15205_v0  ;;  %v13505_v56 = vpack.c.bf16 %v5436_v55, %v5435_v54 }
 0xf21   :  { %13458 = vmatpush3.bf16.msra.mxu0 %v13457_v58  ;;  %12286 = vmatprep.mubr.msk.f32.mxu0 %vm15206_vm0, %v15207_v1  ;;  %v5437_v58 = vld [vmem:[%s18004_s4 + $0x10] sm:$0xff] }
 0xf22   :  { %12319 = vmatmul.mubr.msk.f32.vlgmr.msra.gmra.mrb[90].mxu1 %vm4729_vm12, %v5189_v36  ;;  %13459 = vmatprep.subr.bf16.mxu0 %v15205_v0  ;;  %v5438_v36 = vld [vmem:[%s18004_s4 + $0x18] sm:$0xff] }
 0xf23   :  { %13480 = vmatprep.subr.bf16.mxu1 %v15205_v0  ;;  %12364 = vmatprep.mubr.msk.f32.mxu1 %vm15206_vm0, %v15207_v1  ;;  %v13508_v33 = vpack.c.bf16 %v5438_v36, %v5437_v58 }
 0xf24   :  { %13482 = vmatpush3.bf16.msra.mxu1 %v13481_v60  ;;  %v5442_v60 = vld [vmem:[%s18004_s4 + $0x38] sm:$0xff] }
 0xf25   :  { %13461 = vmatpush3.bf16.msra.mxu0 %v13460_v7  ;;  %13483 = vmatprep.subr.bf16.mxu1 %v15205_v0  ;;  %v5440_v7 = vld [vmem:[%s18004_s4 + $0x28] sm:$0xff]  ;;  %v13514_v61 = vpack.c.bf16 %v5442_v60, %v5441_v59 }
 0xf26   :  { %13462 = vmatprep.subr.bf16.mxu0 %v15205_v0  ;;  %v13511_v11 = vpack.c.bf16 %v5440_v7, %v5439_v57  ;;  %v5618_v57 = vld [vmem:[%s18005_s21] sm:$0xff]  ;;  %v5619_v7 = vld [vmem:[%s18005_s21 + $0x8] sm:$0xff] }
 0xf27   :  { %v13532_v60 = vpack.c.bf16 %v5619_v7, %v5618_v57 }
 0xf28   :  { %13485 = vmatpush3.bf16.msra.mxu1 %v13484_v3  ;;  %v5444_v3 = vld [vmem:[%s18004_s4 + $0x48] sm:$0xff] }
 0xf29   :  { %13486 = vmatprep.subr.bf16.mxu1 %v15205_v0  ;;  %v13517_v8 = vpack.c.bf16 %v5444_v3, %v5443_v62  ;;  %v5620_v62 = vld [vmem:[%s18005_s21 + $0x10] sm:$0xff]  ;;  %v5621_v3 = vld [vmem:[%s18005_s21 + $0x18] sm:$0xff] }
 0xf2c   :  { %13488 = vmatpush3.bf16.msra.mxu1 %v13487_v4  ;;  %v5446_v4 = vld [vmem:[%s18004_s4 + $0x58] sm:$0xff] }
 0xf2d   :  { %13489 = vmatprep.subr.bf16.mxu1 %v15205_v0  ;;  %v13520_v41 = vpack.c.bf16 %v5446_v4, %v5445_v32  ;;  %v5622_v32 = vld [vmem:[%s18005_s21 + $0x20] sm:$0xff]  ;;  %v5623_v4 = vld [vmem:[%s18005_s21 + $0x28] sm:$0xff] }
 0xf30   :  { %13491 = vmatpush3.bf16.msra.mxu1 %v13490_v12  ;;  %v5448_v12 = vld [vmem:[%s18004_s4 + $0x68] sm:$0xff] }
 0xf31   :  { %13492 = vmatprep.subr.bf16.mxu1 %v15205_v0  ;;  %v13523_v13 = vpack.c.bf16 %v5448_v12, %v5447_v9  ;;  %v5624_v9 = vld [vmem:[%s18005_s21 + $0x30] sm:$0xff]  ;;  %v5625_v12 = vld [vmem:[%s18005_s21 + $0x38] sm:$0xff] }
 0xf34   :  { %13494 = vmatpush3.bf16.msra.mxu1 %v13493_v2  ;;  %v5450_v2 = vld [vmem:[%s18004_s4 + $0x78] sm:$0xff] }
 0xf35   :  { %13495 = vmatprep.subr.bf16.mxu1 %v15205_v0  ;;  %v13526_v37 = vpack.c.bf16 %v5450_v2, %v5449_v15  ;;  %v5626_v15 = vld [vmem:[%s18005_s21 + $0x40] sm:$0xff]  ;;  %v5627_v2 = vld [vmem:[%s18005_s21 + $0x48] sm:$0xff] }
 0xf38   :  { %13497 = vmatpush3.bf16.msra.mxu1 %v13496_v10 }
 0xf39   :  { %13498 = vmatprep.subr.bf16.mxu1 %v15205_v0 }
 0xf3c   :  { %13500 = vmatpush3.bf16.msra.mxu1 %v13499_v17  ;;  %v13529_v17 = vpack.c.bf16 %v5535_v16, %v5534_v63  ;;  %v5630_v16 = vld [vmem:[%s18005_s21 + $0x60] sm:$0xff] }
 0xf3d   :  { %13501 = vmatprep.subr.bf16.mxu1 %v15205_v0 }
 0xf40   :  { %13503 = vmatpush3.bf16.msra.mxu1 %v13502_v20  ;;  %v13556_v20 = vpack.c.bf16 %v11003_v49, %v11002_v18  ;;  %v5632_v49 = vld [vmem:[%s18005_s21 + $0x70] sm:$0xff] }
 0xf41   :  { %13528 = vmatprep.subr.bf16.mxu1 %v15205_v0 }
 0xfef   :  { %v4799_v21 = vpop.f32.mrb[102].mxu0 }
 0xff0   :  { %v12272_v22 = vpop.f32.mrb[103].mxu0 }
 0xff1   :  { %v5105_v26 = vpop.f32.mrb[88].mxu1  ;;  %v11006_v22 = vld [vmem:[%s18005_s21 + $0xa0] sm:$0xff] }
 0xff2   :  { %v12304_v25 = vpop.f32.mrb[89].mxu1 }
 0xff3   :  { %v4878_v27 = vpop.f32.mrb[104].mxu0  ;;  %v13565_v25 = vpack.c.bf16 %v11009_v6, %v11008_v19 }
 0xff4   :  { %v12277_v5 = vpop.f32.mrb[105].mxu0  ;;  %12287 = vmatmul.mubr.msk.f32.vlgmr.msra.gmra.mrb[106].mxu0 %vm4887_vm13, %v4878_v27  ;;  %v11010_v27 = vld [vmem:[%s18005_s21 + $0xc0] sm:$0xff] }
 0xff5   :  { %13464 = vmatpush3.bf16.msra.mxu0 %v13463_v23  ;;  %12297 = vmatprep.mubr.msk.f32.mxu0 %vm15206_vm0, %v15207_v1  ;;  %v5259_v35 = vpop.f32.mrb[90].mxu1  ;;  %v11007_v23 = vld [vmem:[%s18005_s21 + $0xa8] sm:$0xff] }
 0xff6   :  { %13465 = vmatprep.subr.bf16.mxu0 %v15205_v0  ;;  %v12320_v42 = vpop.f32.mrb[91].mxu1  ;;  %v11011_v5 = vld [vmem:[%s18005_s21 + $0xc8] sm:$0xff] }
 0xff7   :  { %v11014_v42 = vld [vmem:[%s18005_s21 + $0xe0] sm:$0xff] }
 0xff9   :  { %13467 = vmatpush3.bf16.msra.mxu0 %v13466_v29  ;;  %v13568_v29 = vpack.c.bf16 %v11011_v5, %v11010_v27  ;;  %v11045_v27 = vld [vmem:[%s18005_s21 + $0x198] sm:$0xff] }
 0xffa   :  { %13468 = vmatprep.subr.bf16.mxu0 %v15205_v0 }
 0xffc   :  { %12298 = vmatmul.mubr.msk.f32.vlgmr.msra.gmra.mrb[106].mxu0 %vm4887_vm13, %v4799_v21  ;;  %v13559_v21 = vpack.c.bf16 %v11005_v14, %v11004_v39  ;;  %v11042_v14 = vld [vmem:[%s18005_s21 + $0x180] sm:$0xff] }
 0xffd   :  { %13470 = vmatpush3.bf16.msra.mxu0 %v13469_v43  ;;  %12313 = vmatprep.mubr.msk.f32.mxu0 %vm15206_vm0, %v15207_v1  ;;  %v11015_v43 = vld [vmem:[%s18005_s21 + $0xe8] sm:$0xff] }
 0xffe   :  { %13471 = vmatprep.subr.bf16.mxu0 %v15205_v0  ;;  %v13574_v24 = vpack.c.bf16 %v11015_v43, %v11014_v42  ;;  %v11049_v42 = vld [vmem:[%s18005_s21 + $0x1b8] sm:$0xff] }
0x1001   :  { %13473 = vmatpush3.bf16.msra.mxu0 %v13472_v44  ;;  %v11017_v44 = vld [vmem:[%s18005_s21 + $0xf8] sm:$0xff] }
0x1002   :  { %13474 = vmatprep.subr.bf16.mxu0 %v15205_v0  ;;  %v13577_v50 = vpack.c.bf16 %v11017_v44, %v11016_v48  ;;  %v11051_v48 = vld [vmem:[%s18005_s21 + $0x1c8] sm:$0xff] }
0x1004   :  { %12314 = vmatmul.mubr.msk.f32.vlgmr.msra.gmra.mrb[106].mxu0 %vm4887_vm13, %v5105_v26  ;;  %v13562_v26 = vpack.c.bf16 %v11007_v23, %v11006_v22  ;;  %v10999_v22 = vld [vmem:[#allocation25] ss:$0 sm:$0xff] }
0x1005   :  { %13476 = vmatpush3.bf16.msra.mxu0 %v13475_v28  ;;  %12329 = vmatprep.mubr.msk.f32.mxu0 %vm15206_vm0, %v15207_v1  ;;  %v10998_v28 = vld [vmem:[#allocation22] ss:$0 sm:$0xff] }
0x1006   :  { %13477 = vmatprep.subr.bf16.mxu0 %v15205_v0 }
0x1009   :  { %13479 = vmatpush3.bf16.msra.mxu0 %v13478_v47 }
0x100a   :  { %13504 = vmatprep.subr.bf16.mxu0 %v15205_v0 }
0x100c   :  { %12330 = vmatmul.mubr.msk.f32.vlgmr.msra.gmra.mrb[106].mxu0 %vm4887_vm13, %v5259_v35  ;;  %v11012_v35 = vld [vmem:[%s18005_s21 + $0xd0] sm:$0xff] }
0x100d   :  { %13506 = vmatpush3.bf16.msra.mxu0 %v13505_v56  ;;  %12399 = vmatprep.mubr.msk.f32.mxu0 %vm15206_vm0, %v15207_v1  ;;  %v13571_v38 = vpack.c.bf16 %v11013_v40, %v11012_v35  ;;  %v11047_v35 = vld [vmem:[%s18005_s21 + $0x1a8] sm:$0xff] }
0x100e   :  { %13507 = vmatprep.subr.bf16.mxu0 %v15205_v0 }
0x1011   :  { %13509 = vmatpush3.bf16.msra.mxu0 %v13508_v33  ;;  %v5531_v33 = vld [vmem:[#allocation5] sm:$0x3] }
0x1012   :  { %13510 = vmatprep.subr.bf16.mxu0 %v15205_v0 }
0x1015   :  { %13512 = vmatpush3.bf16.msra.mxu0 %v13511_v11 }
0x1016   :  { %13513 = vmatprep.subr.bf16.mxu0 %v15205_v0 }
0x1019   :  { %13515 = vmatpush3.bf16.msra.mxu0 %v13514_v61 }
0x101a   :  { %13516 = vmatprep.subr.bf16.mxu0 %v15205_v0 }
0x101d   :  { %13518 = vmatpush3.bf16.msra.mxu0 %v13517_v8  ;;  %v13535_v8 = vpack.c.bf16 %v5621_v3, %v5620_v62  ;;  %v11025_v62 = vld [vmem:[%s18005_s21 + $0x110] sm:$0xff]  ;;  %v11026_v3 = vld [vmem:[%s18005_s21 + $0x118] sm:$0xff] }
0x101e   :  { %13519 = vmatprep.subr.bf16.mxu0 %v15205_v0 }
0x1021   :  { %13521 = vmatpush3.bf16.msra.mxu0 %v13520_v41  ;;  %v13538_v41 = vpack.c.bf16 %v5623_v4, %v5622_v32  ;;  %v11027_v32 = vld [vmem:[%s18005_s21 + $0x120] sm:$0xff]  ;;  %v11028_v4 = vld [vmem:[%s18005_s21 + $0x128] sm:$0xff] }
0x1022   :  { %13522 = vmatprep.subr.bf16.mxu0 %v15205_v0 }
0x1025   :  { %13524 = vmatpush3.bf16.msra.mxu0 %v13523_v13  ;;  %v13541_v13 = vpack.c.bf16 %v5625_v12, %v5624_v9  ;;  %v11029_v9 = vld [vmem:[%s18005_s21 + $0x130] sm:$0xff]  ;;  %v11030_v12 = vld [vmem:[%s18005_s21 + $0x138] sm:$0xff] }
0x1026   :  { %13525 = vmatprep.subr.bf16.mxu0 %v15205_v0 }
0x1029   :  { %13527 = vmatpush3.bf16.msra.mxu0 %v13526_v37  ;;  %v13544_v37 = vpack.c.bf16 %v5627_v2, %v5626_v15  ;;  %v11031_v15 = vld [vmem:[%s18005_s21 + $0x140] sm:$0xff]  ;;  %v11032_v2 = vld [vmem:[%s18005_s21 + $0x148] sm:$0xff] }
0x102a   :  { %13555 = vmatprep.subr.bf16.mxu0 %v15205_v0 }
0x10df   :  { %v5337_v46 = vpop.f32.mrb[106].mxu0 }
0x10e0   :  { %v12331_v10 = vpop.f32.mrb[107].mxu0  ;;  %12365 = vmatmul.mubr.f32.vlgmr.msra.gmra.mrb[92].mxu1 %v5337_v46  ;;  %12400 = vmatmul.mubr.f32.vlgmr.msra.gmra.mrb[108].mxu0 %v5337_v46  ;;  %v5628_v46 = vld [vmem:[%s18005_s21 + $0x50] sm:$0xff] }
0x10e1   :  { %12406 = vmatprep.mubr.msk.f32.mxu1 %vm15206_vm0, %v15207_v1  ;;  %12476 = vmatprep.mubr.msk.f32.mxu0 %vm15206_vm0, %v15207_v1  ;;  %v5629_v10 = vld [vmem:[%s18005_s21 + $0x58] sm:$0xff] }
0x10e2   :  { %13530 = vmatpush3.bf16.msra.mxu1 %v13529_v17  ;;  %13557 = vmatpush3.bf16.msra.mxu0 %v13556_v20  ;;  %v13547_v63 = vpack.c.bf16 %v5629_v10, %v5628_v46  ;;  %v5631_v17 = vld [vmem:[%s18005_s21 + $0x68] sm:$0xff]  ;;  %v5633_v20 = vld [vmem:[%s18005_s21 + $0x78] sm:$0xff]  ;;  %v11033_v46 = vld [vmem:[%s18005_s21 + $0x150] sm:$0xff] }
0x10e3   :  { %13531 = vmatprep.subr.bf16.mxu1 %v15205_v0  ;;  %13558 = vmatprep.subr.bf16.mxu0 %v15205_v0  ;;  %v13550_v18 = vpack.c.bf16 %v5631_v17, %v5630_v16  ;;  %v13553_v39 = vpack.c.bf16 %v5633_v20, %v5632_v49  ;;  %v11034_v10 = vld [vmem:[%s18005_s21 + $0x158] sm:$0xff]  ;;  %v11035_v16 = vld [vmem:[%s18005_s21 + $0x160] sm:$0xff]  ;;  %v11036_v17 = vld [vmem:[%s18005_s21 + $0x168] sm:$0xff] }
0x10e4   :  { %v11037_v20 = vld [vmem:[%s18005_s21 + $0x170] sm:$0xff] }
0x10e6   :  { %13560 = vmatpush3.bf16.msra.mxu0 %v13559_v21  ;;  %v11043_v21 = vld [vmem:[%s18005_s21 + $0x188] sm:$0xff] }
0x10e7   :  { %13561 = vmatprep.subr.bf16.mxu0 %v15205_v0 }
0x10ea   :  { %13563 = vmatpush3.bf16.msra.mxu0 %v13562_v26  ;;  %v13604_v26 = vpack.c.bf16 %v11043_v21, %v11042_v14 }
0x10eb   :  { %13564 = vmatprep.subr.bf16.mxu0 %v15205_v0 }
0x10ee   :  { %13566 = vmatpush3.bf16.msra.mxu0 %v13565_v25  ;;  %v11044_v25 = vld [vmem:[%s18005_s21 + $0x190] sm:$0xff] }
0x10ef   :  { %13567 = vmatprep.subr.bf16.mxu0 %v15205_v0  ;;  %v13607_v5 = vpack.c.bf16 %v11045_v27, %v11044_v25  ;;  %v6434_v25 = vld [vmem:[#allocation28 + $0x28] sm:$0xff]  ;;  %v6353_v27 = vld [vmem:[#allocation28] sm:$0xff] }
0x10f2   :  { %13569 = vmatpush3.bf16.msra.mxu0 %v13568_v29  ;;  %v11046_v29 = vld [vmem:[%s18005_s21 + $0x1a0] sm:$0xff] }
0x10f3   :  { %13570 = vmatprep.subr.bf16.mxu0 %v15205_v0  ;;  %v13610_v40 = vpack.c.bf16 %v11047_v35, %v11046_v29  ;;  %v6279_v29 = vld [vmem:[#allocation26] sm:$0xff]  ;;  %v6358_v35 = vld [vmem:[#allocation26 + $0x8] sm:$0xff] }
0x10f6   :  { %13572 = vmatpush3.bf16.msra.mxu0 %v13571_v38  ;;  %v11048_v38 = vld [vmem:[%s18005_s21 + $0x1b0] sm:$0xff] }
0x10f7   :  { %13573 = vmatprep.subr.bf16.mxu0 %v15205_v0  ;;  %v13613_v43 = vpack.c.bf16 %v11049_v42, %v11048_v38 }
0x10fa   :  { %13575 = vmatpush3.bf16.msra.mxu0 %v13574_v24  ;;  %v11050_v24 = vld [vmem:[%s18005_s21 + $0x1c0] sm:$0xff] }
0x10fb   :  { %13576 = vmatprep.subr.bf16.mxu0 %v15205_v0  ;;  %v13616_v44 = vpack.c.bf16 %v11051_v48, %v11050_v24  ;;  %v6436_v48 = vld [vmem:[#allocation28 + $0x38] sm:$0xff] }
0x10fe   :  { %13578 = vmatpush3.bf16.msra.mxu0 %v13577_v50  ;;  %v11052_v50 = vld [vmem:[%s18005_s21 + $0x1d0] sm:$0xff] }
0x10ff   :  { %13603 = vmatprep.subr.bf16.mxu0 %v15205_v0 }
0x11b3   :  { %v5431_v52 = vpop.f32.mrb[92].mxu1  ;;  %v5524_v53 = vpop.f32.mrb[108].mxu0 }
0x11b4   :  { %v5432_v47 = vadd.f32 %v10997_v51, %v5431_v52  ;;  %v5525_v54 = vadd.f32 %v10998_v28, %v5524_v53  ;;  %v12366_v55 = vpop.f32.mrb[93].mxu1  ;;  %v12401_v56 = vpop.f32.mrb[109].mxu0  ;;  %v11053_v51 = vld [vmem:[%s18005_s21 + $0x1d8] sm:$0xff]  ;;  %v11054_v52 = vld [vmem:[%s18005_s21 + $0x1e0] sm:$0xff]  ;;  %v11055_v53 = vld [vmem:[%s18005_s21 + $0x1e8] sm:$0xff] }
0x11b5   :  { %v13619_v28 = vpack.c.bf16 %v11053_v51, %v11052_v50  ;;  %v11057_v55 = vld [vmem:[%s18005_s21 + $0x1f8] sm:$0xff] }
0x11b6   :  { %v5528_v58 = vmul.f32 0.5, %v5525_v54  ;;  %10479 = vst.msk [vmem:[#allocation41] sm:$0x3] %vm10478_vm14, %v5432_v47  ;;  %10480 = vst.msk [vmem:[#allocation43] sm:$0x3] %vm10478_vm14, %v5525_v54  ;;  %v11056_v54 = vld [vmem:[%s18005_s21 + $0x1f0] sm:$0xff] }
0x11b7   :  { %v13625_v56 = vpack.c.bf16 %v11057_v55, %v11056_v54  ;;  %v6356_v50 = vld [vmem:[#allocation28 + $0x18] sm:$0xff] }
0x11b8   :  { %v5529_v36 = vmul.f32 1.442695, %v5528_v58  ;;  %v11001_v58 = vld [vmem:[%s18006_s1 + $0x8] sm:$0xff] }
0x11ba   :  { %14451 = vpow2.f32 %v5529_v36 }
0x11c4   :  { %v14452_v11 = vpop.eup %14451 }
0x11c5   :  { %v5532_v59 = vmul.f32 %v14452_v11, %v5531_v33  ;;  %v11023_v11 = vld [vmem:[%s18005_s21 + $0x100] sm:$0xff] }
0x11c7   :  { %v5533_v61 = vadd.f32 %v5532_v59, %v5432_v47  ;;  %v13622_v47 = vpack.c.bf16 %v11055_v53, %v11054_v52  ;;  %v11024_v59 = vld [vmem:[%s18005_s21 + $0x108] sm:$0xff] }
0x11c8   :  { %v6659_v52 = vld [vmem:[#allocation28 + $0x40] sm:$0xff]  ;;  %v6660_v53 = vld [vmem:[#allocation28 + $0x48] sm:$0xff] }
0x11c9   :  { %12407 = vmatmul.mubr.msk.f32.vlgmr.msra.gmra.mrb[94].mxu1 %vm5543_vm15, %v5533_v61  ;;  %10481 = vst.msk [vmem:[#allocation44] sm:$0x3] %vm10478_vm14, %v5533_v61  ;;  %v13580_v61 = vpack.c.bf16 %v11024_v59, %v11023_v11 }
0x11ca   :  { %13533 = vmatpush3.bf16.msra.mxu1 %v13532_v60  ;;  %12441 = vmatprep.mubr.msk.f32.mxu1 %vm15206_vm0, %v15207_v1  ;;  %v5617_v60 = vld [vmem:[%s18006_s1] sm:$0xff] }
0x11cb   :  { %13534 = vmatprep.subr.bf16.mxu1 %v15205_v0 }
0x11ce   :  { %13536 = vmatpush3.bf16.msra.mxu1 %v13535_v8  ;;  %v13583_v8 = vpack.c.bf16 %v11026_v3, %v11025_v62 }
0x11cf   :  { %13537 = vmatprep.subr.bf16.mxu1 %v15205_v0 }
0x11d2   :  { %13539 = vmatpush3.bf16.msra.mxu1 %v13538_v41  ;;  %v13586_v41 = vpack.c.bf16 %v11028_v4, %v11027_v32  ;;  %v6746_v32 = vld [vmem:[%s18007_s27] sm:$0xff] }
0x11d3   :  { %13540 = vmatprep.subr.bf16.mxu1 %v15205_v0 }
0x11d6   :  { %13542 = vmatpush3.bf16.msra.mxu1 %v13541_v13  ;;  %v13589_v13 = vpack.c.bf16 %v11030_v12, %v11029_v9 }
0x11d7   :  { %13543 = vmatprep.subr.bf16.mxu1 %v15205_v0 }
0x11da   :  { %13545 = vmatpush3.bf16.msra.mxu1 %v13544_v37  ;;  %v13592_v37 = vpack.c.bf16 %v11032_v2, %v11031_v15  ;;  %v6830_v15 = vld [vmem:[%s18008_s2 + $0x8] sm:$0xff] }
0x11db   :  { %13546 = vmatprep.subr.bf16.mxu1 %v15205_v0 }
0x11de   :  { %13548 = vmatpush3.bf16.msra.mxu1 %v13547_v63  ;;  %v13595_v63 = vpack.c.bf16 %v11034_v10, %v11033_v46  ;;  %v6832_v46 = vld [vmem:[%s18008_s2 + $0x18] sm:$0xff] }
0x11df   :  { %13549 = vmatprep.subr.bf16.mxu1 %v15205_v0 }
0x11e2   :  { %13551 = vmatpush3.bf16.msra.mxu1 %v13550_v18  ;;  %v13598_v18 = vpack.c.bf16 %v11036_v17, %v11035_v16  ;;  %v6747_v16 = vld [vmem:[%s18007_s27 + $0x8] sm:$0xff] }
0x11e3   :  { %13552 = vmatprep.subr.bf16.mxu1 %v15205_v0 }
0x11e6   :  { %13554 = vmatpush3.bf16.msra.mxu1 %v13553_v39  ;;  %v11038_v39 = vld [vmem:[%s18005_s21 + $0x178] sm:$0xff] }
0x11e7   :  { %12479 = vmatprep.subr.mxu1 %v15207_v1  ;;  %v13601_v21 = vpack.c.bf16 %v11038_v39, %v11037_v20  ;;  %v6914_v20 = vld [vmem:[#allocation31] sm:$0xff] }
0x11e8   :  { %v11075_v39 = vld [vmem:[%s18009_s7 + $0x40] sm:$0xff] }
0x129c   :  { %v5613_v23 = vpop.f32.mrb[94].mxu1 }
0x129d   :  { %v16777_v19 = vadd.f32 %v10999_v22, %v5613_v23  ;;  %v12408_v6 = vpop.f32.mrb[95].mxu1  ;;  %v11022_v22 = vld [vmem:[%s18006_s1 + $0x10] sm:$0xff] }
0x129e   :  { %v6433_v6 = vld [vmem:[#allocation28 + $0x20] sm:$0xff] }
0x129f   :  { %12442 = vmatmul.mubr.f32.vlgmr.msra.gmra.mrb[96].mxu1 %v16777_v19  ;;  %12477 = vmatmul.mubr.f32.vlgmr.msra.gmra.mrb[110].mxu0 %v16777_v19  ;;  %v13628_v38 = vpack.c.bf16 %v6434_v25, %v6433_v6  ;;  %v11080_v6 = vld [vmem:[%s18009_s7 + $0x68] sm:$0xff] }
0x12a0   :  { %13605 = vmatpush3.bf16.msra.mxu0 %v13604_v26  ;;  %12561 = vmatprep.mubr.msk.f32.mxu0 %vm15206_vm0, %v15207_v1 }
0x12a1   :  { %13606 = vmatprep.subr.bf16.mxu0 %v15205_v0  ;;  %12481 = vmatprep.mubr.msk.f32.mxu1 %vm15206_vm0, %v15207_v1 }
0x12a4   :  { %13608 = vmatpush3.bf16.msra.mxu0 %v13607_v5  ;;  %v6354_v5 = vld [vmem:[#allocation28 + $0x8] sm:$0xff] }
0x12a5   :  { %13609 = vmatprep.subr.bf16.mxu0 %v15205_v0  ;;  %v13634_v42 = vpack.c.bf16 %v6354_v5, %v6353_v27 }
0x12a8   :  { %13611 = vmatpush3.bf16.msra.mxu0 %v13610_v40 }
0x12a9   :  { %13612 = vmatprep.subr.bf16.mxu0 %v15205_v0 }
0x12ac   :  { %13614 = vmatpush3.bf16.msra.mxu0 %v13613_v43  ;;  %v6435_v43 = vld [vmem:[#allocation28 + $0x30] sm:$0xff] }
0x12ad   :  { %13615 = vmatprep.subr.bf16.mxu0 %v15205_v0  ;;  %v13631_v51 = vpack.c.bf16 %v6436_v48, %v6435_v43  ;;  %v7262_v43 = vld [vmem:[#allocation31 + $0x28] sm:$0xff]  ;;  %v11082_v48 = vld [vmem:[%s18009_s7 + $0x78] sm:$0xff] }
0x12b0   :  { %13617 = vmatpush3.bf16.msra.mxu0 %v13616_v44  ;;  %v6355_v44 = vld [vmem:[#allocation28 + $0x10] sm:$0xff] }
0x12b1   :  { %13618 = vmatprep.subr.bf16.mxu0 %v15205_v0 }
0x12b4   :  { %13620 = vmatpush3.bf16.msra.mxu0 %v13619_v28  ;;  %v13637_v28 = vpack.c.bf16 %v6356_v50, %v6355_v44  ;;  %v6997_v50 = vld [vmem:[%s18009_s7] sm:$0xff] }
0x12b5   :  { %13621 = vmatprep.subr.bf16.mxu0 %v15205_v0 }
0x12b8   :  { %13623 = vmatpush3.bf16.msra.mxu0 %v13622_v47  ;;  %v13640_v47 = vpack.c.bf16 %v6660_v53, %v6659_v52 }
0x12b9   :  { %13624 = vmatprep.subr.bf16.mxu0 %v15205_v0 }
0x12bc   :  { %13626 = vmatpush3.bf16.msra.mxu0 %v13625_v56 }
0x12bd   :  { %12574 = vmatprep.subr.mxu0 %v15207_v1 }
0x12bf   :  { %12562 = vmatmul.mubr.f32.vlgmr.msra.gmra.mrb[112].mxu0 %v16777_v19 }
0x12c0   :  { %12576 = vmatprep.mubr.msk.f32.mxu0 %vm15206_vm0, %v15207_v1 }
0x1372   :  { %v5700_v36 = vpop.f32.mrb[96].mxu1  ;;  %v5789_v33 = vpop.f32.mrb[110].mxu0 }
0x1373   :  { %v12443_v57 = vpop.f32.mrb[97].mxu1  ;;  %v12478_v7 = vpop.f32.mrb[111].mxu0  ;;  %12480 = vmatpush3.msk.msra.mxu1 %vm5797_vm2, %v5789_v33  ;;  %v6661_v33 = vld [vmem:[#allocation28 + $0x50] sm:$0xff] }
0x1374   :  { %12482 = vmatmul.mubr.msk.f32.vlgmr.msra.gmra.mrb[98].mxu1 %vm5793_vm3, %v11001_v58  ;;  %12484 = vmatprep.subr.mxu1 %v15207_v1  ;;  %v6662_v57 = vld [vmem:[#allocation28 + $0x58] sm:$0xff] }
0x1375   :  { %12485 = vmatpush3.msk.msra.mxu1 %vm5797_vm2, %v5700_v36  ;;  %12486 = vmatprep.mubr.msk.f32.mxu1 %vm15206_vm0, %v15207_v1  ;;  %v6584_v36 = vld [vmem:[#allocation26 + $0x10] sm:$0xff]  ;;  %v13643_v7 = vpack.c.bf16 %v6662_v57, %v6661_v33  ;;  %v7002_v33 = vld [vmem:[%s18009_s7 + $0x28] sm:$0xff] }
0x1376   :  { %13579 = vmatprep.subr.bf16.mxu1 %v15205_v0 }
0x137c   :  { %12487 = vmatmul.mubr.msk.f32.vlgmr.msra.gmra.mrb[98].mxu1 %vm5793_vm3, %v5617_v60 }
0x137d   :  { %13581 = vmatpush3.bf16.msra.mxu1 %v13580_v61  ;;  %12521 = vmatprep.mubr.msk.f32.mxu1 %vm15206_vm0, %v15207_v1 }
0x137e   :  { %13582 = vmatprep.subr.bf16.mxu1 %v15205_v0 }
0x1381   :  { %13584 = vmatpush3.bf16.msra.mxu1 %v13583_v8 }
0x1382   :  { %13585 = vmatprep.subr.bf16.mxu1 %v15205_v0 }
0x1385   :  { %13587 = vmatpush3.bf16.msra.mxu1 %v13586_v41  ;;  %v11066_v41 = vld [vmem:[#allocation29] ss:$0 sm:$0xff] }
0x1386   :  { %13588 = vmatprep.subr.bf16.mxu1 %v15205_v0 }
0x1389   :  { %13590 = vmatpush3.bf16.msra.mxu1 %v13589_v13  ;;  %v6829_v13 = vld [vmem:[%s18008_s2] sm:$0xff] }
0x138a   :  { %13591 = vmatprep.subr.bf16.mxu1 %v15205_v0 }
0x138d   :  { %13593 = vmatpush3.bf16.msra.mxu1 %v13592_v37  ;;  %v6831_v37 = vld [vmem:[%s18008_s2 + $0x10] sm:$0xff] }
0x138e   :  { %13594 = vmatprep.subr.bf16.mxu1 %v15205_v0  ;;  %v13649_v17 = vpack.c.bf16 %v6832_v46, %v6831_v37  ;;  %v7447_v46 = vld [vmem:[%s18010_s25] sm:$0xff] }
0x1391   :  { %13596 = vmatpush3.bf16.msra.mxu1 %v13595_v63  ;;  %v13645_v63 = vpack.c.bf16 %v6830_v15, %v6829_v13  ;;  %v11095_v15 = vld [vmem:[%s18009_s7 + $0xb0] sm:$0xff] }
0x1392   :  { %v6198_v49 = vpop.f32.mrb[112].mxu0  ;;  %13597 = vmatprep.subr.bf16.mxu1 %v15205_v0 }
0x1393   :  { %v12563_v14 = vpop.f32.mrb[113].mxu0 }
0x1394   :  { %v11076_v14 = vld [vmem:[%s18009_s7 + $0x48] sm:$0xff] }
0x1395   :  { %13599 = vmatpush3.bf16.msra.mxu1 %v13598_v18 }
0x1396   :  { %13600 = vmatprep.subr.bf16.mxu1 %v15205_v0 }
0x1399   :  { %13602 = vmatpush3.bf16.msra.mxu1 %v13601_v21  ;;  %v11077_v21 = vld [vmem:[%s18009_s7 + $0x50] sm:$0xff] }
0x139a   :  { %12524 = vmatprep.subr.mxu1 %v15207_v1 }
0x139c   :  { %12522 = vmatmul.mubr.f32.vlgmr.msra.gmra.mrb[100].mxu1 %v16777_v19  ;;  %v11041_v19 = vld [vmem:[%s18006_s1 + $0x18] sm:$0xff] }
0x139d   :  { %12526 = vmatprep.mubr.msk.f32.mxu1 %vm15206_vm0, %v15207_v1 }
0x146f   :  { %v6032_v23 = vpop.f32.mrb[100].mxu1 }
0x1470   :  { %v12523_v26 = vpop.f32.mrb[101].mxu1  ;;  %12525 = vmatpush3.msk.msra.mxu1 %vm5797_vm2, %v6032_v23  ;;  %v11078_v23 = vld [vmem:[%s18009_s7 + $0x58] sm:$0xff] }
0x1471   :  { %12527 = vmatmul.mubr.msk.f32.vlgmr.msra.gmra.mrb[98].mxu1 %vm5793_vm3, %v11022_v22  ;;  %12564 = vmatprep.subr.mxu1 %v15207_v1  ;;  %v13661_v22 = vpack.c.bf16 %v11076_v14, %v11075_v39  ;;  %v13665_v26 = vpack.c.bf16 %v11078_v23, %v11077_v21  ;;  %v7549_v39 = vld [vmem:[#allocation34 + $0x8] sm:$0xff]  ;;  %v7550_v23 = vld [vmem:[#allocation34 + $0x10] sm:$0xff] }
0x1472   :  { %12565 = vmatpush3.msk.msra.mxu1 %vm5797_vm2, %v6198_v49  ;;  %12566 = vmatprep.mubr.msk.f32.mxu1 %vm15206_vm0, %v15207_v1 }
0x1473   :  { %12569 = vmatprep.subr.mxu1 %v15207_v1 }
0x1479   :  { %12567 = vmatmul.mubr.msk.f32.vlgmr.msra.gmra.mrb[98].mxu1 %vm5793_vm3, %v11041_v19  ;;  %v11079_v19 = vld [vmem:[%s18009_s7 + $0x60] sm:$0xff] }
0x147a   :  { %12571 = vmatprep.mubr.msk.f32.mxu1 %vm15206_vm0, %v15207_v1  ;;  %v13669_v25 = vpack.c.bf16 %v11080_v6, %v11079_v19  ;;  %v7448_v19 = vld [vmem:[%s18010_s25 + $0x8] sm:$0xff]  ;;  %v7449_v6 = vld [vmem:[%s18010_s25 + $0x10] sm:$0xff] }
0x154c   :  { %v6274_v40 = vpop.f32.mrb[98].mxu1 }
0x154d   :  { %v12568_v24 = vpop.f32.mrb[99].mxu1  ;;  %12570 = vmatpush3.msra.mxu1 %v6274_v40  ;;  %12575 = vmatpush3.msra.mxu0 %v6274_v40 }
0x154e   :  { %12572 = vmatmul.mubr.msk.f32.vlgmr.msra.gmra.mrb[102].mxu1 %vm4729_vm12, %v6279_v29  ;;  %12577 = vmatmul.mubr.msk.f32.vlgmr.msra.gmra.mrb[114].mxu0 %vm4729_vm12, %v6358_v35  ;;  %v6915_v35 = vld [vmem:[#allocation31 + $0x8] sm:$0xff] }
0x154f   :  { %13627 = vmatprep.subr.bf16.mxu1 %v15205_v0  ;;  %13633 = vmatprep.subr.bf16.mxu0 %v15205_v0  ;;  %v11081_v24 = vld [vmem:[%s18009_s7 + $0x70] sm:$0xff] }
0x1550   :  { %13629 = vmatpush3.bf16.msra.mxu1 %v13628_v38  ;;  %13635 = vmatpush3.bf16.msra.mxu0 %v13634_v42  ;;  %v7007_v38 = vld [vmem:[#allocation31 + $0x18] sm:$0xff]  ;;  %v7261_v42 = vld [vmem:[#allocation31 + $0x20] sm:$0xff]  ;;  %v13673_v44 = vpack.c.bf16 %v11082_v48, %v11081_v24 }
0x1551   :  { %13630 = vmatprep.subr.bf16.mxu1 %v15205_v0  ;;  %13636 = vmatprep.subr.bf16.mxu0 %v15205_v0 }
0x1552   :  { %12587 = vmatprep.mubr.msk.f32.mxu1 %vm15206_vm0, %v15207_v1  ;;  %12598 = vmatprep.mubr.msk.f32.mxu0 %vm15206_vm0, %v15207_v1 }
0x1554   :  { %13632 = vmatpush3.bf16.msra.mxu1 %v13631_v51  ;;  %13638 = vmatpush3.bf16.msra.mxu0 %v13637_v28  ;;  %v6998_v51 = vld [vmem:[%s18009_s7 + $0x8] sm:$0xff] }
0x1555   :  { %12601 = vmatprep.subr.mxu1 %v15207_v1  ;;  %13639 = vmatprep.subr.bf16.mxu0 %v15205_v0  ;;  %v13677_v28 = vpack.c.bf16 %v6998_v51, %v6997_v50  ;;  %v7653_v50 = vld [vmem:[%s18011_s10] sm:$0xff] }
0x1556   :  { %v11152_v51 = vld [vmem:[%s18011_s10 + $0x40] sm:$0xff] }
0x1621   :  { %v6349_v54 = vpop.f32.mrb[102].mxu1  ;;  %v6428_v55 = vpop.f32.mrb[114].mxu0 }
0x1622   :  { %v12578_v56 = vpop.f32.mrb[115].mxu0  ;;  %12588 = vmatmul.mubr.msk.f32.vlgmr.msra.gmra.mrb[104].mxu1 %vm4887_vm13, %v6428_v55  ;;  %12599 = vmatmul.mubr.msk.f32.vlgmr.msra.gmra.mrb[116].mxu0 %vm4887_vm13, %v6349_v54  ;;  %v12573_v58 = vpop.f32.mrb[103].mxu1  ;;  %v7000_v54 = vld [vmem:[%s18009_s7 + $0x18] sm:$0xff] }
0x1623   :  { %12602 = vmatpush3.msra.mxu1 %v6274_v40  ;;  %12603 = vmatprep.mubr.msk.f32.mxu1 %vm15206_vm0, %v15207_v1  ;;  %v7006_v40 = vld [vmem:[#allocation31 + $0x10] sm:$0xff] }
0x1624   :  { %13641 = vmatpush3.bf16.msra.mxu0 %v13640_v47  ;;  %12614 = vmatprep.mubr.msk.f32.mxu0 %vm15206_vm0, %v15207_v1  ;;  %v6999_v47 = vld [vmem:[%s18009_s7 + $0x10] sm:$0xff] }
0x1625   :  { %13642 = vmatprep.subr.bf16.mxu0 %v15205_v0  ;;  %v13681_v58 = vpack.c.bf16 %v7000_v54, %v6999_v47 }
0x1626   :  { %12604 = vmatmul.mubr.msk.f32.vlgmr.msra.gmra.mrb[106].mxu1 %vm4729_vm12, %v6584_v36  ;;  %v7001_v36 = vld [vmem:[%s18009_s7 + $0x20] sm:$0xff] }
0x1627   :  { %12619 = vmatprep.mubr.msk.f32.mxu1 %vm4729_vm12, %v6746_v32  ;;  %v11091_v32 = vld [vmem:[%s18009_s7 + $0x90] sm:$0xff] }
0x1628   :  { %13644 = vmatpush3.bf16.msra.mxu0 %v13643_v7  ;;  %v13685_v7 = vpack.c.bf16 %v7002_v33, %v7001_v36  ;;  %v7655_v36 = vld [vmem:[%s18011_s10 + $0x10] sm:$0xff] }
0x1629   :  { %v11154_v33 = vld [vmem:[%s18011_s10 + $0x50] sm:$0xff] }
0x16f5   :  { %v6506_v11 = vpop.f32.mrb[104].mxu1  ;;  %v6579_v59 = vpop.f32.mrb[116].mxu0 }
0x16f6   :  { %v6580_v60 = vadd.f32 %v6579_v59, %v6506_v11  ;;  %v12589_v61 = vpop.f32.mrb[105].mxu1  ;;  %v12600_v62 = vpop.f32.mrb[117].mxu0  ;;  %v7003_v59 = vld [vmem:[%s18009_s7 + $0x30] sm:$0xff] }
0x16f7   :  { %v11089_v62 = vld [vmem:[%s18009_s7 + $0x80] sm:$0xff] }
0x16f9   :  { %v6654_v3 = vpop.f32.mrb[106].mxu1 }
0x16fa   :  { %v12605_v8 = vpop.f32.mrb[107].mxu1  ;;  %12615 = vmatmul.mubr.msk.f32.vlgmr.msra.gmra.mrb[118].mxu0 %vm4887_vm13, %v6654_v3  ;;  %v11090_v3 = vld [vmem:[%s18009_s7 + $0x88] sm:$0xff] }
0x16fb   :  { %12637 = vmatprep.mubr.msk.f32.mxu0 %vm5543_vm15, %v6914_v20  ;;  %v13697_v8 = vpack.c.bf16 %v11090_v3, %v11089_v62  ;;  %v7548_v20 = vld [vmem:[#allocation34] sm:$0xff]  ;;  %v11120_v62 = vld [vmem:[%s18012_s5 + $0x100] sm:$0xff]  ;;  %v11122_v3 = vld [vmem:[%s18012_s5 + $0x110] sm:$0xff] }
0x17cd   :  { %v6732_v4 = vpop.f32.mrb[118].mxu0 }
0x17ce   :  { %v6736_v9 = vadd.f32 %v6732_v4, %v6580_v60  ;;  %v12616_v12 = vpop.f32.mrb[119].mxu0  ;;  %v7004_v60 = vld [vmem:[%s18009_s7 + $0x38] sm:$0xff] }
0x17cf   :  { %v13689_v61 = vpack.c.bf16 %v7004_v60, %v7003_v59  ;;  %v11092_v4 = vld [vmem:[%s18009_s7 + $0x98] sm:$0xff]  ;;  %v11094_v12 = vld [vmem:[%s18009_s7 + $0xa8] sm:$0xff]  ;;  %v11112_v60 = vld [vmem:[%s18011_s10 + $0x20] sm:$0xff] }
0x17d0   :  { %v6744_v2 = vadd.f32 %v11066_v41, %v6736_v9  ;;  %v13701_v41 = vpack.c.bf16 %v11092_v4, %v11091_v32  ;;  %v11093_v9 = vld [vmem:[%s18009_s7 + $0xa0] sm:$0xff]  ;;  %v11155_v59 = vld [vmem:[%s18011_s10 + $0x58] sm:$0xf]  ;;  %v11113_v4 = vld [vmem:[%s18011_s10 + $0x28] sm:$0xff] }
0x17d1   :  { %v13705_v13 = vpack.c.bf16 %v11094_v12, %v11093_v9  ;;  %v11127_v32 = vld [vmem:[%s18012_s5 + $0x138] sm:$0xff]  ;;  %v11114_v9 = vld [vmem:[%s18011_s10 + $0x30] sm:$0xff] }
0x17d2   :  { %v6745_v10 = vmax.f32 %v6744_v2, 0.0  ;;  %v11096_v2 = vld [vmem:[%s18009_s7 + $0xb8] sm:$0xff] }
0x17d3   :  { %v13709_v37 = vpack.c.bf16 %v11096_v2, %v11095_v15  ;;  %v11126_v15 = vld [vmem:[%s18012_s5 + $0x130] sm:$0xff]  ;;  %v11129_v2 = vld [vmem:[%s18012_s5 + $0x148] sm:$0xff] }
0x17d4   :  { %12617 = vmatprep.subr.mxu1 %v6745_v10 }
0x17d5   :  { %12618 = vmatpush3.msra.mxu1 %v6745_v10  ;;  %v11099_v10 = vld [vmem:[#allocation32] ss:$0 sm:$0xff] }
0x17d6   :  { %12620 = vmatmul.mubr.msk.f32.vlgmr.msra.gmra.mrb[108].mxu1 %vm4729_vm12, %v6747_v16  ;;  %13646 = vmatprep.subr.bf16.mxu1 %v13645_v63 }
0x17d7   :  { %13648 = vmatpush3.bf16.msra.mxu1 %v13645_v63 }
0x17d8   :  { %13650 = vmatprep.subr.bf16.mxu1 %v13649_v17 }
0x17db   :  { %13652 = vmatpush3.bf16.msra.mxu1 %v13649_v17 }
0x17dc   :  { %13662 = vmatprep.subr.bf16.mxu1 %v13661_v22 }
0x18a9   :  { %v12621_v18 = vpop.f32.mrb[108].mxu1 }
0x18aa   :  { %v6820_v49 = vpop.f32.mrb[109].mxu1 }
0x18ab   :  { %12630 = vmatprep.mubr.msk.f32.mxu1 %vm4887_vm13, %v6820_v49 }
0x18ac   :  { %12631 = vmatmul.mubr.msk.f32.vlgmr.msra.gmra.mrb[110].mxu1 %vm4887_vm13, %v12621_v18 }
0x18ad   :  { %13664 = vmatpush3.bf16.msra.mxu1 %v13661_v22  ;;  %v13717_v22 = vpack.c.bf16 %v7549_v39, %v7548_v20 }
0x18ae   :  { %13666 = vmatprep.subr.bf16.mxu1 %v13665_v26 }
0x18b1   :  { %13668 = vmatpush3.bf16.msra.mxu1 %v13665_v26  ;;  %v7551_v26 = vld [vmem:[#allocation34 + $0x18] sm:$0xff] }
0x18b2   :  { %13670 = vmatprep.subr.bf16.mxu1 %v13669_v25 }
0x18b5   :  { %13672 = vmatpush3.bf16.msra.mxu1 %v13669_v25  ;;  %v13721_v25 = vpack.c.bf16 %v7551_v26, %v7550_v23  ;;  %v11139_v23 = vld [vmem:[%s18012_s5 + $0x198] sm:$0xff] }
0x18b6   :  { %13674 = vmatprep.subr.bf16.mxu1 %v13673_v44 }
0x18b9   :  { %13676 = vmatpush3.bf16.msra.mxu1 %v13673_v44 }
0x18ba   :  { %13678 = vmatprep.subr.bf16.mxu1 %v13677_v28 }
0x197f   :  { %v12632_v27 = vpop.f32.mrb[110].mxu1 }
0x1980   :  { %v6905_v5 = vpop.f32.mrb[111].mxu1 }
0x1981   :  { %v13653_v29 = vpack.c.bf16 %v12632_v27, %v6905_v5  ;;  %v7552_v27 = vld [vmem:[#allocation34 + $0x20] sm:$0xff]  ;;  %v7553_v5 = vld [vmem:[#allocation34 + $0x28] sm:$0xff] }
0x1983   :  { %13654 = vmatprep.subr.bf16.mxu0 %v13653_v29 }
0x1984   :  { %13656 = vmatpush3.bf16.msra.mxu0 %v13653_v29 }
0x1985   :  { %13658 = vmatprep.subr.bf16.mxu0 %v13653_v29 }
0x1987   :  { %12638 = vmatmul.mubr.msk.f32.vlgmr.msra.gmra.mrb[120].mxu0 %vm5543_vm15, %v6915_v35  ;;  %v13725_v35 = vpack.c.bf16 %v7553_v5, %v7552_v27  ;;  %v11141_v27 = vld [vmem:[%s18012_s5 + $0x1a8] sm:$0xff]  ;;  %v11143_v5 = vld [vmem:[%s18012_s5 + $0x1b8] sm:$0xff] }
0x1988   :  { %13660 = vmatpush3.bf16.msra.mxu0 %v13653_v29  ;;  %12644 = vmatprep.mubr.msk.f32.mxu0 %vm5543_vm15, %v7006_v40  ;;  %v7554_v40 = vld [vmem:[#allocation34 + $0x30] sm:$0xff] }
0x1989   :  { %13694 = vmatprep.subr.bf16.mxu0 %v13653_v29 }
0x198b   :  { %12645 = vmatmul.mubr.msk.f32.vlgmr.msra.gmra.mrb[122].mxu0 %vm5543_vm15, %v7007_v38  ;;  %v7555_v38 = vld [vmem:[#allocation34 + $0x38] sm:$0xff] }
0x198c   :  { %13696 = vmatpush3.bf16.msra.mxu0 %v13653_v29  ;;  %12689 = vmatprep.mubr.msk.f32.mxu0 %vm5543_vm15, %v7261_v42  ;;  %v7450_v29 = vld [vmem:[%s18010_s25 + $0x18] sm:$0xff]  ;;  %v13729_v42 = vpack.c.bf16 %v7555_v38, %v7554_v40  ;;  %v11140_v40 = vld [vmem:[%s18012_s5 + $0x1a0] sm:$0xff]  ;;  %v11142_v38 = vld [vmem:[%s18012_s5 + $0x1b0] sm:$0xff] }
0x198f   :  { %12690 = vmatmul.mubr.msk.f32.vlgmr.msra.gmra.mrb[124].mxu0 %vm5543_vm15, %v7262_v43 }
0x1990   :  { %12715 = vmatprep.mubr.msk.f32.mxu0 %vm5543_vm15, %v7447_v46  ;;  %v11115_v46 = vld [vmem:[%s18011_s10 + $0x38] sm:$0xf] }
0x1a5a   :  { %v12639_v52 = vpop.f32.mrb[120].mxu0 }
0x1a5b   :  { %v6988_v53 = vpop.f32.mrb[121].mxu0 }
0x1a5e   :  { %v12646_v55 = vpop.f32.mrb[122].mxu0 }
0x1a5f   :  { %v7080_v56 = vpop.f32.mrb[123].mxu0 }
0x1a60   :  { %12663 = vmatprep.mubr.msk.f32.mxu1 %vm2311_vm6, %v7080_v56  ;;  %v7654_v56 = vld [vmem:[%s18011_s10 + $0x8] sm:$0xff] }
0x1a61   :  { %12664 = vmatmul.mubr.msk.f32.vlgmr.msra.gmra.mrb[112].mxu1 %vm2311_vm6, %v12646_v55 }
0x1a62   :  { %13680 = vmatpush3.bf16.msra.mxu1 %v13677_v28  ;;  %12682 = vmatprep.mubr.msk.f32.mxu1 %vm2311_vm6, %v6988_v53  ;;  %v12691_v57 = vpop.f32.mrb[124].mxu0 }
0x1a63   :  { %13682 = vmatprep.subr.bf16.mxu1 %v13681_v58  ;;  %v7335_v11 = vpop.f32.mrb[125].mxu0 }
0x1a66   :  { %13684 = vmatpush3.bf16.msra.mxu1 %v13681_v58  ;;  %v11153_v58 = vld [vmem:[%s18011_s10 + $0x48] sm:$0xff] }
0x1a67   :  { %13686 = vmatprep.subr.bf16.mxu1 %v13685_v7 }
0x1a6a   :  { %13688 = vmatpush3.bf16.msra.mxu1 %v13685_v7  ;;  %v11123_v7 = vld [vmem:[%s18012_s5 + $0x118] sm:$0xff] }
0x1a6b   :  { %13690 = vmatprep.subr.bf16.mxu1 %v13689_v61 }
0x1a6e   :  { %13692 = vmatpush3.bf16.msra.mxu1 %v13689_v61 }
0x1a6f   :  { %13698 = vmatprep.subr.bf16.mxu1 %v13697_v8 }
0x1a71   :  { %12683 = vmatmul.mubr.msk.f32.vlgmr.msra.gmra.mrb[112].mxu1 %vm2311_vm6, %v12639_v52 }
0x1a72   :  { %13700 = vmatpush3.bf16.msra.mxu1 %v13697_v8  ;;  %12708 = vmatprep.mubr.msk.f32.mxu1 %vm2311_vm6, %v7335_v11  ;;  %v7656_v11 = vld [vmem:[%s18011_s10 + $0x18] sm:$0xf]  ;;  %v11125_v8 = vld [vmem:[%s18012_s5 + $0x128] sm:$0xff] }
0x1a73   :  { %13702 = vmatprep.subr.bf16.mxu1 %v13701_v41  ;;  %v13753_v12 = vpack.c.bf16 %v11127_v32, %v11125_v8  ;;  %v7759_v8 = vld [vmem:[%s18012_s5 + $0x28] sm:$0xff]  ;;  %v7761_v32 = vld [vmem:[%s18012_s5 + $0x38] sm:$0xff] }
0x1a76   :  { %13704 = vmatpush3.bf16.msra.mxu1 %v13701_v41  ;;  %v13751_v41 = vpack.c.bf16 %v11122_v3, %v11120_v62 }
0x1a77   :  { %13706 = vmatprep.subr.bf16.mxu1 %v13705_v13 }
0x1a7a   :  { %13708 = vmatpush3.bf16.msra.mxu1 %v13705_v13  ;;  %v11124_v13 = vld [vmem:[%s18012_s5 + $0x120] sm:$0xff] }
0x1a7b   :  { %13710 = vmatprep.subr.bf16.mxu1 %v13709_v37 }
0x1a7e   :  { %13712 = vmatpush3.bf16.msra.mxu1 %v13709_v37  ;;  %v11131_v37 = vld [vmem:[%s18012_s5 + $0x158] sm:$0xff] }
0x1a81   :  { %12709 = vmatmul.mubr.msk.f32.vlgmr.msra.gmra.mrb[112].mxu1 %vm2311_vm6, %v12691_v57  ;;  %v11121_v57 = vld [vmem:[%s18012_s5 + $0x108] sm:$0xff] }
0x1a82   :  { %12779 = vmatprep.mubr.msk.f32.mxu1 %vm4887_vm13, %v11152_v51  ;;  %v13749_v61 = vpack.c.bf16 %v11123_v7, %v11121_v57 }
0x1b54   :  { %v12710_v63 = vpop.f32.mrb[112].mxu1 }
0x1b55   :  { %v7444_v16 = vadd.f32 %v12710_v63, %v11099_v10  ;;  %v7425_v17 = vpop.f32.mrb[113].mxu1  ;;  %v13757_v63 = vpack.c.bf16 %v11131_v37, %v11129_v2  ;;  %v7763_v37 = vld [vmem:[%s18012_s5 + $0x48] sm:$0xff] }
0x1b56   :  { %v7443_v18 = vadd.f32 %v11099_v10, %v7425_v17  ;;  %v13755_v10 = vpack.c.bf16 %v11126_v15, %v11124_v13  ;;  %v11130_v17 = vld [vmem:[%s18012_s5 + $0x150] sm:$0xff]  ;;  %v7758_v13 = vld [vmem:[%s18012_s5 + $0x20] sm:$0xff] }
0x1b57   :  { %v7446_v49 = vmax.f32 %v7444_v16, 0.0  ;;  %v11128_v16 = vld [vmem:[%s18012_s5 + $0x140] sm:$0xff]  ;;  %v7760_v15 = vld [vmem:[%s18012_s5 + $0x30] sm:$0xff] }
0x1b58   :  { %v7445_v14 = vmax.f32 %v7443_v18, 0.0  ;;  %v11133_v18 = vld [vmem:[%s18012_s5 + $0x168] sm:$0xff]  ;;  %v13759_v20 = vpack.c.bf16 %v11130_v17, %v11128_v16  ;;  %v7762_v16 = vld [vmem:[%s18012_s5 + $0x40] sm:$0xff]  ;;  %v7764_v17 = vld [vmem:[%s18012_s5 + $0x50] sm:$0xff] }
0x1b5a   :  { %v13713_v21 = vpack.c.bf16 %v7446_v49, %v7445_v14  ;;  %v11135_v49 = vld [vmem:[%s18012_s5 + $0x178] sm:$0xff]  ;;  %v11132_v14 = vld [vmem:[%s18012_s5 + $0x160] sm:$0xff] }
0x1b5b   :  { %v13761_v39 = vpack.c.bf16 %v11135_v49, %v11133_v18  ;;  %v7767_v49 = vld [vmem:[%s18012_s5 + $0x68] sm:$0xff] }
0x1b5c   :  { %13714 = vmatprep.subr.bf16.mxu0 %v13713_v21 }
0x1b5d   :  { %13716 = vmatpush3.bf16.msra.mxu0 %v13713_v21  ;;  %v11134_v21 = vld [vmem:[%s18012_s5 + $0x170] sm:$0xff] }
0x1b5e   :  { %13718 = vmatprep.subr.bf16.mxu0 %v13717_v22  ;;  %v13763_v26 = vpack.c.bf16 %v11134_v21, %v11132_v14  ;;  %v13791_v14 = vpack.c.bf16 %v7764_v17, %v7762_v16  ;;  %v11168_v16 = vld [vmem:[%s18012_s5 + $0x240] sm:$0xff]  ;;  %v11170_v17 = vld [vmem:[%s18012_s5 + $0x250] sm:$0xff] }
0x1b60   :  { %12716 = vmatmul.mubr.msk.f32.vlgmr.msra.gmra.mrb[126].mxu0 %vm5543_vm15, %v7448_v19 }
0x1b61   :  { %12718 = vmatprep.mubr.msk.f32.mxu0 %vm5543_vm15, %v7449_v6  ;;  %13720 = vmatpush3.bf16.msra.mxu0 %v13717_v22  ;;  %v11137_v22 = vld [vmem:[%s18012_s5 + $0x188] sm:$0xff]  ;;  %v11136_v6 = vld [vmem:[%s18012_s5 + $0x180] sm:$0xff] }
0x1b62   :  { %13722 = vmatprep.subr.bf16.mxu0 %v13721_v25  ;;  %v13765_v19 = vpack.c.bf16 %v11139_v23, %v11137_v22  ;;  %v7766_v22 = vld [vmem:[%s18012_s5 + $0x60] sm:$0xff]  ;;  %v7768_v23 = vld [vmem:[%s18012_s5 + $0x70] sm:$0xff] }
0x1b64   :  { %12719 = vmatmul.mubr.msk.f32.gmra.mrb[128].mxu0 %vm5543_vm15, %v7450_v29 }
0x1b65   :  { %13724 = vmatpush3.bf16.msra.mxu0 %v13721_v25  ;;  %v11138_v25 = vld [vmem:[%s18012_s5 + $0x190] sm:$0xff] }
0x1b66   :  { %13726 = vmatprep.subr.bf16.mxu0 %v13725_v35  ;;  %v13767_v29 = vpack.c.bf16 %v11138_v25, %v11136_v6  ;;  %v13795_v6 = vpack.c.bf16 %v7768_v23, %v7766_v22  ;;  %v11179_v22 = vld [vmem:[%s18012_s5 + $0x298] sm:$0xff] }
0x1b69   :  { %13728 = vmatpush3.bf16.msra.mxu0 %v13725_v35  ;;  %v13769_v35 = vpack.c.bf16 %v11143_v5, %v11141_v27  ;;  %v7770_v27 = vld [vmem:[%s18012_s5 + $0x80] sm:$0xff]  ;;  %v7772_v5 = vld [vmem:[%s18012_s5 + $0x90] sm:$0xff] }
0x1b6a   :  { %13730 = vmatprep.subr.bf16.mxu0 %v13729_v42 }
0x1b6d   :  { %13732 = vmatpush3.bf16.msra.mxu0 %v13729_v42  ;;  %v13771_v42 = vpack.c.bf16 %v11142_v38, %v11140_v40  ;;  %v13799_v40 = vpack.c.bf16 %v7772_v5, %v7770_v27  ;;  %v11180_v5 = vld [vmem:[%s18012_s5 + $0x2a0] sm:$0xff] }
0x1c33   :  { %v12717_v43 = vpop.f32.mrb[126].mxu0 }
0x1c34   :  { %v7529_v24 = vpop.f32.mrb[127].mxu0 }
0x1c35   :  { %12737 = vmatprep.mubr.msk.f32.mxu0 %vm2311_vm6, %v7529_v24  ;;  %v11147_v24 = vld [vmem:[%s18012_s5 + $0x1d8] sm:$0xff] }
0x1c36   :  { %12738 = vmatmul.mubr.msk.f32.vlgmr.msra.gmra.mrb[130].mxu0 %vm2311_vm6, %v12717_v43  ;;  %v11145_v43 = vld [vmem:[%s18012_s5 + $0x1c8] sm:$0xff] }
0x1c37   :  { %v12720_v48 = vpop.f32.mrb[128].mxu0 }
0x1c38   :  { %v7539_v44 = vpop.f32.mrb[129].mxu0 }
0x1c39   :  { %12740 = vmatprep.mubr.msk.f32.mxu0 %vm2311_vm6, %v7539_v44  ;;  %v11144_v44 = vld [vmem:[%s18012_s5 + $0x1c0] sm:$0xff] }
0x1c3a   :  { %12741 = vmatmul.mubr.msk.f32.gmra.mrb[132].mxu0 %vm2311_vm6, %v12720_v48  ;;  %v13773_v48 = vpack.c.bf16 %v11147_v24, %v11145_v43  ;;  %v7776_v43 = vld [vmem:[%s18012_s5 + $0xb0] sm:$0xff]  ;;  %v7779_v24 = vld [vmem:[%s18012_s5 + $0xc8] sm:$0xff] }
0x1c3b   :  { %12751 = vmatprep.mubr.msk.f32.mxu0 %vm4887_vm13, %v7653_v50  ;;  %v11146_v50 = vld [vmem:[%s18012_s5 + $0x1d0] sm:$0xff] }
0x1c3c   :  { %v13775_v51 = vpack.c.bf16 %v11146_v50, %v11144_v44 }
0x1d09   :  { %v12739_v28 = vpop.f32.mrb[130].mxu0 }
0x1d0a   :  { %v7634_v52 = vpop.f32.mrb[131].mxu0 }
0x1d0b   :  { %v13733_v53 = vpack.c.bf16 %v12739_v28, %v7634_v52  ;;  %v11149_v28 = vld [vmem:[%s18012_s5 + $0x1e8] sm:$0xff]  ;;  %v11151_v52 = vld [vmem:[%s18012_s5 + $0x1f8] sm:$0xff] }
0x1d0d   :  { %v12742_v47 = vpop.f32.mrb[132].mxu0  ;;  %13734 = vmatprep.subr.bf16.mxu0 %v13733_v53  ;;  %13814 = vmatprep.subr.bf16.mxu1 %v13733_v53 }
0x1d0e   :  { %v7644_v54 = vpop.f32.mrb[133].mxu0  ;;  %13736 = vmatpush3.bf16.msra.mxu0 %v13733_v53  ;;  %13816 = vmatpush3.bf16.msra.mxu1 %v13733_v53 }
0x1d0f   :  { %v13737_v55 = vpack.c.bf16 %v12742_v47, %v7644_v54  ;;  %v11148_v47 = vld [vmem:[%s18012_s5 + $0x1e0] sm:$0xff]  ;;  %v11150_v54 = vld [vmem:[%s18012_s5 + $0x1f0] sm:$0xff] }
0x1d11   :  { %13738 = vmatprep.subr.bf16.mxu0 %v13737_v55  ;;  %13818 = vmatprep.subr.bf16.mxu1 %v13737_v55 }
0x1d12   :  { %13740 = vmatpush3.bf16.msra.mxu0 %v13737_v55  ;;  %13820 = vmatpush3.bf16.msra.mxu1 %v13737_v55 }
0x1d13   :  { %13742 = vmatprep.subr.bf16.mxu0 %v13733_v53 }
0x1d15   :  { %12752 = vmatmul.mubr.msk.f32.vlgmr.msra.gmra.mrb[134].mxu0 %vm4887_vm13, %v7654_v56  ;;  %12780 = vmatmul.mubr.msk.f32.vlgmr.msra.gmra.mrb[114].mxu1 %vm4887_vm13, %v11153_v58  ;;  %v7755_v56 = vld [vmem:[%s18012_s5 + $0x8] sm:$0xff]  ;;  %v7757_v58 = vld [vmem:[%s18012_s5 + $0x18] sm:$0xff] }
0x1d16   :  { %13744 = vmatpush3.bf16.msra.mxu0 %v13733_v53  ;;  %12754 = vmatprep.mubr.msk.f32.mxu0 %vm4887_vm13, %v7655_v36  ;;  %v13777_v53 = vpack.c.bf16 %v11151_v52, %v11149_v28  ;;  %v13781_v36 = vpack.c.bf16 %v7757_v58, %v7755_v56  ;;  %v7780_v28 = vld [vmem:[%s18012_s5 + $0xd0] sm:$0xff]  ;;  %v7783_v52 = vld [vmem:[%s18012_s5 + $0xe8] sm:$0xff] }
0x1d17   :  { %13746 = vmatprep.subr.bf16.mxu0 %v13737_v55  ;;  %12782 = vmatprep.mubr.msk.f32.mxu1 %vm4887_vm13, %v11154_v33  ;;  %v7784_v56 = vld [vmem:[%s18012_s5 + $0xf0] sm:$0xff]  ;;  %v11161_v58 = vld [vmem:[%s18012_s5 + $0x208] sm:$0xff] }
0x1d19   :  { %12755 = vmatmul.mubr.msk.f32.gmra.mrb[136].mxu0 %vm4887_vm13, %v7656_v11  ;;  %12783 = vmatmul.mubr.msk.f32.gmra.mrb[116].mxu1 %vm4887_vm13, %v11155_v59 }
0x1d1a   :  { %13748 = vmatpush3.bf16.msra.mxu0 %v13737_v55  ;;  %12765 = vmatprep.mubr.msk.f32.mxu0 %vm4887_vm13, %v11112_v60  ;;  %v13779_v55 = vpack.c.bf16 %v11150_v54, %v11148_v47  ;;  %v7754_v60 = vld [vmem:[%s18012_s5] sm:$0xff] }
0x1d1b   :  { %13750 = vmatprep.subr.bf16.mxu0 %v13749_v61  ;;  %8457 = vmatprep.mubr.f32.mxu1 %v15207_v1  ;;  %v7756_v61 = vld [vmem:[%s18012_s5 + $0x10] sm:$0xff] }
0x1d1d   :  { %12766 = vmatmul.mubr.msk.f32.vlgmr.msra.gmra.mrb[138].mxu0 %vm4887_vm13, %v11113_v4 }
0x1d1e   :  { %12768 = vmatprep.mubr.msk.f32.mxu0 %vm4887_vm13, %v11114_v9  ;;  %13752 = vmatpush1.bf16.msra.mxu0 %v13751_v41  ;;  %v13783_v41 = vpack.c.bf16 %v7756_v61, %v7754_v60 }
0x1d1f   :  { %13754 = vmatprep.subr.bf16.mxu0 %v13753_v12  ;;  %v13785_v12 = vpack.c.bf16 %v7761_v32, %v7759_v8  ;;  %v11160_v8 = vld [vmem:[%s18012_s5 + $0x200] sm:$0xff]  ;;  %v11162_v32 = vld [vmem:[%s18012_s5 + $0x210] sm:$0xff] }
0x1d21   :  { %12769 = vmatmul.mubr.msk.f32.gmra.mrb[140].mxu0 %vm4887_vm13, %v11115_v46  ;;  %v7765_v46 = vld [vmem:[%s18012_s5 + $0x58] sm:$0xff] }
0x1d22   :  { %13756 = vmatpush1.bf16.msra.mxu0 %v13755_v10  ;;  %7985 = vmatprep.mubr.f32.mxu0 %v15207_v1  ;;  %v13787_v10 = vpack.c.bf16 %v7760_v15, %v7758_v13  ;;  %v11164_v15 = vld [vmem:[%s18012_s5 + $0x220] sm:$0xff] }
0x1d23   :  { %13758 = vmatprep.subr.bf16.mxu0 %v13757_v63  ;;  %v13789_v63 = vpack.c.bf16 %v7765_v46, %v7763_v37  ;;  %v11169_v37 = vld [vmem:[%s18012_s5 + $0x248] sm:$0xff]  ;;  %v11171_v46 = vld [vmem:[%s18012_s5 + $0x258] sm:$0xff] }
0x1d26   :  { %13760 = vmatpush1.bf16.msra.mxu0 %v13759_v20  ;;  %v7769_v20 = vld [vmem:[%s18012_s5 + $0x78] sm:$0xff] }
0x1d27   :  { %13762 = vmatprep.subr.bf16.mxu0 %v13761_v39  ;;  %v13793_v21 = vpack.c.bf16 %v7769_v20, %v7767_v49  ;;  %v11175_v49 = vld [vmem:[%s18012_s5 + $0x278] sm:$0xff] }
0x1d2a   :  { %13764 = vmatpush1.bf16.msra.mxu0 %v13763_v26  ;;  %v7771_v26 = vld [vmem:[%s18012_s5 + $0x88] sm:$0xff] }
0x1d2b   :  { %13766 = vmatprep.subr.bf16.mxu0 %v13765_v19  ;;  %v7773_v19 = vld [vmem:[%s18012_s5 + $0x98] sm:$0xff] }
0x1d2c   :  { %v13797_v25 = vpack.c.bf16 %v7773_v19, %v7771_v26  ;;  %v11176_v26 = vld [vmem:[%s18012_s5 + $0x280] sm:$0xff]  ;;  %v11178_v19 = vld [vmem:[%s18012_s5 + $0x290] sm:$0xff] }
0x1d2e   :  { %13768 = vmatpush1.bf16.msra.mxu0 %v13767_v29  ;;  %v7775_v29 = vld [vmem:[%s18012_s5 + $0xa8] sm:$0xff] }
0x1d2f   :  { %13770 = vmatprep.subr.bf16.mxu0 %v13769_v35  ;;  %v7777_v35 = vld [vmem:[%s18012_s5 + $0xb8] sm:$0xff] }
0x1d30   :  { %v13801_v38 = vpack.c.bf16 %v7777_v35, %v7775_v29  ;;  %v11182_v29 = vld [vmem:[%s18012_s5 + $0x2b0] sm:$0xff]  ;;  %v11185_v35 = vld [vmem:[%s18012_s5 + $0x2c8] sm:$0xff] }
0x1d32   :  { %13772 = vmatpush1.bf16.msra.mxu0 %v13771_v42  ;;  %v7774_v42 = vld [vmem:[%s18012_s5 + $0xa0] sm:$0xff] }
0x1d33   :  { %13774 = vmatprep.subr.bf16.mxu0 %v13773_v48  ;;  %v7781_v48 = vld [vmem:[%s18012_s5 + $0xd8] sm:$0xff]  ;;  %v13803_v44 = vpack.c.bf16 %v7776_v43, %v7774_v42  ;;  %v11184_v43 = vld [vmem:[%s18012_s5 + $0x2c0] sm:$0xff] }
0x1d34   :  { %v13805_v50 = vpack.c.bf16 %v7781_v48, %v7779_v24  ;;  %v11189_v24 = vld [vmem:[%s18012_s5 + $0x2e8] sm:$0xff]  ;;  %v11191_v48 = vld [vmem:[%s18012_s5 + $0x2f8] sm:$0xff] }
0x1d36   :  { %13776 = vmatpush1.bf16.msra.mxu0 %v13775_v51  ;;  %v7778_v51 = vld [vmem:[%s18012_s5 + $0xc0] sm:$0xff] }
0x1d37   :  { %13778 = vmatprep.subr.bf16.mxu0 %v13777_v53  ;;  %v7785_v53 = vld [vmem:[%s18012_s5 + $0xf8] sm:$0xff]  ;;  %v13807_v47 = vpack.c.bf16 %v7780_v28, %v7778_v51  ;;  %v11188_v51 = vld [vmem:[%s18012_s5 + $0x2e0] sm:$0xff]  ;;  %v11190_v28 = vld [vmem:[%s18012_s5 + $0x2f0] sm:$0xff] }
0x1d38   :  { %v13809_v54 = vpack.c.bf16 %v7785_v53, %v7783_v52  ;;  %v13851_v52 = vpack.c.bf16 %v11190_v28, %v11188_v51  ;;  %v8331_v53 = vld [vmem:[#allocation35] sm:$0x3] }
0x1d39   :  { %v8362_v51 = vld [vmem:[%s18014_s11 + $0x18] sm:$0xff] }
0x1d3a   :  { %13780 = vmatpush1.bf16.msra.mxu0 %v13779_v55  ;;  %v7782_v55 = vld [vmem:[%s18012_s5 + $0xe0] sm:$0xff] }
0x1d3b   :  { %13782 = vmatprep.subr.bf16.mxu0 %v13781_v36  ;;  %v11163_v36 = vld [vmem:[%s18012_s5 + $0x218] sm:$0xff]  ;;  %v13811_v60 = vpack.c.bf16 %v7784_v56, %v7782_v55 }
0x1d3c   :  { %v13821_v61 = vpack.c.bf16 %v11163_v36, %v11161_v58 }
0x1de8   :  { %v17000_v33 = vpop.f32.mrb[134].mxu0  ;;  %v17002_v57 = vpop.f32.mrb[114].mxu1 }
0x1de9   :  { %v17004_v7 = vpop.f32.mrb[135].mxu0  ;;  %v17006_v11 = vpop.f32.mrb[115].mxu1 }
0x1dec   :  { %v17008_v59 = vpop.f32.mrb[136].mxu0  ;;  %v17012_v62 = vpop.f32.mrb[116].mxu1 }
0x1ded   :  { %v17014_v3 = vpop.f32.mrb[137].mxu0  ;;  %v17018_v4 = vpop.f32.mrb[117].mxu1 }
0x1df0   :  { %v12767_v9 = vpop.f32.mrb[138].mxu0 }
0x1df1   :  { %v7869_v2 = vpop.f32.mrb[139].mxu0 }
0x1df2   :  { %7986 = vmatmul.mubr.f32.vlgmr.msra.gmra.mrb[142].mxu0 %v7869_v2  ;;  %v11166_v2 = vld [vmem:[%s18012_s5 + $0x230] sm:$0xff] }
0x1df3   :  { %13784 = vmatpush1.bf16.msra.mxu0 %v13783_v41  ;;  %7991 = vmatprep.mubr.f32.mxu0 %v15207_v1  ;;  %v11165_v41 = vld [vmem:[%s18012_s5 + $0x228] sm:$0xff] }
0x1df4   :  { %13786 = vmatprep.subr.bf16.mxu0 %v13785_v12  ;;  %v12770_v18 = vpop.f32.mrb[140].mxu0  ;;  %v13823_v12 = vpack.c.bf16 %v11162_v32, %v11160_v8 }
0x1df5   :  { %v7879_v39 = vpop.f32.mrb[141].mxu0 }
0x1df6   :  { %7992 = vmatmul.mubr.f32.gmra.mrb[144].mxu0 %v12767_v9  ;;  %v11167_v9 = vld [vmem:[%s18012_s5 + $0x238] sm:$0xff] }
0x1df7   :  { %13788 = vmatpush1.bf16.msra.mxu0 %v13787_v10  ;;  %7997 = vmatprep.mubr.f32.mxu0 %v15207_v1  ;;  %v13825_v13 = vpack.c.bf16 %v11167_v9, %v11165_v41  ;;  %v13827_v10 = vpack.c.bf16 %v11166_v2, %v11164_v15 }
0x1df8   :  { %13790 = vmatprep.subr.bf16.mxu0 %v13789_v63  ;;  %v13829_v63 = vpack.c.bf16 %v11171_v46, %v11169_v37 }
0x1dfa   :  { %7998 = vmatmul.mubr.f32.gmra.mrb[146].mxu0 %v7879_v39  ;;  %v11172_v39 = vld [vmem:[%s18012_s5 + $0x260] sm:$0xff] }
0x1dfb   :  { %13792 = vmatpush1.bf16.msra.mxu0 %v13791_v14  ;;  %8003 = vmatprep.mubr.f32.mxu0 %v15207_v1  ;;  %v11174_v14 = vld [vmem:[%s18012_s5 + $0x270] sm:$0xff] }
0x1dfc   :  { %13794 = vmatprep.subr.bf16.mxu0 %v13793_v21  ;;  %v11177_v21 = vld [vmem:[%s18012_s5 + $0x288] sm:$0xff] }
0x1dfd   :  { %v13837_v23 = vpack.c.bf16 %v11179_v22, %v11177_v21  ;;  %v8509_v21 = vld [vmem:[%s18013_s30 + $0x48] sm:$0xff] }
0x1dfe   :  { %8004 = vmatmul.mubr.f32.gmra.mrb[148].mxu0 %v12770_v18  ;;  %v11173_v18 = vld [vmem:[%s18012_s5 + $0x268] sm:$0xff] }
0x1dff   :  { %13796 = vmatpush1.bf16.msra.mxu0 %v13795_v6  ;;  %8074 = vmatprep.mubr.f32.mxu0 %v15207_v1  ;;  %v13833_v20 = vpack.c.bf16 %v11175_v49, %v11173_v18  ;;  %v11181_v6 = vld [vmem:[%s18012_s5 + $0x2a8] sm:$0xff] }
0x1e00   :  { %13798 = vmatprep.subr.bf16.mxu0 %v13797_v25  ;;  %v11183_v25 = vld [vmem:[%s18012_s5 + $0x2b8] sm:$0xff]  ;;  %v8513_v22 = vld [vmem:[%s18013_s30 + $0x68] sm:$0xff] }
0x1e01   :  { %v13841_v27 = vpack.c.bf16 %v11183_v25, %v11181_v6  ;;  %v8512_v6 = vld [vmem:[%s18013_s30 + $0x60] sm:$0xff]  ;;  %v8517_v25 = vld [vmem:[%s18013_s30 + $0x88] sm:$0xff] }
0x1e03   :  { %13800 = vmatpush1.bf16.msra.mxu0 %v13799_v40  ;;  %v11187_v40 = vld [vmem:[%s18012_s5 + $0x2d8] sm:$0xff] }
0x1e04   :  { %13802 = vmatprep.subr.bf16.mxu0 %v13801_v38  ;;  %v13843_v38 = vpack.c.bf16 %v11182_v29, %v11180_v5  ;;  %v13845_v42 = vpack.c.bf16 %v11187_v40, %v11185_v35  ;;  %v8516_v29 = vld [vmem:[%s18013_s30 + $0x80] sm:$0xff]  ;;  %v8525_v40 = vld [vmem:[%s18013_s30 + $0xc8] sm:$0xff] }
0x1e05   :  { %v8520_v35 = vld [vmem:[%s18013_s30 + $0xa0] sm:$0xff] }
0x1e07   :  { %13804 = vmatpush1.bf16.msra.mxu0 %v13803_v44 }
0x1e08   :  { %13806 = vmatprep.subr.bf16.mxu0 %v13805_v50  ;;  %v13849_v50 = vpack.c.bf16 %v11191_v48, %v11189_v24  ;;  %v8524_v24 = vld [vmem:[%s18013_s30 + $0xc0] sm:$0xff] }
0x1e09   :  { %v8528_v48 = vld [vmem:[%s18013_s30 + $0xe0] sm:$0xff] }
0x1e0a   :  { %v13877_v28 = vpack.c.bf16 %v8528_v48, %v8524_v24 }
0x1e0b   :  { %13808 = vmatpush1.bf16.msra.mxu0 %v13807_v47  ;;  %v8336_v47 = vrot.slane %v8331_v53, %v1720_v31 }
0x1e0c   :  { %13810 = vmatprep.subr.bf16.mxu0 %v13809_v54 }
0x1e0f   :  { %13812 = vmatpush1.bf16.msra.mxu0 %v13811_v60 }
0x1e10   :  { %13822 = vmatprep.subr.bf16.mxu0 %v13821_v61 }
0x1e12   :  { %8075 = vmatmul.mubr.f32.vlgmr.msra.gmra.mrb[142].mxu0 %v17004_v7  ;;  %v13831_v7 = vpack.c.bf16 %v11170_v17, %v11168_v16  ;;  %v8505_v16 = vld [vmem:[%s18013_s30 + $0x28] sm:$0xff] }
0x1e13   :  { %13824 = vmatpush1.bf16.msra.mxu0 %v13823_v12  ;;  %8080 = vmatprep.mubr.f32.mxu0 %v15207_v1 }
0x1e14   :  { %13826 = vmatprep.subr.bf16.mxu0 %v13825_v13 }
0x1e16   :  { %8081 = vmatmul.mubr.f32.gmra.mrb[144].mxu0 %v17000_v33  ;;  %v13835_v33 = vpack.c.bf16 %v11174_v14, %v11172_v39  ;;  %v8500_v39 = vld [vmem:[%s18013_s30] sm:$0xff] }
0x1e17   :  { %13828 = vmatpush1.bf16.msra.mxu0 %v13827_v10  ;;  %8086 = vmatprep.mubr.f32.mxu0 %v15207_v1  ;;  %v8504_v14 = vld [vmem:[%s18013_s30 + $0x20] sm:$0xff] }
0x1e18   :  { %13830 = vmatprep.subr.bf16.mxu0 %v13829_v63  ;;  %v8501_v63 = vld [vmem:[%s18013_s30 + $0x8] sm:$0xff] }
0x1e1a   :  { %8087 = vmatmul.mubr.f32.gmra.mrb[146].mxu0 %v17014_v3  ;;  %v13839_v3 = vpack.c.bf16 %v11178_v19, %v11176_v26  ;;  %v13867_v26 = vpack.c.bf16 %v8513_v22, %v8509_v21  ;;  %v8508_v19 = vld [vmem:[%s18013_s30 + $0x40] sm:$0xff]  ;;  %v8585_v21 = vld [vmem:[%s18013_s30 + $0x2a8] sm:$0xff] }
0x1e1b   :  { %13832 = vmatpush1.bf16.msra.mxu0 %v13831_v7  ;;  %8092 = vmatprep.mubr.f32.mxu0 %v15207_v1  ;;  %v13869_v45 = vpack.c.bf16 %v8512_v6, %v8508_v19  ;;  %v8589_v19 = vld [vmem:[%s18013_s30 + $0x2c8] sm:$0xff] }
0x1e1c   :  { %13834 = vmatprep.subr.bf16.mxu0 %v13833_v20  ;;  %v13863_v20 = vpack.c.bf16 %v8505_v16, %v8501_v63  ;;  %v8564_v63 = vld [vmem:[%s18013_s30 + $0x200] sm:$0xff]  ;;  %v8593_v6 = vld [vmem:[%s18013_s30 + $0x2e8] sm:$0xff] }
0x1e1d   :  { %v8568_v16 = vld [vmem:[%s18013_s30 + $0x220] sm:$0xff] }
0x1e1e   :  { %8093 = vmatmul.mubr.f32.gmra.mrb[148].mxu0 %v17008_v59  ;;  %v11186_v59 = vld [vmem:[%s18012_s5 + $0x2d0] sm:$0xff] }
0x1e1f   :  { %13836 = vmatpush1.bf16.msra.mxu0 %v13835_v33  ;;  %8298 = vmatprep.mubr.f32.mxu0 %v15207_v1  ;;  %v13847_v44 = vpack.c.bf16 %v11186_v59, %v11184_v43  ;;  %v8359_v33 = vld [vmem:[%s18014_s11] sm:$0xff]  ;;  %v13873_v43 = vpack.c.bf16 %v8520_v35, %v8516_v29  ;;  %v8601_v29 = vld [vmem:[%s18013_s30 + $0x328] sm:$0xff] }
0x1e20   :  { %13838 = vmatprep.subr.bf16.mxu0 %v13837_v23  ;;  %v13865_v23 = vpack.c.bf16 %v8504_v14, %v8500_v39  ;;  %v8576_v39 = vld [vmem:[%s18013_s30 + $0x260] sm:$0xff]  ;;  %v8581_v14 = vld [vmem:[%s18013_s30 + $0x288] sm:$0xff] }
0x1e23   :  { %13840 = vmatpush1.bf16.msra.mxu0 %v13839_v3  ;;  %v8521_v3 = vld [vmem:[%s18013_s30 + $0xa8] sm:$0xff] }
0x1e24   :  { %13842 = vmatprep.subr.bf16.mxu0 %v13841_v27  ;;  %v8360_v27 = vld [vmem:[%s18014_s11 + $0x8] sm:$0xff]  ;;  %v13871_v5 = vpack.c.bf16 %v8521_v3, %v8517_v25  ;;  %v13907_v3 = vpack.c.bf16 %v8593_v6, %v8589_v19  ;;  %v8542_v19 = vld [vmem:[%s18013_s30 + $0x150] sm:$0xff] }
0x1e25   :  { %v8546_v6 = vld [vmem:[%s18013_s30 + $0x170] sm:$0xff] }
0x1e27   :  { %13844 = vmatpush1.bf16.msra.mxu0 %v13843_v38  ;;  %v8529_v38 = vld [vmem:[%s18013_s30 + $0xe8] sm:$0xff] }
0x1e28   :  { %13846 = vmatprep.subr.bf16.mxu0 %v13845_v42  ;;  %v8361_v42 = vld [vmem:[%s18014_s11 + $0x10] sm:$0xff]  ;;  %v13875_v59 = vpack.c.bf16 %v8529_v38, %v8525_v40  ;;  %v8596_v38 = vld [vmem:[%s18013_s30 + $0x300] sm:$0xff] }
0x1e2b   :  { %13848 = vmatpush1.bf16.msra.mxu0 %v13847_v44  ;;  %v8533_v44 = vld [vmem:[%s18013_s30 + $0x108] sm:$0xff] }
0x1e2c   :  { %13850 = vmatprep.subr.bf16.mxu0 %v13849_v50  ;;  %v8537_v50 = vld [vmem:[%s18013_s30 + $0x128] sm:$0xff] }
0x1e2f   :  { %13852 = vmatpush1.bf16.msra.mxu0 %v13851_v52  ;;  %v13879_v52 = vpack.c.bf16 %v8537_v50, %v8533_v44  ;;  %v8604_v44 = vld [vmem:[%s18013_s30 + $0x340] sm:$0xff] }
0x1e30   :  { %v8608_v50 = vld [vmem:[%s18013_s30 + $0x360] sm:$0xff] }
0x1e32   :  { %8299 = vmatmul.mubr.f32.vlgmr.msra.gmra.mrb[142].mxu0 %v17006_v11  ;;  %v8340_v11 = vrot.slane %v8331_v53, %v1724_v34  ;;  %v8532_v53 = vld [vmem:[%s18013_s30 + $0x100] sm:$0xff] }
0x1e33   :  { %8304 = vmatprep.mubr.f32.mxu0 %v15207_v1 }
0x1e36   :  { %8305 = vmatmul.mubr.f32.gmra.mrb[144].mxu0 %v17002_v57 }
0x1e37   :  { %8310 = vmatprep.mubr.f32.mxu0 %v15207_v1 }
0x1e3a   :  { %8311 = vmatmul.mubr.f32.gmra.mrb[146].mxu0 %v17018_v4 }
0x1e3b   :  { %8316 = vmatprep.mubr.f32.mxu0 %v15207_v1 }
0x1e3e   :  { %8317 = vmatmul.mubr.f32.gmra.mrb[148].mxu0 %v17012_v62 }
0x1e3f   :  { %8939 = vmatprep.mubr.f32.mxu0 %v15207_v1 }
0x1f05   :  { %v8300_v54 = vpop.f32.mrb[142].mxu0 }
0x1f06   :  { %v8302_v55 = vpop.f32.mrb[143].mxu0  ;;  %v8343_v57 = vadd.f32 %v8336_v47, %v8300_v54  ;;  %v8541_v54 = vld [vmem:[%s18013_s30 + $0x148] sm:$0xff] }
0x1f07   :  { %v8344_v56 = vadd.f32 %v8340_v11, %v8302_v55  ;;  %v8363_v55 = vld [vmem:[%s18014_s11 + $0x20] sm:$0xff] }
0x1f08   :  { %v8351_v61 = vmax.f32 %v8343_v57, 0.0 }
0x1f09   :  { %v8306_v58 = vpop.f32.mrb[144].mxu0  ;;  %v8352_v62 = vmax.f32 %v8344_v56, 0.0 }
0x1f0a   :  { %v8345_v36 = vadd.f32 %v8336_v47, %v8306_v58  ;;  %v8308_v4 = vpop.f32.mrb[145].mxu0  ;;  %v8540_v58 = vld [vmem:[%s18013_s30 + $0x140] sm:$0xff] }
0x1f0b   :  { %v8346_v60 = vadd.f32 %v8340_v11, %v8308_v4  ;;  %v8549_v4 = vld [vmem:[%s18013_s30 + $0x188] sm:$0xff] }
0x1f0c   :  { %v8353_v8 = vmax.f32 %v8345_v36, 0.0  ;;  %v8544_v36 = vld [vmem:[%s18013_s30 + $0x160] sm:$0xff] }
0x1f0d   :  { %v8354_v32 = vmax.f32 %v8346_v60, 0.0  ;;  %v8312_v41 = vpop.f32.mrb[146].mxu0  ;;  %v8553_v60 = vld [vmem:[%s18013_s30 + $0x1a8] sm:$0xff] }
0x1f0e   :  { %v13855_v9 = vpack.c.bf16 %v8353_v8, %v8351_v61  ;;  %v8314_v31 = vpop.f32.mrb[147].mxu0  ;;  %v8347_v13 = vadd.f32 %v8336_v47, %v8312_v41  ;;  %v8364_v61 = vld [vmem:[%s18014_s11 + $0x28] sm:$0xff]  ;;  %v13885_v8 = vpack.c.bf16 %v8544_v36, %v8540_v58  ;;  %v8552_v41 = vld [vmem:[%s18013_s30 + $0x1a0] sm:$0xff] }
0x1f0f   :  { %v13853_v12 = vpack.c.bf16 %v8354_v32, %v8352_v62  ;;  %v8348_v30 = vadd.f32 %v8340_v11, %v8314_v31  ;;  %v13887_v62 = vpack.c.bf16 %v8553_v60, %v8549_v4  ;;  %v8548_v32 = vld [vmem:[%s18013_s30 + $0x180] sm:$0xff]  ;;  %v8561_v31 = vld [vmem:[%s18013_s30 + $0x1e8] sm:$0xff]  ;;  %v8510_v4 = vld [vmem:[%s18013_s30 + $0x50] sm:$0xff] }
0x1f10   :  { %v8355_v46 = vmax.f32 %v8347_v13, 0.0  ;;  %v13889_v13 = vpack.c.bf16 %v8552_v41, %v8548_v32  ;;  %v8514_v60 = vld [vmem:[%s18013_s30 + $0x70] sm:$0xff] }
0x1f11   :  { %v8318_v34 = vpop.f32.mrb[148].mxu0  ;;  %13854 = vmatprep.subr.bf16.mxu1 %v13853_v12  ;;  %v8356_v17 = vmax.f32 %v8348_v30, 0.0  ;;  %v8365_v12 = vld [vmem:[%s18014_s11 + $0x30] sm:$0xff]  ;;  %v13925_v32 = vpack.c.bf16 %v8514_v60, %v8510_v4 }
0x1f12   :  { %v8349_v15 = vadd.f32 %v8336_v47, %v8318_v34  ;;  %v8320_v2 = vpop.f32.mrb[149].mxu0  ;;  %13856 = vmatpush1.bf16.msra.mxu1 %v13855_v9  ;;  %v8536_v47 = vld [vmem:[%s18013_s30 + $0x120] sm:$0xff]  ;;  %v8557_v9 = vld [vmem:[%s18013_s30 + $0x1c8] sm:$0xff]  ;;  %v8574_v4 = vld [vmem:[%s18013_s30 + $0x250] sm:$0xff] }
0x1f13   :  { %v8350_v37 = vadd.f32 %v8340_v11, %v8320_v2  ;;  %v8545_v11 = vld [vmem:[%s18013_s30 + $0x168] sm:$0xff]  ;;  %v13881_v57 = vpack.c.bf16 %v8536_v47, %v8532_v53  ;;  %v13891_v30 = vpack.c.bf16 %v8561_v31, %v8557_v9  ;;  %v8556_v34 = vld [vmem:[%s18013_s30 + $0x1c0] sm:$0xff]  ;;  %v8502_v47 = vld [vmem:[%s18013_s30 + $0x10] sm:$0xff] }
0x1f14   :  { %v8357_v10 = vmax.f32 %v8349_v15, 0.0  ;;  %v13883_v56 = vpack.c.bf16 %v8545_v11, %v8541_v54  ;;  %v8560_v15 = vld [vmem:[%s18013_s30 + $0x1e0] sm:$0xff]  ;;  %v8565_v2 = vld [vmem:[%s18013_s30 + $0x208] sm:$0xff]  ;;  %v8506_v54 = vld [vmem:[%s18013_s30 + $0x30] sm:$0xff] }
0x1f15   :  { %v8358_v18 = vmax.f32 %v8350_v37, 0.0  ;;  %v8569_v37 = vld [vmem:[%s18013_s30 + $0x228] sm:$0xff]  ;;  %v8511_v11 = vld [vmem:[%s18013_s30 + $0x58] sm:$0xff]  ;;  %v8518_v31 = vld [vmem:[%s18013_s30 + $0x90] sm:$0xff] }
0x1f16   :  { %v13860_v49 = vpack.c.bf16 %v8357_v10, %v8355_v46  ;;  %v13893_v46 = vpack.c.bf16 %v8560_v15, %v8556_v34  ;;  %v13895_v10 = vpack.c.bf16 %v8569_v37, %v8565_v2  ;;  %v8578_v60 = vld [vmem:[%s18013_s30 + $0x270] sm:$0xff] }
0x1f17   :  { %v13857_v7 = vpack.c.bf16 %v8358_v18, %v8356_v17  ;;  %v8573_v17 = vld [vmem:[%s18013_s30 + $0x248] sm:$0xff] }
0x1f18   :  { %v8577_v18 = vld [vmem:[%s18013_s30 + $0x268] sm:$0xff] }
0x1f19   :  { %13859 = vmatprep.subr.msk.bf16.mxu1 %vm15689_vm4, %v13857_v7  ;;  %v13899_v7 = vpack.c.bf16 %v8577_v18, %v8573_v17 }
0x1f1a   :  { %13862 = vmatpush1.bf16.msk.msra.mxu1 %vm15689_vm4, %v13860_v49  ;;  %v13897_v49 = vpack.c.bf16 %v8568_v16, %v8564_v63  ;;  %v8535_v63 = vld [vmem:[%s18013_s30 + $0x118] sm:$0xff] }
0x1f1b   :  { %13864 = vmatprep.subr.bf16.mxu1 %v13863_v20  ;;  %v8572_v20 = vld [vmem:[%s18013_s30 + $0x240] sm:$0xff]  ;;  %v8539_v16 = vld [vmem:[%s18013_s30 + $0x138] sm:$0xff] }
0x1f1c   :  { %v13901_v22 = vpack.c.bf16 %v8576_v39, %v8572_v20  ;;  %v8534_v20 = vld [vmem:[%s18013_s30 + $0x110] sm:$0xff] }
0x1f1d   :  { %11194 = vmatmul.mubr.msk.f32.vlgmr.msra.gmra.mrb[118].mxu1 %vm799_vm5, %v8359_v33  ;;  %v13903_v33 = vpack.c.bf16 %v8585_v21, %v8581_v14  ;;  %v8538_v39 = vld [vmem:[%s18013_s30 + $0x130] sm:$0xff]  ;;  %v8543_v14 = vld [vmem:[%s18013_s30 + $0x158] sm:$0xff] }
0x1f1e   :  { %8463 = vmatprep.mubr.f32.mxu1 %v15207_v1  ;;  %13866 = vmatpush1.bf16.msra.mxu1 %v13865_v23  ;;  %v8580_v23 = vld [vmem:[%s18013_s30 + $0x280] sm:$0xff]  ;;  %v8547_v21 = vld [vmem:[%s18013_s30 + $0x178] sm:$0xff] }
0x1f1f   :  { %13868 = vmatprep.subr.bf16.mxu1 %v13867_v26  ;;  %v8584_v26 = vld [vmem:[%s18013_s30 + $0x2a0] sm:$0xff] }
0x1f20   :  { %v13905_v25 = vpack.c.bf16 %v8584_v26, %v8580_v23  ;;  %v13939_v26 = vpack.c.bf16 %v8547_v21, %v8543_v14  ;;  %v8611_v14 = vld [vmem:[%s18013_s30 + $0x378] sm:$0xff] }
0x1f21   :  { %11195 = vmatmul.mubr.msk.f32.gmra.mrb[120].mxu1 %vm799_vm5, %v8360_v27  ;;  %v8588_v27 = vld [vmem:[%s18013_s30 + $0x2c0] sm:$0xff] }
0x1f22   :  { %8469 = vmatprep.mubr.f32.mxu1 %v15207_v1  ;;  %13870 = vmatpush1.bf16.msra.mxu1 %v13869_v45  ;;  %v8592_v45 = vld [vmem:[%s18013_s30 + $0x2e0] sm:$0xff] }
0x1f23   :  { %13872 = vmatprep.subr.bf16.mxu1 %v13871_v5  ;;  %v8597_v5 = vld [vmem:[%s18013_s30 + $0x308] sm:$0xff]  ;;  %v13909_v35 = vpack.c.bf16 %v8592_v45, %v8588_v27  ;;  %v13941_v45 = vpack.c.bf16 %v8546_v6, %v8542_v19  ;;  %v8610_v19 = vld [vmem:[%s18013_s30 + $0x370] sm:$0xff] }
0x1f24   :  { %v13911_v40 = vpack.c.bf16 %v8601_v29, %v8597_v5 }
0x1f25   :  { %11196 = vmatmul.mubr.msk.f32.gmra.mrb[122].mxu1 %vm799_vm5, %v8361_v42  ;;  %v8600_v42 = vld [vmem:[%s18013_s30 + $0x320] sm:$0xff] }
0x1f26   :  { %8475 = vmatprep.mubr.f32.mxu1 %v15207_v1  ;;  %13874 = vmatpush1.bf16.msra.mxu1 %v13873_v43  ;;  %v8605_v43 = vld [vmem:[%s18013_s30 + $0x348] sm:$0xff]  ;;  %v13913_v24 = vpack.c.bf16 %v8600_v42, %v8596_v38  ;;  %v8559_v38 = vld [vmem:[%s18013_s30 + $0x1d8] sm:$0xff] }
0x1f27   :  { %13876 = vmatprep.subr.bf16.mxu1 %v13875_v59  ;;  %v8609_v59 = vld [vmem:[%s18013_s30 + $0x368] sm:$0xff]  ;;  %v8563_v42 = vld [vmem:[%s18013_s30 + $0x1f8] sm:$0xff] }
0x1f28   :  { %v13915_v48 = vpack.c.bf16 %v8609_v59, %v8605_v43 }
0x1f29   :  { %11197 = vmatmul.mubr.msk.f32.gmra.mrb[124].mxu1 %vm799_vm5, %v8362_v51  ;;  %v13917_v51 = vpack.c.bf16 %v8608_v50, %v8604_v44  ;;  %v8558_v44 = vld [vmem:[%s18013_s30 + $0x1d0] sm:$0xff] }
0x1f2a   :  { %8481 = vmatprep.mubr.f32.mxu1 %v15207_v1  ;;  %13878 = vmatpush1.bf16.msra.mxu1 %v13877_v28  ;;  %v8503_v28 = vld [vmem:[%s18013_s30 + $0x18] sm:$0xff]  ;;  %v8562_v50 = vld [vmem:[%s18013_s30 + $0x1f0] sm:$0xff] }
0x1f2b   :  { %13880 = vmatprep.subr.bf16.mxu1 %v13879_v52  ;;  %v8507_v52 = vld [vmem:[%s18013_s30 + $0x38] sm:$0xff] }
0x1f2c   :  { %v13919_v53 = vpack.c.bf16 %v8507_v52, %v8503_v28  ;;  %v8571_v28 = vld [vmem:[%s18013_s30 + $0x238] sm:$0xff]  ;;  %v13949_v52 = vpack.c.bf16 %v8562_v50, %v8558_v44  ;;  %v11244_v44 = vld [vmem:[%s18015_s19 + $0x1c8] sm:$0xff] }
0x1f2d   :  { %11198 = vmatmul.mubr.msk.f32.gmra.mrb[126].mxu1 %vm799_vm5, %v8363_v55  ;;  %v8515_v55 = vld [vmem:[%s18013_s30 + $0x78] sm:$0xff] }
0x1f2e   :  { %8487 = vmatprep.mubr.f32.mxu1 %v15207_v1  ;;  %13882 = vmatpush1.bf16.msra.mxu1 %v13881_v57  ;;  %v13923_v36 = vpack.c.bf16 %v8515_v55, %v8511_v11  ;;  %v8575_v11 = vld [vmem:[%s18013_s30 + $0x258] sm:$0xff] }
0x1f2f   :  { %13884 = vmatprep.subr.bf16.mxu1 %v13883_v56  ;;  %v13921_v56 = vpack.c.bf16 %v8506_v54, %v8502_v47  ;;  %v8566_v47 = vld [vmem:[%s18013_s30 + $0x210] sm:$0xff]  ;;  %v8579_v55 = vld [vmem:[%s18013_s30 + $0x278] sm:$0xff] }
0x1f30   :  { %v8570_v54 = vld [vmem:[%s18013_s30 + $0x230] sm:$0xff] }
0x1f31   :  { %11199 = vmatmul.mubr.msk.f32.gmra.mrb[128].mxu1 %vm799_vm5, %v8364_v61  ;;  %v8519_v61 = vld [vmem:[%s18013_s30 + $0x98] sm:$0xff] }
0x1f32   :  { %8493 = vmatprep.mubr.f32.mxu1 %v15207_v1  ;;  %13886 = vmatpush1.bf16.msra.mxu1 %v13885_v8  ;;  %v8523_v8 = vld [vmem:[%s18013_s30 + $0xb8] sm:$0xff] }
0x1f33   :  { %13888 = vmatprep.subr.bf16.mxu1 %v13887_v62  ;;  %v13927_v9 = vpack.c.bf16 %v8523_v8, %v8519_v61  ;;  %v8587_v61 = vld [vmem:[%s18013_s30 + $0x2b8] sm:$0xff]  ;;  %v13957_v8 = vpack.c.bf16 %v8578_v60, %v8574_v4  ;;  %v11263_v60 = vld [vmem:[%s18015_s19 + $0x260] sm:$0xff] }
0x1f34   :  { %v17343_v50 = vld [vmem:[#allocation37 + $0x38] sm:$0xff] }
0x1f35   :  { %11200 = vmatmul.mubr.msk.f32.gmra.mrb[130].mxu1 %vm799_vm5, %v8365_v12  ;;  %v8522_v12 = vld [vmem:[%s18013_s30 + $0xb0] sm:$0xff] }
0x1f36   :  { %13890 = vmatpush1.bf16.msra.mxu1 %v13889_v13  ;;  %v8527_v13 = vld [vmem:[%s18013_s30 + $0xd8] sm:$0xff]  ;;  %v13929_v15 = vpack.c.bf16 %v8522_v12, %v8518_v31  ;;  %v8586_v31 = vld [vmem:[%s18013_s30 + $0x2b0] sm:$0xff] }
0x1f37   :  { %13892 = vmatprep.subr.bf16.mxu1 %v13891_v30  ;;  %v8531_v30 = vld [vmem:[%s18013_s30 + $0xf8] sm:$0xff] }
0x1f38   :  { %v13931_v37 = vpack.c.bf16 %v8531_v30, %v8527_v13  ;;  %v8591_v12 = vld [vmem:[%s18013_s30 + $0x2d8] sm:$0xff] }
0x1f39   :  { %v8595_v13 = vld [vmem:[%s18013_s30 + $0x2f8] sm:$0xff] }
0x1f3a   :  { %13894 = vmatpush1.bf16.msra.mxu1 %v13893_v46  ;;  %v8526_v46 = vld [vmem:[%s18013_s30 + $0xd0] sm:$0xff] }
0x1f3b   :  { %13896 = vmatprep.subr.bf16.mxu1 %v13895_v10  ;;  %v8530_v10 = vld [vmem:[%s18013_s30 + $0xf0] sm:$0xff] }
0x1f3c   :  { %v13933_v18 = vpack.c.bf16 %v8530_v10, %v8526_v46  ;;  %v8594_v46 = vld [vmem:[%s18013_s30 + $0x2f0] sm:$0xff]  ;;  %v8599_v10 = vld [vmem:[%s18013_s30 + $0x318] sm:$0xff] }
0x1f3e   :  { %13898 = vmatpush1.bf16.msra.mxu1 %v13897_v49 }
0x1f3f   :  { %13900 = vmatprep.subr.bf16.mxu1 %v13899_v7  ;;  %v13935_v7 = vpack.c.bf16 %v8539_v16, %v8535_v63  ;;  %v8603_v63 = vld [vmem:[%s18013_s30 + $0x338] sm:$0xff] }
0x1f42   :  { %13902 = vmatpush1.bf16.msra.mxu1 %v13901_v22 }
0x1f43   :  { %13904 = vmatprep.subr.bf16.mxu1 %v13903_v33  ;;  %v13937_v33 = vpack.c.bf16 %v8538_v39, %v8534_v20  ;;  %v8602_v20 = vld [vmem:[%s18013_s30 + $0x330] sm:$0xff]  ;;  %v8607_v39 = vld [vmem:[%s18013_s30 + $0x358] sm:$0xff] }
0x1f46   :  { %13906 = vmatpush1.bf16.msra.mxu1 %v13905_v25  ;;  %v8551_v25 = vld [vmem:[%s18013_s30 + $0x198] sm:$0xff] }
0x1f47   :  { %13908 = vmatprep.subr.bf16.mxu1 %v13907_v3  ;;  %v8555_v3 = vld [vmem:[%s18013_s30 + $0x1b8] sm:$0xff] }
0x1f48   :  { %v13943_v29 = vpack.c.bf16 %v8555_v3, %v8551_v25 }
0x1f4a   :  { %13910 = vmatpush1.bf16.msra.mxu1 %v13909_v35  ;;  %v8550_v35 = vld [vmem:[%s18013_s30 + $0x190] sm:$0xff] }
0x1f4b   :  { %13912 = vmatprep.subr.bf16.mxu1 %v13911_v40  ;;  %v8554_v40 = vld [vmem:[%s18013_s30 + $0x1b0] sm:$0xff] }
0x1f4c   :  { %v13945_v59 = vpack.c.bf16 %v8554_v40, %v8550_v35 }
0x1f4e   :  { %13914 = vmatpush1.bf16.msra.mxu1 %v13913_v24 }
0x1f4f   :  { %13916 = vmatprep.subr.bf16.mxu1 %v13915_v48  ;;  %v13947_v48 = vpack.c.bf16 %v8563_v42, %v8559_v38 }
0x1f52   :  { %13918 = vmatpush1.bf16.msra.mxu1 %v13917_v51  ;;  %v8567_v51 = vld [vmem:[%s18013_s30 + $0x218] sm:$0xff] }
0x1f53   :  { %13920 = vmatprep.subr.bf16.mxu1 %v13919_v53  ;;  %v13951_v53 = vpack.c.bf16 %v8571_v28, %v8567_v51  ;;  %v17345_v51 = vld [vmem:[#allocation37] sm:$0xff] }
0x1ff0   :  { %v17188_v57 = vpop.f32.mrb[118].mxu1 }
0x1ff1   :  { %v17190_v58 = vpop.f32.mrb[119].mxu1 }
0x1ff2   :  { %11201 = vmatprep.mubr.msk.f32.mxu1 %vm3075_vm7, %v17190_v58 }
0x1ff3   :  { %8698 = vmatmul.mubr.f32.vlgmr.msra.gmra.mrb[132].mxu1 %v17188_v57 }
0x1ff4   :  { %13922 = vmatpush1.bf16.msra.mxu1 %v13921_v56  ;;  %v17199_v62 = vpop.f32.mrb[120].mxu1  ;;  %v13953_v56 = vpack.c.bf16 %v8570_v54, %v8566_v47  ;;  %v11262_v47 = vld [vmem:[%s18015_s19 + $0x258] sm:$0xff]  ;;  %v11245_v54 = vld [vmem:[%s18015_s19 + $0x1d0] sm:$0xff] }
0x1ff5   :  { %v17201_v41 = vpop.f32.mrb[121].mxu1  ;;  %13924 = vmatprep.subr.bf16.mxu1 %v13923_v36  ;;  %v13955_v36 = vpack.c.bf16 %v8579_v55, %v8575_v11  ;;  %v11246_v11 = vld [vmem:[%s18015_s19 + $0x1d8] sm:$0xff] }
0x1ff6   :  { %11202 = vmatprep.mubr.msk.f32.mxu1 %vm3075_vm7, %v17201_v41  ;;  %v17358_v55 = vld [vmem:[#allocation37 + $0x40] sm:$0xff]  ;;  %v14029_v4 = vpack.c.bf16 %v11246_v11, %v11245_v54 }
0x1ff7   :  { %8704 = vmatmul.mubr.f32.gmra.mrb[134].mxu1 %v17199_v62 }
0x1ff8   :  { %13926 = vmatpush1.bf16.msra.mxu1 %v13925_v32  ;;  %v17210_v34 = vpop.f32.mrb[122].mxu1 }
0x1ff9   :  { %v17212_v2 = vpop.f32.mrb[123].mxu1  ;;  %13928 = vmatprep.subr.bf16.mxu1 %v13927_v9  ;;  %v8582_v9 = vld [vmem:[%s18013_s30 + $0x290] sm:$0xff] }
0x1ffa   :  { %11203 = vmatprep.mubr.msk.f32.mxu1 %vm3075_vm7, %v17212_v2  ;;  %v13961_v30 = vpack.c.bf16 %v8586_v31, %v8582_v9  ;;  %v17375_v9 = vld [vmem:[#allocation37 + $0x10] sm:$0xff] }
0x1ffb   :  { %8710 = vmatmul.mubr.f32.gmra.mrb[136].mxu1 %v17210_v34 }
0x1ffc   :  { %13930 = vmatpush1.bf16.msra.mxu1 %v13929_v15  ;;  %v17221_v17 = vpop.f32.mrb[124].mxu1  ;;  %v13963_v15 = vpack.c.bf16 %v8595_v13, %v8591_v12  ;;  %v11265_v13 = vld [vmem:[%s18015_s19 + $0x270] sm:$0xff] }
0x1ffd   :  { %v17223_v49 = vpop.f32.mrb[125].mxu1  ;;  %13932 = vmatprep.subr.bf16.mxu1 %v13931_v37  ;;  %v8590_v37 = vld [vmem:[%s18013_s30 + $0x2d0] sm:$0xff] }
0x1ffe   :  { %11204 = vmatprep.mubr.msk.f32.mxu1 %vm3075_vm7, %v17223_v49  ;;  %v13965_v16 = vpack.c.bf16 %v8594_v46, %v8590_v37  ;;  %v11250_v37 = vld [vmem:[%s18015_s19 + $0x1f8] sm:$0xff]  ;;  %v17386_v46 = vld [vmem:[#allocation37 + $0x50] sm:$0xff] }
0x1fff   :  { %8716 = vmatmul.mubr.f32.gmra.mrb[138].mxu1 %v17221_v17 }
0x2000   :  { %13934 = vmatpush1.bf16.msra.mxu1 %v13933_v18  ;;  %v17232_v22 = vpop.f32.mrb[126].mxu1  ;;  %v13967_v18 = vpack.c.bf16 %v8603_v63, %v8599_v10  ;;  %v17389_v10 = vld [vmem:[#allocation37 + $0x18] sm:$0xff] }
0x2001   :  { %v17234_v23 = vpop.f32.mrb[127].mxu1  ;;  %13936 = vmatprep.subr.bf16.mxu1 %v13935_v7  ;;  %v8598_v7 = vld [vmem:[%s18013_s30 + $0x310] sm:$0xff] }
0x2002   :  { %11205 = vmatprep.mubr.msk.f32.mxu1 %vm3075_vm7, %v17234_v23  ;;  %v13969_v21 = vpack.c.bf16 %v8602_v20, %v8598_v7  ;;  %v11268_v7 = vld [vmem:[%s18015_s19 + $0x288] sm:$0xff]  ;;  %v11251_v20 = vld [vmem:[%s18015_s19 + $0x200] sm:$0xff] }
0x2003   :  { %8722 = vmatmul.mubr.f32.gmra.mrb[140].mxu1 %v17232_v22 }
0x2004   :  { %13938 = vmatpush1.bf16.msra.mxu1 %v13937_v33  ;;  %v17243_v27 = vpop.f32.mrb[128].mxu1  ;;  %v13971_v33 = vpack.c.bf16 %v8611_v14, %v8607_v39  ;;  %v11252_v39 = vld [vmem:[%s18015_s19 + $0x208] sm:$0xff]  ;;  %v17400_v14 = vld [vmem:[#allocation37 + $0x58] sm:$0xff] }
0x2005   :  { %v17245_v5 = vpop.f32.mrb[129].mxu1  ;;  %13940 = vmatprep.subr.bf16.mxu1 %v13939_v26  ;;  %v8606_v26 = vld [vmem:[%s18013_s30 + $0x350] sm:$0xff] }
0x2006   :  { %11206 = vmatprep.mubr.msk.f32.mxu1 %vm3075_vm7, %v17245_v5  ;;  %v13973_v6 = vpack.c.bf16 %v8610_v19, %v8606_v26  ;;  %v14041_v26 = vpack.c.bf16 %v11252_v39, %v11251_v20  ;;  %v11269_v19 = vld [vmem:[%s18015_s19 + $0x290] sm:$0xff] }
0x2007   :  { %8728 = vmatmul.mubr.f32.gmra.mrb[142].mxu1 %v17243_v27 }
0x2008   :  { %13942 = vmatpush1.bf16.msra.mxu1 %v13941_v45  ;;  %v17254_v43 = vpop.f32.mrb[130].mxu1 }
0x2009   :  { %v17256_v24 = vpop.f32.mrb[131].mxu1  ;;  %13944 = vmatprep.subr.bf16.mxu1 %v13943_v29 }
0x200a   :  { %11207 = vmatprep.mubr.msk.f32.mxu1 %vm3075_vm7, %v17256_v24 }
0x200b   :  { %8734 = vmatmul.mubr.f32.gmra.mrb[144].mxu1 %v17254_v43 }
0x200c   :  { %13946 = vmatpush1.bf16.msra.mxu1 %v13945_v59  ;;  %11208 = vmatprep.mubr.msk.f32.mxu1 %vm3075_vm7, %v17190_v58  ;;  %v8583_v58 = vld [vmem:[%s18013_s30 + $0x298] sm:$0xff]  ;;  %v11259_v59 = vld [vmem:[%s18015_s19 + $0x240] sm:$0xff] }
0x200d   :  { %13948 = vmatprep.subr.bf16.mxu1 %v13947_v48  ;;  %v13959_v32 = vpack.c.bf16 %v8587_v61, %v8583_v58  ;;  %v11243_v48 = vld [vmem:[%s18015_s19 + $0x1c0] sm:$0xff]  ;;  %v11264_v58 = vld [vmem:[%s18015_s19 + $0x268] sm:$0xff] }
0x200e   :  { %v11247_v61 = vld [vmem:[%s18015_s19 + $0x1e0] sm:$0xff]  ;;  %v14031_v31 = vpack.c.bf16 %v11264_v58, %v11263_v60 }
0x2010   :  { %13950 = vmatpush1.bf16.msra.mxu1 %v13949_v52  ;;  %v14025_v52 = vpack.c.bf16 %v11244_v44, %v11243_v48  ;;  %v11274_v48 = vld [vmem:[%s18015_s19 + $0x2b8] sm:$0xff] }
0x2011   :  { %13952 = vmatprep.subr.bf16.mxu1 %v13951_v53  ;;  %v11261_v53 = vld [vmem:[%s18015_s19 + $0x250] sm:$0xff] }
0x2014   :  { %13954 = vmatpush1.bf16.msra.mxu1 %v13953_v56  ;;  %v17361_v56 = vld [vmem:[#allocation37 + $0x8] sm:$0xff] }
0x2015   :  { %13956 = vmatprep.subr.bf16.mxu1 %v13955_v36  ;;  %v14027_v36 = vpack.c.bf16 %v11262_v47, %v11261_v53  ;;  %v11258_v53 = vld [vmem:[%s18015_s19 + $0x238] sm:$0xff] }
0x2018   :  { %13958 = vmatpush1.bf16.msra.mxu1 %v13957_v8  ;;  %v11248_v8 = vld [vmem:[%s18015_s19 + $0x1e8] sm:$0xff] }
0x2019   :  { %13960 = vmatprep.subr.bf16.mxu1 %v13959_v32  ;;  %v17372_v32 = vld [vmem:[#allocation37 + $0x48] sm:$0xff]  ;;  %v14033_v12 = vpack.c.bf16 %v11248_v8, %v11247_v61 }
0x201c   :  { %13962 = vmatpush1.bf16.msra.mxu1 %v13961_v30  ;;  %v11266_v30 = vld [vmem:[%s18015_s19 + $0x278] sm:$0xff] }
0x201d   :  { %13964 = vmatprep.subr.bf16.mxu1 %v13963_v15  ;;  %v11249_v15 = vld [vmem:[%s18015_s19 + $0x1f0] sm:$0xff]  ;;  %v14035_v63 = vpack.c.bf16 %v11266_v30, %v11265_v13 }
0x2020   :  { %13966 = vmatpush1.bf16.msra.mxu1 %v13965_v16  ;;  %v14037_v16 = vpack.c.bf16 %v11250_v37, %v11249_v15 }
0x2021   :  { %13968 = vmatprep.subr.bf16.mxu1 %v13967_v18  ;;  %v11267_v18 = vld [vmem:[%s18015_s19 + $0x280] sm:$0xff] }
0x2024   :  { %13970 = vmatpush1.bf16.msra.mxu1 %v13969_v21  ;;  %v17403_v21 = vld [vmem:[#allocation37 + $0x20] sm:$0xff] }
0x2025   :  { %13972 = vmatprep.subr.bf16.mxu1 %v13971_v33  ;;  %v14039_v33 = vpack.c.bf16 %v11268_v7, %v11267_v18 }
0x2028   :  { %13974 = vmatpush1.bf16.msra.mxu1 %v13973_v6  ;;  %v11270_v6 = vld [vmem:[%s18015_s19 + $0x298] sm:$0xff] }
0x202b   :  { %8805 = vmatmul.mubr.f32.vlgmr.msra.gmra.mrb[146].mxu1 %v17188_v57 }
0x202c   :  { %11209 = vmatprep.mubr.msk.f32.mxu1 %vm3075_vm7, %v17201_v41 }
0x202f   :  { %8811 = vmatmul.mubr.f32.gmra.mrb[148].mxu1 %v17199_v62 }
0x2030   :  { %11210 = vmatprep.mubr.msk.f32.mxu1 %vm3075_vm7, %v17212_v2 }
0x2033   :  { %8817 = vmatmul.mubr.f32.gmra.mrb[150].mxu1 %v17210_v34 }
0x2034   :  { %11211 = vmatprep.mubr.msk.f32.mxu1 %vm3075_vm7, %v17223_v49 }
0x2037   :  { %8823 = vmatmul.mubr.f32.gmra.mrb[152].mxu1 %v17221_v17 }
0x2038   :  { %11212 = vmatprep.mubr.msk.f32.mxu1 %vm3075_vm7, %v17234_v23 }
0x203b   :  { %8829 = vmatmul.mubr.f32.gmra.mrb[154].mxu1 %v17232_v22 }
0x203c   :  { %11213 = vmatprep.mubr.msk.f32.mxu1 %vm3075_vm7, %v17245_v5 }
0x203f   :  { %8835 = vmatmul.mubr.f32.gmra.mrb[156].mxu1 %v17243_v27 }
0x2040   :  { %11214 = vmatprep.mubr.msk.f32.mxu1 %vm3075_vm7, %v17256_v24  ;;  %v11260_v24 = vld [vmem:[%s18015_s19 + $0x248] sm:$0xff] }
0x2041   :  { %v14023_v28 = vpack.c.bf16 %v11260_v24, %v11259_v59  ;;  %v11273_v24 = vld [vmem:[%s18015_s19 + $0x2b0] sm:$0xff] }
0x2043   :  { %8841 = vmatmul.mubr.f32.gmra.mrb[158].mxu1 %v17254_v43 }
0x2044   :  { %9238 = vmatprep.mubr.f32.mxu1 %v15207_v1 }
0x20c6   :  { %v8699_v57 = vpop.f32.mrb[132].mxu1 }
0x20c7   :  { %v8701_v62 = vpop.f32.mrb[133].mxu1 }
0x20ca   :  { %v8705_v41 = vpop.f32.mrb[134].mxu1 }
0x20cb   :  { %v17309_v34 = vpack.c.bf16 %v8705_v41, %v8699_v57  ;;  %v8707_v2 = vpop.f32.mrb[135].mxu1  ;;  %v11253_v57 = vld [vmem:[%s18015_s19 + $0x210] sm:$0xff]  ;;  %v17414_v41 = vld [vmem:[#allocation37 + $0x60] sm:$0xff] }
0x20cc   :  { %v17311_v17 = vpack.c.bf16 %v8707_v2, %v8701_v62  ;;  %v11254_v62 = vld [vmem:[%s18015_s19 + $0x218] sm:$0xff]  ;;  %v17417_v2 = vld [vmem:[#allocation37 + $0x28] sm:$0xff] }
0x20ce   :  { %v8711_v49 = vpop.f32.mrb[136].mxu1  ;;  %13976 = vmatprep.subr.bf16.mxu0 %v17311_v17  ;;  %14000 = vmatprep.subr.bf16.mxu1 %v17311_v17 }
0x20cf   :  { %v8713_v22 = vpop.f32.mrb[137].mxu1  ;;  %13978 = vmatpush1.bf16.msra.mxu0 %v17309_v34  ;;  %14002 = vmatpush1.bf16.msra.mxu1 %v17309_v34 }
0x20d2   :  { %v8717_v23 = vpop.f32.mrb[138].mxu1 }
0x20d3   :  { %v17317_v25 = vpack.c.bf16 %v8717_v23, %v8711_v49  ;;  %v8719_v3 = vpop.f32.mrb[139].mxu1  ;;  %v14043_v49 = vpack.c.bf16 %v11270_v6, %v11269_v19  ;;  %v11272_v23 = vld [vmem:[%s18015_s19 + $0x2a8] sm:$0xff]  ;;  %v11281_v19 = vld [vmem:[%s18015_s19 + $0x2f0] sm:$0xff]  ;;  %v11282_v6 = vld [vmem:[%s18015_s19 + $0x2f8] sm:$0xff] }
0x20d4   :  { %v17319_v27 = vpack.c.bf16 %v8719_v3, %v8713_v22  ;;  %v11271_v22 = vld [vmem:[%s18015_s19 + $0x2a0] sm:$0xff]  ;;  %v14045_v3 = vpack.c.bf16 %v11254_v62, %v11253_v57  ;;  %v14065_v57 = vpack.c.bf16 %v11282_v6, %v11281_v19  ;;  %v9094_v6 = vld [vmem:[%s18015_s19 + $0x28] sm:$0xff] }
0x20d5   :  { %v14047_v59 = vpack.c.bf16 %v11272_v23, %v11271_v22  ;;  %v11283_v62 = vld [vmem:[%s18015_s19 + $0x300] sm:$0xff]  ;;  %v11286_v22 = vld [vmem:[%s18015_s19 + $0x318] sm:$0xff] }
0x20d6   :  { %v8723_v45 = vpop.f32.mrb[140].mxu1  ;;  %13980 = vmatprep.subr.bf16.mxu0 %v17319_v27  ;;  %14004 = vmatprep.subr.bf16.mxu1 %v17319_v27  ;;  %v9093_v19 = vld [vmem:[%s18015_s19 + $0x20] sm:$0xff] }
0x20d7   :  { %v8725_v5 = vpop.f32.mrb[141].mxu1  ;;  %13982 = vmatpush1.bf16.msra.mxu0 %v17317_v25  ;;  %14006 = vmatpush1.bf16.msra.mxu1 %v17317_v25 }
0x20da   :  { %v8729_v29 = vpop.f32.mrb[142].mxu1 }
0x20db   :  { %v17325_v35 = vpack.c.bf16 %v8729_v29, %v8723_v45  ;;  %v8731_v40 = vpop.f32.mrb[143].mxu1  ;;  %v17423_v45 = vld [vmem:[#allocation37 + $0x68] sm:$0xff] }
0x20dc   :  { %v17327_v38 = vpack.c.bf16 %v8731_v40, %v8725_v5  ;;  %v11255_v5 = vld [vmem:[%s18015_s19 + $0x220] sm:$0xff]  ;;  %v11256_v29 = vld [vmem:[%s18015_s19 + $0x228] sm:$0xff] }
0x20dd   :  { %v17431_v40 = vld [vmem:[#allocation37 + $0x30] sm:$0xff]  ;;  %v14049_v44 = vpack.c.bf16 %v11256_v29, %v11255_v5 }
0x20de   :  { %13984 = vmatprep.subr.bf16.mxu0 %v17327_v38  ;;  %14008 = vmatprep.subr.bf16.mxu1 %v17327_v38  ;;  %v17331_v42 = vpop.f32.mrb[144].mxu1  ;;  %v11289_v29 = vld [vmem:[%s18015_s19 + $0x330] sm:$0xff] }
0x20df   :  { %13986 = vmatpush1.bf16.msra.mxu0 %v17325_v35  ;;  %14010 = vmatpush1.bf16.msra.mxu1 %v17325_v35  ;;  %v17335_v43 = vpop.f32.mrb[145].mxu1 }
0x20e0   :  { %8887 = vmatprep.subr.mxu0 %v17335_v43  ;;  %9186 = vmatprep.subr.mxu1 %v17335_v43 }
0x20e3   :  { %8888 = vmatpush1.msra.mxu0 %v17331_v42  ;;  %9187 = vmatpush1.msra.mxu1 %v17331_v42 }
0x20e4   :  { %11229 = vmatmul.mubr.msk.f32.vlgmr.msra.gmra.mrb[160].mxu1 %vm515_vm1, %v17343_v50  ;;  %11215 = vmatmul.mubr.msk.f32.vlgmr.msra.gmra.mrb[150].mxu0 %vm515_vm1, %v17345_v51 }
0x20e5   :  { %9244 = vmatprep.mubr.f32.mxu1 %v15207_v1  ;;  %8945 = vmatprep.mubr.f32.mxu0 %v15207_v1 }
0x20e6   :  { %14024 = vmatprep.subr.bf16.mxu1 %v14023_v28  ;;  %v14051_v28 = vpack.c.bf16 %v11274_v48, %v11273_v24  ;;  %v11291_v24 = vld [vmem:[%s18015_s19 + $0x340] sm:$0xff]  ;;  %v11292_v48 = vld [vmem:[%s18015_s19 + $0x348] sm:$0xff] }
0x20e7   :  { %14026 = vmatpush3.bf16.msra.mxu1 %v14025_v52  ;;  %v11257_v52 = vld [vmem:[%s18015_s19 + $0x230] sm:$0xff] }
0x20e8   :  { %11230 = vmatmul.mubr.msk.f32.gmra.mrb[162].mxu1 %vm515_vm1, %v17358_v55  ;;  %11216 = vmatmul.mubr.msk.f32.gmra.mrb[152].mxu0 %vm515_vm1, %v17361_v56  ;;  %v14053_v11 = vpack.c.bf16 %v11258_v53, %v11257_v52  ;;  %v11294_v52 = vld [vmem:[%s18015_s19 + $0x358] sm:$0xff] }
0x20e9   :  { %9250 = vmatprep.mubr.f32.mxu1 %v15207_v1  ;;  %8951 = vmatprep.mubr.f32.mxu0 %v15207_v1 }
0x20ea   :  { %14028 = vmatprep.subr.bf16.mxu1 %v14027_v36 }
0x20eb   :  { %14030 = vmatpush3.bf16.msra.mxu1 %v14029_v4 }
0x20ec   :  { %11231 = vmatmul.mubr.msk.f32.gmra.mrb[164].mxu1 %vm515_vm1, %v17372_v32  ;;  %11217 = vmatmul.mubr.msk.f32.gmra.mrb[154].mxu0 %vm515_vm1, %v17375_v9 }
0x20ed   :  { %9256 = vmatprep.mubr.f32.mxu1 %v15207_v1  ;;  %8957 = vmatprep.mubr.f32.mxu0 %v15207_v1 }
0x20ee   :  { %14032 = vmatprep.subr.bf16.mxu1 %v14031_v31 }
0x20ef   :  { %14034 = vmatpush3.bf16.msra.mxu1 %v14033_v12 }
0x20f0   :  { %11232 = vmatmul.mubr.msk.f32.gmra.mrb[166].mxu1 %vm515_vm1, %v17386_v46  ;;  %11218 = vmatmul.mubr.msk.f32.gmra.mrb[156].mxu0 %vm515_vm1, %v17389_v10 }
0x20f1   :  { %9262 = vmatprep.mubr.f32.mxu1 %v15207_v1  ;;  %8963 = vmatprep.mubr.f32.mxu0 %v15207_v1 }
0x20f2   :  { %14036 = vmatprep.subr.bf16.mxu1 %v14035_v63 }
0x20f3   :  { %14038 = vmatpush3.bf16.msra.mxu1 %v14037_v16 }
0x20f4   :  { %11233 = vmatmul.mubr.msk.f32.gmra.mrb[168].mxu1 %vm515_vm1, %v17400_v14  ;;  %11219 = vmatmul.mubr.msk.f32.gmra.mrb[158].mxu0 %vm515_vm1, %v17403_v21 }
0x20f5   :  { %9268 = vmatprep.mubr.f32.mxu1 %v15207_v1  ;;  %8969 = vmatprep.mubr.f32.mxu0 %v15207_v1 }
0x20f6   :  { %14040 = vmatprep.subr.bf16.mxu1 %v14039_v33  ;;  %v11280_v33 = vld [vmem:[%s18015_s19 + $0x2e8] sm:$0xff] }
0x20f7   :  { %14042 = vmatpush3.bf16.msra.mxu1 %v14041_v26 }
0x20f8   :  { %11234 = vmatmul.mubr.msk.f32.gmra.mrb[170].mxu1 %vm515_vm1, %v17414_v41  ;;  %11220 = vmatmul.mubr.msk.f32.gmra.mrb[160].mxu0 %vm515_vm1, %v17417_v2 }
0x20f9   :  { %9274 = vmatprep.mubr.f32.mxu1 %v15207_v1  ;;  %8975 = vmatprep.mubr.f32.mxu0 %v15207_v1 }
0x20fa   :  { %14044 = vmatprep.subr.bf16.mxu1 %v14043_v49  ;;  %v11285_v49 = vld [vmem:[%s18015_s19 + $0x310] sm:$0xff] }
0x20fb   :  { %14046 = vmatpush3.bf16.msra.mxu1 %v14045_v3  ;;  %v14071_v23 = vpack.c.bf16 %v11286_v22, %v11285_v49  ;;  %v11287_v3 = vld [vmem:[%s18015_s19 + $0x320] sm:$0xff]  ;;  %v14101_v49 = vpack.c.bf16 %v9094_v6, %v9093_v19  ;;  %v9119_v19 = vld [vmem:[%s18015_s19 + $0xf0] sm:$0xff]  ;;  %v9120_v6 = vld [vmem:[%s18015_s19 + $0xf8] sm:$0xff] }
0x20fc   :  { %11235 = vmatmul.mubr.msk.f32.gmra.mrb[172].mxu1 %vm515_vm1, %v17423_v45  ;;  %11221 = vmatmul.mubr.msk.f32.gmra.mrb[162].mxu0 %vm515_vm1, %v17431_v40 }
0x20fd   :  { %9046 = vmatprep.mubr.f32.mxu0 %v15207_v1  ;;  %14048 = vmatprep.subr.bf16.mxu1 %v14047_v59 }
0x20fe   :  { %v8806_v47 = vpop.f32.mrb[146].mxu1 }
0x20ff   :  { %v8808_v54 = vpop.f32.mrb[147].mxu1  ;;  %14050 = vmatpush3.bf16.msra.mxu1 %v14049_v44  ;;  %v14080_v44 = vpack.c.bf16 %v11292_v48, %v11291_v24 }
0x2100   :  { %14052 = vmatprep.subr.bf16.mxu1 %v14051_v28  ;;  %v11293_v28 = vld [vmem:[%s18015_s19 + $0x350] sm:$0xff] }
0x2101   :  { %v14083_v53 = vpack.c.bf16 %v11294_v52, %v11293_v28 }
0x2102   :  { %v8812_v36 = vpop.f32.mrb[148].mxu1 }
0x2103   :  { %v17442_v4 = vpack.c.bf16 %v8812_v36, %v8806_v47  ;;  %v8814_v60 = vpop.f32.mrb[149].mxu1  ;;  %14054 = vmatpush3.bf16.msra.mxu1 %v14053_v11  ;;  %v11295_v47 = vld [vmem:[%s18015_s19 + $0x360] sm:$0xff]  ;;  %v11297_v36 = vld [vmem:[%s18015_s19 + $0x370] sm:$0xff] }
0x2104   :  { %v17444_v58 = vpack.c.bf16 %v8814_v60, %v8808_v54  ;;  %v11296_v54 = vld [vmem:[%s18015_s19 + $0x368] sm:$0xff]  ;;  %v11298_v60 = vld [vmem:[%s18015_s19 + $0x378] sm:$0xff] }
0x2105   :  { %v14086_v11 = vpack.c.bf16 %v11296_v54, %v11295_v47  ;;  %v9098_v47 = vld [vmem:[%s18015_s19 + $0x48] sm:$0xff] }
0x2106   :  { %v8818_v61 = vpop.f32.mrb[150].mxu1  ;;  %13988 = vmatprep.subr.bf16.mxu0 %v17444_v58 }
0x2107   :  { %v8820_v8 = vpop.f32.mrb[151].mxu1  ;;  %13990 = vmatpush1.bf16.msra.mxu0 %v17442_v4 }
0x210a   :  { %v8824_v31 = vpop.f32.mrb[152].mxu1 }
0x210b   :  { %v17448_v12 = vpack.c.bf16 %v8824_v31, %v8818_v61  ;;  %v8826_v13 = vpop.f32.mrb[153].mxu1  ;;  %v14089_v61 = vpack.c.bf16 %v11298_v60, %v11297_v36  ;;  %v9090_v31 = vld [vmem:[%s18015_s19 + $0x8] sm:$0xff]  ;;  %v9116_v36 = vld [vmem:[%s18015_s19 + $0xd8] sm:$0xff] }
0x210c   :  { %v17450_v30 = vpack.c.bf16 %v8826_v13, %v8820_v8  ;;  %v9089_v8 = vld [vmem:[%s18015_s19] sm:$0xff]  ;;  %v9107_v13 = vld [vmem:[%s18015_s19 + $0x90] sm:$0xff] }
0x210e   :  { %v8830_v15 = vpop.f32.mrb[154].mxu1  ;;  %13992 = vmatprep.subr.bf16.mxu0 %v17450_v30 }
0x210f   :  { %v8832_v37 = vpop.f32.mrb[155].mxu1  ;;  %13994 = vmatpush1.bf16.msra.mxu0 %v17448_v12 }
0x2112   :  { %v8836_v63 = vpop.f32.mrb[156].mxu1 }
0x2113   :  { %v17454_v16 = vpack.c.bf16 %v8836_v63, %v8830_v15  ;;  %v8838_v18 = vpop.f32.mrb[157].mxu1  ;;  %v9108_v15 = vld [vmem:[%s18015_s19 + $0x98] sm:$0xff]  ;;  %v14093_v63 = vpack.c.bf16 %v9090_v31, %v9089_v8 }
0x2114   :  { %v17456_v7 = vpack.c.bf16 %v8838_v18, %v8832_v37 }
0x2116   :  { %v17458_v20 = vpop.f32.mrb[158].mxu1  ;;  %13996 = vmatprep.subr.bf16.mxu0 %v17456_v7 }
0x2117   :  { %v17461_v39 = vpop.f32.mrb[159].mxu1  ;;  %13998 = vmatpush1.bf16.msra.mxu0 %v17454_v16 }
0x2118   :  { %8994 = vmatprep.subr.mxu0 %v17461_v39 }
0x211b   :  { %8995 = vmatpush1.msra.mxu0 %v17458_v20 }
0x211c   :  { %11222 = vmatmul.mubr.msk.f32.vlgmr.msra.gmra.mrb[164].mxu0 %vm515_vm1, %v17345_v51  ;;  %14012 = vmatprep.subr.bf16.mxu0 %v17444_v58  ;;  %v9105_v51 = vld [vmem:[%s18015_s19 + $0x80] sm:$0xff] }
0x211d   :  { %14014 = vmatpush1.bf16.msra.mxu0 %v17442_v4  ;;  %9052 = vmatprep.mubr.f32.mxu0 %v15207_v1 }
0x211e   :  { %14016 = vmatprep.subr.bf16.mxu0 %v17450_v30 }
0x2120   :  { %11223 = vmatmul.mubr.msk.f32.gmra.mrb[166].mxu0 %vm515_vm1, %v17361_v56  ;;  %v9106_v56 = vld [vmem:[%s18015_s19 + $0x88] sm:$0xff] }
0x2121   :  { %14018 = vmatpush1.bf16.msra.mxu0 %v17448_v12  ;;  %9058 = vmatprep.mubr.f32.mxu0 %v15207_v1 }
0x2122   :  { %14020 = vmatprep.subr.bf16.mxu0 %v17456_v7 }
0x2124   :  { %11224 = vmatmul.mubr.msk.f32.gmra.mrb[168].mxu0 %vm515_vm1, %v17375_v9  ;;  %v14091_v9 = vpack.c.bf16 %v9106_v56, %v9105_v51  ;;  %v14095_v56 = vpack.c.bf16 %v9108_v15, %v9107_v13  ;;  %v9099_v15 = vld [vmem:[%s18015_s19 + $0x50] sm:$0xff] }
0x2125   :  { %14022 = vmatpush1.bf16.msra.mxu0 %v17454_v16  ;;  %9064 = vmatprep.mubr.f32.mxu0 %v15207_v1 }
0x2126   :  { %9293 = vmatprep.subr.mxu0 %v17461_v39  ;;  %14092 = vmatprep.subr.bf16.mxu1 %v14091_v9  ;;  %v9091_v9 = vld [vmem:[%s18015_s19 + $0x10] sm:$0xff] }
0x2128   :  { %11225 = vmatmul.mubr.msk.f32.gmra.mrb[170].mxu0 %vm515_vm1, %v17389_v10  ;;  %v11278_v10 = vld [vmem:[%s18015_s19 + $0x2d8] sm:$0xff] }
0x2129   :  { %9294 = vmatpush1.msra.mxu0 %v17458_v20  ;;  %9070 = vmatprep.mubr.f32.mxu0 %v15207_v1 }
0x212a   :  { %14055 = vmatprep.subr.bf16.mxu0 %v15205_v0 }
0x212c   :  { %11226 = vmatmul.mubr.msk.f32.gmra.mrb[172].mxu0 %vm515_vm1, %v17403_v21  ;;  %v11279_v21 = vld [vmem:[%s18015_s19 + $0x2e0] sm:$0xff] }
0x212d   :  { %9076 = vmatprep.mubr.f32.mxu0 %v15207_v1  ;;  %v14062_v26 = vpack.c.bf16 %v11280_v33, %v11279_v21 }
0x2130   :  { %11227 = vmatmul.mubr.msk.f32.gmra.mrb[174].mxu0 %vm515_vm1, %v17417_v2 }
0x2131   :  { %9082 = vmatprep.mubr.f32.mxu0 %v15207_v1 }
0x2134   :  { %11228 = vmatmul.mubr.msk.f32.gmra.mrb[176].mxu0 %vm515_vm1, %v17431_v40  ;;  %v11290_v40 = vld [vmem:[%s18015_s19 + $0x338] sm:$0xff] }
0x2135   :  { %9345 = vmatprep.mubr.f32.mxu0 %v15207_v1  ;;  %v14077_v59 = vpack.c.bf16 %v11290_v40, %v11289_v29  ;;  %v9113_v40 = vld [vmem:[%s18015_s19 + $0xc0] sm:$0xff] }
0x2138   :  { %11236 = vmatmul.mubr.msk.f32.vlgmr.msra.gmra.mrb[178].mxu0 %vm515_vm1, %v17343_v50  ;;  %v11275_v50 = vld [vmem:[%s18015_s19 + $0x2c0] sm:$0xff] }
0x2139   :  { %9351 = vmatprep.mubr.f32.mxu0 %v15207_v1 }
0x213c   :  { %11237 = vmatmul.mubr.msk.f32.gmra.mrb[180].mxu0 %vm515_vm1, %v17358_v55  ;;  %v11276_v55 = vld [vmem:[%s18015_s19 + $0x2c8] sm:$0xff] }
0x213d   :  { %9357 = vmatprep.mubr.f32.mxu0 %v15207_v1 }
0x2140   :  { %11238 = vmatmul.mubr.msk.f32.gmra.mrb[182].mxu0 %vm515_vm1, %v17372_v32  ;;  %v14056_v32 = vpack.c.bf16 %v11276_v55, %v11275_v50  ;;  %v9092_v50 = vld [vmem:[%s18015_s19 + $0x18] sm:$0xff] }
0x2141   :  { %9363 = vmatprep.mubr.f32.mxu0 %v15207_v1 }
0x2142   :  { %14057 = vmatpush1.bf16.msra.mxu0 %v14056_v32  ;;  %v9109_v32 = vld [vmem:[%s18015_s19 + $0xa0] sm:$0xff] }
0x2143   :  { %14058 = vmatprep.subr.bf16.mxu0 %v15205_v0 }
0x2144   :  { %11239 = vmatmul.mubr.msk.f32.gmra.mrb[184].mxu0 %vm515_vm1, %v17386_v46  ;;  %v11277_v46 = vld [vmem:[%s18015_s19 + $0x2d0] sm:$0xff] }
0x2145   :  { %9369 = vmatprep.mubr.f32.mxu0 %v15207_v1 }
0x2148   :  { %11240 = vmatmul.mubr.msk.f32.gmra.mrb[186].mxu0 %vm515_vm1, %v17400_v14  ;;  %v14059_v14 = vpack.c.bf16 %v11278_v10, %v11277_v46  ;;  %v9110_v46 = vld [vmem:[%s18015_s19 + $0xa8] sm:$0xff] }
0x2149   :  { %9375 = vmatprep.mubr.f32.mxu0 %v15207_v1 }
0x214a   :  { %14060 = vmatpush1.bf16.msra.mxu0 %v14059_v14  ;;  %v14097_v14 = vpack.c.bf16 %v9092_v50, %v9091_v9 }
0x214b   :  { %14061 = vmatprep.subr.bf16.mxu0 %v15205_v0 }
0x214c   :  { %11241 = vmatmul.mubr.msk.f32.gmra.mrb[188].mxu0 %vm515_vm1, %v17414_v41  ;;  %v11284_v41 = vld [vmem:[%s18015_s19 + $0x308] sm:$0xff] }
0x214d   :  { %9381 = vmatprep.mubr.f32.mxu0 %v15207_v1  ;;  %v14068_v2 = vpack.c.bf16 %v11284_v41, %v11283_v62  ;;  %v9111_v62 = vld [vmem:[%s18015_s19 + $0xb0] sm:$0xff]  ;;  %v9112_v41 = vld [vmem:[%s18015_s19 + $0xb8] sm:$0xff] }
0x214e   :  { %14063 = vmatpush1.bf16.msra.mxu0 %v14062_v26  ;;  %v14099_v26 = vpack.c.bf16 %v9110_v46, %v9109_v32 }
0x214f   :  { %14064 = vmatprep.subr.bf16.mxu0 %v15205_v0 }
0x2150   :  { %11242 = vmatmul.mubr.msk.f32.gmra.mrb[190].mxu0 %vm515_vm1, %v17423_v45  ;;  %v11288_v45 = vld [vmem:[%s18015_s19 + $0x328] sm:$0xff] }
0x2151   :  { %v14074_v5 = vpack.c.bf16 %v11288_v45, %v11287_v3  ;;  %v14103_v3 = vpack.c.bf16 %v9112_v41, %v9111_v62  ;;  %v9095_v45 = vld [vmem:[%s18015_s19 + $0x30] sm:$0xff] }
0x2152   :  { %14066 = vmatpush1.bf16.msra.mxu0 %v14065_v57 }
0x2153   :  { %14067 = vmatprep.subr.bf16.mxu0 %v15205_v0 }
0x2156   :  { %14069 = vmatpush1.bf16.msra.mxu0 %v14068_v2 }
0x2157   :  { %14070 = vmatprep.subr.bf16.mxu0 %v15205_v0 }
0x215a   :  { %14072 = vmatpush1.bf16.msra.mxu0 %v14071_v23 }
0x215b   :  { %14073 = vmatprep.subr.bf16.mxu0 %v15205_v0 }
0x215e   :  { %14075 = vmatpush1.bf16.msra.mxu0 %v14074_v5  ;;  %v9096_v5 = vld [vmem:[%s18015_s19 + $0x38] sm:$0xff] }
0x215f   :  { %14076 = vmatprep.subr.bf16.mxu0 %v15205_v0  ;;  %v14105_v48 = vpack.c.bf16 %v9096_v5, %v9095_v45  ;;  %v9104_v45 = vld [vmem:[%s18015_s19 + $0x78] sm:$0xff] }
0x2162   :  { %14078 = vmatpush1.bf16.msra.mxu0 %v14077_v59  ;;  %v9114_v59 = vld [vmem:[%s18015_s19 + $0xc8] sm:$0xff] }
0x2163   :  { %14079 = vmatprep.subr.bf16.mxu0 %v15205_v0  ;;  %v14107_v52 = vpack.c.bf16 %v9114_v59, %v9113_v40 }
0x2166   :  { %14081 = vmatpush1.bf16.msra.mxu0 %v14080_v44 }
0x2167   :  { %14082 = vmatprep.subr.bf16.mxu0 %v15205_v0 }
0x216a   :  { %14084 = vmatpush1.bf16.msra.mxu0 %v14083_v53  ;;  %v9097_v53 = vld [vmem:[%s18015_s19 + $0x40] sm:$0xff] }
0x216b   :  { %14085 = vmatprep.subr.bf16.mxu0 %v15205_v0 }
0x216e   :  { %14087 = vmatpush1.bf16.msra.mxu0 %v14086_v11  ;;  %v9115_v11 = vld [vmem:[%s18015_s19 + $0xd0] sm:$0xff] }
0x216f   :  { %14088 = vmatprep.subr.bf16.mxu0 %v15205_v0  ;;  %v14111_v13 = vpack.c.bf16 %v9116_v36, %v9115_v11  ;;  %v9125_v11 = vld [vmem:[%s18015_s19 + $0x120] sm:$0xff]  ;;  %v9126_v36 = vld [vmem:[%s18015_s19 + $0x128] sm:$0xff] }
0x2172   :  { %14090 = vmatpush1.bf16.msra.mxu0 %v14089_v61  ;;  %v14109_v61 = vpack.c.bf16 %v9098_v47, %v9097_v53 }
0x2173   :  { %14123 = vmatprep.subr.bf16.mxu0 %v15205_v0 }
0x21b7   :  { %v9240_v37 = vpop.f32.mrb[160].mxu1  ;;  %v17558_v18 = vpop.f32.mrb[150].mxu0 }
0x21b8   :  { %v9242_v51 = vpop.f32.mrb[161].mxu1  ;;  %v17562_v55 = vpop.f32.mrb[151].mxu0 }
0x21b9   :  { %9530 = vmatprep.mubr.f32.mxu1 %v9242_v51  ;;  %v9117_v51 = vld [vmem:[%s18015_s19 + $0xe0] sm:$0xff] }
0x21ba   :  { %9531 = vmatmul.mubr.f32.vlgmr.msra.gmra.mrb[174].mxu1 %v9240_v37  ;;  %v9100_v37 = vld [vmem:[%s18015_s19 + $0x58] sm:$0xff] }
0x21bb   :  { %14094 = vmatpush3.bf16.msra.mxu1 %v14093_v63  ;;  %v9246_v10 = vpop.f32.mrb[162].mxu1  ;;  %v17566_v21 = vpop.f32.mrb[152].mxu0  ;;  %v14113_v50 = vpack.c.bf16 %v9100_v37, %v9099_v15 }
0x21bc   :  { %14096 = vmatprep.subr.bf16.mxu1 %v14095_v56  ;;  %v9248_v33 = vpop.f32.mrb[163].mxu1  ;;  %v17570_v57 = vpop.f32.mrb[153].mxu0  ;;  %v9118_v56 = vld [vmem:[%s18015_s19 + $0xe8] sm:$0xff] }
0x21bd   :  { %9535 = vmatprep.mubr.f32.mxu1 %v9248_v33  ;;  %v9102_v33 = vld [vmem:[%s18015_s19 + $0x68] sm:$0xff] }
0x21be   :  { %9536 = vmatmul.mubr.f32.gmra.mrb[176].mxu1 %v9246_v10  ;;  %v14115_v10 = vpack.c.bf16 %v9118_v56, %v9117_v51  ;;  %v9129_v51 = vld [vmem:[%s18015_s19 + $0x140] sm:$0xff]  ;;  %v9130_v56 = vld [vmem:[%s18015_s19 + $0x148] sm:$0xff] }
0x21bf   :  { %14098 = vmatpush3.bf16.msra.mxu1 %v14097_v14  ;;  %v9252_v2 = vpop.f32.mrb[164].mxu1  ;;  %v17574_v22 = vpop.f32.mrb[154].mxu0  ;;  %v9101_v14 = vld [vmem:[%s18015_s19 + $0x60] sm:$0xff] }
0x21c0   :  { %14100 = vmatprep.subr.bf16.mxu1 %v14099_v26  ;;  %v9254_v23 = vpop.f32.mrb[165].mxu1  ;;  %v17578_v29 = vpop.f32.mrb[155].mxu0  ;;  %v14117_v41 = vpack.c.bf16 %v9102_v33, %v9101_v14 }
0x21c1   :  { %9540 = vmatprep.mubr.f32.mxu1 %v9254_v23  ;;  %v14119_v23 = vpack.c.bf16 %v9120_v6, %v9119_v19  ;;  %v9133_v19 = vld [vmem:[%s18015_s19 + $0x160] sm:$0xff]  ;;  %v9134_v6 = vld [vmem:[%s18015_s19 + $0x168] sm:$0xff] }
0x21c2   :  { %9541 = vmatmul.mubr.f32.gmra.mrb[178].mxu1 %v9252_v2 }
0x21c3   :  { %14102 = vmatpush3.bf16.msra.mxu1 %v14101_v49  ;;  %v9258_v24 = vpop.f32.mrb[166].mxu1  ;;  %v17582_v44 = vpop.f32.mrb[156].mxu0 }
0x21c4   :  { %14104 = vmatprep.subr.bf16.mxu1 %v14103_v3  ;;  %v9260_v28 = vpop.f32.mrb[167].mxu1  ;;  %v8961_v54 = vpop.f32.mrb[157].mxu0  ;;  %v9103_v3 = vld [vmem:[%s18015_s19 + $0x70] sm:$0xff] }
0x21c5   :  { %9545 = vmatprep.mubr.f32.mxu1 %v9260_v28  ;;  %v14121_v40 = vpack.c.bf16 %v9104_v45, %v9103_v3  ;;  %v9123_v28 = vld [vmem:[%s18015_s19 + $0x110] sm:$0xff]  ;;  %v9137_v45 = vld [vmem:[%s18015_s19 + $0x180] sm:$0xff] }
0x21c6   :  { %9546 = vmatmul.mubr.f32.gmra.mrb[180].mxu1 %v9258_v24 }
0x21c7   :  { %14106 = vmatpush3.bf16.msra.mxu1 %v14105_v48  ;;  %v9264_v60 = vpop.f32.mrb[168].mxu1  ;;  %v8965_v8 = vpop.f32.mrb[158].mxu0  ;;  %v17680_v48 = vld [vmem:[#allocation37 + $0xa0] sm:$0xff] }
0x21c8   :  { %14108 = vmatprep.subr.bf16.mxu1 %v14107_v52  ;;  %v9266_v31 = vpop.f32.mrb[169].mxu1  ;;  %v8967_v63 = vpop.f32.mrb[159].mxu0  ;;  %v9124_v52 = vld [vmem:[%s18015_s19 + $0x118] sm:$0xff] }
0x21c9   :  { %9550 = vmatprep.mubr.f32.mxu1 %v9266_v31  ;;  %v14127_v47 = vpack.c.bf16 %v9124_v52, %v9123_v28  ;;  %v9127_v31 = vld [vmem:[%s18015_s19 + $0x130] sm:$0xff]  ;;  %v11362_v52 = vld [vmem:[%s18015_s19 + $0x498] sm:$0xff] }
0x21ca   :  { %9551 = vmatmul.mubr.f32.gmra.mrb[182].mxu1 %v9264_v60  ;;  %v11361_v28 = vld [vmem:[%s18015_s19 + $0x490] sm:$0xff] }
0x21cb   :  { %14110 = vmatpush3.bf16.msra.mxu1 %v14109_v61  ;;  %v9270_v9 = vpop.f32.mrb[170].mxu1  ;;  %v8971_v32 = vpop.f32.mrb[160].mxu0  ;;  %v14130_v61 = vpack.c.bf16 %v9126_v36, %v9125_v11  ;;  %v14219_v11 = vpack.c.bf16 %v11362_v52, %v11361_v28  ;;  %v11345_v36 = vld [vmem:[%s18015_s19 + $0x410] sm:$0xff]  ;;  %v11340_v28 = vld [vmem:[%s18015_s19 + $0x3e8] sm:$0xff] }
0x21cc   :  { %14112 = vmatprep.subr.bf16.mxu1 %v14111_v13  ;;  %v9272_v46 = vpop.f32.mrb[171].mxu1  ;;  %v8973_v26 = vpop.f32.mrb[161].mxu0  ;;  %v9128_v13 = vld [vmem:[%s18015_s19 + $0x138] sm:$0xff] }
0x21cd   :  { %9555 = vmatprep.mubr.f32.mxu1 %v9272_v46  ;;  %v14133_v37 = vpack.c.bf16 %v9128_v13, %v9127_v31  ;;  %v9131_v46 = vld [vmem:[%s18015_s19 + $0x150] sm:$0xff]  ;;  %v11364_v31 = vld [vmem:[%s18015_s19 + $0x4a8] sm:$0xff] }
0x21ce   :  { %9556 = vmatmul.mubr.f32.gmra.mrb[184].mxu1 %v9270_v9 }
0x21cf   :  { %14114 = vmatpush3.bf16.msra.mxu1 %v14113_v50  ;;  %v9276_v62 = vpop.f32.mrb[172].mxu1  ;;  %v8977_v2 = vpop.f32.mrb[162].mxu0  ;;  %v14136_v50 = vpack.c.bf16 %v9130_v56, %v9129_v51  ;;  %v11347_v51 = vld [vmem:[%s18015_s19 + $0x420] sm:$0xff]  ;;  %v11348_v56 = vld [vmem:[%s18015_s19 + $0x428] sm:$0xff] }
0x21d0   :  { %14116 = vmatprep.subr.bf16.mxu1 %v14115_v10  ;;  %v9278_v49 = vpop.f32.mrb[173].mxu1  ;;  %v8979_v5 = vpop.f32.mrb[163].mxu0  ;;  %v9132_v10 = vld [vmem:[%s18015_s19 + $0x158] sm:$0xff] }
0x21d1   :  { %9560 = vmatprep.mubr.f32.mxu1 %v9278_v49  ;;  %v14139_v33 = vpack.c.bf16 %v9132_v10, %v9131_v46  ;;  %v9135_v49 = vld [vmem:[%s18015_s19 + $0x170] sm:$0xff]  ;;  %v14191_v46 = vpack.c.bf16 %v11348_v56, %v11347_v51  ;;  %v11331_v10 = vld [vmem:[%s18015_s19 + $0x3a0] sm:$0xff] }
0x21d2   :  { %9561 = vmatmul.mubr.f32.gmra.mrb[186].mxu1 %v9276_v62 }
0x21d3   :  { %14118 = vmatpush3.bf16.msra.mxu1 %v14117_v41  ;;  %9751 = vmatprep.mubr.f32.mxu1 %v17562_v55  ;;  %v14142_v41 = vpack.c.bf16 %v9134_v6, %v9133_v19  ;;  %v11367_v19 = vld [vmem:[%s18015_s19 + $0x4c0] sm:$0xff]  ;;  %v11368_v6 = vld [vmem:[%s18015_s19 + $0x4c8] sm:$0xff] }
0x21d4   :  { %14120 = vmatprep.subr.bf16.mxu1 %v14119_v23  ;;  %v9136_v23 = vld [vmem:[%s18015_s19 + $0x178] sm:$0xff] }
0x21d5   :  { %v14145_v3 = vpack.c.bf16 %v9136_v23, %v9135_v49  ;;  %v14228_v49 = vpack.c.bf16 %v11368_v6, %v11367_v19  ;;  %v11352_v23 = vld [vmem:[%s18015_s19 + $0x448] sm:$0xff] }
0x21d7   :  { %14122 = vmatpush3.bf16.msra.mxu1 %v14121_v40 }
0x21d8   :  { %14160 = vmatprep.subr.bf16.mxu1 %v17311_v17 }
0x21da   :  { %9752 = vmatmul.mubr.f32.vlgmr.msra.gmra.mrb[188].mxu1 %v17558_v18 }
0x21db   :  { %14162 = vmatpush1.bf16.msra.mxu1 %v17309_v34  ;;  %9756 = vmatprep.mubr.f32.mxu1 %v17570_v57 }
0x21dc   :  { %14164 = vmatprep.subr.bf16.mxu1 %v17319_v27 }
0x21de   :  { %9757 = vmatmul.mubr.f32.gmra.mrb[190].mxu1 %v17566_v21 }
0x21df   :  { %14166 = vmatpush1.bf16.msra.mxu1 %v17317_v25  ;;  %9761 = vmatprep.mubr.f32.mxu1 %v17578_v29  ;;  %v9888_v25 = vld [vmem:[#allocation37 + $0x70] sm:$0xff] }
0x21e0   :  { %14168 = vmatprep.subr.bf16.mxu1 %v17327_v38  ;;  %v17626_v38 = vld [vmem:[#allocation37 + $0x78] sm:$0xff]  ;;  %v9122_v29 = vld [vmem:[%s18015_s19 + $0x108] sm:$0xff] }
0x21e2   :  { %9762 = vmatmul.mubr.f32.gmra.mrb[192].mxu1 %v17574_v22  ;;  %v9121_v22 = vld [vmem:[%s18015_s19 + $0x100] sm:$0xff] }
0x21e3   :  { %14170 = vmatpush1.bf16.msra.mxu1 %v17325_v35  ;;  %9766 = vmatprep.mubr.f32.mxu1 %v8961_v54  ;;  %v14124_v24 = vpack.c.bf16 %v9122_v29, %v9121_v22  ;;  %v9143_v22 = vld [vmem:[%s18015_s19 + $0x1b0] sm:$0xff]  ;;  %v9144_v29 = vld [vmem:[%s18015_s19 + $0x1b8] sm:$0xff] }
0x21e4   :  { %9928 = vmatprep.subr.mxu1 %v17335_v43 }
0x21e6   :  { %9767 = vmatmul.mubr.f32.gmra.mrb[194].mxu1 %v17582_v44 }
0x21e7   :  { %9929 = vmatpush1.msra.mxu1 %v17331_v42  ;;  %9771 = vmatprep.mubr.f32.mxu1 %v8967_v63 }
0x21e8   :  { %14172 = vmatprep.subr.bf16.mxu1 %v17444_v58  ;;  %v17637_v58 = vld [vmem:[#allocation37 + $0x80] sm:$0xff] }
0x21ea   :  { %9772 = vmatmul.mubr.f32.gmra.mrb[196].mxu1 %v8965_v8 }
0x21eb   :  { %9776 = vmatprep.mubr.f32.mxu1 %v8973_v26 }
0x21ee   :  { %9777 = vmatmul.mubr.f32.gmra.mrb[198].mxu1 %v8971_v32 }
0x21ef   :  { %9781 = vmatprep.mubr.f32.mxu1 %v8979_v5  ;;  %v17614_v34 = vpop.f32.mrb[164].mxu0  ;;  %v9138_v5 = vld [vmem:[%s18015_s19 + $0x188] sm:$0xff] }
0x21f0   :  { %v17616_v17 = vpop.f32.mrb[165].mxu0  ;;  %v14148_v40 = vpack.c.bf16 %v9138_v5, %v9137_v45  ;;  %v11370_v45 = vld [vmem:[%s18015_s19 + $0x4d8] sm:$0xff] }
0x21f2   :  { %9782 = vmatmul.mubr.f32.gmra.mrb[200].mxu1 %v8977_v2 }
0x21f3   :  { %9980 = vmatprep.mubr.f32.mxu1 %v15207_v1  ;;  %v17619_v27 = vpop.f32.mrb[166].mxu0 }
0x21f4   :  { %v17621_v35 = vpop.f32.mrb[167].mxu0 }
0x21f6   :  { %11313 = vmatmul.mubr.msk.f32.vlgmr.msra.gmra.mrb[202].mxu1 %vm515_vm1, %v9888_v25 }
0x21f7   :  { %14174 = vmatpush1.bf16.msra.mxu1 %v17442_v4  ;;  %9986 = vmatprep.mubr.f32.mxu1 %v15207_v1  ;;  %v17628_v42 = vpop.f32.mrb[168].mxu0 }
0x21f8   :  { %14176 = vmatprep.subr.bf16.mxu1 %v17450_v30  ;;  %v17631_v43 = vpop.f32.mrb[169].mxu0  ;;  %v17648_v30 = vld [vmem:[#allocation37 + $0x88] sm:$0xff] }
0x21fa   :  { %11314 = vmatmul.mubr.msk.f32.gmra.mrb[204].mxu1 %vm515_vm1, %v17626_v38 }
0x21fb   :  { %14178 = vmatpush1.bf16.msra.mxu1 %v17448_v12  ;;  %9992 = vmatprep.mubr.f32.mxu1 %v15207_v1  ;;  %v17639_v4 = vpop.f32.mrb[170].mxu0 }
0x21fc   :  { %14180 = vmatprep.subr.bf16.mxu1 %v17456_v7  ;;  %v17642_v18 = vpop.f32.mrb[171].mxu0 }
0x21fe   :  { %11315 = vmatmul.mubr.msk.f32.gmra.mrb[206].mxu1 %vm515_vm1, %v17637_v58 }
0x21ff   :  { %14182 = vmatpush1.bf16.msra.mxu1 %v17454_v16  ;;  %9998 = vmatprep.mubr.f32.mxu1 %v15207_v1  ;;  %v17650_v12 = vpop.f32.mrb[172].mxu0  ;;  %v17659_v16 = vld [vmem:[#allocation37 + $0x90] sm:$0xff] }
0x2200   :  { %10035 = vmatprep.subr.mxu1 %v17461_v39  ;;  %v17653_v55 = vpop.f32.mrb[173].mxu0 }
0x2202   :  { %11316 = vmatmul.mubr.msk.f32.gmra.mrb[208].mxu1 %vm515_vm1, %v17648_v30 }
0x2203   :  { %10036 = vmatpush1.msra.mxu1 %v17458_v20  ;;  %10004 = vmatprep.mubr.f32.mxu1 %v15207_v1  ;;  %v17661_v7 = vpop.f32.mrb[174].mxu0  ;;  %v17671_v20 = vld [vmem:[#allocation37 + $0x98] sm:$0xff] }
0x2204   :  { %v17663_v21 = vpop.f32.mrb[175].mxu0  ;;  %14215 = vmatprep.subr.bf16.mxu1 %v15205_v0 }
0x2206   :  { %11317 = vmatmul.mubr.msk.f32.gmra.mrb[210].mxu1 %vm515_vm1, %v17659_v16 }
0x2207   :  { %v17668_v39 = vpop.f32.mrb[176].mxu0  ;;  %10010 = vmatprep.mubr.f32.mxu1 %v15207_v1 }
0x2208   :  { %v17673_v57 = vpop.f32.mrb[177].mxu0 }
0x220a   :  { %11318 = vmatmul.mubr.msk.f32.gmra.mrb[212].mxu1 %vm515_vm1, %v17671_v20 }
0x220b   :  { %v9347_v59 = vpop.f32.mrb[178].mxu0  ;;  %10016 = vmatprep.mubr.f32.mxu1 %v15207_v1 }
0x220c   :  { %v9349_v44 = vpop.f32.mrb[179].mxu0 }
0x220d   :  { %11299 = vmatprep.mubr.msk.f32.mxu0 %vm2311_vm6, %v9349_v44  ;;  %v14157_v44 = vpack.c.bf16 %v9144_v29, %v9143_v22  ;;  %v11356_v29 = vld [vmem:[%s18015_s19 + $0x468] sm:$0xff] }
0x220e   :  { %9631 = vmatmul.mubr.f32.vlgmr.msra.gmra.mrb[192].mxu0 %v9347_v59  ;;  %11319 = vmatmul.mubr.msk.f32.gmra.mrb[214].mxu1 %vm515_vm1, %v17680_v48 }
0x220f   :  { %14125 = vmatpush1.bf16.msra.mxu0 %v14124_v24  ;;  %v9353_v53 = vpop.f32.mrb[180].mxu0  ;;  %10087 = vmatprep.mubr.f32.mxu1 %v15207_v1  ;;  %v11343_v24 = vld [vmem:[%s18015_s19 + $0x400] sm:$0xff] }
0x2210   :  { %v9355_v54 = vpop.f32.mrb[181].mxu0  ;;  %14126 = vmatprep.subr.bf16.mxu0 %v15205_v0 }
0x2211   :  { %11300 = vmatprep.mubr.msk.f32.mxu0 %vm2311_vm6, %v9355_v54  ;;  %v11328_v54 = vld [vmem:[%s18015_s19 + $0x388] sm:$0xff] }
0x2212   :  { %9636 = vmatmul.mubr.f32.gmra.mrb[194].mxu0 %v9353_v53  ;;  %11320 = vmatmul.mubr.msk.f32.vlgmr.msra.gmra.mrb[216].mxu1 %vm515_vm1, %v9888_v25  ;;  %v9140_v25 = vld [vmem:[%s18015_s19 + $0x198] sm:$0xff] }
0x2213   :  { %14128 = vmatpush1.bf16.msra.mxu0 %v14127_v47  ;;  %v9359_v60 = vpop.f32.mrb[182].mxu0  ;;  %10093 = vmatprep.mubr.f32.mxu1 %v15207_v1  ;;  %v11327_v47 = vld [vmem:[%s18015_s19 + $0x380] sm:$0xff] }
0x2214   :  { %v9361_v8 = vpop.f32.mrb[183].mxu0  ;;  %14129 = vmatprep.subr.bf16.mxu0 %v15205_v0 }
0x2215   :  { %11301 = vmatprep.mubr.msk.f32.mxu0 %vm2311_vm6, %v9361_v8  ;;  %v11363_v8 = vld [vmem:[%s18015_s19 + $0x4a0] sm:$0xff] }
0x2216   :  { %9641 = vmatmul.mubr.f32.gmra.mrb[196].mxu0 %v9359_v60  ;;  %11321 = vmatmul.mubr.msk.f32.gmra.mrb[218].mxu1 %vm515_vm1, %v17626_v38  ;;  %v11346_v60 = vld [vmem:[%s18015_s19 + $0x418] sm:$0xff] }
0x2217   :  { %14131 = vmatpush1.bf16.msra.mxu0 %v14130_v61  ;;  %v9365_v15 = vpop.f32.mrb[184].mxu0  ;;  %10099 = vmatprep.mubr.f32.mxu1 %v15207_v1  ;;  %v14185_v61 = vpack.c.bf16 %v11328_v54, %v11327_v47  ;;  %v14187_v13 = vpack.c.bf16 %v11346_v60, %v11345_v36  ;;  %v11375_v47 = vld [vmem:[%s18015_s19 + $0x500] sm:$0xff]  ;;  %v11376_v54 = vld [vmem:[%s18015_s19 + $0x508] sm:$0xff]  ;;  %v11341_v36 = vld [vmem:[%s18015_s19 + $0x3f0] sm:$0xff] }
0x2218   :  { %v9367_v63 = vpop.f32.mrb[185].mxu0  ;;  %14132 = vmatprep.subr.bf16.mxu0 %v15205_v0  ;;  %v11342_v60 = vld [vmem:[%s18015_s19 + $0x3f8] sm:$0xff] }
0x2219   :  { %11302 = vmatprep.mubr.msk.f32.mxu0 %vm2311_vm6, %v9367_v63  ;;  %v14222_v63 = vpack.c.bf16 %v11364_v31, %v11363_v8  ;;  %v11378_v8 = vld [vmem:[%s18015_s19 + $0x518] sm:$0xff] }
0x221a   :  { %9646 = vmatmul.mubr.f32.gmra.mrb[198].mxu0 %v9365_v15  ;;  %11322 = vmatmul.mubr.msk.f32.gmra.mrb[220].mxu1 %vm515_vm1, %v17637_v58  ;;  %v9141_v58 = vld [vmem:[%s18015_s19 + $0x1a0] sm:$0xff]  ;;  %v11329_v15 = vld [vmem:[%s18015_s19 + $0x390] sm:$0xff] }
0x221b   :  { %14134 = vmatpush1.bf16.msra.mxu0 %v14133_v37  ;;  %v9371_v9 = vpop.f32.mrb[186].mxu0  ;;  %10105 = vmatprep.mubr.f32.mxu1 %v15207_v1  ;;  %v11330_v37 = vld [vmem:[%s18015_s19 + $0x398] sm:$0xff] }
0x221c   :  { %v9373_v32 = vpop.f32.mrb[187].mxu0  ;;  %14135 = vmatprep.subr.bf16.mxu0 %v15205_v0 }
0x221d   :  { %11303 = vmatprep.mubr.msk.f32.mxu0 %vm2311_vm6, %v9373_v32  ;;  %v11366_v32 = vld [vmem:[%s18015_s19 + $0x4b8] sm:$0xff] }
0x221e   :  { %9651 = vmatmul.mubr.f32.gmra.mrb[200].mxu0 %v9371_v9  ;;  %11323 = vmatmul.mubr.msk.f32.gmra.mrb[222].mxu1 %vm515_vm1, %v17648_v30  ;;  %v14189_v9 = vpack.c.bf16 %v11330_v37, %v11329_v15  ;;  %v11380_v15 = vld [vmem:[%s18015_s19 + $0x528] sm:$0xff] }
0x221f   :  { %14137 = vmatpush1.bf16.msra.mxu0 %v14136_v50  ;;  %v9377_v14 = vpop.f32.mrb[188].mxu0  ;;  %10111 = vmatprep.mubr.f32.mxu1 %v15207_v1  ;;  %v11365_v50 = vld [vmem:[%s18015_s19 + $0x4b0] sm:$0xff] }
0x2220   :  { %v9379_v26 = vpop.f32.mrb[189].mxu0  ;;  %14138 = vmatprep.subr.bf16.mxu0 %v15205_v0 }
0x2221   :  { %11304 = vmatprep.mubr.msk.f32.mxu0 %vm2311_vm6, %v9379_v26  ;;  %v11350_v26 = vld [vmem:[%s18015_s19 + $0x438] sm:$0xff] }
0x2222   :  { %9656 = vmatmul.mubr.f32.gmra.mrb[202].mxu0 %v9377_v14  ;;  %11324 = vmatmul.mubr.msk.f32.gmra.mrb[224].mxu1 %vm515_vm1, %v17659_v16  ;;  %v11359_v16 = vld [vmem:[%s18015_s19 + $0x480] sm:$0xff]  ;;  %v11332_v14 = vld [vmem:[%s18015_s19 + $0x3a8] sm:$0xff] }
0x2223   :  { %14140 = vmatpush1.bf16.msra.mxu0 %v14139_v33  ;;  %v9383_v62 = vpop.f32.mrb[190].mxu0  ;;  %10117 = vmatprep.mubr.f32.mxu1 %v15207_v1  ;;  %v14225_v33 = vpack.c.bf16 %v11366_v32, %v11365_v50 }
0x2224   :  { %v9385_v2 = vpop.f32.mrb[191].mxu0  ;;  %14141 = vmatprep.subr.bf16.mxu0 %v15205_v0 }
0x2225   :  { %11305 = vmatprep.mubr.msk.f32.mxu0 %vm2311_vm6, %v9385_v2  ;;  %v11334_v2 = vld [vmem:[%s18015_s19 + $0x3b8] sm:$0xff] }
0x2226   :  { %9661 = vmatmul.mubr.f32.gmra.mrb[204].mxu0 %v9383_v62  ;;  %11325 = vmatmul.mubr.msk.f32.gmra.mrb[226].mxu1 %vm515_vm1, %v17671_v20  ;;  %v11360_v20 = vld [vmem:[%s18015_s19 + $0x488] sm:$0xff] }
0x2227   :  { %14143 = vmatpush1.bf16.msra.mxu0 %v14142_v41  ;;  %10123 = vmatprep.mubr.f32.mxu1 %v15207_v1  ;;  %v9139_v1 = vld [vmem:[%s18015_s19 + $0x190] sm:$0xff]  ;;  %v14216_v59 = vpack.c.bf16 %v11360_v20, %v11359_v16  ;;  %v11338_v20 = vld [vmem:[%s18015_s19 + $0x3d8] sm:$0xff] }
0x2228   :  { %14144 = vmatprep.subr.bf16.mxu0 %v15205_v0  ;;  %11306 = vmatprep.mubr.msk.f32.mxu0 %vm2311_vm6, %v17616_v17  ;;  %v14151_v38 = vpack.c.bf16 %v9140_v25, %v9139_v1  ;;  %v9142_v17 = vld [vmem:[%s18015_s19 + $0x1a8] sm:$0xff]  ;;  %v11333_v41 = vld [vmem:[%s18015_s19 + $0x3b0] sm:$0xff] }
0x2229   :  { %v14154_v30 = vpack.c.bf16 %v9142_v17, %v9141_v58  ;;  %14217 = vmatpush1.bf16.msra.mxu1 %v14216_v59  ;;  %v11336_v1 = vld [vmem:[%s18015_s19 + $0x3c8] sm:$0xff]  ;;  %v11371_v58 = vld [vmem:[%s18015_s19 + $0x4e0] sm:$0xff]  ;;  %v11337_v16 = vld [vmem:[%s18015_s19 + $0x3d0] sm:$0xff] }
0x222a   :  { %11326 = vmatmul.mubr.msk.f32.gmra.mrb[228].mxu1 %vm515_vm1, %v17680_v48  ;;  %v11344_v48 = vld [vmem:[%s18015_s19 + $0x408] sm:$0xff]  ;;  %14218 = vmatprep.subr.bf16.mxu1 %v15205_v0  ;;  %v11373_v59 = vld [vmem:[%s18015_s19 + $0x4f0] sm:$0xff] }
0x222b   :  { %14146 = vmatpush1.bf16.msra.mxu0 %v14145_v3  ;;  %v14183_v53 = vpack.c.bf16 %v11344_v48, %v11343_v24  ;;  %v11369_v3 = vld [vmem:[%s18015_s19 + $0x4d0] sm:$0xff]  ;;  %v11372_v17 = vld [vmem:[%s18015_s19 + $0x4e8] sm:$0xff]  ;;  %v11374_v24 = vld [vmem:[%s18015_s19 + $0x4f8] sm:$0xff] }
0x222c   :  { %14147 = vmatprep.subr.bf16.mxu0 %v15205_v0  ;;  %v14231_v25 = vpack.c.bf16 %v11370_v45, %v11369_v3  ;;  %v14234_v22 = vpack.c.bf16 %v11372_v17, %v11371_v58  ;;  %v14237_v52 = vpack.c.bf16 %v11374_v24, %v11373_v59 }
0x222d   :  { %14220 = vmatpush1.bf16.msra.mxu1 %v14219_v11 }
0x222e   :  { %14221 = vmatprep.subr.bf16.mxu1 %v15205_v0 }
0x222f   :  { %14149 = vmatpush1.bf16.msra.mxu0 %v14148_v40  ;;  %v11335_v40 = vld [vmem:[%s18015_s19 + $0x3c0] sm:$0xff] }
0x2230   :  { %14150 = vmatprep.subr.bf16.mxu0 %v15205_v0 }
0x2231   :  { %14223 = vmatpush1.bf16.msra.mxu1 %v14222_v63  ;;  %v11382_v63 = vld [vmem:[%s18015_s19 + $0x538] sm:$0xff] }
0x2232   :  { %14224 = vmatprep.subr.bf16.mxu1 %v15205_v0 }
0x2233   :  { %14152 = vmatpush1.bf16.msra.mxu0 %v14151_v38  ;;  %v11354_v38 = vld [vmem:[%s18015_s19 + $0x458] sm:$0xff] }
0x2234   :  { %14153 = vmatprep.subr.bf16.mxu0 %v15205_v0 }
0x2235   :  { %14226 = vmatpush1.bf16.msra.mxu1 %v14225_v33 }
0x2236   :  { %14227 = vmatprep.subr.bf16.mxu1 %v15205_v0 }
0x2237   :  { %14155 = vmatpush1.bf16.msra.mxu0 %v14154_v30 }
0x2238   :  { %14156 = vmatprep.subr.bf16.mxu0 %v15205_v0 }
0x2239   :  { %14229 = vmatpush1.bf16.msra.mxu1 %v14228_v49 }
0x223a   :  { %14230 = vmatprep.subr.bf16.mxu1 %v15205_v0 }
0x223b   :  { %14158 = vmatpush1.bf16.msra.mxu0 %v14157_v44  ;;  %v11339_v44 = vld [vmem:[%s18015_s19 + $0x3e0] sm:$0xff] }
0x223c   :  { %14184 = vmatprep.subr.bf16.mxu0 %v14183_v53  ;;  %v11358_v53 = vld [vmem:[%s18015_s19 + $0x478] sm:$0xff] }
0x223d   :  { %14232 = vmatpush1.bf16.msra.mxu1 %v14231_v25 }
0x223e   :  { %9852 = vmatmul.mubr.f32.vlgmr.msra.gmra.mrb[206].mxu0 %v17614_v34  ;;  %v11349_v34 = vld [vmem:[%s18015_s19 + $0x430] sm:$0xff]  ;;  %14233 = vmatprep.subr.bf16.mxu1 %v15205_v0 }
0x223f   :  { %11307 = vmatprep.mubr.msk.f32.mxu0 %vm2311_vm6, %v17621_v35  ;;  %14186 = vmatpush3.bf16.msra.mxu0 %v14185_v61  ;;  %v14193_v35 = vpack.c.bf16 %v11332_v14, %v11331_v10  ;;  %v14195_v62 = vpack.c.bf16 %v11350_v26, %v11349_v34  ;;  %v14240_v61 = vpack.c.bf16 %v11376_v54, %v11375_v47 }
0x2240   :  { %14188 = vmatprep.subr.bf16.mxu0 %v14187_v13  ;;  %v11379_v13 = vld [vmem:[%s18015_s19 + $0x520] sm:$0xff] }
0x2241   :  { %14235 = vmatpush1.bf16.msra.mxu1 %v14234_v22  ;;  %v14246_v37 = vpack.c.bf16 %v11380_v15, %v11379_v13 }
0x2242   :  { %9857 = vmatmul.mubr.f32.gmra.mrb[208].mxu0 %v17619_v27  ;;  %v11351_v27 = vld [vmem:[%s18015_s19 + $0x440] sm:$0xff]  ;;  %14236 = vmatprep.subr.bf16.mxu1 %v15205_v0 }
0x2243   :  { %11308 = vmatprep.mubr.msk.f32.mxu0 %vm2311_vm6, %v17631_v43  ;;  %14190 = vmatpush3.bf16.msra.mxu0 %v14189_v9  ;;  %v14197_v43 = vpack.c.bf16 %v11334_v2, %v11333_v41  ;;  %v14199_v5 = vpack.c.bf16 %v11352_v23, %v11351_v27 }
0x2244   :  { %14192 = vmatprep.subr.bf16.mxu0 %v14191_v46 }
0x2245   :  { %14238 = vmatpush1.bf16.msra.mxu1 %v14237_v52 }
0x2246   :  { %9862 = vmatmul.mubr.f32.gmra.mrb[210].mxu0 %v17628_v42  ;;  %v11353_v42 = vld [vmem:[%s18015_s19 + $0x450] sm:$0xff]  ;;  %14239 = vmatprep.subr.bf16.mxu1 %v15205_v0 }
0x2247   :  { %11309 = vmatprep.mubr.msk.f32.mxu0 %vm2311_vm6, %v17642_v18  ;;  %14194 = vmatpush3.bf16.msra.mxu0 %v14193_v35  ;;  %v14201_v18 = vpack.c.bf16 %v11336_v1, %v11335_v40  ;;  %v14203_v30 = vpack.c.bf16 %v11354_v38, %v11353_v42 }
0x2248   :  { %14196 = vmatprep.subr.bf16.mxu0 %v14195_v62 }
0x2249   :  { %14241 = vmatpush1.bf16.msra.mxu1 %v14240_v61 }
0x224a   :  { %9867 = vmatmul.mubr.f32.gmra.mrb[212].mxu0 %v17639_v4  ;;  %v11355_v4 = vld [vmem:[%s18015_s19 + $0x460] sm:$0xff]  ;;  %14242 = vmatprep.subr.bf16.mxu1 %v15205_v0 }
0x224b   :  { %11310 = vmatprep.mubr.msk.f32.mxu0 %vm2311_vm6, %v17653_v55  ;;  %14198 = vmatpush3.bf16.msra.mxu0 %v14197_v43  ;;  %v14205_v55 = vpack.c.bf16 %v11338_v20, %v11337_v16  ;;  %v14207_v48 = vpack.c.bf16 %v11356_v29, %v11355_v4 }
0x224c   :  { %14200 = vmatprep.subr.bf16.mxu0 %v14199_v5 }
0x224e   :  { %9872 = vmatmul.mubr.f32.gmra.mrb[214].mxu0 %v17650_v12  ;;  %v11357_v12 = vld [vmem:[%s18015_s19 + $0x470] sm:$0xff] }
0x224f   :  { %11311 = vmatprep.mubr.msk.f32.mxu0 %vm2311_vm6, %v17663_v21  ;;  %14202 = vmatpush3.bf16.msra.mxu0 %v14201_v18  ;;  %v14209_v21 = vpack.c.bf16 %v11340_v28, %v11339_v44  ;;  %v14211_v11 = vpack.c.bf16 %v11358_v53, %v11357_v12 }
0x2250   :  { %14204 = vmatprep.subr.bf16.mxu0 %v14203_v30 }
0x2252   :  { %9877 = vmatmul.mubr.f32.gmra.mrb[216].mxu0 %v17661_v7  ;;  %v14213_v7 = vpack.c.bf16 %v11342_v60, %v11341_v36 }
0x2253   :  { %11312 = vmatprep.mubr.msk.f32.mxu0 %vm2311_vm6, %v17673_v57  ;;  %14206 = vmatpush3.bf16.msra.mxu0 %v14205_v55  ;;  %v11377_v57 = vld [vmem:[%s18015_s19 + $0x510] sm:$0xff] }
0x2254   :  { %14208 = vmatprep.subr.bf16.mxu0 %v14207_v48  ;;  %v14243_v31 = vpack.c.bf16 %v11378_v8, %v11377_v57 }
0x2256   :  { %9882 = vmatmul.mubr.f32.gmra.mrb[218].mxu0 %v17668_v39  ;;  %14244 = vmatpush1.bf16.msra.mxu1 %v14243_v31  ;;  %v11381_v39 = vld [vmem:[%s18015_s19 + $0x530] sm:$0xff] }
0x2257   :  { %14210 = vmatpush3.bf16.msra.mxu0 %v14209_v21  ;;  %14245 = vmatprep.subr.bf16.mxu1 %v15205_v0  ;;  %v14249_v51 = vpack.c.bf16 %v11382_v63, %v11381_v39 }
0x2258   :  { %14212 = vmatprep.subr.bf16.mxu0 %v14211_v11 }
0x225a   :  { %14247 = vmatpush1.bf16.msra.mxu1 %v14246_v37 }
0x225b   :  { %14214 = vmatpush3.bf16.msra.mxu0 %v14213_v7  ;;  %14248 = vmatprep.subr.bf16.mxu1 %v15205_v0 }
0x225e   :  { %14250 = vmatpush1.bf16.msra.mxu1 %v14249_v51 }
0x228d   :  { %v11832_v56 = vpop.f32.mrb[174].mxu1 }
0x228e   :  { %v11833_v9 = vpop.f32.mrb[175].mxu1 }
0x228f   :  { %v17832_v50 = vadd.f32 %v11833_v9, %v11832_v56 }
0x2291   :  { %v11835_v32 = vpop.f32.mrb[176].mxu1 }
0x2292   :  { %v11836_v46 = vpop.f32.mrb[177].mxu1 }
0x2293   :  { %v17834_v10 = vadd.f32 %v11836_v46, %v11835_v32 }
0x2295   :  { %v11838_v14 = vpop.f32.mrb[178].mxu1 }
0x2296   :  { %v11839_v33 = vpop.f32.mrb[179].mxu1 }
0x2297   :  { %v17836_v34 = vadd.f32 %v11839_v33, %v11838_v14 }
0x2299   :  { %v11841_v26 = vpop.f32.mrb[180].mxu1 }
0x229a   :  { %v11842_v35 = vpop.f32.mrb[181].mxu1 }
0x229b   :  { %v17838_v19 = vadd.f32 %v11842_v35, %v11841_v26 }
0x229d   :  { %v11844_v0 = vpop.f32.mrb[182].mxu1 }
0x229e   :  { %v11845_v6 = vpop.f32.mrb[183].mxu1 }
0x229f   :  { %v17840_v62 = vadd.f32 %v11845_v6, %v11844_v0 }
0x22a1   :  { %v11847_v41 = vpop.f32.mrb[184].mxu1 }
0x22a2   :  { %v11848_v2 = vpop.f32.mrb[185].mxu1 }
0x22a3   :  { %v17842_v49 = vadd.f32 %v11848_v2, %v11847_v41 }
0x22a5   :  { %v11850_v27 = vpop.f32.mrb[186].mxu1 }
0x22a6   :  { %v11851_v23 = vpop.f32.mrb[187].mxu1 }
0x22a7   :  { %v17844_v43 = vadd.f32 %v11851_v23, %v11850_v27 }
0x22ad   :  { %v11885_v3 = vpop.f32.mrb[188].mxu1 }
0x22ae   :  { %v11886_v45 = vpop.f32.mrb[189].mxu1 }
0x22af   :  { %v11887_v5 = vadd.f32 %v11886_v45, %v11885_v3 }
0x22b1   :  { %v11888_v40 = vpop.f32.mrb[190].mxu1 }
0x22b2   :  { %v11889_v1 = vpop.f32.mrb[191].mxu1 }
0x22b3   :  { %v11890_v25 = vadd.f32 %v11889_v1, %v11888_v40 }
0x22b5   :  { %v11891_v42 = vpop.f32.mrb[192].mxu1 }
0x22b6   :  { %v11892_v38 = vpop.f32.mrb[193].mxu1 }
0x22b7   :  { %v11893_v18 = vadd.f32 %v11892_v38, %v11891_v42 }
0x22b9   :  { %v11894_v58 = vpop.f32.mrb[194].mxu1 }
0x22ba   :  { %v11895_v17 = vpop.f32.mrb[195].mxu1 }
0x22bb   :  { %v17846_v30 = vadd.f32 %v11895_v17, %v11894_v58 }
0x22bd   :  { %v11897_v16 = vpop.f32.mrb[196].mxu1 }
0x22be   :  { %v11898_v20 = vpop.f32.mrb[197].mxu1 }
0x22bf   :  { %v17848_v22 = vadd.f32 %v11898_v20, %v11897_v16 }
0x22c1   :  { %v11900_v4 = vpop.f32.mrb[198].mxu1 }
0x22c2   :  { %v11901_v29 = vpop.f32.mrb[199].mxu1 }
0x22c3   :  { %v17850_v55 = vadd.f32 %v11901_v29, %v11900_v4 }
0x22c5   :  { %v11903_v59 = vpop.f32.mrb[200].mxu1 }
0x22c6   :  { %v11904_v24 = vpop.f32.mrb[201].mxu1 }
0x22c7   :  { %v17852_v48 = vadd.f32 %v11904_v24, %v11903_v59 }
0x22c9   :  { %v9982_v44 = vpop.f32.mrb[202].mxu1 }
0x22ca   :  { %v9984_v28 = vpop.f32.mrb[203].mxu1 }
0x22cb   :  { %10272 = vmatprep.mubr.f32.mxu0 %v9984_v28 }
0x22cc   :  { %10273 = vmatmul.mubr.f32.vlgmr.msra.gmra.mrb[220].mxu0 %v9982_v44 }
0x22cd   :  { %v9988_v52 = vpop.f32.mrb[204].mxu1 }
0x22ce   :  { %v9990_v12 = vpop.f32.mrb[205].mxu1 }
0x22cf   :  { %10277 = vmatprep.mubr.f32.mxu0 %v9990_v12 }
0x22d0   :  { %10278 = vmatmul.mubr.f32.gmra.mrb[222].mxu0 %v9988_v52 }
0x22d1   :  { %v9994_v53 = vpop.f32.mrb[206].mxu1 }
0x22d2   :  { %v9996_v21 = vpop.f32.mrb[207].mxu1 }
0x22d3   :  { %10282 = vmatprep.mubr.f32.mxu0 %v9996_v21 }
0x22d4   :  { %10283 = vmatmul.mubr.f32.gmra.mrb[224].mxu0 %v9994_v53 }
0x22d5   :  { %v10000_v47 = vpop.f32.mrb[208].mxu1 }
0x22d6   :  { %v10002_v54 = vpop.f32.mrb[209].mxu1 }
0x22d7   :  { %10287 = vmatprep.mubr.f32.mxu0 %v10002_v54 }
0x22d8   :  { %10288 = vmatmul.mubr.f32.gmra.mrb[226].mxu0 %v10000_v47 }
0x22d9   :  { %v10006_v11 = vpop.f32.mrb[210].mxu1 }
0x22da   :  { %v10008_v36 = vpop.f32.mrb[211].mxu1 }
0x22db   :  { %10292 = vmatprep.mubr.f32.mxu0 %v10008_v36 }
0x22dc   :  { %10293 = vmatmul.mubr.f32.gmra.mrb[228].mxu0 %v10006_v11 }
0x22dd   :  { %v10012_v60 = vpop.f32.mrb[212].mxu1 }
0x22de   :  { %v10014_v61 = vpop.f32.mrb[213].mxu1 }
0x22df   :  { %10297 = vmatprep.mubr.f32.mxu0 %v10014_v61 }
0x22e0   :  { %10298 = vmatmul.mubr.f32.gmra.mrb[230].mxu0 %v10012_v60 }
0x22e1   :  { %v9632_v7 = vpop.f32.mrb[192].mxu0  ;;  %v10018_v57 = vpop.f32.mrb[214].mxu1 }
0x22e2   :  { %v9633_v8 = vadd.f32 %v17832_v50, %v9632_v7  ;;  %v9634_v31 = vpop.f32.mrb[193].mxu0  ;;  %v10020_v13 = vpop.f32.mrb[215].mxu1 }
0x22e3   :  { %10302 = vmatprep.mubr.f32.mxu0 %v10020_v13 }
0x22e4   :  { %10303 = vmatmul.mubr.f32.gmra.mrb[232].mxu0 %v10018_v57  ;;  %v9754_v15 = vadd.f32 %v11887_v5, %v9633_v8 }
0x22e5   :  { %v9637_v37 = vpop.f32.mrb[194].mxu0  ;;  %v10089_v39 = vpop.f32.mrb[216].mxu1 }
0x22e6   :  { %v9638_v63 = vadd.f32 %v17834_v10, %v9637_v37  ;;  %v10091_v51 = vpop.f32.mrb[217].mxu1  ;;  %v9639_v56 = vpop.f32.mrb[195].mxu0 }
0x22e7   :  { %11383 = vmatprep.mubr.msk.f32.mxu1 %vm2311_vm6, %v10091_v51 }
0x22e8   :  { %10373 = vmatmul.mubr.f32.vlgmr.msra.gmra.mrb[230].mxu1 %v10089_v39  ;;  %v9759_v9 = vadd.f32 %v11890_v25, %v9638_v63 }
0x22e9   :  { %v9642_v32 = vpop.f32.mrb[196].mxu0  ;;  %v10095_v46 = vpop.f32.mrb[218].mxu1 }
0x22ea   :  { %v9643_v14 = vadd.f32 %v17836_v34, %v9642_v32  ;;  %v10097_v50 = vpop.f32.mrb[219].mxu1  ;;  %v9644_v33 = vpop.f32.mrb[197].mxu0 }
0x22eb   :  { %11384 = vmatprep.mubr.msk.f32.mxu1 %vm2311_vm6, %v10097_v50 }
0x22ec   :  { %10378 = vmatmul.mubr.f32.gmra.mrb[232].mxu1 %v10095_v46  ;;  %v9764_v26 = vadd.f32 %v11893_v18, %v9643_v14 }
0x22ed   :  { %v9647_v35 = vpop.f32.mrb[198].mxu0  ;;  %v10101_v0 = vpop.f32.mrb[220].mxu1 }
0x22ee   :  { %v9648_v10 = vadd.f32 %v17838_v19, %v9647_v35  ;;  %v10103_v6 = vpop.f32.mrb[221].mxu1  ;;  %v9649_v41 = vpop.f32.mrb[199].mxu0 }
0x22ef   :  { %11385 = vmatprep.mubr.msk.f32.mxu1 %vm2311_vm6, %v10103_v6 }
0x22f0   :  { %10383 = vmatmul.mubr.f32.gmra.mrb[234].mxu1 %v10101_v0  ;;  %v9769_v2 = vadd.f32 %v17846_v30, %v9648_v10 }
0x22f1   :  { %v9652_v27 = vpop.f32.mrb[200].mxu0  ;;  %v10107_v23 = vpop.f32.mrb[222].mxu1 }
0x22f2   :  { %v9653_v34 = vadd.f32 %v17840_v62, %v9652_v27  ;;  %v10109_v3 = vpop.f32.mrb[223].mxu1  ;;  %v9654_v45 = vpop.f32.mrb[201].mxu0 }
0x22f3   :  { %11386 = vmatprep.mubr.msk.f32.mxu1 %vm2311_vm6, %v10109_v3 }
0x22f4   :  { %10388 = vmatmul.mubr.f32.gmra.mrb[236].mxu1 %v10107_v23  ;;  %v9774_v5 = vadd.f32 %v17848_v22, %v9653_v34 }
0x22f5   :  { %v9657_v40 = vpop.f32.mrb[202].mxu0  ;;  %v10113_v19 = vpop.f32.mrb[224].mxu1 }
0x22f6   :  { %v9658_v1 = vadd.f32 %v17842_v49, %v9657_v40  ;;  %v10115_v25 = vpop.f32.mrb[225].mxu1  ;;  %v9659_v42 = vpop.f32.mrb[203].mxu0 }
0x22f7   :  { %11387 = vmatprep.mubr.msk.f32.mxu1 %vm2311_vm6, %v10115_v25 }
0x22f8   :  { %10393 = vmatmul.mubr.f32.gmra.mrb[238].mxu1 %v10113_v19  ;;  %v9779_v38 = vadd.f32 %v17850_v55, %v9658_v1 }
0x22f9   :  { %v9662_v18 = vpop.f32.mrb[204].mxu0  ;;  %v10119_v62 = vpop.f32.mrb[226].mxu1 }
0x22fa   :  { %v9663_v58 = vadd.f32 %v17844_v43, %v9662_v18  ;;  %v10121_v17 = vpop.f32.mrb[227].mxu1  ;;  %v9664_v30 = vpop.f32.mrb[205].mxu0 }
0x22fb   :  { %11388 = vmatprep.mubr.msk.f32.mxu1 %vm2311_vm6, %v10121_v17 }
0x22fc   :  { %10398 = vmatmul.mubr.f32.gmra.mrb[240].mxu1 %v10119_v62  ;;  %v9784_v16 = vadd.f32 %v17852_v48, %v9663_v58 }
0x22fd   :  { %v10125_v20 = vpop.f32.mrb[228].mxu1 }
0x22fe   :  { %v10127_v49 = vpop.f32.mrb[229].mxu1 }
0x22ff   :  { %11389 = vmatprep.mubr.msk.f32.mxu1 %vm2311_vm6, %v10127_v49 }
0x2300   :  { %10403 = vmatmul.mubr.f32.gmra.mrb[242].mxu1 %v10125_v20 }
0x2311   :  { %v9853_v22 = vpop.f32.mrb[206].mxu0 }
0x2312   :  { %v17872_v4 = vadd.f32 %v9853_v22, %v9754_v15  ;;  %v9855_v29 = vpop.f32.mrb[207].mxu0 }
0x2315   :  { %v9858_v55 = vpop.f32.mrb[208].mxu0 }
0x2316   :  { %v17874_v59 = vadd.f32 %v9858_v55, %v9759_v9  ;;  %v9860_v43 = vpop.f32.mrb[209].mxu0 }
0x2319   :  { %v9863_v24 = vpop.f32.mrb[210].mxu0 }
0x231a   :  { %v17876_v44 = vadd.f32 %v9863_v24, %v9764_v26  ;;  %v9865_v28 = vpop.f32.mrb[211].mxu0 }
0x231d   :  { %v9868_v52 = vpop.f32.mrb[212].mxu0 }
0x231e   :  { %v17878_v12 = vadd.f32 %v9868_v52, %v9769_v2  ;;  %v9870_v48 = vpop.f32.mrb[213].mxu0 }
0x2321   :  { %v9873_v53 = vpop.f32.mrb[214].mxu0 }
0x2322   :  { %v17880_v21 = vadd.f32 %v9873_v53, %v9774_v5  ;;  %v9875_v47 = vpop.f32.mrb[215].mxu0 }
0x2325   :  { %v9878_v54 = vpop.f32.mrb[216].mxu0 }
0x2326   :  { %v17882_v11 = vadd.f32 %v9878_v54, %v9779_v38  ;;  %v9880_v36 = vpop.f32.mrb[217].mxu0 }
0x2329   :  { %v9883_v60 = vpop.f32.mrb[218].mxu0 }
0x232a   :  { %v17884_v61 = vadd.f32 %v9883_v60, %v9784_v16  ;;  %v9885_v7 = vpop.f32.mrb[219].mxu0 }
0x232b   :  { %15020 = shalt.err (!%p15017_p0)
}
0x232c   :  { %s15021_s13 = scalar_lea.hbm %s15451_s20, 32 }
0x232d   :  { %p15022_p1 = scmp.ne.s32.totalorder %s15451_s20, %s15021_s13  ;;  %p15025_p2 = scmp.lt.u32.totalorder %s15021_s13, %s15451_s20 }
0x232f   :  { %p15027_p3 = pnand %p15025_p2, %p15022_p1 }
0x2331   :  { %15030 = shalt.err (!%p15027_p3)
}
0x2332   :  { %10503 = dma.vmem_to_hbm [thread:$0]  %s10501_s16, 32, %s15451_s20, [#allocation42]  }
0x2333   :  { %s15210_s12 = smov [#allocation43]   ;;  %s15211_s23 = smov [#allocation44]  }
0x2334   :  { %s10510_s18 = sshll.u32 %s15210_s12, 4  ;;  %s10520_s14 = sshll.u32 %s15211_s23, 4  ;;  %s10511_s18 = int_to_ptr.vmem [resolvable:$true] %s10510_s18  ;;  %s10521_s14 = int_to_ptr.vmem [resolvable:$true] %s10520_s14 }
0x2335   :  { %s15031_s26 = scalar_lea.vmem %s10511_s18, 32  ;;  %p15036_p5 = scmp.lt.s32.totalorder %s10511_s18, %s10511_s18 }
0x2336   :  { %p15032_p4 = scmp.ne.s32.totalorder %s10511_s18, %s15031_s26  ;;  %p15037_p6 = scmp.lt.s32.totalorder %s15031_s26, %s15031_s26 }
0x2338   :  { %p15038_p7 = por %p15037_p6, %p15036_p5 }
0x233a   :  { %p15039_p8 = pnand %p15038_p7, %p15032_p4 }
0x233c   :  { %15042 = shalt.err (!%p15039_p8)
}
0x233d   :  { %s15043_s3 = scalar_lea.hbm %s15456_s6, 32 }
0x233e   :  { %p15044_p9 = scmp.ne.s32.totalorder %s15456_s6, %s15043_s3  ;;  %p15047_p10 = scmp.lt.u32.totalorder %s15043_s3, %s15456_s6 }
0x2340   :  { %p15049_p11 = pnand %p15047_p10, %p15044_p9 }
0x2342   :  { %15052 = shalt.err (!%p15049_p11)
}
0x2343   :  { %10513 = dma.vmem_to_hbm [thread:$0]  %s10511_s18, 32, %s15456_s6, [#allocation42]  }
0x2344   :  { %s15053_s20 = scalar_lea.vmem %s10521_s14, 32  ;;  %p15058_p13 = scmp.lt.s32.totalorder %s10521_s14, %s10521_s14 }
0x2345   :  { %p15054_p12 = scmp.ne.s32.totalorder %s10521_s14, %s15053_s20  ;;  %p15059_p0 = scmp.lt.s32.totalorder %s15053_s20, %s15053_s20 }
0x2347   :  { %p15060_p1 = por %p15059_p0, %p15058_p13 }
0x2349   :  { %p15061_p2 = pnand %p15060_p1, %p15054_p12 }
0x234b   :  { %15064 = shalt.err (!%p15061_p2)
}
0x234c   :  { %s15065_s0 = scalar_lea.hbm %s15461_s29, 32 }
0x234d   :  { %p15066_p3 = scmp.ne.s32.totalorder %s15461_s29, %s15065_s0  ;;  %p15069_p4 = scmp.lt.u32.totalorder %s15065_s0, %s15461_s29 }
0x234f   :  { %p15071_p5 = pnand %p15069_p4, %p15066_p3 }
0x2351   :  { %15074 = shalt.err (!%p15071_p5)
}
0x2352   :  { %10523 = dma.vmem_to_hbm [thread:$0]  %s10521_s14, 32, %s15461_s29, [#allocation45]   ;;  %v11390_v23 = vld [vmem:[#allocation38] ss:$0 sm:$0xff] }
0x2353   :  { %s15212_s29 = smov [#allocation40]  }
0x2354   :  { %s10487_s6 = sshll.u32 %s15212_s29, 4  ;;  %s10488_s6 = int_to_ptr.vmem [resolvable:$true] %s10487_s6 }
0x2355   :  { %s15075_s8 = scalar_lea.vmem %s10488_s6, 896  ;;  %p15080_p7 = scmp.lt.s32.totalorder %s10488_s6, %s10488_s6 }
0x2356   :  { %p15076_p6 = scmp.ne.s32.totalorder %s10488_s6, %s15075_s8  ;;  %p15081_p8 = scmp.lt.s32.totalorder %s15075_s8, %s15075_s8 }
0x2358   :  { %p15082_p9 = por %p15081_p8, %p15080_p7 }
0x235a   :  { %p15083_p10 = pnand %p15082_p9, %p15076_p6 }
0x239f   :  { %v11938_v57 = vpop.f32.mrb[220].mxu0 }
0x23a0   :  { %v11939_v8 = vpop.f32.mrb[221].mxu0 }
0x23a1   :  { %v11940_v31 = vadd.f32 %v11939_v8, %v11938_v57 }
0x23a3   :  { %v11941_v13 = vpop.f32.mrb[222].mxu0 }
0x23a4   :  { %v11942_v15 = vpop.f32.mrb[223].mxu0 }
0x23a5   :  { %v11943_v37 = vadd.f32 %v11942_v15, %v11941_v13 }
0x23a7   :  { %v11944_v39 = vpop.f32.mrb[224].mxu0 }
0x23a8   :  { %v11945_v63 = vpop.f32.mrb[225].mxu0 }
0x23a9   :  { %v11946_v51 = vadd.f32 %v11945_v63, %v11944_v39 }
0x23ab   :  { %v11947_v56 = vpop.f32.mrb[226].mxu0 }
0x23ac   :  { %v11948_v9 = vpop.f32.mrb[227].mxu0 }
0x23ad   :  { %v11949_v32 = vadd.f32 %v11948_v9, %v11947_v56 }
0x23af   :  { %v11950_v46 = vpop.f32.mrb[228].mxu0 }
0x23b0   :  { %v11951_v14 = vpop.f32.mrb[229].mxu0 }
0x23b1   :  { %v11952_v50 = vadd.f32 %v11951_v14, %v11950_v46 }
0x23b3   :  { %v11953_v33 = vpop.f32.mrb[230].mxu0 }
0x23b4   :  { %v11954_v26 = vpop.f32.mrb[231].mxu0 }
0x23b5   :  { %v11955_v35 = vadd.f32 %v11954_v26, %v11953_v33 }
0x23b7   :  { %v11956_v0 = vpop.f32.mrb[232].mxu0 }
0x23b8   :  { %v11957_v10 = vpop.f32.mrb[233].mxu0 }
0x23b9   :  { %v11958_v6 = vadd.f32 %v11957_v10, %v11956_v0 }
0x23bb   :  { %v10374_v41 = vpop.f32.mrb[230].mxu1 }
0x23bc   :  { %v10375_v2 = vadd.f32 %v11940_v31, %v10374_v41  ;;  %v10376_v27 = vpop.f32.mrb[231].mxu1 }
0x23be   :  { %v10408_v34 = vadd.f32 %v10375_v2, %v17872_v4 }
0x23bf   :  { %v10379_v3 = vpop.f32.mrb[232].mxu1 }
0x23c0   :  { %v10422_v45 = vadd.f32 %v11390_v23, %v10408_v34  ;;  %v10380_v5 = vadd.f32 %v11943_v37, %v10379_v3  ;;  %v10381_v40 = vpop.f32.mrb[233].mxu1 }
0x23c2   :  { %v11391_v19 = vmul.f32 -1.442695, %v10422_v45  ;;  %v10409_v1 = vadd.f32 %v10380_v5, %v17874_v59 }
0x23c3   :  { %v10384_v25 = vpop.f32.mrb[234].mxu1 }
0x23c4   :  { %14453 = vpow2.f32 %v11391_v19  ;;  %v10423_v42 = vadd.f32 %v11390_v23, %v10409_v1  ;;  %v10385_v38 = vadd.f32 %v11946_v51, %v10384_v25  ;;  %v10386_v18 = vpop.f32.mrb[235].mxu1 }
0x23c6   :  { %v11392_v62 = vmul.f32 -1.442695, %v10423_v42  ;;  %v10410_v58 = vadd.f32 %v10385_v38, %v17876_v44 }
0x23c7   :  { %v10389_v17 = vpop.f32.mrb[236].mxu1 }
0x23c8   :  { %14455 = vpow2.f32 %v11392_v62  ;;  %v10424_v30 = vadd.f32 %v11390_v23, %v10410_v58  ;;  %v10390_v16 = vadd.f32 %v11949_v32, %v10389_v17  ;;  %v10391_v20 = vpop.f32.mrb[237].mxu1 }
0x23ca   :  { %v11393_v49 = vmul.f32 -1.442695, %v10424_v30  ;;  %v10411_v22 = vadd.f32 %v10390_v16, %v17878_v12 }
0x23cb   :  { %v10394_v4 = vpop.f32.mrb[238].mxu1 }
0x23cc   :  { %14457 = vpow2.f32 %v11393_v49  ;;  %v10425_v29 = vadd.f32 %v11390_v23, %v10411_v22  ;;  %v10395_v55 = vadd.f32 %v11952_v50, %v10394_v4  ;;  %v10396_v59 = vpop.f32.mrb[239].mxu1 }
0x23ce   :  { %v14454_v43 = vpop.eup %14453  ;;  %v11394_v24 = vmul.f32 -1.442695, %v10425_v29  ;;  %v10412_v28 = vadd.f32 %v10395_v55, %v17880_v21 }
0x23cf   :  { %v10450_v52 = vadd.f32 1.0, %v14454_v43  ;;  %v10399_v48 = vpop.f32.mrb[240].mxu1 }
0x23d0   :  { %14459 = vpow2.f32 %v11394_v24  ;;  %v10426_v44 = vadd.f32 %v11390_v23, %v10412_v28  ;;  %v10400_v53 = vadd.f32 %v11955_v35, %v10399_v48  ;;  %v10401_v47 = vpop.f32.mrb[241].mxu1 }
0x23d1   :  { %14461 = vrcp.f32 %v10450_v52 }
0x23d2   :  { %v14456_v54 = vpop.eup %14455  ;;  %v11395_v36 = vmul.f32 -1.442695, %v10426_v44  ;;  %v10413_v12 = vadd.f32 %v10400_v53, %v17882_v11 }
0x23d3   :  { %v10451_v60 = vadd.f32 1.0, %v14456_v54  ;;  %v10404_v7 = vpop.f32.mrb[242].mxu1 }
0x23d4   :  { %14463 = vpow2.f32 %v11395_v36  ;;  %v10427_v57 = vadd.f32 %v11390_v23, %v10413_v12  ;;  %v10405_v8 = vadd.f32 %v11958_v6, %v10404_v7  ;;  %v10406_v31 = vpop.f32.mrb[243].mxu1 }
0x23d5   :  { %14465 = vrcp.f32 %v10451_v60 }
0x23d6   :  { %v14458_v13 = vpop.eup %14457  ;;  %v11396_v21 = vmul.f32 -1.442695, %v10427_v57  ;;  %v10414_v15 = vadd.f32 %v10405_v8, %v17884_v61 }
0x23d7   :  { %v10452_v37 = vadd.f32 1.0, %v14458_v13 }
0x23d8   :  { %14467 = vpow2.f32 %v11396_v21  ;;  %v10428_v39 = vadd.f32 %v11390_v23, %v10414_v15 }
0x23d9   :  { %14469 = vrcp.f32 %v10452_v37 }
0x23da   :  { %v14460_v63 = vpop.eup %14459  ;;  %v11397_v51 = vmul.f32 -1.442695, %v10428_v39 }
0x23db   :  { %v14462_v56 = vpop.eup %14461  ;;  %v10453_v9 = vadd.f32 1.0, %v14460_v63 }
0x23dc   :  { %10471 = vst.msk [vmem:[#allocation40] sm:$0xff] %vm799_vm5, %v14462_v56  ;;  %14471 = vpow2.f32 %v11397_v51 }
0x23dd   :  { %14473 = vrcp.f32 %v10453_v9 }
0x23de   :  { %v14464_v11 = vpop.eup %14463 }
0x23df   :  { %v14466_v32 = vpop.eup %14465  ;;  %v10454_v46 = vadd.f32 1.0, %v14464_v11 }
0x23e0   :  { %10472 = vst.msk [vmem:[#allocation40 + $0x8] sm:$0xff] %vm799_vm5, %v14466_v32 }
0x23e1   :  { %14475 = vrcp.f32 %v10454_v46 }
0x23e2   :  { %v14468_v14 = vpop.eup %14467 }
0x23e3   :  { %v14470_v61 = vpop.eup %14469  ;;  %v10455_v50 = vadd.f32 1.0, %v14468_v14 }
0x23e4   :  { %10473 = vst.msk [vmem:[#allocation40 + $0x10] sm:$0xff] %vm799_vm5, %v14470_v61 }
0x23e5   :  { %14477 = vrcp.f32 %v10455_v50 }
0x23e6   :  { %v14472_v33 = vpop.eup %14471 }
0x23e7   :  { %v14474_v26 = vpop.eup %14473  ;;  %v10456_v35 = vadd.f32 1.0, %v14472_v33 }
0x23e8   :  { %10474 = vst.msk [vmem:[#allocation40 + $0x18] sm:$0xff] %vm799_vm5, %v14474_v26 }
0x23e9   :  { %14479 = vrcp.f32 %v10456_v35 }
0x23eb   :  { %v14476_v0 = vpop.eup %14475 }
0x23ec   :  { %10475 = vst.msk [vmem:[#allocation40 + $0x20] sm:$0xff] %vm799_vm5, %v14476_v0 }
0x23ef   :  { %v14478_v10 = vpop.eup %14477 }
0x23f0   :  { %10476 = vst.msk [vmem:[#allocation40 + $0x28] sm:$0xff] %vm799_vm5, %v14478_v10 }
0x23f3   :  { %v14480_v6 = vpop.eup %14479 }
0x23f4   :  { %10477 = vst.msk [vmem:[#allocation40 + $0x30] sm:$0xff] %vm799_vm5, %v14480_v6 }
0x23f5   :  { %15086 = shalt.err (!%p15083_p10)
}
0x23f6   :  { %s15087_s28 = scalar_lea.hbm %s15446_s24, 896 }
0x23f7   :  { %p15088_p11 = scmp.ne.s32.totalorder %s15446_s24, %s15087_s28  ;;  %p15091_p12 = scmp.lt.u32.totalorder %s15087_s28, %s15446_s24 }
0x23f9   :  { %p15093_p13 = pnand %p15091_p12, %p15088_p11 }
0x23fb   :  { %15096 = shalt.err (!%p15093_p13)
}
0x23fc   :  { %10493 = dma.vmem_to_hbm [thread:$0]  %s10488_s6, 896, %s15446_s24, [#allocation4], %s15180_s22, %s15180_s22, %s15181_s9  }
0x23fd   :  { %15123 = dma.done.wait [#allocation4], 896  }
0x23fe   :  { %15124 = vsyncadd [#allocation4], 4294966400 }
0x23ff   :  { %15125 = dma.done.wait [#allocation42], 64  }
0x2400   :  { %15126 = vsyncadd [#allocation42], 4294967232 }
0x2401   :  { %15127 = dma.done.wait [#allocation45], 32  }
0x2402   :  { %15128 = vsyncadd [#allocation45], 4294967264 }
0x2403   :  { %10536 = vsyncpa [#allocation3], 1 }
0x2404   :  { %10537 = vsyncpa [#allocation6], 1 }
0x2405   :  { %10538 = vsyncpa [#allocation9], 1 }
0x2406   :  { %10539 = vsyncpa [#allocation12], 1 }
0x2407   :  { %10540 = vsyncpa [#allocation15], 1 }
0x2408   :  { %10541 = vsyncpa [#allocation18], 1 }
0x2409   :  { %10542 = vsyncpa [#allocation21], 1 }
0x240a   :  { %10543 = vsyncpa [#allocation24], 1 }
0x240b   :  { %10544 = vsyncpa [#allocation27], 1 }
0x240c   :  { %10545 = vsyncpa [#allocation30], 1 }
0x240d   :  { %10546 = vsyncpa [#allocation33], 1 }
0x240e   :  { %10547 = vsyncpa [#allocation36], 1 }
0x240f   :  { %10548 = vsyncpa [#allocation39], 1 }
0x2410   :  { %10549 = vsyncpa [#allocation4], 1 }
0x2411   :  { %10550 = vsyncpa [#allocation42], 1 }
0x2412   :  { %10551 = vsyncpa [#allocation45], 1 }

</bundles_post_ra>
